<compile_context>
chip_gen: v7x
topology: tpu7x:2x2x1
jax: 0.10.0
libtpu: 0.0.40
codegen_flags: <defaults>
</compile_context>

<pallas_src>
import functools

import jax
import jax.numpy as jnp
from jax import lax
from jax.experimental import pallas as pl
from jax.experimental.pallas import tpu as pltpu

TEMPERATURE = 4.0
ALPHA = 0.5
BETA = 1.0
_COS_EPS = 1e-8                      # F.cosine_similarity default eps (per-norm clamp)
_COS_EPS_SQ = _COS_EPS * _COS_EPS


def _cdiv(a, b):
    return -(-a // b)


@functools.lru_cache(maxsize=None)
def _vmem_limit_bytes():
    """Per-generation scoped-VMEM limit: half of physical, clamped to [32, 64] MiB."""
    cap = 128 * 1024 * 1024
    try:
        info = pltpu.get_tpu_info()
        cap = int(getattr(info, "vmem_capacity_bytes", cap))
    except Exception:
        pass
    return max(32 * 1024 * 1024, min(cap // 2, 64 * 1024 * 1024))


def _params(dims):
    return pltpu.CompilerParams(dimension_semantics=dims,
                                vmem_limit_bytes=_vmem_limit_bytes())


# ----------------------------------------------------------------------------
# in-kernel helpers
# ----------------------------------------------------------------------------
def _row_cosine(dot, ss, tt):
    """Per-row cosine from dot products and squared norms (EUP rsqrt).

    Equivalent to dot / (max(|s|, eps) * max(|t|, eps)) == PyTorch's clamp."""
    denom_sq = jnp.maximum(ss, _COS_EPS_SQ) * jnp.maximum(tt, _COS_EPS_SQ)
    return dot * lax.rsqrt(denom_sq)


# ----------------------------------------------------------------------------
# Kernel 1: KD term (resident logits, exact softmax, per-row KL sums out)
# ----------------------------------------------------------------------------
def _kd_kernel(s_ref, t_ref, o_ref, *, temperature):
    s = s_ref[...].astype(jnp.float32) / temperature
    t = t_ref[...].astype(jnp.float32) / temperature

    s = s - jnp.max(s, axis=-1, keepdims=True)
    log_p_s = s - jnp.log(jnp.sum(jnp.exp(s), axis=-1, keepdims=True))

    t = t - jnp.max(t, axis=-1, keepdims=True)
    log_p_t = t - jnp.log(jnp.sum(jnp.exp(t), axis=-1, keepdims=True))
    p_t = jnp.exp(log_p_t)                        # exact (no approx reciprocal)

    o_ref[...] = jnp.sum(p_t * (log_p_t - log_p_s), axis=-1, keepdims=True)


def kd_loss(student_logits, teacher_logits, temperature):
    batch = student_logits.shape[0]
    rows = pl.pallas_call(
        functools.partial(_kd_kernel, temperature=float(temperature)),
        out_shape=jax.ShapeDtypeStruct((batch, 1), jnp.float32),
        in_specs=[pl.BlockSpec(memory_space=pltpu.MemorySpace.VMEM)] * 2,
        out_specs=pl.BlockSpec(memory_space=pltpu.MemorySpace.VMEM),
        compiler_params=pltpu.CompilerParams(vmem_limit_bytes=_vmem_limit_bytes()),
    )(student_logits, teacher_logits)
    # KLDiv(reduction='batchmean') * T^2  ==  mean(per-row sums) * T^2
    return jnp.mean(rows) * (temperature * temperature)


# ----------------------------------------------------------------------------
# Kernel 2: same-width cosine term, streamed over D chunks (masked ragged tail)
# ----------------------------------------------------------------------------
def _cos_kernel(fs_ref, ft_ref, o_ref, dot_acc, ss_acc, tt_acc,
                *, d_total, chunk, mask_tail):
    k = pl.program_id(0)
    last_k = pl.num_programs(0) - 1

    @pl.when(k == 0)
    def _():
        dot_acc[...] = jnp.zeros_like(dot_acc)
        ss_acc[...] = jnp.zeros_like(ss_acc)
        tt_acc[...] = jnp.zeros_like(tt_acc)

    fs = fs_ref[...].astype(jnp.float32)           # (B, chunk)
    ft = ft_ref[...].astype(jnp.float32)           # (B, chunk)
    if mask_tail:
        col = lax.broadcasted_iota(jnp.int32, fs.shape, 1) + k * chunk
        valid = col < d_total
        fs = jnp.where(valid, fs, 0.0)
        ft = jnp.where(valid, ft, 0.0)

    # Each streamed chunk feeds all three reductions (one HBM read per element).
    dot_acc[...] += jnp.sum(fs * ft, axis=-1, keepdims=True)
    ss_acc[...] += jnp.sum(fs * fs, axis=-1, keepdims=True)
    tt_acc[...] += jnp.sum(ft * ft, axis=-1, keepdims=True)

    @pl.when(k == last_k)
    def _():
        o_ref[...] = _row_cosine(dot_acc[...], ss_acc[...], tt_acc[...])


def _cos_tiling(d, batch, elt_bytes):
    budget = _vmem_limit_bytes() // 2              # leave headroom for scratch
    # 2 inputs x 2 pipeline buffers of a (batch, chunk) tile must fit
    cap = budget // (4 * batch * elt_bytes)
    cap = max(512, min(4096, (cap // 128) * 128))
    if d <= cap:
        return d, 1, False                         # single resident block
    return cap, _cdiv(d, cap), (d % cap != 0)


def cos_loss(f_s, f_t):
    batch, d = f_s.shape
    elt = max(jnp.dtype(f_s.dtype).itemsize, jnp.dtype(f_t.dtype).itemsize)
    chunk, num_k, mask_tail = _cos_tiling(d, batch, elt)

    cos_rows = pl.pallas_call(
        functools.partial(_cos_kernel, d_total=d, chunk=chunk,
                          mask_tail=mask_tail),
        out_shape=jax.ShapeDtypeStruct((batch, 1), jnp.float32),
        grid_spec=pltpu.PrefetchScalarGridSpec(
            num_scalar_prefetch=0,
            grid=(num_k,),
            in_specs=[
                pl.BlockSpec((batch, chunk), lambda k: (0, k)),
                pl.BlockSpec((batch, chunk), lambda k: (0, k)),
            ],
            out_specs=pl.BlockSpec((batch, 1), lambda k: (0, 0)),
            scratch_shapes=[
                pltpu.VMEM((batch, 1), jnp.float32),   # fs . ft
                pltpu.VMEM((batch, 1), jnp.float32),   # |fs|^2
                pltpu.VMEM((batch, 1), jnp.float32),   # |ft|^2
            ],
        ),
        compiler_params=_params(("arbitrary",)),
    )(f_s, f_t)
    return 1.0 - jnp.mean(cos_rows)


# ----------------------------------------------------------------------------
# Kernel 3: Linear(D_s -> D_t) projection + cosine, (N, K)-tiled matmul
# ----------------------------------------------------------------------------
def _proj_cos_kernel(fs_ref, w_ref, b_ref, ft_ref, o_ref,
                     mm_acc, dot_acc, ss_acc, tt_acc,
                     *, d_s, d_t, tk, tn, mask_k, mask_n):
    n = pl.program_id(0)
    k = pl.program_id(1)
    last_n = pl.num_programs(0) - 1
    last_k = pl.num_programs(1) - 1

    @pl.when((n == 0) & (k == 0))
    def _():
        dot_acc[...] = jnp.zeros_like(dot_acc)
        ss_acc[...] = jnp.zeros_like(ss_acc)
        tt_acc[...] = jnp.zeros_like(tt_acc)

    @pl.when(k == 0)
    def _():
        mm_acc[...] = jnp.zeros_like(mm_acc)

    fs = fs_ref[...]                               # (B, TK), native dtype for MXU
    w = w_ref[...]                                 # (TK, TN)
    if mask_k:                                     # ragged K tail: zero OOB rows/cols
        kcol = lax.broadcasted_iota(jnp.int32, fs.shape, 1) + k * tk
        fs = jnp.where(kcol < d_s, fs, jnp.zeros_like(fs))
        krow = lax.broadcasted_iota(jnp.int32, w.shape, 0) + k * tk
        w = jnp.where(krow < d_s, w, jnp.zeros_like(w))
    mm_acc[...] += jnp.dot(fs, w, preferred_element_type=jnp.float32)

    @pl.when(k == last_k)
    def _():
        proj = mm_acc[...] + b_ref[...].astype(jnp.float32)   # (B, TN)
        ft = ft_ref[...].astype(jnp.float32)                  # (B, TN)
        if mask_n:                                 # ragged N tail: zero OOB columns
            ncol = lax.broadcasted_iota(jnp.int32, proj.shape, 1) + n * tn
            valid = ncol < d_t
            proj = jnp.where(valid, proj, 0.0)
            ft = jnp.where(valid, ft, 0.0)
        dot_acc[...] += jnp.sum(proj * ft, axis=-1, keepdims=True)
        ss_acc[...] += jnp.sum(proj * proj, axis=-1, keepdims=True)
        tt_acc[...] += jnp.sum(ft * ft, axis=-1, keepdims=True)

    @pl.when((n == last_n) & (k == last_k))
    def _():
        o_ref[...] = _row_cosine(dot_acc[...], ss_acc[...], tt_acc[...])


def _proj_tiling(d_s, d_t, elt_bytes):
    budget = _vmem_limit_bytes() // 2
    tn = d_t if d_t <= 512 else 512                # full-width MXU N tiles
    # K tile: double-buffered (TK, TN) W tiles within ~half the budget
    cap_k = (budget // 2) // (2 * tn * elt_bytes)
    cap_k = max(256, min(2048, (cap_k // 128) * 128))
    tk = d_s if d_s <= cap_k else cap_k
    return (tn, tk, _cdiv(d_t, tn), _cdiv(d_s, tk),
            (d_t % tn != 0), (d_s % tk != 0))


def proj_cos_loss(f_s, w, b, f_t):
    batch, d_s = f_s.shape
    d_t = f_t.shape[1]
    elt = max(jnp.dtype(f_s.dtype).itemsize, jnp.dtype(w.dtype).itemsize)
    tn, tk, num_n, num_k, mask_n, mask_k = _proj_tiling(d_s, d_t, elt)

    cos_rows = pl.pallas_call(
        functools.partial(_proj_cos_kernel, d_s=d_s, d_t=d_t, tk=tk, tn=tn,
                          mask_k=mask_k, mask_n=mask_n),
        out_shape=jax.ShapeDtypeStruct((batch, 1), jnp.float32),
        grid_spec=pltpu.PrefetchScalarGridSpec(
            num_scalar_prefetch=0,
            grid=(num_n, num_k),                    # K (matmul reduction) innermost
            in_specs=[
                pl.BlockSpec((batch, tk), lambda n, k: (0, k)),   # fs, streamed K
                pl.BlockSpec((tk, tn), lambda n, k: (k, n)),      # W,  streamed K
                pl.BlockSpec((1, tn), lambda n, k: (0, n)),       # bias, per-N
                pl.BlockSpec((batch, tn), lambda n, k: (0, n)),   # ft, per-N
            ],
            out_specs=pl.BlockSpec((batch, 1), lambda n, k: (0, 0)),
            scratch_shapes=[
                pltpu.VMEM((batch, tn), jnp.float32),  # partial matmul accumulator
                pltpu.VMEM((batch, 1), jnp.float32),   # proj . ft
                pltpu.VMEM((batch, 1), jnp.float32),   # |proj|^2
                pltpu.VMEM((batch, 1), jnp.float32),   # |ft|^2
            ],
        ),
        compiler_params=_params(("arbitrary", "arbitrary")),
    )(f_s, w, b, f_t)
    return 1.0 - jnp.mean(cos_rows)


# ----------------------------------------------------------------------------
# DCKDLoss forward
# ----------------------------------------------------------------------------
def dckd_loss(student_logits, teacher_logits, student_features, teacher_features,
              projections=None, temperature=TEMPERATURE, alpha=ALPHA, beta=BETA):
    kd = kd_loss(student_logits, teacher_logits, temperature)

    corr = jnp.float32(0.0)
    for i, (f_s, f_t) in enumerate(zip(student_features, teacher_features)):
        fs2 = f_s.reshape(f_s.shape[0], -1)        # metadata-only flatten (NCHW)
        ft2 = f_t.reshape(f_t.shape[0], -1)
        if fs2.shape[1] != ft2.shape[1]:
            if projections is None or i not in projections:
                raise ValueError(f"pair {i} needs projection weights (w, b)")
            # TODO(synk): the PyTorch module instantiates a fresh randomly-
            # initialized nn.Linear inside forward(); we take its weights as
            # explicit inputs instead.
            w, b = projections[i]
            corr = corr + proj_cos_loss(fs2, w, b, ft2)
        else:
            corr = corr + cos_loss(fs2, ft2)

    return alpha * kd + beta * corr


# ----------------------------------------------------------------------------
# Pure-JAX reference (for correctness check)
# ----------------------------------------------------------------------------
def _reference(student_logits, teacher_logits, student_features, teacher_features,
               projections, temperature, alpha, beta):
    log_p_s = jax.nn.log_softmax(student_logits / temperature, axis=1)
    log_p_t = jax.nn.log_softmax(teacher_logits / temperature, axis=1)
    p_t = jnp.exp(log_p_t)
    kd = (jnp.sum(p_t * (log_p_t - log_p_s)) / student_logits.shape[0]
          * temperature ** 2)
    corr = 0.0
    for i, (f_s, f_t) in enumerate(zip(student_features, teacher_features)):
        fs = f_s.reshape(f_s.shape[0], -1)
        ft = f_t.reshape(f_t.shape[0], -1)
        if fs.shape[1] != ft.shape[1]:
            w, b = projections[i]
            fs = fs @ w + b
        dot = jnp.sum(fs * ft, axis=-1)
        ns = jnp.maximum(jnp.sqrt(jnp.sum(fs * fs, axis=-1)), _COS_EPS)
        nt = jnp.maximum(jnp.sqrt(jnp.sum(ft * ft, axis=-1)), _COS_EPS)
        corr = corr + (1.0 - jnp.mean(dot / (ns * nt)))
    return alpha * kd + beta * corr


if __name__ == "__main__":
    key = jax.random.PRNGKey(0)
    ks = jax.random.split(key, 14)

    B, C = 4, 100  # CIFAR-100 logits
    student_logits = jax.random.normal(ks[0], (B, C), jnp.float32)
    teacher_logits = jax.random.normal(ks[1], (B, C), jnp.float32)

    # pair 0: matching widths, small -> single resident block path  (B, 512)
    fs0 = jax.random.normal(ks[2], (B, 8, 8, 8), jnp.float32)
    ft0 = jax.random.normal(ks[3], (B, 8, 8, 8), jnp.float32)

    # pair 1: mismatched widths -> Linear(128 -> 256), single-tile projection
    fs1 = jax.random.normal(ks[4], (B, 8, 4, 4), jnp.float32)     # (B, 128)
    ft1 = jax.random.normal(ks[5], (B, 16, 4, 4), jnp.float32)    # (B, 256)
    d_in1, d_out1 = 128, 256
    bnd1 = 1.0 / (d_in1 ** 0.5)
    w1 = jax.random.uniform(ks[6], (d_in1, d_out1), jnp.float32, -bnd1, bnd1)
    b1 = jax.random.uniform(ks[7], (1, d_out1), jnp.float32, -bnd1, bnd1)

    # pair 2: matching widths, D = 66*8*8 = 4224 -> streamed masked-tail path
    fs2 = jax.random.normal(ks[8], (B, 66, 8, 8), jnp.float32)
    ft2 = jax.random.normal(ks[9], (B, 66, 8, 8), jnp.float32)

    # pair 3: mismatched widths -> Linear(2176 -> 640): exercises K and N tiling
    fs3 = jax.random.normal(ks[10], (B, 34, 8, 8), jnp.float32)   # (B, 2176)
    ft3 = jax.random.normal(ks[11], (B, 10, 8, 8), jnp.float32)   # (B, 640)
    d_in3, d_out3 = 2176, 640
    bnd3 = 1.0 / (d_in3 ** 0.5)
    w3 = jax.random.uniform(ks[12], (d_in3, d_out3), jnp.float32, -bnd3, bnd3)
    b3 = jax.random.uniform(ks[13], (1, d_out3), jnp.float32, -bnd3, bnd3)

    projections = {1: (w1, b1), 3: (w3, b3)}
    student_features = [fs0, fs1, fs2, fs3]
    teacher_features = [ft0, ft1, ft2, ft3]

    loss_fn = jax.jit(functools.partial(dckd_loss,
                                        temperature=TEMPERATURE,
                                        alpha=ALPHA, beta=BETA))
    loss = loss_fn(student_logits, teacher_logits,
                   student_features, teacher_features, projections)
    loss = jax.block_until_ready(loss)

    ref = _reference(student_logits, teacher_logits,
                     student_features, teacher_features, projections,
                     TEMPERATURE, ALPHA, BETA)
    ref = jax.block_until_ready(ref)

    # slack only for MXU default-precision f32 matmul and chunked-sum ordering
    tol = 1e-3 + 1e-3 * abs(float(ref))
    assert abs(float(loss) - float(ref)) < tol, (float(loss), float(ref))
    print("KERNEL_OK")
</pallas_src>

<mosaic_0001>
module attributes {stable_mosaic.version = 11 : i64} {
  func.func @_cos_kernel(%arg0: i32, %arg1: memref<4x4096xf32, #tpu.memory_space<vmem>>, %arg2: memref<4x4096xf32, #tpu.memory_space<vmem>>, %arg3: memref<4x1xf32, #tpu.memory_space<vmem>>, %arg4: memref<4x1xf32, #tpu.memory_space<vmem>>, %arg5: memref<4x1xf32, #tpu.memory_space<vmem>>, %arg6: memref<4x1xf32, #tpu.memory_space<vmem>>) attributes {dimension_semantics = [#tpu.dimension_semantics<arbitrary>], iteration_bounds = array<i64: 2>, scalar_prefetch = 0 : i64, scratch_operands = 3 : i64, tpu.core_type = #tpu.core_type<tc>, window_params = [{transform_indices = @transform_0, window_bounds = array<i64: 4, 4096>}, {transform_indices = @transform_1, window_bounds = array<i64: 4, 4096>}, {pipeline_mode = #tpu.pipeline_mode<synchronous>, transform_indices = @transform_2, window_bounds = array<i64: 4, 1>}]} {
    %c0_i32 = arith.constant 0 : i32
    %0 = arith.cmpi eq, %arg0, %c0_i32 : i32
    %1 = arith.extui %0 : i1 to i32
    %c0_i32_0 = arith.constant 0 : i32
    %2 = arith.cmpi ne, %1, %c0_i32_0 : i32
    scf.if %2 {
      %cst_21 = arith.constant 0.000000e+00 : f32
      %36 = vector.broadcast %cst_21 : f32 to vector<4x1xf32>
      %c0_22 = arith.constant 0 : index
      %c0_23 = arith.constant 0 : index
      %37 = vector.load %arg4[%c0_22, %c0_23] : memref<4x1xf32, #tpu.memory_space<vmem>>, vector<4x1xf32>
      tpu.vector_store %arg4[%c0_22, %c0_23], %36 {strides = array<i32>} : memref<4x1xf32, #tpu.memory_space<vmem>>, vector<4x1xf32>,
      %cst_24 = arith.constant 0.000000e+00 : f32
      %38 = vector.broadcast %cst_24 : f32 to vector<4x1xf32>
      %c0_25 = arith.constant 0 : index
      %c0_26 = arith.constant 0 : index
      %39 = vector.load %arg5[%c0_25, %c0_26] : memref<4x1xf32, #tpu.memory_space<vmem>>, vector<4x1xf32>
      tpu.vector_store %arg5[%c0_25, %c0_26], %38 {strides = array<i32>} : memref<4x1xf32, #tpu.memory_space<vmem>>, vector<4x1xf32>,
      %cst_27 = arith.constant 0.000000e+00 : f32
      %40 = vector.broadcast %cst_27 : f32 to vector<4x1xf32>
      %c0_28 = arith.constant 0 : index
      %c0_29 = arith.constant 0 : index
      %41 = vector.load %arg6[%c0_28, %c0_29] : memref<4x1xf32, #tpu.memory_space<vmem>>, vector<4x1xf32>
      tpu.vector_store %arg6[%c0_28, %c0_29], %40 {strides = array<i32>} : memref<4x1xf32, #tpu.memory_space<vmem>>, vector<4x1xf32>,
    } else {
    }
    %c0 = arith.constant 0 : index
    %c0_1 = arith.constant 0 : index
    %3 = vector.load %arg1[%c0, %c0_1] : memref<4x4096xf32, #tpu.memory_space<vmem>>, vector<4x4096xf32>
    %c0_2 = arith.constant 0 : index
    %c0_3 = arith.constant 0 : index
    %4 = vector.load %arg2[%c0_2, %c0_3] : memref<4x4096xf32, #tpu.memory_space<vmem>>, vector<4x4096xf32>
    %5 = tpu.iota {dimensions = array<i32: 1>} : vector<4x4096xi32>
    %c4096_i32 = arith.constant 4096 : i32
    %6 = arith.muli %arg0, %c4096_i32 : i32
    %7 = vector.broadcast %6 : i32 to vector<4x4096xi32>
    %8 = arith.addi %5, %7 : vector<4x4096xi32>
    %c4224_i32 = arith.constant 4224 : i32
    %9 = vector.broadcast %c4224_i32 : i32 to vector<4x4096xi32>
    %10 = arith.cmpi slt, %8, %9 : vector<4x4096xi32>
    %cst = arith.constant 0.000000e+00 : f32
    %11 = vector.broadcast %cst : f32 to vector<4x4096xf32>
    %12 = arith.select %10, %3, %11 : vector<4x4096xi1>, vector<4x4096xf32>
    %cst_4 = arith.constant 0.000000e+00 : f32
    %13 = vector.broadcast %cst_4 : f32 to vector<4x4096xf32>
    %14 = arith.select %10, %4, %13 : vector<4x4096xi1>, vector<4x4096xf32>
    %c0_5 = arith.constant 0 : index
    %c0_6 = arith.constant 0 : index
    %15 = vector.load %arg4[%c0_5, %c0_6] : memref<4x1xf32, #tpu.memory_space<vmem>>, vector<4x1xf32>
    %16 = arith.mulf %12, %14 : vector<4x4096xf32>
    %cst_7 = arith.constant dense<0.000000e+00> : vector<4xf32>
    %17 = vector.multi_reduction <add>, %16, %cst_7 [1] : vector<4x4096xf32> to vector<4xf32>
    %18 = vector.shape_cast %17 : vector<4xf32> to vector<4x1xf32>
    %19 = arith.addf %15, %18 : vector<4x1xf32>
    %c0_8 = arith.constant 0 : index
    %c0_9 = arith.constant 0 : index
    %20 = vector.load %arg4[%c0_8, %c0_9] : memref<4x1xf32, #tpu.memory_space<vmem>>, vector<4x1xf32>
    tpu.vector_store %arg4[%c0_8, %c0_9], %19 {strides = array<i32>} : memref<4x1xf32, #tpu.memory_space<vmem>>, vector<4x1xf32>,
    %c0_10 = arith.constant 0 : index
    %c0_11 = arith.constant 0 : index
    %21 = vector.load %arg5[%c0_10, %c0_11] : memref<4x1xf32, #tpu.memory_space<vmem>>, vector<4x1xf32>
    %22 = arith.mulf %12, %12 : vector<4x4096xf32>
    %cst_12 = arith.constant dense<0.000000e+00> : vector<4xf32>
    %23 = vector.multi_reduction <add>, %22, %cst_12 [1] : vector<4x4096xf32> to vector<4xf32>
    %24 = vector.shape_cast %23 : vector<4xf32> to vector<4x1xf32>
    %25 = arith.addf %21, %24 : vector<4x1xf32>
    %c0_13 = arith.constant 0 : index
    %c0_14 = arith.constant 0 : index
    %26 = vector.load %arg5[%c0_13, %c0_14] : memref<4x1xf32, #tpu.memory_space<vmem>>, vector<4x1xf32>
    tpu.vector_store %arg5[%c0_13, %c0_14], %25 {strides = array<i32>} : memref<4x1xf32, #tpu.memory_space<vmem>>, vector<4x1xf32>,
    %c0_15 = arith.constant 0 : index
    %c0_16 = arith.constant 0 : index
    %27 = vector.load %arg6[%c0_15, %c0_16] : memref<4x1xf32, #tpu.memory_space<vmem>>, vector<4x1xf32>
    %28 = arith.mulf %14, %14 : vector<4x4096xf32>
    %cst_17 = arith.constant dense<0.000000e+00> : vector<4xf32>
    %29 = vector.multi_reduction <add>, %28, %cst_17 [1] : vector<4x4096xf32> to vector<4xf32>
    %30 = vector.shape_cast %29 : vector<4xf32> to vector<4x1xf32>
    %31 = arith.addf %27, %30 : vector<4x1xf32>
    %c0_18 = arith.constant 0 : index
    %c0_19 = arith.constant 0 : index
    %32 = vector.load %arg6[%c0_18, %c0_19] : memref<4x1xf32, #tpu.memory_space<vmem>>, vector<4x1xf32>
    tpu.vector_store %arg6[%c0_18, %c0_19], %31 {strides = array<i32>} : memref<4x1xf32, #tpu.memory_space<vmem>>, vector<4x1xf32>,
    %c1_i32 = arith.constant 1 : i32
    %33 = arith.cmpi eq, %arg0, %c1_i32 : i32
    %34 = arith.extui %33 : i1 to i32
    %c0_i32_20 = arith.constant 0 : i32
    %35 = arith.cmpi ne, %34, %c0_i32_20 : i32
    scf.if %35 {
      %c0_21 = arith.constant 0 : index
      %c0_22 = arith.constant 0 : index
      %36 = vector.load %arg4[%c0_21, %c0_22] : memref<4x1xf32, #tpu.memory_space<vmem>>, vector<4x1xf32>
      %c0_23 = arith.constant 0 : index
      %c0_24 = arith.constant 0 : index
      %37 = vector.load %arg5[%c0_23, %c0_24] : memref<4x1xf32, #tpu.memory_space<vmem>>, vector<4x1xf32>
      %c0_25 = arith.constant 0 : index
      %c0_26 = arith.constant 0 : index
      %38 = vector.load %arg6[%c0_25, %c0_26] : memref<4x1xf32, #tpu.memory_space<vmem>>, vector<4x1xf32>
      %cst_27 = arith.constant 1.000000e-16 : f32
      %39 = vector.broadcast %cst_27 : f32 to vector<4x1xf32>
      %40 = arith.maximumf %37, %39 : vector<4x1xf32>
      %cst_28 = arith.constant 1.000000e-16 : f32
      %41 = vector.broadcast %cst_28 : f32 to vector<4x1xf32>
      %42 = arith.maximumf %38, %41 : vector<4x1xf32>
      %43 = arith.mulf %40, %42 : vector<4x1xf32>
      %44 = math.rsqrt %43 : vector<4x1xf32>
      %45 = arith.mulf %36, %44 : vector<4x1xf32>
      %c0_29 = arith.constant 0 : index
      %c0_30 = arith.constant 0 : index
      %46 = vector.load %arg3[%c0_29, %c0_30] : memref<4x1xf32, #tpu.memory_space<vmem>>, vector<4x1xf32>
      tpu.vector_store %arg3[%c0_29, %c0_30], %45 {strides = array<i32>} : memref<4x1xf32, #tpu.memory_space<vmem>>, vector<4x1xf32>,
    } else {
    }
    return
  }
  func.func @transform_0(%arg0: i32) -> (i32, i32) {
    %c0_i32 = arith.constant 0 : i32
    %c0_i32_0 = arith.constant 0 : i32
    return %c0_i32, %arg0 : i32, i32
  }
  func.func @transform_1(%arg0: i32) -> (i32, i32) {
    %c0_i32 = arith.constant 0 : i32
    %c0_i32_0 = arith.constant 0 : i32
    return %c0_i32, %arg0 : i32, i32
  }
  func.func @transform_2(%arg0: i32) -> (i32, i32) {
    %c0_i32 = arith.constant 0 : i32
    %c0_i32_0 = arith.constant 0 : i32
    %c0_i32_1 = arith.constant 0 : i32
    return %c0_i32, %c0_i32_0 : i32, i32
  }
}

module attributes {stable_mosaic.version = 11 : i64} {
  func.func @_proj_cos_kernel(%arg0: i32, %arg1: i32, %arg2: memref<4x128xf32, #tpu.memory_space<vmem>>, %arg3: memref<128x256xf32, #tpu.memory_space<vmem>>, %arg4: memref<1x256xf32, #tpu.memory_space<vmem>>, %arg5: memref<4x256xf32, #tpu.memory_space<vmem>>, %arg6: memref<4x1xf32, #tpu.memory_space<vmem>>, %arg7: memref<4x256xf32, #tpu.memory_space<vmem>>, %arg8: memref<4x1xf32, #tpu.memory_space<vmem>>, %arg9: memref<4x1xf32, #tpu.memory_space<vmem>>, %arg10: memref<4x1xf32, #tpu.memory_space<vmem>>) attributes {dimension_semantics = [#tpu.dimension_semantics<arbitrary>, #tpu.dimension_semantics<arbitrary>], iteration_bounds = array<i64: 1, 1>, scalar_prefetch = 0 : i64, scratch_operands = 4 : i64, tpu.core_type = #tpu.core_type<tc>, window_params = [{transform_indices = @transform_0, window_bounds = array<i64: 4, 128>}, {transform_indices = @transform_1, window_bounds = array<i64: 128, 256>}, {transform_indices = @transform_2, window_bounds = array<i64: 1, 256>}, {transform_indices = @transform_3, window_bounds = array<i64: 4, 256>}, {pipeline_mode = #tpu.pipeline_mode<synchronous>, transform_indices = @transform_4, window_bounds = array<i64: 4, 1>}]} {
    %c0_i32 = arith.constant 0 : i32
    %0 = arith.cmpi eq, %arg0, %c0_i32 : i32
    %c0_i32_0 = arith.constant 0 : i32
    %1 = arith.cmpi eq, %arg1, %c0_i32_0 : i32
    %2 = arith.andi %0, %1 : i1
    %3 = arith.extui %2 : i1 to i32
    %c0_i32_1 = arith.constant 0 : i32
    %4 = arith.cmpi ne, %3, %c0_i32_1 : i32
    scf.if %4 {
      %cst_16 = arith.constant 0.000000e+00 : f32
      %22 = vector.broadcast %cst_16 : f32 to vector<4x1xf32>
      %c0_17 = arith.constant 0 : index
      %c0_18 = arith.constant 0 : index
      %23 = vector.load %arg8[%c0_17, %c0_18] : memref<4x1xf32, #tpu.memory_space<vmem>>, vector<4x1xf32>
      tpu.vector_store %arg8[%c0_17, %c0_18], %22 {strides = array<i32>} : memref<4x1xf32, #tpu.memory_space<vmem>>, vector<4x1xf32>,
      %cst_19 = arith.constant 0.000000e+00 : f32
      %24 = vector.broadcast %cst_19 : f32 to vector<4x1xf32>
      %c0_20 = arith.constant 0 : index
      %c0_21 = arith.constant 0 : index
      %25 = vector.load %arg9[%c0_20, %c0_21] : memref<4x1xf32, #tpu.memory_space<vmem>>, vector<4x1xf32>
      tpu.vector_store %arg9[%c0_20, %c0_21], %24 {strides = array<i32>} : memref<4x1xf32, #tpu.memory_space<vmem>>, vector<4x1xf32>,
      %cst_22 = arith.constant 0.000000e+00 : f32
      %26 = vector.broadcast %cst_22 : f32 to vector<4x1xf32>
      %c0_23 = arith.constant 0 : index
      %c0_24 = arith.constant 0 : index
      %27 = vector.load %arg10[%c0_23, %c0_24] : memref<4x1xf32, #tpu.memory_space<vmem>>, vector<4x1xf32>
      tpu.vector_store %arg10[%c0_23, %c0_24], %26 {strides = array<i32>} : memref<4x1xf32, #tpu.memory_space<vmem>>, vector<4x1xf32>,
    } else {
    }
    %c0_i32_2 = arith.constant 0 : i32
    %5 = arith.cmpi eq, %arg1, %c0_i32_2 : i32
    %6 = arith.extui %5 : i1 to i32
    %c0_i32_3 = arith.constant 0 : i32
    %7 = arith.cmpi ne, %6, %c0_i32_3 : i32
    scf.if %7 {
      %cst_16 = arith.constant 0.000000e+00 : f32
      %22 = vector.broadcast %cst_16 : f32 to vector<4x256xf32>
      %c0_17 = arith.constant 0 : index
      %c0_18 = arith.constant 0 : index
      %23 = vector.load %arg7[%c0_17, %c0_18] : memref<4x256xf32, #tpu.memory_space<vmem>>, vector<4x256xf32>
      tpu.vector_store %arg7[%c0_17, %c0_18], %22 {strides = array<i32>} : memref<4x256xf32, #tpu.memory_space<vmem>>, vector<4x256xf32>,
    } else {
    }
    %c0 = arith.constant 0 : index
    %c0_4 = arith.constant 0 : index
    %8 = vector.load %arg2[%c0, %c0_4] : memref<4x128xf32, #tpu.memory_space<vmem>>, vector<4x128xf32>
    %c0_5 = arith.constant 0 : index
    %c0_6 = arith.constant 0 : index
    %9 = vector.load %arg3[%c0_5, %c0_6] : memref<128x256xf32, #tpu.memory_space<vmem>>, vector<128x256xf32>
    %c0_7 = arith.constant 0 : index
    %c0_8 = arith.constant 0 : index
    %10 = vector.load %arg7[%c0_7, %c0_8] : memref<4x256xf32, #tpu.memory_space<vmem>>, vector<4x256xf32>
    %cst = arith.constant dense<0.000000e+00> : vector<4x256xf32>
    %11 = tpu.matmul %8, %9, %cst {dimension_numbers = #tpu.dot_dimension_numbers<[1], [0], [0], [1], [0, 0, 1, 1], [], []>} : vector<4x128xf32>, vector<128x256xf32>, vector<4x256xf32> -> vector<4x256xf32>
    %12 = arith.addf %10, %11 : vector<4x256xf32>
    %c0_9 = arith.constant 0 : index
    %c0_10 = arith.constant 0 : index
    %13 = vector.load %arg7[%c0_9, %c0_10] : memref<4x256xf32, #tpu.memory_space<vmem>>, vector<4x256xf32>
    tpu.vector_store %arg7[%c0_9, %c0_10], %12 {strides = array<i32>} : memref<4x256xf32, #tpu.memory_space<vmem>>, vector<4x256xf32>,
    %c0_i32_11 = arith.constant 0 : i32
    %14 = arith.cmpi eq, %arg1, %c0_i32_11 : i32
    %15 = arith.extui %14 : i1 to i32
    %c0_i32_12 = arith.constant 0 : i32
    %16 = arith.cmpi ne, %15, %c0_i32_12 : i32
    scf.if %16 {
      %c0_16 = arith.constant 0 : index
      %c0_17 = arith.constant 0 : index
      %22 = vector.load %arg7[%c0_16, %c0_17] : memref<4x256xf32, #tpu.memory_space<vmem>>, vector<4x256xf32>
      %c0_18 = arith.constant 0 : index
      %c0_19 = arith.constant 0 : index
      %23 = vector.load %arg4[%c0_18, %c0_19] : memref<1x256xf32, #tpu.memory_space<vmem>>, vector<1x256xf32>
      %24 = vector.broadcast %23 : vector<1x256xf32> to vector<4x256xf32>
      %25 = arith.addf %22, %24 : vector<4x256xf32>
      %c0_20 = arith.constant 0 : index
      %c0_21 = arith.constant 0 : index
      %26 = vector.load %arg5[%c0_20, %c0_21] : memref<4x256xf32, #tpu.memory_space<vmem>>, vector<4x256xf32>
      %c0_22 = arith.constant 0 : index
      %c0_23 = arith.constant 0 : index
      %27 = vector.load %arg8[%c0_22, %c0_23] : memref<4x1xf32, #tpu.memory_space<vmem>>, vector<4x1xf32>
      %28 = arith.mulf %25, %26 : vector<4x256xf32>
      %cst_24 = arith.constant dense<0.000000e+00> : vector<4xf32>
      %29 = vector.multi_reduction <add>, %28, %cst_24 [1] : vector<4x256xf32> to vector<4xf32>
      %30 = vector.shape_cast %29 : vector<4xf32> to vector<4x1xf32>
      %31 = arith.addf %27, %30 : vector<4x1xf32>
      %c0_25 = arith.constant 0 : index
      %c0_26 = arith.constant 0 : index
      %32 = vector.load %arg8[%c0_25, %c0_26] : memref<4x1xf32, #tpu.memory_space<vmem>>, vector<4x1xf32>
      tpu.vector_store %arg8[%c0_25, %c0_26], %31 {strides = array<i32>} : memref<4x1xf32, #tpu.memory_space<vmem>>, vector<4x1xf32>,
      %c0_27 = arith.constant 0 : index
      %c0_28 = arith.constant 0 : index
      %33 = vector.load %arg9[%c0_27, %c0_28] : memref<4x1xf32, #tpu.memory_space<vmem>>, vector<4x1xf32>
      %34 = arith.mulf %25, %25 : vector<4x256xf32>
      %cst_29 = arith.constant dense<0.000000e+00> : vector<4xf32>
      %35 = vector.multi_reduction <add>, %34, %cst_29 [1] : vector<4x256xf32> to vector<4xf32>
      %36 = vector.shape_cast %35 : vector<4xf32> to vector<4x1xf32>
      %37 = arith.addf %33, %36 : vector<4x1xf32>
      %c0_30 = arith.constant 0 : index
      %c0_31 = arith.constant 0 : index
      %38 = vector.load %arg9[%c0_30, %c0_31] : memref<4x1xf32, #tpu.memory_space<vmem>>, vector<4x1xf32>
      tpu.vector_store %arg9[%c0_30, %c0_31], %37 {strides = array<i32>} : memref<4x1xf32, #tpu.memory_space<vmem>>, vector<4x1xf32>,
      %c0_32 = arith.constant 0 : index
      %c0_33 = arith.constant 0 : index
      %39 = vector.load %arg10[%c0_32, %c0_33] : memref<4x1xf32, #tpu.memory_space<vmem>>, vector<4x1xf32>
      %40 = arith.mulf %26, %26 : vector<4x256xf32>
      %cst_34 = arith.constant dense<0.000000e+00> : vector<4xf32>
      %41 = vector.multi_reduction <add>, %40, %cst_34 [1] : vector<4x256xf32> to vector<4xf32>
      %42 = vector.shape_cast %41 : vector<4xf32> to vector<4x1xf32>
      %43 = arith.addf %39, %42 : vector<4x1xf32>
      %c0_35 = arith.constant 0 : index
      %c0_36 = arith.constant 0 : index
      %44 = vector.load %arg10[%c0_35, %c0_36] : memref<4x1xf32, #tpu.memory_space<vmem>>, vector<4x1xf32>
      tpu.vector_store %arg10[%c0_35, %c0_36], %43 {strides = array<i32>} : memref<4x1xf32, #tpu.memory_space<vmem>>, vector<4x1xf32>,
    } else {
    }
    %c0_i32_13 = arith.constant 0 : i32
    %17 = arith.cmpi eq, %arg0, %c0_i32_13 : i32
    %c0_i32_14 = arith.constant 0 : i32
    %18 = arith.cmpi eq, %arg1, %c0_i32_14 : i32
    %19 = arith.andi %17, %18 : i1
    %20 = arith.extui %19 : i1 to i32
    %c0_i32_15 = arith.constant 0 : i32
    %21 = arith.cmpi ne, %20, %c0_i32_15 : i32
    scf.if %21 {
      %c0_16 = arith.constant 0 : index
      %c0_17 = arith.constant 0 : index
      %22 = vector.load %arg8[%c0_16, %c0_17] : memref<4x1xf32, #tpu.memory_space<vmem>>, vector<4x1xf32>
      %c0_18 = arith.constant 0 : index
      %c0_19 = arith.constant 0 : index
      %23 = vector.load %arg9[%c0_18, %c0_19] : memref<4x1xf32, #tpu.memory_space<vmem>>, vector<4x1xf32>
      %c0_20 = arith.constant 0 : index
      %c0_21 = arith.constant 0 : index
      %24 = vector.load %arg10[%c0_20, %c0_21] : memref<4x1xf32, #tpu.memory_space<vmem>>, vector<4x1xf32>
      %cst_22 = arith.constant 1.000000e-16 : f32
      %25 = vector.broadcast %cst_22 : f32 to vector<4x1xf32>
      %26 = arith.maximumf %23, %25 : vector<4x1xf32>
      %cst_23 = arith.constant 1.000000e-16 : f32
      %27 = vector.broadcast %cst_23 : f32 to vector<4x1xf32>
      %28 = arith.maximumf %24, %27 : vector<4x1xf32>
      %29 = arith.mulf %26, %28 : vector<4x1xf32>
      %30 = math.rsqrt %29 : vector<4x1xf32>
      %31 = arith.mulf %22, %30 : vector<4x1xf32>
      %c0_24 = arith.constant 0 : index
      %c0_25 = arith.constant 0 : index
      %32 = vector.load %arg6[%c0_24, %c0_25] : memref<4x1xf32, #tpu.memory_space<vmem>>, vector<4x1xf32>
      tpu.vector_store %arg6[%c0_24, %c0_25], %31 {strides = array<i32>} : memref<4x1xf32, #tpu.memory_space<vmem>>, vector<4x1xf32>,
    } else {
    }
    return
  }
  func.func @transform_0(%arg0: i32, %arg1: i32) -> (i32, i32) {
    %c0_i32 = arith.constant 0 : i32
    %c0_i32_0 = arith.constant 0 : i32
    return %c0_i32, %arg1 : i32, i32
  }
  func.func @transform_1(%arg0: i32, %arg1: i32) -> (i32, i32) {
    %c0_i32 = arith.constant 0 : i32
    return %arg1, %arg0 : i32, i32
  }
  func.func @transform_2(%arg0: i32, %arg1: i32) -> (i32, i32) {
    %c0_i32 = arith.constant 0 : i32
    %c0_i32_0 = arith.constant 0 : i32
    return %c0_i32, %arg0 : i32, i32
  }
  func.func @transform_3(%arg0: i32, %arg1: i32) -> (i32, i32) {
    %c0_i32 = arith.constant 0 : i32
    %c0_i32_0 = arith.constant 0 : i32
    return %c0_i32, %arg0 : i32, i32
  }
  func.func @transform_4(%arg0: i32, %arg1: i32) -> (i32, i32) {
    %c0_i32 = arith.constant 0 : i32
    %c0_i32_0 = arith.constant 0 : i32
    %c0_i32_1 = arith.constant 0 : i32
    return %c0_i32, %c0_i32_0 : i32, i32
  }
}

module attributes {stable_mosaic.version = 11 : i64} {
  func.func @_cos_kernel(%arg0: i32, %arg1: memref<4x512xf32, #tpu.memory_space<vmem>>, %arg2: memref<4x512xf32, #tpu.memory_space<vmem>>, %arg3: memref<4x1xf32, #tpu.memory_space<vmem>>, %arg4: memref<4x1xf32, #tpu.memory_space<vmem>>, %arg5: memref<4x1xf32, #tpu.memory_space<vmem>>, %arg6: memref<4x1xf32, #tpu.memory_space<vmem>>) attributes {dimension_semantics = [#tpu.dimension_semantics<arbitrary>], iteration_bounds = array<i64: 1>, scalar_prefetch = 0 : i64, scratch_operands = 3 : i64, tpu.core_type = #tpu.core_type<tc>, window_params = [{transform_indices = @transform_0, window_bounds = array<i64: 4, 512>}, {transform_indices = @transform_1, window_bounds = array<i64: 4, 512>}, {pipeline_mode = #tpu.pipeline_mode<synchronous>, transform_indices = @transform_2, window_bounds = array<i64: 4, 1>}]} {
    %c0_i32 = arith.constant 0 : i32
    %0 = arith.cmpi eq, %arg0, %c0_i32 : i32
    %1 = arith.extui %0 : i1 to i32
    %c0_i32_0 = arith.constant 0 : i32
    %2 = arith.cmpi ne, %1, %c0_i32_0 : i32
    scf.if %2 {
      %cst_20 = arith.constant 0.000000e+00 : f32
      %26 = vector.broadcast %cst_20 : f32 to vector<4x1xf32>
      %c0_21 = arith.constant 0 : index
      %c0_22 = arith.constant 0 : index
      %27 = vector.load %arg4[%c0_21, %c0_22] : memref<4x1xf32, #tpu.memory_space<vmem>>, vector<4x1xf32>
      tpu.vector_store %arg4[%c0_21, %c0_22], %26 {strides = array<i32>} : memref<4x1xf32, #tpu.memory_space<vmem>>, vector<4x1xf32>,
      %cst_23 = arith.constant 0.000000e+00 : f32
      %28 = vector.broadcast %cst_23 : f32 to vector<4x1xf32>
      %c0_24 = arith.constant 0 : index
      %c0_25 = arith.constant 0 : index
      %29 = vector.load %arg5[%c0_24, %c0_25] : memref<4x1xf32, #tpu.memory_space<vmem>>, vector<4x1xf32>
      tpu.vector_store %arg5[%c0_24, %c0_25], %28 {strides = array<i32>} : memref<4x1xf32, #tpu.memory_space<vmem>>, vector<4x1xf32>,
      %cst_26 = arith.constant 0.000000e+00 : f32
      %30 = vector.broadcast %cst_26 : f32 to vector<4x1xf32>
      %c0_27 = arith.constant 0 : index
      %c0_28 = arith.constant 0 : index
      %31 = vector.load %arg6[%c0_27, %c0_28] : memref<4x1xf32, #tpu.memory_space<vmem>>, vector<4x1xf32>
      tpu.vector_store %arg6[%c0_27, %c0_28], %30 {strides = array<i32>} : memref<4x1xf32, #tpu.memory_space<vmem>>, vector<4x1xf32>,
    } else {
    }
    %c0 = arith.constant 0 : index
    %c0_1 = arith.constant 0 : index
    %3 = vector.load %arg1[%c0, %c0_1] : memref<4x512xf32, #tpu.memory_space<vmem>>, vector<4x512xf32>
    %c0_2 = arith.constant 0 : index
    %c0_3 = arith.constant 0 : index
    %4 = vector.load %arg2[%c0_2, %c0_3] : memref<4x512xf32, #tpu.memory_space<vmem>>, vector<4x512xf32>
    %c0_4 = arith.constant 0 : index
    %c0_5 = arith.constant 0 : index
    %5 = vector.load %arg4[%c0_4, %c0_5] : memref<4x1xf32, #tpu.memory_space<vmem>>, vector<4x1xf32>
    %6 = arith.mulf %3, %4 : vector<4x512xf32>
    %cst = arith.constant dense<0.000000e+00> : vector<4xf32>
    %7 = vector.multi_reduction <add>, %6, %cst [1] : vector<4x512xf32> to vector<4xf32>
    %8 = vector.shape_cast %7 : vector<4xf32> to vector<4x1xf32>
    %9 = arith.addf %5, %8 : vector<4x1xf32>
    %c0_6 = arith.constant 0 : index
    %c0_7 = arith.constant 0 : index
    %10 = vector.load %arg4[%c0_6, %c0_7] : memref<4x1xf32, #tpu.memory_space<vmem>>, vector<4x1xf32>
    tpu.vector_store %arg4[%c0_6, %c0_7], %9 {strides = array<i32>} : memref<4x1xf32, #tpu.memory_space<vmem>>, vector<4x1xf32>,
    %c0_8 = arith.constant 0 : index
    %c0_9 = arith.constant 0 : index
    %11 = vector.load %arg5[%c0_8, %c0_9] : memref<4x1xf32, #tpu.memory_space<vmem>>, vector<4x1xf32>
    %12 = arith.mulf %3, %3 : vector<4x512xf32>
    %cst_10 = arith.constant dense<0.000000e+00> : vector<4xf32>
    %13 = vector.multi_reduction <add>, %12, %cst_10 [1] : vector<4x512xf32> to vector<4xf32>
    %14 = vector.shape_cast %13 : vector<4xf32> to vector<4x1xf32>
    %15 = arith.addf %11, %14 : vector<4x1xf32>
    %c0_11 = arith.constant 0 : index
    %c0_12 = arith.constant 0 : index
    %16 = vector.load %arg5[%c0_11, %c0_12] : memref<4x1xf32, #tpu.memory_space<vmem>>, vector<4x1xf32>
    tpu.vector_store %arg5[%c0_11, %c0_12], %15 {strides = array<i32>} : memref<4x1xf32, #tpu.memory_space<vmem>>, vector<4x1xf32>,
    %c0_13 = arith.constant 0 : index
    %c0_14 = arith.constant 0 : index
    %17 = vector.load %arg6[%c0_13, %c0_14] : memref<4x1xf32, #tpu.memory_space<vmem>>, vector<4x1xf32>
    %18 = arith.mulf %4, %4 : vector<4x512xf32>
    %cst_15 = arith.constant dense<0.000000e+00> : vector<4xf32>
    %19 = vector.multi_reduction <add>, %18, %cst_15 [1] : vector<4x512xf32> to vector<4xf32>
    %20 = vector.shape_cast %19 : vector<4xf32> to vector<4x1xf32>
    %21 = arith.addf %17, %20 : vector<4x1xf32>
    %c0_16 = arith.constant 0 : index
    %c0_17 = arith.constant 0 : index
    %22 = vector.load %arg6[%c0_16, %c0_17] : memref<4x1xf32, #tpu.memory_space<vmem>>, vector<4x1xf32>
    tpu.vector_store %arg6[%c0_16, %c0_17], %21 {strides = array<i32>} : memref<4x1xf32, #tpu.memory_space<vmem>>, vector<4x1xf32>,
    %c0_i32_18 = arith.constant 0 : i32
    %23 = arith.cmpi eq, %arg0, %c0_i32_18 : i32
    %24 = arith.extui %23 : i1 to i32
    %c0_i32_19 = arith.constant 0 : i32
    %25 = arith.cmpi ne, %24, %c0_i32_19 : i32
    scf.if %25 {
      %c0_20 = arith.constant 0 : index
      %c0_21 = arith.constant 0 : index
      %26 = vector.load %arg4[%c0_20, %c0_21] : memref<4x1xf32, #tpu.memory_space<vmem>>, vector<4x1xf32>
      %c0_22 = arith.constant 0 : index
      %c0_23 = arith.constant 0 : index
      %27 = vector.load %arg5[%c0_22, %c0_23] : memref<4x1xf32, #tpu.memory_space<vmem>>, vector<4x1xf32>
      %c0_24 = arith.constant 0 : index
      %c0_25 = arith.constant 0 : index
      %28 = vector.load %arg6[%c0_24, %c0_25] : memref<4x1xf32, #tpu.memory_space<vmem>>, vector<4x1xf32>
      %cst_26 = arith.constant 1.000000e-16 : f32
      %29 = vector.broadcast %cst_26 : f32 to vector<4x1xf32>
      %30 = arith.maximumf %27, %29 : vector<4x1xf32>
      %cst_27 = arith.constant 1.000000e-16 : f32
      %31 = vector.broadcast %cst_27 : f32 to vector<4x1xf32>
      %32 = arith.maximumf %28, %31 : vector<4x1xf32>
      %33 = arith.mulf %30, %32 : vector<4x1xf32>
      %34 = math.rsqrt %33 : vector<4x1xf32>
      %35 = arith.mulf %26, %34 : vector<4x1xf32>
      %c0_28 = arith.constant 0 : index
      %c0_29 = arith.constant 0 : index
      %36 = vector.load %arg3[%c0_28, %c0_29] : memref<4x1xf32, #tpu.memory_space<vmem>>, vector<4x1xf32>
      tpu.vector_store %arg3[%c0_28, %c0_29], %35 {strides = array<i32>} : memref<4x1xf32, #tpu.memory_space<vmem>>, vector<4x1xf32>,
    } else {
    }
    return
  }
  func.func @transform_0(%arg0: i32) -> (i32, i32) {
    %c0_i32 = arith.constant 0 : i32
    %c0_i32_0 = arith.constant 0 : i32
    return %c0_i32, %arg0 : i32, i32
  }
  func.func @transform_1(%arg0: i32) -> (i32, i32) {
    %c0_i32 = arith.constant 0 : i32
    %c0_i32_0 = arith.constant 0 : i32
    return %c0_i32, %arg0 : i32, i32
  }
  func.func @transform_2(%arg0: i32) -> (i32, i32) {
    %c0_i32 = arith.constant 0 : i32
    %c0_i32_0 = arith.constant 0 : i32
    %c0_i32_1 = arith.constant 0 : i32
    return %c0_i32, %c0_i32_0 : i32, i32
  }
}

module attributes {stable_mosaic.version = 11 : i64} {
  func.func @_proj_cos_kernel(%arg0: i32, %arg1: i32, %arg2: memref<4x2048xf32, #tpu.memory_space<vmem>>, %arg3: memref<2048x512xf32, #tpu.memory_space<vmem>>, %arg4: memref<1x512xf32, #tpu.memory_space<vmem>>, %arg5: memref<4x512xf32, #tpu.memory_space<vmem>>, %arg6: memref<4x1xf32, #tpu.memory_space<vmem>>, %arg7: memref<4x512xf32, #tpu.memory_space<vmem>>, %arg8: memref<4x1xf32, #tpu.memory_space<vmem>>, %arg9: memref<4x1xf32, #tpu.memory_space<vmem>>, %arg10: memref<4x1xf32, #tpu.memory_space<vmem>>) attributes {dimension_semantics = [#tpu.dimension_semantics<arbitrary>, #tpu.dimension_semantics<arbitrary>], iteration_bounds = array<i64: 2, 2>, scalar_prefetch = 0 : i64, scratch_operands = 4 : i64, tpu.core_type = #tpu.core_type<tc>, window_params = [{transform_indices = @transform_0, window_bounds = array<i64: 4, 2048>}, {transform_indices = @transform_1, window_bounds = array<i64: 2048, 512>}, {transform_indices = @transform_2, window_bounds = array<i64: 1, 512>}, {transform_indices = @transform_3, window_bounds = array<i64: 4, 512>}, {pipeline_mode = #tpu.pipeline_mode<synchronous>, transform_indices = @transform_4, window_bounds = array<i64: 4, 1>}]} {
    %c0_i32 = arith.constant 0 : i32
    %0 = arith.cmpi eq, %arg0, %c0_i32 : i32
    %c0_i32_0 = arith.constant 0 : i32
    %1 = arith.cmpi eq, %arg1, %c0_i32_0 : i32
    %2 = arith.andi %0, %1 : i1
    %3 = arith.extui %2 : i1 to i32
    %c0_i32_1 = arith.constant 0 : i32
    %4 = arith.cmpi ne, %3, %c0_i32_1 : i32
    scf.if %4 {
      %cst_19 = arith.constant 0.000000e+00 : f32
      %38 = vector.broadcast %cst_19 : f32 to vector<4x1xf32>
      %c0_20 = arith.constant 0 : index
      %c0_21 = arith.constant 0 : index
      %39 = vector.load %arg8[%c0_20, %c0_21] : memref<4x1xf32, #tpu.memory_space<vmem>>, vector<4x1xf32>
      tpu.vector_store %arg8[%c0_20, %c0_21], %38 {strides = array<i32>} : memref<4x1xf32, #tpu.memory_space<vmem>>, vector<4x1xf32>,
      %cst_22 = arith.constant 0.000000e+00 : f32
      %40 = vector.broadcast %cst_22 : f32 to vector<4x1xf32>
      %c0_23 = arith.constant 0 : index
      %c0_24 = arith.constant 0 : index
      %41 = vector.load %arg9[%c0_23, %c0_24] : memref<4x1xf32, #tpu.memory_space<vmem>>, vector<4x1xf32>
      tpu.vector_store %arg9[%c0_23, %c0_24], %40 {strides = array<i32>} : memref<4x1xf32, #tpu.memory_space<vmem>>, vector<4x1xf32>,
      %cst_25 = arith.constant 0.000000e+00 : f32
      %42 = vector.broadcast %cst_25 : f32 to vector<4x1xf32>
      %c0_26 = arith.constant 0 : index
      %c0_27 = arith.constant 0 : index
      %43 = vector.load %arg10[%c0_26, %c0_27] : memref<4x1xf32, #tpu.memory_space<vmem>>, vector<4x1xf32>
      tpu.vector_store %arg10[%c0_26, %c0_27], %42 {strides = array<i32>} : memref<4x1xf32, #tpu.memory_space<vmem>>, vector<4x1xf32>,
    } else {
    }
    %c0_i32_2 = arith.constant 0 : i32
    %5 = arith.cmpi eq, %arg1, %c0_i32_2 : i32
    %6 = arith.extui %5 : i1 to i32
    %c0_i32_3 = arith.constant 0 : i32
    %7 = arith.cmpi ne, %6, %c0_i32_3 : i32
    scf.if %7 {
      %cst_19 = arith.constant 0.000000e+00 : f32
      %38 = vector.broadcast %cst_19 : f32 to vector<4x512xf32>
      %c0_20 = arith.constant 0 : index
      %c0_21 = arith.constant 0 : index
      %39 = vector.load %arg7[%c0_20, %c0_21] : memref<4x512xf32, #tpu.memory_space<vmem>>, vector<4x512xf32>
      tpu.vector_store %arg7[%c0_20, %c0_21], %38 {strides = array<i32>} : memref<4x512xf32, #tpu.memory_space<vmem>>, vector<4x512xf32>,
    } else {
    }
    %c0 = arith.constant 0 : index
    %c0_4 = arith.constant 0 : index
    %8 = vector.load %arg2[%c0, %c0_4] : memref<4x2048xf32, #tpu.memory_space<vmem>>, vector<4x2048xf32>
    %c0_5 = arith.constant 0 : index
    %c0_6 = arith.constant 0 : index
    %9 = vector.load %arg3[%c0_5, %c0_6] : memref<2048x512xf32, #tpu.memory_space<vmem>>, vector<2048x512xf32>
    %10 = tpu.iota {dimensions = array<i32: 1>} : vector<4x2048xi32>
    %c2048_i32 = arith.constant 2048 : i32
    %11 = arith.muli %arg1, %c2048_i32 : i32
    %12 = vector.broadcast %11 : i32 to vector<4x2048xi32>
    %13 = arith.addi %10, %12 : vector<4x2048xi32>
    %c2176_i32 = arith.constant 2176 : i32
    %14 = vector.broadcast %c2176_i32 : i32 to vector<4x2048xi32>
    %15 = arith.cmpi slt, %13, %14 : vector<4x2048xi32>
    %cst = arith.constant 0.000000e+00 : f32
    %16 = vector.broadcast %cst : f32 to vector<4x2048xf32>
    %17 = arith.select %15, %8, %16 : vector<4x2048xi1>, vector<4x2048xf32>
    %18 = tpu.iota {dimensions = array<i32: 0>} : vector<2048x512xi32>
    %c2048_i32_7 = arith.constant 2048 : i32
    %19 = arith.muli %arg1, %c2048_i32_7 : i32
    %20 = vector.broadcast %19 : i32 to vector<2048x512xi32>
    %21 = arith.addi %18, %20 : vector<2048x512xi32>
    %c2176_i32_8 = arith.constant 2176 : i32
    %22 = vector.broadcast %c2176_i32_8 : i32 to vector<2048x512xi32>
    %23 = arith.cmpi slt, %21, %22 : vector<2048x512xi32>
    %cst_9 = arith.constant 0.000000e+00 : f32
    %24 = vector.broadcast %cst_9 : f32 to vector<2048x512xf32>
    %25 = arith.select %23, %9, %24 : vector<2048x512xi1>, vector<2048x512xf32>
    %c0_10 = arith.constant 0 : index
    %c0_11 = arith.constant 0 : index
    %26 = vector.load %arg7[%c0_10, %c0_11] : memref<4x512xf32, #tpu.memory_space<vmem>>, vector<4x512xf32>
    %cst_12 = arith.constant dense<0.000000e+00> : vector<4x512xf32>
    %27 = tpu.matmul %17, %25, %cst_12 {dimension_numbers = #tpu.dot_dimension_numbers<[1], [0], [0], [1], [0, 0, 1, 1], [], []>} : vector<4x2048xf32>, vector<2048x512xf32>, vector<4x512xf32> -> vector<4x512xf32>
    %28 = arith.addf %26, %27 : vector<4x512xf32>
    %c0_13 = arith.constant 0 : index
    %c0_14 = arith.constant 0 : index
    %29 = vector.load %arg7[%c0_13, %c0_14] : memref<4x512xf32, #tpu.memory_space<vmem>>, vector<4x512xf32>
    tpu.vector_store %arg7[%c0_13, %c0_14], %28 {strides = array<i32>} : memref<4x512xf32, #tpu.memory_space<vmem>>, vector<4x512xf32>,
    %c1_i32 = arith.constant 1 : i32
    %30 = arith.cmpi eq, %arg1, %c1_i32 : i32
    %31 = arith.extui %30 : i1 to i32
    %c0_i32_15 = arith.constant 0 : i32
    %32 = arith.cmpi ne, %31, %c0_i32_15 : i32
    scf.if %32 {
      %c0_19 = arith.constant 0 : index
      %c0_20 = arith.constant 0 : index
      %38 = vector.load %arg7[%c0_19, %c0_20] : memref<4x512xf32, #tpu.memory_space<vmem>>, vector<4x512xf32>
      %c0_21 = arith.constant 0 : index
      %c0_22 = arith.constant 0 : index
      %39 = vector.load %arg4[%c0_21, %c0_22] : memref<1x512xf32, #tpu.memory_space<vmem>>, vector<1x512xf32>
      %40 = vector.broadcast %39 : vector<1x512xf32> to vector<4x512xf32>
      %41 = arith.addf %38, %40 : vector<4x512xf32>
      %c0_23 = arith.constant 0 : index
      %c0_24 = arith.constant 0 : index
      %42 = vector.load %arg5[%c0_23, %c0_24] : memref<4x512xf32, #tpu.memory_space<vmem>>, vector<4x512xf32>
      %43 = tpu.iota {dimensions = array<i32: 1>} : vector<4x512xi32>
      %c512_i32 = arith.constant 512 : i32
      %44 = arith.muli %arg0, %c512_i32 : i32
      %45 = vector.broadcast %44 : i32 to vector<4x512xi32>
      %46 = arith.addi %43, %45 : vector<4x512xi32>
      %c640_i32 = arith.constant 640 : i32
      %47 = vector.broadcast %c640_i32 : i32 to vector<4x512xi32>
      %48 = arith.cmpi slt, %46, %47 : vector<4x512xi32>
      %cst_25 = arith.constant 0.000000e+00 : f32
      %49 = vector.broadcast %cst_25 : f32 to vector<4x512xf32>
      %50 = arith.select %48, %41, %49 : vector<4x512xi1>, vector<4x512xf32>
      %cst_26 = arith.constant 0.000000e+00 : f32
      %51 = vector.broadcast %cst_26 : f32 to vector<4x512xf32>
      %52 = arith.select %48, %42, %51 : vector<4x512xi1>, vector<4x512xf32>
      %c0_27 = arith.constant 0 : index
      %c0_28 = arith.constant 0 : index
      %53 = vector.load %arg8[%c0_27, %c0_28] : memref<4x1xf32, #tpu.memory_space<vmem>>, vector<4x1xf32>
      %54 = arith.mulf %50, %52 : vector<4x512xf32>
      %cst_29 = arith.constant dense<0.000000e+00> : vector<4xf32>
      %55 = vector.multi_reduction <add>, %54, %cst_29 [1] : vector<4x512xf32> to vector<4xf32>
      %56 = vector.shape_cast %55 : vector<4xf32> to vector<4x1xf32>
      %57 = arith.addf %53, %56 : vector<4x1xf32>
      %c0_30 = arith.constant 0 : index
      %c0_31 = arith.constant 0 : index
      %58 = vector.load %arg8[%c0_30, %c0_31] : memref<4x1xf32, #tpu.memory_space<vmem>>, vector<4x1xf32>
      tpu.vector_store %arg8[%c0_30, %c0_31], %57 {strides = array<i32>} : memref<4x1xf32, #tpu.memory_space<vmem>>, vector<4x1xf32>,
      %c0_32 = arith.constant 0 : index
      %c0_33 = arith.constant 0 : index
      %59 = vector.load %arg9[%c0_32, %c0_33] : memref<4x1xf32, #tpu.memory_space<vmem>>, vector<4x1xf32>
      %60 = arith.mulf %50, %50 : vector<4x512xf32>
      %cst_34 = arith.constant dense<0.000000e+00> : vector<4xf32>
      %61 = vector.multi_reduction <add>, %60, %cst_34 [1] : vector<4x512xf32> to vector<4xf32>
      %62 = vector.shape_cast %61 : vector<4xf32> to vector<4x1xf32>
      %63 = arith.addf %59, %62 : vector<4x1xf32>
      %c0_35 = arith.constant 0 : index
      %c0_36 = arith.constant 0 : index
      %64 = vector.load %arg9[%c0_35, %c0_36] : memref<4x1xf32, #tpu.memory_space<vmem>>, vector<4x1xf32>
      tpu.vector_store %arg9[%c0_35, %c0_36], %63 {strides = array<i32>} : memref<4x1xf32, #tpu.memory_space<vmem>>, vector<4x1xf32>,
      %c0_37 = arith.constant 0 : index
      %c0_38 = arith.constant 0 : index
      %65 = vector.load %arg10[%c0_37, %c0_38] : memref<4x1xf32, #tpu.memory_space<vmem>>, vector<4x1xf32>
      %66 = arith.mulf %52, %52 : vector<4x512xf32>
      %cst_39 = arith.constant dense<0.000000e+00> : vector<4xf32>
      %67 = vector.multi_reduction <add>, %66, %cst_39 [1] : vector<4x512xf32> to vector<4xf32>
      %68 = vector.shape_cast %67 : vector<4xf32> to vector<4x1xf32>
      %69 = arith.addf %65, %68 : vector<4x1xf32>
      %c0_40 = arith.constant 0 : index
      %c0_41 = arith.constant 0 : index
      %70 = vector.load %arg10[%c0_40, %c0_41] : memref<4x1xf32, #tpu.memory_space<vmem>>, vector<4x1xf32>
      tpu.vector_store %arg10[%c0_40, %c0_41], %69 {strides = array<i32>} : memref<4x1xf32, #tpu.memory_space<vmem>>, vector<4x1xf32>,
    } else {
    }
    %c1_i32_16 = arith.constant 1 : i32
    %33 = arith.cmpi eq, %arg0, %c1_i32_16 : i32
    %c1_i32_17 = arith.constant 1 : i32
    %34 = arith.cmpi eq, %arg1, %c1_i32_17 : i32
    %35 = arith.andi %33, %34 : i1
    %36 = arith.extui %35 : i1 to i32
    %c0_i32_18 = arith.constant 0 : i32
    %37 = arith.cmpi ne, %36, %c0_i32_18 : i32
    scf.if %37 {
      %c0_19 = arith.constant 0 : index
      %c0_20 = arith.constant 0 : index
      %38 = vector.load %arg8[%c0_19, %c0_20] : memref<4x1xf32, #tpu.memory_space<vmem>>, vector<4x1xf32>
      %c0_21 = arith.constant 0 : index
      %c0_22 = arith.constant 0 : index
      %39 = vector.load %arg9[%c0_21, %c0_22] : memref<4x1xf32, #tpu.memory_space<vmem>>, vector<4x1xf32>
      %c0_23 = arith.constant 0 : index
      %c0_24 = arith.constant 0 : index
      %40 = vector.load %arg10[%c0_23, %c0_24] : memref<4x1xf32, #tpu.memory_space<vmem>>, vector<4x1xf32>
      %cst_25 = arith.constant 1.000000e-16 : f32
      %41 = vector.broadcast %cst_25 : f32 to vector<4x1xf32>
      %42 = arith.maximumf %39, %41 : vector<4x1xf32>
      %cst_26 = arith.constant 1.000000e-16 : f32
      %43 = vector.broadcast %cst_26 : f32 to vector<4x1xf32>
      %44 = arith.maximumf %40, %43 : vector<4x1xf32>
      %45 = arith.mulf %42, %44 : vector<4x1xf32>
      %46 = math.rsqrt %45 : vector<4x1xf32>
      %47 = arith.mulf %38, %46 : vector<4x1xf32>
      %c0_27 = arith.constant 0 : index
      %c0_28 = arith.constant 0 : index
      %48 = vector.load %arg6[%c0_27, %c0_28] : memref<4x1xf32, #tpu.memory_space<vmem>>, vector<4x1xf32>
      tpu.vector_store %arg6[%c0_27, %c0_28], %47 {strides = array<i32>} : memref<4x1xf32, #tpu.memory_space<vmem>>, vector<4x1xf32>,
    } else {
    }
    return
  }
  func.func @transform_0(%arg0: i32, %arg1: i32) -> (i32, i32) {
    %c0_i32 = arith.constant 0 : i32
    %c0_i32_0 = arith.constant 0 : i32
    return %c0_i32, %arg1 : i32, i32
  }
  func.func @transform_1(%arg0: i32, %arg1: i32) -> (i32, i32) {
    %c0_i32 = arith.constant 0 : i32
    return %arg1, %arg0 : i32, i32
  }
  func.func @transform_2(%arg0: i32, %arg1: i32) -> (i32, i32) {
    %c0_i32 = arith.constant 0 : i32
    %c0_i32_0 = arith.constant 0 : i32
    return %c0_i32, %arg0 : i32, i32
  }
  func.func @transform_3(%arg0: i32, %arg1: i32) -> (i32, i32) {
    %c0_i32 = arith.constant 0 : i32
    %c0_i32_0 = arith.constant 0 : i32
    return %c0_i32, %arg0 : i32, i32
  }
  func.func @transform_4(%arg0: i32, %arg1: i32) -> (i32, i32) {
    %c0_i32 = arith.constant 0 : i32
    %c0_i32_0 = arith.constant 0 : i32
    %c0_i32_1 = arith.constant 0 : i32
    return %c0_i32, %c0_i32_0 : i32, i32
  }
}

module attributes {stable_mosaic.version = 11 : i64} {
  func.func @_kd_kernel(%arg0: memref<4x100xf32, #tpu.memory_space<vmem>>, %arg1: memref<4x100xf32, #tpu.memory_space<vmem>>, %arg2: memref<4x1xf32, #tpu.memory_space<vmem>>) attributes {dimension_semantics = [], scalar_prefetch = 0 : i64, scratch_operands = 0 : i64, tpu.core_type = #tpu.core_type<tc>} {
    %c0 = arith.constant 0 : index
    %c0_0 = arith.constant 0 : index
    %0 = vector.load %arg0[%c0, %c0_0] : memref<4x100xf32, #tpu.memory_space<vmem>>, vector<4x100xf32>
    %cst = arith.constant 4.000000e+00 : f32
    %1 = vector.broadcast %cst : f32 to vector<4x100xf32>
    %2 = arith.divf %0, %1 : vector<4x100xf32>
    %c0_1 = arith.constant 0 : index
    %c0_2 = arith.constant 0 : index
    %3 = vector.load %arg1[%c0_1, %c0_2] : memref<4x100xf32, #tpu.memory_space<vmem>>, vector<4x100xf32>
    %cst_3 = arith.constant 4.000000e+00 : f32
    %4 = vector.broadcast %cst_3 : f32 to vector<4x100xf32>
    %5 = arith.divf %3, %4 : vector<4x100xf32>
    %cst_4 = arith.constant dense<0xFF800000> : vector<4xf32>
    %6 = vector.multi_reduction <maximumf>, %2, %cst_4 [1] : vector<4x100xf32> to vector<4xf32>
    %7 = vector.shape_cast %6 : vector<4xf32> to vector<4x1xf32>
    %8 = vector.broadcast %7 : vector<4x1xf32> to vector<4x100xf32>
    %9 = arith.subf %2, %8 : vector<4x100xf32>
    %10 = math.exp %9 : vector<4x100xf32>
    %cst_5 = arith.constant dense<0.000000e+00> : vector<4xf32>
    %11 = vector.multi_reduction <add>, %10, %cst_5 [1] : vector<4x100xf32> to vector<4xf32>
    %12 = vector.shape_cast %11 : vector<4xf32> to vector<4x1xf32>
    %13 = math.log %12 : vector<4x1xf32>
    %14 = vector.broadcast %13 : vector<4x1xf32> to vector<4x100xf32>
    %15 = arith.subf %9, %14 : vector<4x100xf32>
    %cst_6 = arith.constant dense<0xFF800000> : vector<4xf32>
    %16 = vector.multi_reduction <maximumf>, %5, %cst_6 [1] : vector<4x100xf32> to vector<4xf32>
    %17 = vector.shape_cast %16 : vector<4xf32> to vector<4x1xf32>
    %18 = vector.broadcast %17 : vector<4x1xf32> to vector<4x100xf32>
    %19 = arith.subf %5, %18 : vector<4x100xf32>
    %20 = math.exp %19 : vector<4x100xf32>
    %cst_7 = arith.constant dense<0.000000e+00> : vector<4xf32>
    %21 = vector.multi_reduction <add>, %20, %cst_7 [1] : vector<4x100xf32> to vector<4xf32>
    %22 = vector.shape_cast %21 : vector<4xf32> to vector<4x1xf32>
    %23 = math.log %22 : vector<4x1xf32>
    %24 = vector.broadcast %23 : vector<4x1xf32> to vector<4x100xf32>
    %25 = arith.subf %19, %24 : vector<4x100xf32>
    %26 = math.exp %25 : vector<4x100xf32>
    %27 = arith.subf %25, %15 : vector<4x100xf32>
    %28 = arith.mulf %26, %27 : vector<4x100xf32>
    %cst_8 = arith.constant dense<0.000000e+00> : vector<4xf32>
    %29 = vector.multi_reduction <add>, %28, %cst_8 [1] : vector<4x100xf32> to vector<4xf32>
    %30 = vector.shape_cast %29 : vector<4xf32> to vector<4x1xf32>
    %c0_9 = arith.constant 0 : index
    %c0_10 = arith.constant 0 : index
    %31 = vector.load %arg2[%c0_9, %c0_10] : memref<4x1xf32, #tpu.memory_space<vmem>>, vector<4x1xf32>
    tpu.vector_store %arg2[%c0_9, %c0_10], %30 {strides = array<i32>} : memref<4x1xf32, #tpu.memory_space<vmem>>, vector<4x1xf32>,
    return
  }
}

</mosaic_0001>

<bundles_post_ra>
// kernel: dckd_loss.8
= control target key start
LH: loop header
LB: loop body
LE: loop exit
PB: predicated region body
PF: predicated region fallthrough
CT: control target
= control target key end

     0   :  { %7 = vsyncpa [#allocation6], 0  ;;  %s2185_s0 = inlined_call_operand.hbm [shape: f32[4,4224], index: 0, kind: input, shape index: {}]   ;;  %s2186_s1 = inlined_call_operand.hbm [shape: f32[4,4224], index: 1, kind: input, shape index: {}]   ;;  %s2187_s2 = inlined_call_operand.hbm [shape: f32[4,1], index: 2, kind: output, shape index: {}]  }
   0x1   :  { %9 = vsyncpa [#allocation6 + $0x1], 0 }
   0x2   :  { %10 = vsyncpa [#allocation9], 0 }
   0x3   :  { %12 = vsyncpa [#allocation9 + $0x1], 0 }
   0x4   :  { %13 = vsyncpa [#allocation7], 0  ;;  %s1152_s9 = smov 0   ;;  %s1154_s10 = smov 0  }
   0x5   :  { %s1156_s11 = smov 0   ;;  %s1158_s12 = smov 0  }
   0x6 LB: > { %s1171_s13 = sadd.s32 4294967295, %s1131_s12   ;;  %s1174_s14 = sadd.s32 1, %s1131_s12   ;;  %s1131_s12 = sphi %s1158_s12, %s2445_s12   ;;  %s1127_s11 = sphi %s1156_s11, %s2444_s11   ;;  %s1123_s10 = sphi %s1154_s10, %s2443_s10   ;;  %s1119_s9 = sphi %s1152_s9, %s2442_s9  }
   0x7   : > { %s23_s15 = ssub.s32 %s1131_s12, %s1174_s14  ;;  %s26_s16 = sadd.s32 1, %s1127_s11 }
   0x8   : > { %p24_p0 = scmp.eq.s32.totalorder %s23_s15, 0  ;;  %p33_p1 = scmp.ne.s32.totalorder %s1127_s11, %s1123_s10 }
   0x9   : > { %p34_p2 = scmp.eq.s32.totalorder %s1131_s12, 0  ;;  %p39_p3 = scmp.ne.s32.totalorder %s1123_s10, %s1119_s9 }
   0xa   : > { %s1184_s17 = scalar_select %p24_p0, %s1127_s11, %s26_s16  }
   0xb   : > { %p1186_p4 = por %p34_p2, %p33_p1  ;;  %p40_p5 = scmp.eq.s32.totalorder %s1171_s13, 0 }
   0xc   : > { %p904_p7 = scmp.ge.s32.totalorder %s1131_s12, 2 }
   0xd   : > { %s2227_s18 = scalar_select %p1186_p4, 1, 0 }
   0xe   : > { %p1191_p6 = por %p40_p5, %p39_p3  ;;  %106 = sbr.rel (%p904_p7) target bundleno = 91 (0x5b), region = 16 }
  0x10   : > { %s2228_s19 = scalar_select %p1191_p6, 1, 0 }
  0x15   : > { %109 = sbr.rel (!%p1186_p4) target bundleno = 55 (0x37), region = 20  ;;  %s110_s20 = sand.u32 (%p1186_p4), 1, %s1127_s11  }
  0x16   : > { %s906_s21 = sshll.u32 (%p1186_p4), %s1131_s12, 5  ;;  %s905_s22 = sshll.u32 (%p1186_p4), %s110_s20, 7 }
  0x17   : > { %s116_s23 = ssub.s32 (%p1186_p4), 33, %s906_s21  ;;  %s1203_s26 = scalar_lea.sflag (%p1186_p4), [#allocation6], %s110_s20 }
  0x18   : > { %p117_p8 = scmp.lt.s32.totalorder (%p1186_p4), %s116_s23, 32  ;;  %s114_s27 = scalar_lea.vmem (%p1186_p4), [#allocation5], %s905_s22 }
  0x1c   : > { %s2447_s23 = smov (!%p117_p8, %s116_s23), 32 }
  0x1d   : > { %s1200_s24 = sshll.u32 %s2447_s23, 6 }
  0x1e   : > { %s121_s25 = ssub.s32 2048, %s1200_s24 }
  0x1f   : > { %122 = vsyncadd %s1203_s26, %s121_s25  ;;  %p908_p9 = scmp.ne.s32.totalorder %s1200_s24, 0  ;;  %s929_s28 = sshll.u32 %s1131_s12, 11 }
  0x20   : > { %s1211_s3 = scalar_lea.hbm %s2185_s0, %s929_s28  ;;  %s128_s4 = sshll.u32 %s114_s27, 4  ;;  %s129_s4 = int_to_ptr.vmem [resolvable:$true] %s128_s4 }
  0x21   : > { %s1007_s5 = scalar_lea.hbm %s1211_s3, %s1200_s24  ;;  %s1011_s8 = scalar_lea.hbm %s2185_s0, 2112 }
  0x22   : > { %p1008_p10 = scmp.ne.s32.totalorder %s1211_s3, %s1007_s5  ;;  %p1012_p13 = scmp.lt.u32.totalorder %s1211_s3, %s2185_s0 }
  0x23   : > { %p1013_p0 = scmp.lt.u32.totalorder %s1011_s8, %s1007_s5  ;;  %p1015_p2 = scmp.lt.u32.totalorder %s1007_s5, %s1211_s3 }
  0x24   : > { %p1009_p11 = pnand %p1008_p10, %p908_p9 }
  0x25   : > { %p1014_p1 = por %p1013_p0, %p1012_p13 }
  0x26   : > { %p1010_p12 = pneg %p1009_p11 }
  0x27   : > { %p1016_p3 = por %p1015_p2, %p1014_p1 }
  0x29   : > { %p1017_p5 = pnand %p1016_p3, %p1010_p12 }
  0x2b   : > { %1020 = shalt.err (!%p1017_p5)
}
  0x2c   : > { %s1021_s16 = scalar_lea.vmem %s129_s4, %s1200_s24  ;;  %s1133_s20 = smov [#allocation5]  }
  0x2d   : > { %p1022_p7 = scmp.ne.s32.totalorder %s129_s4, %s1021_s16  ;;  %s1025_s21 = sshll.u32 %s1133_s20, 4  ;;  %s1026_s21 = int_to_ptr.vmem [resolvable:$false] %s1025_s21 }
  0x2e   : > { %s1027_s22 = scalar_lea.vmem %s1026_s21, 4096  ;;  %p1028_p11 = scmp.lt.s32.totalorder %s129_s4, %s1026_s21 }
  0x2f   : > { %p1023_p8 = pnand %p1022_p7, %p908_p9  ;;  %p1029_p6 = scmp.lt.s32.totalorder %s1027_s22, %s1021_s16 }
  0x31   : > { %p1024_p10 = pneg %p1023_p8  ;;  %p1030_p4 = por %p1029_p6, %p1028_p11 }
  0x33   : > { %p1031_p0 = pnand %p1030_p4, %p1024_p10 }
  0x35   : > { %1034 = shalt.err (!%p1031_p0)
}
  0x36   : > { %131 = dma.hbm_to_vmem [thread:$0]  (%p908_p9), %s1211_s3, %s1200_s24, %s129_s4, %s1203_s26  }
  0x37 PF: > { %p2229_p12 = scmp.ne.s32.totalorder %s2227_s18, 0 }
  0x38   : > { %s135_s23 = sand.u32 (%p2229_p12), 1, %s1127_s11   ;;  %s913_s25 = sshll.u32 (%p2229_p12), %s1131_s12, 5 }
  0x39   : > { %134 = sbr.rel (!%p2229_p12) target bundleno = 91 (0x5b), region = 24  ;;  %s912_s27 = sshll.u32 (%p2229_p12), %s135_s23, 7 }
  0x3a   : > { %s141_s28 = ssub.s32 (%p2229_p12), 33, %s913_s25  ;;  %s1241_s5 = scalar_lea.sflag (%p2229_p12), [#allocation9], %s135_s23 }
  0x3b   : > { %p142_p13 = scmp.lt.s32.totalorder (%p2229_p12), %s141_s28, 32  ;;  %s139_s24 = scalar_lea.vmem (%p2229_p12), [#allocation8], %s912_s27 }
  0x40   : > { %s2449_s28 = smov (!%p142_p13, %s141_s28), 32 }
  0x41   : > { %s1238_s29 = sshll.u32 %s2449_s28, 6 }
  0x42   : > { %s146_s30 = ssub.s32 2048, %s1238_s29 }
  0x43   : > { %147 = vsyncadd %s1241_s5, %s146_s30  ;;  %p915_p4 = scmp.ne.s32.totalorder %s1238_s29, 0  ;;  %s930_s18 = sshll.u32 %s1131_s12, 11 }
  0x44   : > { %s1249_s4 = scalar_lea.hbm %s2186_s1, %s930_s18  ;;  %s153_s6 = sshll.u32 %s139_s24, 4  ;;  %s154_s6 = int_to_ptr.vmem [resolvable:$true] %s153_s6 }
  0x45   : > { %s1035_s7 = scalar_lea.hbm %s1249_s4, %s1238_s29  ;;  %s1039_s15 = scalar_lea.hbm %s2186_s1, 2112 }
  0x46   : > { %p1036_p6 = scmp.ne.s32.totalorder %s1249_s4, %s1035_s7  ;;  %p1040_p2 = scmp.lt.u32.totalorder %s1249_s4, %s2186_s1 }
  0x47   : > { %p1041_p3 = scmp.lt.u32.totalorder %s1039_s15, %s1035_s7  ;;  %p1043_p7 = scmp.lt.u32.totalorder %s1035_s7, %s1249_s4 }
  0x48   : > { %p1037_p9 = pnand %p1036_p6, %p915_p4 }
  0x49   : > { %p1042_p5 = por %p1041_p3, %p1040_p2 }
  0x4a   : > { %p1038_p1 = pneg %p1037_p9 }
  0x4b   : > { %p1044_p8 = por %p1043_p7, %p1042_p5 }
  0x4d   : > { %p1045_p10 = pnand %p1044_p8, %p1038_p1 }
  0x4f   : > { %1048 = shalt.err (!%p1045_p10)
}
  0x50   : > { %s1049_s21 = scalar_lea.vmem %s154_s6, %s1238_s29  ;;  %s1134_s22 = smov [#allocation8]  }
  0x51   : > { %p1050_p11 = scmp.ne.s32.totalorder %s154_s6, %s1049_s21  ;;  %s1053_s23 = sshll.u32 %s1134_s22, 4  ;;  %s1054_s23 = int_to_ptr.vmem [resolvable:$false] %s1053_s23 }
  0x52   : > { %s1055_s25 = scalar_lea.vmem %s1054_s23, 4096  ;;  %p1056_p13 = scmp.lt.s32.totalorder %s154_s6, %s1054_s23 }
  0x53   : > { %p1051_p0 = pnand %p1050_p11, %p915_p4  ;;  %p1057_p6 = scmp.lt.s32.totalorder %s1055_s25, %s1049_s21 }
  0x55   : > { %p1052_p12 = pneg %p1051_p0  ;;  %p1058_p9 = por %p1057_p6, %p1056_p13 }
  0x57   : > { %p1059_p2 = pnand %p1058_p9, %p1052_p12 }
  0x59   : > { %1062 = shalt.err (!%p1059_p2)
}
  0x5a   : > { %156 = dma.hbm_to_vmem [thread:$0]  (%p915_p4), %s1249_s4, %s1238_s29, %s154_s6, %s1241_s5  }
  0x5b PF: > { %p919_p1 = scmp.ge.s32.totalorder %s1131_s12, 1  ;;  %p158_p3 = scmp.lt.s32.totalorder %s1131_s12, 3 }
  0x5d   : > { %p159_p5 = pnand %p919_p1, %p158_p3 }
  0x5f   : > { %162 = sbr.rel (%p159_p5) target bundleno = 466 (0x1d2), region = 28 }
  0x66   : > { %s164_s27 = sand.u32 1, %s1123_s10   ;;  %p2230_p7 = scmp.ne.s32.totalorder %s2228_s19, 0 }
  0x67   : > { %s920_s28 = sshll.u32 %s164_s27, 7  ;;  %s165_s30 = scalar_lea.sflag [#allocation6], %s164_s27 }
  0x68   : > { %s1275_s24 = scalar_lea.vmem [#allocation5], %s920_s28 }
  0x69   : > { %1106 = dma.done.wait (%p2230_p7), %s165_s30, 2048  }
  0x6a   : > { %1108 = vsyncadd (%p2230_p7), %s165_s30, 4294965248  ;;  %s174_s29 = scalar_lea.sflag [#allocation9], %s164_s27  ;;  %s1281_s5 = scalar_lea.vmem [#allocation8], %s920_s28 }
  0x6b   : > { %1110 = dma.done.wait (%p2230_p7), %s174_s29, 2048  }
  0x6c   : > { %1112 = vsyncadd (%p2230_p7), %s174_s29, 4294965248  ;;  %p922_p4 = scmp.ne.s32.totalorder %s1171_s13, 0 }
  0x6d   : > { %vm212_vm0 = vcmask (!%p922_p4), 3072   ;;  %v1135_v0 = vmov (!%p922_p4), 0.0  }
  0x6e   : > { %211 = sbr.rel (%p922_p4) target bundleno = 117 (0x75), region = 40  ;;  %213 = vst.msk [vmem:[#allocation2] sm:$0xf] (!%p922_p4), %vm212_vm0, %v1135_v0  ;;  %214 = vst.msk [vmem:[#allocation3] sm:$0xf] (!%p922_p4), %vm212_vm0, %v1135_v0 }
  0x6f   : > { %215 = vst.msk [vmem:[#allocation4] sm:$0xf] (!%p922_p4), %vm212_vm0, %v1135_v0 }
  0x75 PF: > { %v248_v1 = vlaneseq  ;;  %v1289_v2 = vld [vmem:[%s1275_s24] sm:$0xff]  ;;  %s923_s12 = sshll.u32 %s1171_s13, 12  ;;  %v1293_v4 = vld [vmem:[%s1275_s24 + $0x8] sm:$0xff]  ;;  %v1296_v5 = vld [vmem:[%s1275_s24 + $0x10] sm:$0xff]  ;;  %p924_p8 = scmp.ne.s32.totalorder %s1171_s13, 1 }
  0x76   : > { %v1299_v6 = vld [vmem:[%s1275_s24 + $0x18] sm:$0xff]  ;;  %v1302_v7 = vld [vmem:[%s1275_s24 + $0x20] sm:$0xff]  ;;  %v1305_v8 = vld [vmem:[%s1275_s24 + $0x28] sm:$0xff]  ;;  %v1316_v12 = vstv %s923_s12  ;;  %v363_v13 = vcombine.high %v1289_v2, %v1289_v2  ;;  %v364_v16 = vcombine.high %v1293_v4, %v1293_v4  ;;  %v365_v17 = vcombine.high %v1296_v5, %v1296_v5 }
  0x77   : > { %v249_v3 = vand.u32 127, %v248_v1  ;;  %v1308_v9 = vld [vmem:[%s1275_s24 + $0x30] sm:$0xff]  ;;  %v1311_v10 = vld [vmem:[%s1275_s24 + $0x38] sm:$0xff]  ;;  %v1314_v11 = vld [vmem:[%s1275_s24 + $0x40] sm:$0xff] }
  0x78   : > { %v1321_v14 = vld [vmem:[%s1275_s24 + $0x48] sm:$0xff]  ;;  %v234_v18 = vld [vmem:[%s1281_s5 + $0x10] sm:$0xff] }
  0x79   : > { %v250_v15 = vadd.s32 128, %v249_v3  ;;  %v251_v19 = vadd.s32 256, %v249_v3  ;;  %v252_v23 = vadd.s32 384, %v249_v3  ;;  %v1336_v24 = vadd.s32 %v1316_v12, %v249_v3 }
  0x7a   : > { %v253_v27 = vadd.s32 512, %v249_v3  ;;  %v254_v28 = vadd.s32 640, %v249_v3  ;;  %v255_v29 = vadd.s32 768, %v249_v3  ;;  %v256_v31 = vadd.s32 896, %v249_v3 }
  0x7b   : > { %v257_v32 = vadd.s32 1024, %v249_v3  ;;  %v258_v33 = vadd.s32 1152, %v249_v3  ;;  %v1345_v34 = vadd.s32 %v1316_v12, %v250_v15  ;;  %v259_v35 = vadd.s32 1280, %v249_v3 }
  0x7c   : > { %v260_v36 = vadd.s32 1408, %v249_v3  ;;  %v261_v37 = vadd.s32 1536, %v249_v3  ;;  %v1348_v38 = vadd.s32 %v1316_v12, %v251_v19  ;;  %v262_v39 = vadd.s32 1664, %v249_v3 }
  0x7d   : > { %v263_v40 = vadd.s32 1792, %v249_v3  ;;  %v264_v41 = vadd.s32 1920, %v249_v3  ;;  %v1351_v42 = vadd.s32 %v1316_v12, %v252_v23  ;;  %v265_v43 = vadd.s32 2048, %v249_v3 }
  0x7e   : > { %v266_v44 = vadd.s32 2176, %v249_v3  ;;  %v267_v45 = vadd.s32 2304, %v249_v3  ;;  %v1354_v46 = vadd.s32 %v1316_v12, %v253_v27  ;;  %v268_v47 = vadd.s32 2432, %v249_v3 }
  0x7f   : > { %v269_v48 = vadd.s32 2560, %v249_v3  ;;  %v270_v49 = vadd.s32 2688, %v249_v3  ;;  %v271_v50 = vadd.s32 2816, %v249_v3  ;;  %v272_v51 = vadd.s32 2944, %v249_v3 }
  0x80   : > { %v273_v52 = vadd.s32 3072, %v249_v3  ;;  %v274_v53 = vadd.s32 3200, %v249_v3  ;;  %v275_v54 = vadd.s32 3328, %v249_v3  ;;  %v276_v55 = vadd.s32 3456, %v249_v3 }
  0x81   : > { %v277_v56 = vadd.s32 3584, %v249_v3  ;;  %v278_v57 = vadd.s32 3712, %v249_v3  ;;  %v279_v58 = vadd.s32 3840, %v249_v3  ;;  %v280_v59 = vadd.s32 3968, %v249_v3 }
  0x82   : > { %v1357_v60 = vadd.s32 %v1316_v12, %v254_v28  ;;  %v1360_v61 = vadd.s32 %v1316_v12, %v255_v29  ;;  %v1363_v62 = vadd.s32 %v1316_v12, %v256_v31  ;;  %v1366_v63 = vadd.s32 %v1316_v12, %v257_v32 }
  0x83   : > { %v1369_v0 = vadd.s32 %v1316_v12, %v258_v33  ;;  %v1372_v1 = vadd.s32 %v1316_v12, %v259_v35  ;;  %v1375_v3 = vadd.s32 %v1316_v12, %v260_v36  ;;  %v1378_v15 = vadd.s32 %v1316_v12, %v261_v37 }
  0x84   : > { %v1381_v19 = vadd.s32 %v1316_v12, %v262_v39  ;;  %v1384_v23 = vadd.s32 %v1316_v12, %v263_v40  ;;  %v1387_v27 = vadd.s32 %v1316_v12, %v264_v41  ;;  %v1390_v28 = vadd.s32 %v1316_v12, %v265_v43 }
  0x85   : > { %v1393_v29 = vadd.s32 %v1316_v12, %v266_v44  ;;  %v1396_v31 = vadd.s32 %v1316_v12, %v267_v45  ;;  %v1399_v32 = vadd.s32 %v1316_v12, %v268_v47  ;;  %v1402_v33 = vadd.s32 %v1316_v12, %v269_v48 }
  0x86   : > { %v1405_v35 = vadd.s32 %v1316_v12, %v270_v49  ;;  %v1408_v36 = vadd.s32 %v1316_v12, %v271_v50  ;;  %v1411_v37 = vadd.s32 %v1316_v12, %v272_v51  ;;  %v1414_v39 = vadd.s32 %v1316_v12, %v273_v52  ;;  %v1442_v49 = vld [vmem:[%s1275_s24 + $0x50] sm:$0xff]  ;;  %v1452_v50 = vld [vmem:[%s1275_s24 + $0x60] sm:$0xff]  ;;  %v1459_v51 = vld [vmem:[%s1275_s24 + $0x68] sm:$0xff] }
  0x87   : > { %v1417_v40 = vadd.s32 %v1316_v12, %v274_v53  ;;  %v1420_v41 = vadd.s32 %v1316_v12, %v275_v54  ;;  %v1423_v43 = vadd.s32 %v1316_v12, %v276_v55  ;;  %v1426_v44 = vadd.s32 %v1316_v12, %v277_v56  ;;  %v232_v52 = vld [vmem:[%s1281_s5] sm:$0xff]  ;;  %v1467_v53 = vld [vmem:[%s1275_s24 + $0x70] sm:$0xff]  ;;  %v1470_v54 = vld [vmem:[%s1275_s24 + $0x78] sm:$0xff] }
  0x88   : > { %v1429_v45 = vadd.s32 %v1316_v12, %v278_v57  ;;  %v1432_v47 = vadd.s32 %v1316_v12, %v279_v58  ;;  %v1435_v48 = vadd.s32 %v1316_v12, %v280_v59  ;;  %vm315_vm1 = vcmp.lt.s32.totalorder %v1336_v24, 4224  ;;  %v1449_v12 = vld [vmem:[%s1275_s24 + $0x58] sm:$0xff]  ;;  %2234 = vst [vmem:[#allocation17_spill] sm:$0xff] %v1470_v54  ;;  %v233_v55 = vld [vmem:[%s1281_s5 + $0x8] sm:$0xff] }
  0x89   : > { %vm316_vm2 = vcmp.lt.s32.totalorder %v1345_v34, 4224  ;;  %vm317_vm3 = vcmp.lt.s32.totalorder %v1348_v38, 4224  ;;  %vm318_vm4 = vcmp.lt.s32.totalorder %v1351_v42, 4224  ;;  %vm319_vm5 = vcmp.lt.s32.totalorder %v1354_v46, 4224  ;;  %v235_v38 = vld [vmem:[%s1281_s5 + $0x18] sm:$0xff] }
  0x8a   : > { %2231 = vst [vmem:[#allocation14_spill] sm:$0xff] %v1429_v45  ;;  %2232 = vst [vmem:[#allocation15_spill] sm:$0xff] %v1432_v47  ;;  %vm2192_vm6 = vcmp.lt.s32.totalorder %v1357_v60, 4224  ;;  %vm2193_vm7 = vcmp.lt.s32.totalorder %v1360_v61, 4224  ;;  %vm331_vm10 = vcmp.lt.s32.totalorder %v1390_v28, 4224  ;;  %vm332_vm11 = vcmp.lt.s32.totalorder %v1393_v29, 4224 }
  0x8b   : > { %2233 = vst [vmem:[#allocation16_spill] sm:$0xff] %v1435_v48  ;;  %vm333_vm12 = vcmp.lt.s32.totalorder %v1396_v31, 4224  ;;  %vm334_vm9 = vcmp.lt.s32.totalorder %v1399_v32, 4224  ;;  %vm337_vm15 = vcmp.lt.s32.totalorder %v1408_v36, 4224  ;;  %vm338_vm0 = vcmp.lt.s32.totalorder %v1411_v37, 4224 }
  0x8c   : > { %v373_v56 = vcombine.high %v1442_v49, %v1442_v49  ;;  %v374_v57 = vcombine.high %v1449_v12, %v1449_v12  ;;  %v375_v58 = vcombine.high %v1452_v50, %v1452_v50  ;;  %v443_v59 = vcombine.high %v232_v52, %v232_v52 }
  0x8d   : > { %v376_v30 = vcombine.high %v1459_v51, %v1459_v51  ;;  %v1498_v22 = vsel %vm315_vm1, %v1289_v2, 0.0  ;;  %v1507_v21 = vsel %vm316_vm2, %v363_v13, 0.0  ;;  %v1512_v25 = vsel %vm317_vm3, %v1293_v4, 0.0 }
  0x8e   : > { %2235 = vst [vmem:[#allocation18_spill] sm:$0xff] %v1498_v22  ;;  %2236 = vst [vmem:[#allocation19_spill] sm:$0xff] %v1507_v21  ;;  %v1519_v26 = vsel %vm318_vm4, %v364_v16, 0.0  ;;  %v444_v20 = vcombine.high %v233_v55, %v233_v55  ;;  %v1526_v2 = vsel %vm319_vm5, %v1296_v5, 0.0  ;;  %v1533_v13 = vsel %vm2192_vm6, %v365_v17, 0.0 }
  0x8f   : > { %2237 = vst [vmem:[#allocation20_spill] sm:$0xff] %v1512_v25  ;;  %2238 = vst [vmem:[#allocation21_spill] sm:$0xff] %v1519_v26  ;;  %v1538_v4 = vsel %vm2193_vm7, %v1299_v6, 0.0  ;;  %v2242_v16 = vcombine.high %v1299_v6, %v1299_v6  ;;  %vm2243_vm13 = vcmp.lt.s32.totalorder %v1363_v62, 4224  ;;  %vm344_vm8 = vcmp.lt.s32.totalorder %v1429_v45, 4224 }
  0x90   : > { %2239 = vst [vmem:[#allocation22_spill] sm:$0xff] %v1526_v2  ;;  %2240 = vst [vmem:[#allocation23_spill] sm:$0xff] %v1533_v13  ;;  %vm345_vm14 = vcmp.lt.s32.totalorder %v1432_v47, 4224  ;;  %vm2245_vm6 = vcmp.lt.s32.totalorder %v1366_v63, 4224  ;;  %v2247_v17 = vcombine.high %v1302_v7, %v1302_v7  ;;  %vm2248_vm7 = vcmp.lt.s32.totalorder %v1369_v0, 4224 }
  0x91   : > { %2241 = vst [vmem:[#allocation24_spill] sm:$0xff] %v1538_v4  ;;  %v1545_v54 = vsel %vm2243_vm13, %v2242_v16, 0.0  ;;  %v1552_v5 = vsel %vm2245_vm6, %v1302_v7, 0.0  ;;  %v1563_v16 = vsel %vm315_vm1, %v232_v52, 0.0  ;;  %vm346_vm13 = vcmp.lt.s32.totalorder %v1435_v48, 4224 }
  0x92   : > { %2244 = vst [vmem:[#allocation25_spill] sm:$0xff] %v1545_v54  ;;  %2246 = vst [vmem:[#allocation26_spill] sm:$0xff] %v1552_v5  ;;  %v1559_v6 = vsel %vm2248_vm7, %v2247_v17, 0.0  ;;  %v1567_v54 = vsel %vm316_vm2, %v443_v59, 0.0  ;;  %vm2249_vm6 = vcmp.lt.s32.totalorder %v1372_v1, 4224  ;;  %v2250_v7 = vcombine.high %v1305_v8, %v1305_v8 }
  0x93   : > { %v1573_v5 = vsel %vm2249_vm6, %v1305_v8, 0.0  ;;  %vm2251_vm7 = vcmp.lt.s32.totalorder %v1375_v3, 4224  ;;  %vm2252_vm1 = vcmp.lt.s32.totalorder %v1378_v15, 4224  ;;  %v1589_v34 = vsel %vm317_vm3, %v233_v55, 0.0 }
  0x94   : > { %v1580_v17 = vsel %vm2251_vm7, %v2250_v7, 0.0  ;;  %v1585_v24 = vsel %vm2252_vm1, %v1308_v9, 0.0  ;;  %v2254_v52 = vcombine.high %v1308_v9, %v1308_v9  ;;  %vm2255_vm2 = vcmp.lt.s32.totalorder %v1381_v19, 4224 }
  0x95   : > { %2253 = vst [vmem:[#allocation27_spill] sm:$0xff] %v1585_v24  ;;  %vm2256_vm6 = vcmp.lt.s32.totalorder %v1384_v23, 4224  ;;  %v445_v7 = vcombine.high %v234_v18, %v234_v18  ;;  %v1605_v24 = vsel %vm318_vm4, %v444_v20, 0.0  ;;  %v2258_v55 = vcombine.high %v1311_v10, %v1311_v10 }
  0x96   : > { %v1596_v59 = vsel %vm2255_vm2, %v2254_v52, 0.0  ;;  %v1601_v8 = vsel %vm2256_vm6, %v1311_v10, 0.0  ;;  %vm2259_vm3 = vcmp.lt.s32.totalorder %v1387_v27, 4224  ;;  %v1618_v52 = vsel %vm331_vm10, %v1314_v11, 0.0 }
  0x97   : > { %2257 = vst [vmem:[#allocation28_spill] sm:$0xff] %v1601_v8  ;;  %v1613_v9 = vsel %vm2259_vm3, %v2258_v55, 0.0  ;;  %2261 = vst [vmem:[#allocation30_spill] sm:$0xff] %v1618_v52  ;;  %v508_v8 = vmul.f32 %v1563_v16, %v1498_v22  ;;  %v509_v20 = vmul.f32 %v1567_v54, %v1507_v21  ;;  %v2262_v42 = vcombine.high %v1314_v11, %v1314_v11 }
  0x98   : > { %2260 = vst [vmem:[#allocation29_spill] sm:$0xff] %v1613_v9  ;;  %v1634_v55 = vsel %vm333_vm12, %v1321_v14, 0.0  ;;  %v1638_v52 = vsel %vm319_vm5, %v234_v18, 0.0  ;;  %v510_v22 = vmul.f32 %v1589_v34, %v1512_v25  ;;  %v2265_v21 = vcombine.high %v1321_v14, %v1321_v14 }
  0x99   : > { %v1629_v10 = vsel %vm332_vm11, %v2262_v42, 0.0  ;;  %2264 = vst [vmem:[#allocation32_spill] sm:$0xff] %v1634_v55  ;;  %vm2267_vm4 = vcmp.lt.s32.totalorder %v1402_v33, 4224  ;;  %vm2269_vm7 = vcmp.lt.s32.totalorder %v1405_v35, 4224  ;;  %v511_v46 = vmul.f32 %v1605_v24, %v1519_v26  ;;  %v2302_v47 = vld [vmem:[#allocation26_spill] sm:$0xff] }
  0x9a   : > { %2263 = vst [vmem:[#allocation31_spill] sm:$0xff] %v1629_v10  ;;  %v1647_v11 = vsel %vm334_vm9, %v2265_v21, 0.0  ;;  %v1652_v42 = vsel %vm2267_vm4, %v1442_v49, 0.0  ;;  %v1656_v18 = vsel %vm2269_vm7, %v373_v56, 0.0  ;;  %v1663_v14 = vsel %vm337_vm15, %v1449_v12, 0.0  ;;  %v236_v56 = vld [vmem:[%s1281_s5 + $0x20] sm:$0xff] }
  0x9b   : > { %2266 = vst [vmem:[#allocation33_spill] sm:$0xff] %v1647_v11  ;;  %2268 = vst [vmem:[#allocation34_spill] sm:$0xff] %v1652_v42  ;;  %v1667_v21 = vsel %vm338_vm0, %v374_v57, 0.0  ;;  %v446_v25 = vcombine.high %v235_v38, %v235_v38  ;;  %vm2273_vm5 = vcmp.lt.s32.totalorder %v1357_v60, 4224  ;;  %vm2274_vm1 = vcmp.lt.s32.totalorder %v1414_v39, 4224  ;;  %v1748_v42 = vld [vmem:[%s1281_s5 + $0x68] sm:$0xff] }
  0x9c   : > { %2270 = vst [vmem:[#allocation35_spill] sm:$0xff] %v1656_v18  ;;  %2271 = vst [vmem:[#allocation36_spill] sm:$0xff] %v1663_v14  ;;  %v1671_v49 = vsel %vm2273_vm5, %v445_v7, 0.0  ;;  %v1677_v26 = vsel %vm2274_vm1, %v1452_v50, 0.0  ;;  %v512_v12 = vmul.f32 %v1638_v52, %v1526_v2  ;;  %vm2276_vm2 = vcmask 1043456   ;;  %v240_v2 = vld [vmem:[%s1281_s5 + $0x40] sm:$0xff] }
  0x9d   : > { %2272 = vst [vmem:[#allocation37_spill] sm:$0xff] %v1667_v21  ;;  %2275 = vst [vmem:[#allocation38_spill] sm:$0xff] %v1677_v26  ;;  %v541_v14 = vsel %vm2276_vm2, %v508_v8, 0.0  ;;  %vm2278_vm3 = vcmp.lt.s32.totalorder %v1417_v40, 4224  ;;  %vm2280_vm4 = vcmp.lt.s32.totalorder %v1360_v61, 4224  ;;  %v237_v26 = vld [vmem:[%s1281_s5 + $0x28] sm:$0xff]  ;;  %v513_v61 = vmul.f32 %v1671_v49, %v1533_v13 }
  0x9e   : > { %vm2277_vm6 = vmmov %vm2276_vm2  ;;  %v1685_v60 = vsel %vm2278_vm3, %v375_v58, 0.0  ;;  %v1689_v7 = vsel %vm2280_vm4, %v235_v38, 0.0  ;;  %vm2283_vm5 = vcmp.lt.s32.totalorder %v1420_v41, 4224  ;;  %vm2285_vm1 = vcmp.lt.s32.totalorder %v1423_v43, 4224  ;;  %v238_v38 = vld [vmem:[%s1281_s5 + $0x30] sm:$0xff]  ;;  %v244_v18 = vld [vmem:[%s1281_s5 + $0x60] sm:$0xff] }
  0x9f   : > { %v542_v57 = vsel %vm2277_vm6, %v509_v20, 0.0  ;;  %2279 = vst [vmem:[#allocation39_spill] sm:$0xff] %v1685_v60  ;;  %2281 = vst [vmem:[#allocation40_spill] sm:$0xff] %v1689_v7  ;;  %v1696_v8 = vsel %vm2283_vm5, %v1459_v51, 0.0  ;;  %v1700_v20 = vsel %vm2285_vm1, %v376_v30, 0.0  ;;  %v546_v58 = vsel %vm2276_vm2, %v511_v46, 0.0 }
  0xa0   : > { %v543_v21 = vadd.f32 %v542_v57, %v541_v14  ;;  %vm2282_vm7 = vmmov %vm2276_vm2  ;;  %2284 = vst [vmem:[#allocation41_spill] sm:$0xff] %v1696_v8  ;;  %v239_v14 = vld [vmem:[%s1281_s5 + $0x38] sm:$0xff]  ;;  %vm2287_vm6 = vcmp.lt.s32.totalorder %v1426_v44, 4224  ;;  %v447_v51 = vcombine.high %v236_v56, %v236_v56  ;;  %vm2289_vm3 = vcmp.lt.s32.totalorder %v1363_v62, 4224  ;;  %v1754_v10 = vld [vmem:[%s1281_s5 + $0x70] sm:$0xff] }
  0xa1   : > { %v544_v50 = vsel %vm2282_vm7, %v510_v22, 0.0  ;;  %2286 = vst [vmem:[#allocation42_spill] sm:$0xff] %v1700_v20  ;;  %v1710_v22 = vsel %vm2287_vm6, %v1467_v53, 0.0  ;;  %v1714_v30 = vsel %vm2289_vm3, %v446_v25, 0.0  ;;  %v241_v20 = vld [vmem:[%s1281_s5 + $0x48] sm:$0xff]  ;;  %v2291_v46 = vcombine.high %v1467_v53, %v1467_v53  ;;  %v2293_v8 = vld [vmem:[#allocation17_spill] sm:$0xff]  ;;  %vm2295_vm4 = vmmov %vm2276_vm2 }
  0xa2   : > { %2288 = vst [vmem:[#allocation43_spill] sm:$0xff] %v1710_v22  ;;  %2290 = vst [vmem:[#allocation44_spill] sm:$0xff] %v1714_v30  ;;  %v545_v57 = vadd.f32 %v544_v50, %v543_v21  ;;  %v1728_v22 = vsel %vm345_vm14, %v2293_v8, 0.0  ;;  %v514_v25 = vmul.f32 %v1689_v7, %v1538_v4  ;;  %v548_v62 = vsel %vm2295_vm4, %v512_v12, 0.0  ;;  %v242_v21 = vld [vmem:[%s1281_s5 + $0x50] sm:$0xff]  ;;  %v243_v50 = vld [vmem:[%s1281_s5 + $0x58] sm:$0xff] }
  0xa3   : > { %v1723_v13 = vsel %vm344_vm8, %v2291_v46, 0.0  ;;  %2294 = vst [vmem:[#allocation17_spill] sm:$0xff] %v1728_v22  ;;  %v2296_v53 = vcombine.high %v2293_v8, %v2293_v8  ;;  %vm2298_vm7 = vcmp.lt.s32.totalorder %v1366_v63, 4224  ;;  %v449_v4 = vcombine.high %v238_v38, %v238_v38  ;;  %v2299_v11 = vld [vmem:[#allocation25_spill] sm:$0xff]  ;;  %vm2300_vm5 = vmmov %vm2276_vm2 }
  0xa4   : > { %2292 = vst [vmem:[#allocation45_spill] sm:$0xff] %v1723_v13  ;;  %v448_v13 = vcombine.high %v237_v26, %v237_v26  ;;  %v1744_v60 = vsel %vm2298_vm7, %v236_v56, 0.0  ;;  %v547_v22 = vadd.f32 %v546_v58, %v545_v57  ;;  %v450_v12 = vcombine.high %v239_v14, %v239_v14  ;;  %vm2304_vm3 = vmmov %vm2276_vm2 }
  0xa5   : > { %v1740_v46 = vsel %vm346_vm13, %v2296_v53, 0.0  ;;  %v515_v55 = vmul.f32 %v1714_v30, %v2299_v11  ;;  %v550_v8 = vsel %vm2300_vm5, %v513_v61, 0.0  ;;  %v1757_v53 = vld [vmem:[%s1281_s5 + $0x78] sm:$0xff]  ;;  %v452_v48 = vcombine.high %v241_v20, %v241_v20 }
  0xa6   : > { %2297 = vst [vmem:[#allocation46_spill] sm:$0xff] %v1740_v46  ;;  %v451_v46 = vcombine.high %v240_v2, %v240_v2  ;;  %vm2301_vm1 = vcmp.lt.s32.totalorder %v1369_v0, 4224  ;;  %v549_v56 = vadd.f32 %v548_v62, %v547_v22  ;;  %v453_v58 = vcombine.high %v242_v21, %v242_v21 }
  0xa7   : > { %v1761_v63 = vsel %vm2301_vm1, %v447_v51, 0.0  ;;  %v454_v57 = vcombine.high %v243_v50, %v243_v50  ;;  %v516_v7 = vmul.f32 %v1744_v60, %v2302_v47  ;;  %v552_v11 = vsel %vm2276_vm2, %v514_v25, 0.0 }
  0xa8   : > { %v455_v30 = vcombine.high %v244_v18, %v244_v18  ;;  %v456_v61 = vcombine.high %v1748_v42, %v1748_v42  ;;  %vm2303_vm6 = vcmp.lt.s32.totalorder %v1372_v1, 4224  ;;  %v551_v9 = vadd.f32 %v550_v8, %v549_v56 }
  0xa9   : > { %v1770_v45 = vsel %vm2303_vm6, %v237_v26, 0.0  ;;  %v457_v0 = vcombine.high %v1754_v10, %v1754_v10  ;;  %v458_v22 = vcombine.high %v1757_v53, %v1757_v53  ;;  %v517_v51 = vmul.f32 %v1761_v63, %v1559_v6  ;;  %vm2310_vm6 = vmmov %vm2304_vm3 }
  0xaa   : > { %v554_v25 = vsel %vm2304_vm3, %v515_v55, 0.0  ;;  %vm2305_vm4 = vcmp.lt.s32.totalorder %v1375_v3, 4224  ;;  %vm2306_vm7 = vcmp.lt.s32.totalorder %v1378_v15, 4224  ;;  %vm2307_vm5 = vcmp.lt.s32.totalorder %v1381_v19, 4224 }
  0xab   : > { %v1781_v62 = vsel %vm2305_vm4, %v448_v13, 0.0  ;;  %v1785_v26 = vsel %vm2306_vm7, %v238_v38, 0.0  ;;  %v1789_v1 = vsel %vm2307_vm5, %v449_v4, 0.0  ;;  %v553_v8 = vadd.f32 %v552_v11, %v551_v9  ;;  %vm2317_vm4 = vmmov %vm2304_vm3 }
  0xac   : > { %vm2308_vm1 = vcmp.lt.s32.totalorder %v1384_v23, 4224  ;;  %vm2309_vm2 = vcmp.lt.s32.totalorder %v1387_v27, 4224  ;;  %v518_v3 = vmul.f32 %v1770_v45, %v1573_v5  ;;  %v556_v15 = vsel %vm2310_vm6, %v516_v7, 0.0  ;;  %vm2318_vm7 = vmmov %vm2304_vm3 }
  0xad   : > { %v1793_v56 = vsel %vm2308_vm1, %v239_v14, 0.0  ;;  %v1797_v55 = vsel %vm2309_vm2, %v450_v12, 0.0  ;;  %v1804_v13 = vsel %vm331_vm10, %v240_v2, 0.0  ;;  %v1808_v19 = vsel %vm332_vm11, %v451_v46, 0.0  ;;  %vm2314_vm11 = vmmov %vm2304_vm3 }
  0xae   : > { %v1812_v23 = vsel %vm333_vm12, %v241_v20, 0.0  ;;  %v555_v27 = vadd.f32 %v554_v25, %v553_v8  ;;  %v1816_v4 = vsel %vm334_vm9, %v452_v48, 0.0  ;;  %v519_v9 = vmul.f32 %v1781_v62, %v1580_v17 }
  0xaf   : > { %v558_v28 = vsel %vm2304_vm3, %v517_v51, 0.0  ;;  %v710_v2 = vmul.f32 %v1563_v16, %v1563_v16  ;;  %vm2311_vm10 = vcmp.lt.s32.totalorder %v1402_v33, 4224  ;;  %v711_v11 = vmul.f32 %v1567_v54, %v1567_v54  ;;  %v2313_v16 = vld [vmem:[#allocation27_spill] sm:$0xff] }
  0xb0   : > { %v1825_v29 = vsel %vm2311_vm10, %v242_v21, 0.0  ;;  %v557_v31 = vadd.f32 %v556_v15, %v555_v27  ;;  %v712_v32 = vmul.f32 %v1589_v34, %v1589_v34  ;;  %vm2312_vm9 = vcmp.lt.s32.totalorder %v1405_v35, 4224 }
  0xb1   : > { %v1833_v48 = vsel %vm2312_vm9, %v453_v58, 0.0  ;;  %v1837_v7 = vsel %vm337_vm15, %v243_v50, 0.0  ;;  %v520_v33 = vmul.f32 %v1785_v26, %v2313_v16  ;;  %v560_v20 = vsel %vm2314_vm11, %v518_v3, 0.0 }
  0xb2   : > { %v1844_v38 = vsel %vm338_vm0, %v454_v57, 0.0  ;;  %vm2315_vm12 = vcmp.lt.s32.totalorder %v1414_v39, 4224  ;;  %v559_v35 = vadd.f32 %v558_v28, %v557_v31  ;;  %v713_v34 = vmul.f32 %v1605_v24, %v1605_v24  ;;  %vm2319_vm0 = vmmov %vm2304_vm3  ;;  %v2322_v24 = vld [vmem:[#allocation28_spill] sm:$0xff] }
  0xb3   : > { %v1848_v54 = vsel %vm2315_vm12, %v244_v18, 0.0  ;;  %vm2316_vm15 = vcmp.lt.s32.totalorder %v1417_v40, 4224  ;;  %v521_v14 = vmul.f32 %v1789_v1, %v1596_v59  ;;  %v562_v21 = vsel %vm2317_vm4, %v519_v9, 0.0  ;;  %vm2320_vm5 = vmmov %vm2319_vm0  ;;  %v2330_v9 = vld [vmem:[#allocation40_spill] sm:$0xff] }
  0xb4   : > { %v1854_v36 = vsel %vm2316_vm15, %v455_v30, 0.0  ;;  %v742_v37 = vsel %vm2318_vm7, %v710_v2, 0.0  ;;  %v561_v50 = vadd.f32 %v560_v20, %v559_v35  ;;  %v714_v39 = vmul.f32 %v1638_v52, %v1638_v52  ;;  %vm2323_vm2 = vmmov %vm2319_vm0  ;;  %v2333_v2 = vld [vmem:[#allocation30_spill] sm:$0xff]  ;;  %v2336_v35 = vld [vmem:[#allocation44_spill] sm:$0xff] }
  0xb5   : > { %v743_v18 = vsel %vm2319_vm0, %v711_v11, 0.0  ;;  %v745_v46 = vsel %vm2320_vm5, %v712_v32, 0.0  ;;  %vm2321_vm1 = vcmp.lt.s32.totalorder %v1420_v41, 4224  ;;  %v522_v30 = vmul.f32 %v1793_v56, %v2322_v24  ;;  %vm2325_vm3 = vmmov %vm2319_vm0 }
  0xb6   : > { %v1867_v40 = vsel %vm2321_vm1, %v1748_v42, 0.0  ;;  %v564_v12 = vsel %vm2323_vm2, %v520_v33, 0.0  ;;  %v744_v58 = vadd.f32 %v743_v18, %v742_v37  ;;  %vm2324_vm6 = vcmp.lt.s32.totalorder %v1423_v43, 4224  ;;  %v2327_v42 = vld [vmem:[#allocation29_spill] sm:$0xff]  ;;  %vm2328_vm9 = vmmov %vm2319_vm0  ;;  %v2339_v37 = vld [vmem:[#allocation32_spill] sm:$0xff] }
  0xb7   : > { %v1874_v57 = vsel %vm2324_vm6, %v456_v61, 0.0  ;;  %v563_v52 = vadd.f32 %v562_v21, %v561_v50  ;;  %v715_v51 = vmul.f32 %v1671_v49, %v1671_v49  ;;  %v747_v25 = vsel %vm2325_vm3, %v713_v34, 0.0  ;;  %vm2331_vm11 = vmmov %vm2319_vm0  ;;  %v2338_v21 = vld [vmem:[#allocation31_spill] sm:$0xff] }
  0xb8   : > { %vm2326_vm10 = vcmp.lt.s32.totalorder %v1426_v44, 4224  ;;  %v523_v8 = vmul.f32 %v1797_v55, %v2327_v42  ;;  %v566_v3 = vsel %vm2328_vm9, %v521_v14, 0.0  ;;  %v746_v15 = vadd.f32 %v745_v46, %v744_v58  ;;  %vm2334_vm12 = vmmov %vm2319_vm0  ;;  %v2341_v46 = vld [vmem:[#allocation33_spill] sm:$0xff] }
  0xb9   : > { %v1882_v41 = vsel %vm2326_vm10, %v1754_v10, 0.0  ;;  %v1889_v61 = vsel %vm344_vm8, %v457_v0, 0.0  ;;  %v565_v27 = vadd.f32 %v564_v12, %v563_v52  ;;  %v716_v49 = vmul.f32 %v2330_v9, %v2330_v9  ;;  %vm2337_vm8 = vmmov %vm2319_vm0  ;;  %v2343_v52 = vld [vmem:[#allocation34_spill] sm:$0xff]  ;;  %v2348_v44 = vld [vmem:[#allocation37_spill] sm:$0xff] }
  0xba   : > { %v749_v28 = vsel %vm2331_vm11, %v714_v39, 0.0  ;;  %v1897_v10 = vsel %vm345_vm14, %v1757_v53, 0.0  ;;  %v524_v31 = vmul.f32 %v1804_v13, %v2333_v2  ;;  %v568_v11 = vsel %vm2334_vm12, %v522_v30, 0.0  ;;  %vm2340_vm14 = vmmov %vm2319_vm0 }
  0xbb   : > { %v748_v32 = vadd.f32 %v747_v25, %v746_v15  ;;  %v1904_v0 = vsel %vm346_vm13, %v458_v22, 0.0  ;;  %v567_v20 = vadd.f32 %v566_v3, %v565_v27  ;;  %v717_v34 = vmul.f32 %v2336_v35, %v2336_v35  ;;  %vm2342_vm13 = vmmov %vm2319_vm0  ;;  %v2344_v25 = vld [vmem:[#allocation35_spill] sm:$0xff] }
  0xbc   : > { %v751_v14 = vsel %vm2337_vm8, %v715_v51, 0.0  ;;  %v525_v53 = vmul.f32 %v1808_v19, %v2338_v21  ;;  %v526_v50 = vmul.f32 %v1812_v23, %v2339_v37  ;;  %v570_v39 = vsel %vm2340_vm14, %v523_v8, 0.0  ;;  %vm2345_vm15 = vmmov %vm2319_vm0  ;;  %v2346_v8 = vld [vmem:[#allocation36_spill] sm:$0xff] }
  0xbd   : > { %v750_v18 = vadd.f32 %v749_v28, %v748_v32  ;;  %v527_v30 = vmul.f32 %v1816_v4, %v2341_v46  ;;  %v569_v22 = vadd.f32 %v568_v11, %v567_v20  ;;  %v718_v12 = vmul.f32 %v1744_v60, %v1744_v60  ;;  %vm2347_vm4 = vmmov %vm2319_vm0  ;;  %v2349_v11 = vld [vmem:[#allocation38_spill] sm:$0xff] }
  0xbe   : > { %v753_v58 = vsel %vm2342_vm13, %v716_v49, 0.0  ;;  %v528_v51 = vmul.f32 %v1825_v29, %v2343_v52  ;;  %v529_v3 = vmul.f32 %v1833_v48, %v2344_v25  ;;  %v572_v15 = vsel %vm2345_vm15, %v524_v31, 0.0  ;;  %vm2350_vm7 = vmmov %vm2319_vm0  ;;  %v2351_v31 = vld [vmem:[#allocation39_spill] sm:$0xff] }
  0xbf   : > { %v752_v43 = vadd.f32 %v751_v14, %v750_v18  ;;  %v530_v27 = vmul.f32 %v1837_v7, %v2346_v8  ;;  %v571_v9 = vadd.f32 %v570_v39, %v569_v22  ;;  %v719_v28 = vmul.f32 %v1761_v63, %v1761_v63  ;;  %v2352_v18 = vld [vmem:[#allocation41_spill] sm:$0xff]  ;;  %v2353_v22 = vld [vmem:[#allocation42_spill] sm:$0xff]  ;;  %vm2354_vm5 = vmmov %vm2319_vm0 }
  0xc0   : > { %v755_v60 = vsel %vm2347_vm4, %v717_v34, 0.0  ;;  %v531_v49 = vmul.f32 %v1844_v38, %v2348_v44  ;;  %v532_v32 = vmul.f32 %v1848_v54, %v2349_v11  ;;  %v574_v33 = vsel %vm2350_vm7, %v525_v53, 0.0  ;;  %vm2356_vm1 = vmmov %vm2319_vm0  ;;  %v2358_v11 = vld [vmem:[#allocation17_spill] sm:$0xff]  ;;  %v2363_v8 = vld [vmem:[#allocation19_spill] sm:$0xff] }
  0xc1   : > { %v754_v20 = vadd.f32 %v753_v58, %v752_v43  ;;  %v533_v35 = vmul.f32 %v1854_v36, %v2351_v31  ;;  %v573_v14 = vadd.f32 %v572_v15, %v571_v9  ;;  %v720_v39 = vmul.f32 %v1770_v45, %v1770_v45  ;;  %v2355_v43 = vld [vmem:[#allocation43_spill] sm:$0xff]  ;;  %v2357_v9 = vld [vmem:[#allocation45_spill] sm:$0xff]  ;;  %vm2359_vm2 = vmmov %vm2319_vm0 }
  0xc2   : > { %v757_v63 = vsel %vm2319_vm0, %v718_v12, 0.0  ;;  %v1941_v34 = vmul.f32 %v1867_v40, %v2352_v18  ;;  %v1945_v44 = vmul.f32 %v1874_v57, %v2353_v22  ;;  %v576_v53 = vsel %vm2354_vm5, %v526_v50, 0.0  ;;  %vm2360_vm6 = vmmov %vm2319_vm0 }
  0xc3   : > { %v756_v58 = vadd.f32 %v755_v60, %v754_v20  ;;  %v1950_v31 = vmul.f32 %v1882_v41, %v2355_v43  ;;  %v575_v15 = vadd.f32 %v574_v33, %v573_v14  ;;  %v721_v45 = vmul.f32 %v1781_v62, %v1781_v62  ;;  %vm2361_vm3 = vmmov %vm2319_vm0  ;;  %v2362_v14 = vld [vmem:[#allocation18_spill] sm:$0xff] }
  0xc4   : > { %v759_v12 = vsel %vm2356_vm1, %v719_v28, 0.0  ;;  %v1957_v18 = vmul.f32 %v1889_v61, %v2357_v9  ;;  %v1961_v22 = vmul.f32 %v1897_v10, %v2358_v11  ;;  %v578_v50 = vsel %vm2359_vm2, %v527_v30, 0.0  ;;  %v2364_v11 = vld [vmem:[#allocation20_spill] sm:$0xff]  ;;  %v2365_v30 = vld [vmem:[#allocation46_spill] sm:$0xff]  ;;  %vm2366_vm10 = vmmov %vm2319_vm0 }
  0xc5   : > { %v758_v60 = vadd.f32 %v757_v63, %v756_v58  ;;  %v577_v20 = vadd.f32 %v576_v53, %v575_v15  ;;  %v580_v43 = vsel %vm2360_vm6, %v528_v51, 0.0  ;;  %v722_v33 = vmul.f32 %v1785_v26, %v1785_v26  ;;  %vm2367_vm9 = vmmov %vm2319_vm0 }
  0xc6   : > { %v761_v62 = vsel %vm2361_vm3, %v720_v39, 0.0  ;;  %v610_v9 = vmul.f32 %v2362_v14, %v2362_v14  ;;  %v611_v25 = vmul.f32 %v2363_v8, %v2363_v8  ;;  %v612_v52 = vmul.f32 %v2364_v11, %v2364_v11  ;;  %vm2368_vm11 = vmmov %vm2319_vm0 }
  0xc7   : > { %v760_v28 = vadd.f32 %v759_v12, %v758_v60  ;;  %v1976_v63 = vmul.f32 %v1904_v0, %v2365_v30  ;;  %v579_v51 = vadd.f32 %v578_v50, %v577_v20  ;;  %v723_v26 = vmul.f32 %v1789_v1, %v1789_v1  ;;  %v2369_v12 = vld [vmem:[#allocation21_spill] sm:$0xff]  ;;  %vm2370_vm12 = vmmov %vm2319_vm0  ;;  %v2371_v50 = vld [vmem:[#allocation22_spill] sm:$0xff] }
  0xc8   : > { %v763_v39 = vsel %vm2366_vm10, %v721_v45, 0.0  ;;  %v582_v53 = vsel %vm2367_vm9, %v529_v3, 0.0  ;;  %v584_v58 = vsel %vm2368_vm11, %v530_v27, 0.0  ;;  %v613_v8 = vmul.f32 %v2369_v12, %v2369_v12  ;;  %vm2372_vm8 = vmmov %vm2319_vm0  ;;  %v2377_v12 = vld [vmem:[#allocation23_spill] sm:$0xff] }
  0xc9   : > { %v762_v15 = vadd.f32 %v761_v62, %v760_v28  ;;  %v581_v60 = vadd.f32 %v580_v43, %v579_v51  ;;  %v724_v11 = vmul.f32 %v1793_v56, %v1793_v56  ;;  %v765_v14 = vsel %vm2370_vm12, %v722_v33, 0.0  ;;  %vm2373_vm14 = vmmov %vm2319_vm0 }
  0xca   : > { %v614_v20 = vmul.f32 %v2371_v50, %v2371_v50  ;;  %v642_v45 = vsel %vm2372_vm8, %v610_v9, 0.0  ;;  %v643_v3 = vsel %vm2373_vm14, %v611_v25, 0.0  ;;  %vm2374_vm13 = vmmov %vm2319_vm0  ;;  %v725_v28 = vmul.f32 %v1797_v55, %v1797_v55 }
  0xcb   : > { %v764_v1 = vadd.f32 %v763_v39, %v762_v15  ;;  %v645_v27 = vsel %vm2374_vm13, %v612_v52, 0.0  ;;  %v583_v62 = vadd.f32 %v582_v53, %v581_v60  ;;  %vm2375_vm15 = vmmov %vm2319_vm0  ;;  %v644_v51 = vadd.f32 %v643_v3, %v642_v45 }
  0xcc   : > { %v767_v43 = vsel %vm2375_vm15, %v723_v26, 0.0  ;;  %vm2376_vm4 = vmmov %vm2319_vm0  ;;  %v615_v50 = vmul.f32 %v2377_v12, %v2377_v12  ;;  %v726_v25 = vmul.f32 %v1804_v13, %v1804_v13  ;;  %v769_v52 = vsel %vm2319_vm0, %v724_v11, 0.0  ;;  %v2380_v26 = vld [vmem:[#allocation24_spill] sm:$0xff]  ;;  %v2384_v11 = vld [vmem:[#allocation25_spill] sm:$0xff] }
  0xcd   : > { %v586_v56 = vsel %vm2376_vm4, %v531_v49, 0.0  ;;  %v766_v33 = vadd.f32 %v765_v14, %v764_v1  ;;  %vm2378_vm7 = vmmov %vm2319_vm0  ;;  %v585_v9 = vadd.f32 %v584_v58, %v583_v62  ;;  %v646_v53 = vadd.f32 %v645_v27, %v644_v51 }
  0xce   : > { %v647_v39 = vsel %vm2378_vm7, %v613_v8, 0.0  ;;  %vm2379_vm5 = vmmov %vm2319_vm0  ;;  %v616_v60 = vmul.f32 %v2380_v26, %v2380_v26  ;;  %v727_v1 = vmul.f32 %v1808_v19, %v1808_v19  ;;  %v617_v3 = vmul.f32 %v2384_v11, %v2384_v11 }
  0xcf   : > { %v588_v55 = vsel %vm2379_vm5, %v532_v32, 0.0  ;;  %v768_v15 = vadd.f32 %v767_v43, %v766_v33  ;;  %vm2381_vm1 = vmmov %vm2319_vm0  ;;  %v587_v14 = vadd.f32 %v586_v56, %v585_v9  ;;  %v648_v8 = vadd.f32 %v647_v39, %v646_v53 }
  0xd0   : > { %v649_v49 = vsel %vm2381_vm1, %v614_v20, 0.0  ;;  %vm2382_vm2 = vmmov %vm2319_vm0  ;;  %v728_v62 = vmul.f32 %v1812_v23, %v1812_v23  ;;  %v729_v33 = vmul.f32 %v1816_v4, %v1816_v4 }
  0xd1   : > { %v771_v58 = vsel %vm2382_vm2, %v725_v28, 0.0  ;;  %vm2383_vm6 = vmmov %vm2319_vm0  ;;  %v770_v45 = vadd.f32 %v769_v52, %v768_v15  ;;  %v589_v27 = vadd.f32 %v588_v55, %v587_v14  ;;  %v650_v43 = vadd.f32 %v649_v49, %v648_v8 }
  0xd2   : > { %v590_v13 = vsel %vm2383_vm6, %v533_v35, 0.0  ;;  %vm2385_vm3 = vmmov %vm2319_vm0  ;;  %v618_v35 = vmul.f32 %v2302_v47, %v2302_v47  ;;  %v730_v47 = vmul.f32 %v1825_v29, %v1825_v29  ;;  %v598_v29 = vsel %vm2319_vm0, %v1957_v18, 0.0 }
  0xd3   : > { %v651_v32 = vsel %vm2385_vm3, %v615_v50, 0.0  ;;  %vm2386_vm10 = vmmov %vm2319_vm0  ;;  %v772_v28 = vadd.f32 %v771_v58, %v770_v45  ;;  %v591_v56 = vadd.f32 %v590_v13, %v589_v27  ;;  %v622_v18 = vmul.f32 %v2313_v16, %v2313_v16 }
  0xd4   : > { %v773_v20 = vsel %vm2386_vm10, %v726_v25, 0.0  ;;  %vm2387_vm9 = vmmov %vm2319_vm0  ;;  %v652_v50 = vadd.f32 %v651_v32, %v650_v43  ;;  %v734_v16 = vmul.f32 %v1848_v54, %v1848_v54  ;;  %v625_v54 = vmul.f32 %v2327_v42, %v2327_v42 }
  0xd5   : > { %v592_v19 = vsel %vm2387_vm9, %v1941_v34, 0.0  ;;  %vm2388_vm11 = vmmov %vm2319_vm0  ;;  %v774_v39 = vadd.f32 %v773_v20, %v772_v28  ;;  %v619_v34 = vmul.f32 %v1559_v6, %v1559_v6  ;;  %v731_v6 = vmul.f32 %v1833_v48, %v1833_v48 }
  0xd6   : > { %v653_v51 = vsel %vm2388_vm11, %v616_v60, 0.0  ;;  %vm2389_vm12 = vmmov %vm2319_vm0  ;;  %v593_v25 = vadd.f32 %v592_v19, %v591_v56  ;;  %v735_v56 = vmul.f32 %v1854_v36, %v1854_v36  ;;  %v626_v36 = vmul.f32 %v2333_v2, %v2333_v2 }
  0xd7   : > { %v775_v12 = vsel %vm2389_vm12, %v727_v1, 0.0  ;;  %vm2390_vm8 = vmmov %vm2319_vm0  ;;  %v654_v53 = vadd.f32 %v653_v51, %v652_v50 }
  0xd8   : > { %v594_v23 = vsel %vm2390_vm8, %v1945_v44, 0.0  ;;  %vm2391_vm14 = vmmov %vm2319_vm0  ;;  %v776_v55 = vadd.f32 %v775_v12, %v774_v39  ;;  %v620_v44 = vmul.f32 %v1573_v5, %v1573_v5  ;;  %v732_v5 = vmul.f32 %v1837_v7, %v1837_v7 }
  0xd9   : > { %v655_v9 = vsel %vm2391_vm14, %v617_v3, 0.0  ;;  %vm2392_vm13 = vmmov %vm2319_vm0  ;;  %v595_v26 = vadd.f32 %v594_v23, %v593_v25  ;;  %v736_v23 = vmul.f32 %v1867_v40, %v1867_v40  ;;  %v737_v25 = vmul.f32 %v1874_v57, %v1874_v57 }
  0xda   : > { %v777_v52 = vsel %vm2392_vm13, %v728_v62, 0.0  ;;  %vm2393_vm15 = vmmov %vm2319_vm0  ;;  %v656_v49 = vadd.f32 %v655_v9, %v654_v53  ;;  %v627_v53 = vmul.f32 %v2338_v21, %v2338_v21 }
  0xdb   : > { %v596_v4 = vsel %vm2393_vm15, %v1950_v31, 0.0  ;;  %vm2394_vm4 = vmmov %vm2319_vm0  ;;  %v778_v14 = vadd.f32 %v777_v52, %v776_v55  ;;  %v621_v31 = vmul.f32 %v1580_v17, %v1580_v17  ;;  %v733_v17 = vmul.f32 %v1844_v38, %v1844_v38 }
  0xdc   : > { %v657_v15 = vsel %vm2394_vm4, %v618_v35, 0.0  ;;  %vm2395_vm7 = vmmov %vm2319_vm0  ;;  %v597_v58 = vadd.f32 %v596_v4, %v595_v26  ;;  %v624_v35 = vmul.f32 %v2322_v24, %v2322_v24  ;;  %v738_v4 = vmul.f32 %v1882_v41, %v1882_v41 }
  0xdd   : > { %v779_v60 = vsel %vm2395_vm7, %v729_v33, 0.0  ;;  %vm2396_vm5 = vmmov %vm2319_vm0  ;;  %v658_v13 = vadd.f32 %v657_v15, %v656_v49  ;;  %v793_v55 = vsel %vm2319_vm0, %v736_v23, 0.0  ;;  %v628_v15 = vmul.f32 %v2339_v37, %v2339_v37 }
  0xde   : > { %v659_v1 = vsel %vm2396_vm5, %v619_v34, 0.0  ;;  %vm2397_vm1 = vmmov %vm2319_vm0  ;;  %v780_v45 = vadd.f32 %v779_v60, %v778_v14  ;;  %v599_v3 = vadd.f32 %v598_v29, %v597_v58  ;;  %v739_v26 = vmul.f32 %v1889_v61, %v1889_v61 }
  0xdf   : > { %v781_v8 = vsel %vm2397_vm1, %v730_v47, 0.0  ;;  %vm2398_vm2 = vmmov %vm2319_vm0  ;;  %v660_v27 = vadd.f32 %v659_v1, %v658_v13  ;;  %v629_v49 = vmul.f32 %v2341_v46, %v2341_v46  ;;  %v740_v29 = vmul.f32 %v1897_v10, %v1897_v10  ;;  %v2415_v1 = vld [vmem:[#allocation34_spill] sm:$0xff] }
  0xe0   : > { %v600_v48 = vsel %vm2398_vm2, %v1961_v22, 0.0  ;;  %vm2399_vm6 = vmmov %vm2319_vm0  ;;  %v782_v62 = vadd.f32 %v781_v8, %v780_v45  ;;  %v623_v22 = vmul.f32 %v1596_v59, %v1596_v59  ;;  %v630_v58 = vmul.f32 %v2415_v1, %v2415_v1  ;;  %v709_v1 = vld [vmem:[#allocation4] sm:$0xf] }
  0xe1   : > { %v661_v11 = vsel %vm2399_vm6, %v620_v44, 0.0  ;;  %vm2400_vm3 = vmmov %vm2319_vm0  ;;  %v601_v43 = vadd.f32 %v600_v48, %v599_v3  ;;  %v2418_v48 = vld [vmem:[#allocation35_spill] sm:$0xff] }
  0xe2   : > { %v783_v32 = vsel %vm2400_vm3, %v731_v6, 0.0  ;;  %vm2401_vm10 = vmmov %vm2319_vm0  ;;  %v662_v28 = vadd.f32 %v661_v11, %v660_v27  ;;  %v631_v45 = vmul.f32 %v2418_v48, %v2418_v48 }
  0xe3   : > { %v602_v7 = vsel %vm2401_vm10, %v1976_v63, 0.0  ;;  %vm2402_vm9 = vmmov %vm2319_vm0  ;;  %v784_v38 = vadd.f32 %v783_v32, %v782_v62 }
  0xe4   : > { %v663_v20 = vsel %vm2402_vm9, %v621_v31, 0.0  ;;  %vm2403_vm11 = vmmov %vm2319_vm0  ;;  %v603_v63 = vadd.f32 %v602_v7, %v601_v43 }
  0xe5   : > { %v785_v19 = vsel %vm2403_vm11, %v732_v5, 0.0  ;;  %vm2404_vm12 = vmmov %vm2319_vm0  ;;  %v664_v33 = vadd.f32 %v663_v20, %v662_v28  ;;  %v741_v5 = vmul.f32 %v1904_v0, %v1904_v0  ;;  %v2426_v28 = vld [vmem:[#allocation38_spill] sm:$0xff] }
  0xe6   : > { %v665_v51 = vsel %vm2404_vm12, %v622_v18, 0.0  ;;  %vm2405_vm8 = vmmov %vm2319_vm0  ;;  %v786_v12 = vadd.f32 %v785_v19, %v784_v38  ;;  %604 = vadd.xlane.f32.xlu0 %v603_v63  ;;  %v634_v38 = vmul.f32 %v2426_v28, %v2426_v28  ;;  %v2428_v63 = vld [vmem:[#allocation39_spill] sm:$0xff] }
  0xe7   : > { %v787_v59 = vsel %vm2405_vm8, %v733_v17, 0.0  ;;  %vm2406_vm14 = vmmov %vm2319_vm0  ;;  %v666_v39 = vadd.f32 %v665_v51, %v664_v33  ;;  %v2421_v17 = vld [vmem:[#allocation36_spill] sm:$0xff] }
  0xe8   : > { %v667_v50 = vsel %vm2406_vm14, %v623_v22, 0.0  ;;  %vm2407_vm13 = vmmov %vm2319_vm0  ;;  %v788_v34 = vadd.f32 %v787_v59, %v786_v12  ;;  %v632_v32 = vmul.f32 %v2421_v17, %v2421_v17  ;;  %v2424_v22 = vld [vmem:[#allocation37_spill] sm:$0xff] }
  0xe9   : > { %v789_v24 = vsel %vm2407_vm13, %v734_v16, 0.0  ;;  %vm2408_vm15 = vmmov %vm2319_vm0  ;;  %v668_v47 = vadd.f32 %v667_v50, %v666_v39  ;;  %v633_v20 = vmul.f32 %v2424_v22, %v2424_v22  ;;  %v2430_v12 = vld [vmem:[#allocation41_spill] sm:$0xff] }
  0xea   : > { %v669_v9 = vsel %vm2408_vm15, %v624_v35, 0.0  ;;  %vm2409_vm4 = vmmov %vm2319_vm0  ;;  %v790_v52 = vadd.f32 %v789_v24, %v788_v34  ;;  %v2432_v24 = vld [vmem:[#allocation42_spill] sm:$0xff] }
  0xeb   : > { %v791_v42 = vsel %vm2409_vm4, %v735_v56, 0.0  ;;  %vm2410_vm7 = vmmov %vm2319_vm0  ;;  %v670_v2 = vadd.f32 %v669_v9, %v668_v47  ;;  %v635_v56 = vmul.f32 %v2428_v63, %v2428_v63  ;;  %v637_v39 = vmul.f32 %v2432_v24, %v2432_v24  ;;  %v2434_v9 = vld [vmem:[#allocation43_spill] sm:$0xff] }
  0xec   : > { %v671_v40 = vsel %vm2410_vm7, %v625_v54, 0.0  ;;  %v792_v44 = vadd.f32 %v791_v42, %v790_v52  ;;  %vm2411_vm5 = vmmov %vm2319_vm0  ;;  %v636_v54 = vmul.f32 %v2430_v12, %v2430_v12  ;;  %v2435_v52 = vld [vmem:[#allocation45_spill] sm:$0xff] }
  0xed   : > { %v673_v57 = vsel %vm2411_vm5, %v626_v36, 0.0  ;;  %vm2412_vm1 = vmmov %vm2319_vm0  ;;  %v672_v21 = vadd.f32 %v671_v40, %v670_v2 }
  0xee   : > { %v795_v6 = vsel %vm2412_vm1, %v737_v25, 0.0  ;;  %v794_v60 = vadd.f32 %v793_v55, %v792_v44  ;;  %vm2413_vm2 = vmmov %vm2319_vm0  ;;  %v638_v25 = vmul.f32 %v2434_v9, %v2434_v9  ;;  %v693_v42 = vsel %vm2319_vm0, %v636_v54, 0.0  ;;  %v2437_v55 = vld [vmem:[#allocation17_spill] sm:$0xff] }
  0xef   : > { %v675_v41 = vsel %vm2413_vm2, %v627_v53, 0.0  ;;  %vm2414_vm6 = vmmov %vm2319_vm0  ;;  %v674_v37 = vadd.f32 %v673_v57, %v672_v21  ;;  %v639_v53 = vmul.f32 %v2435_v52, %v2435_v52  ;;  %v640_v2 = vmul.f32 %v2437_v55, %v2437_v55 }
  0xf0   : > { %v797_v14 = vsel %vm2414_vm6, %v738_v4, 0.0  ;;  %v796_v31 = vadd.f32 %v795_v6, %v794_v60  ;;  %vm2416_vm3 = vmmov %vm2319_vm0  ;;  %v641_v57 = vmul.f32 %v2365_v30, %v2365_v30 }
  0xf1   : > { %v677_v61 = vsel %vm2416_vm3, %v628_v15, 0.0  ;;  %vm2417_vm10 = vmmov %vm2319_vm0  ;;  %v676_v46 = vadd.f32 %v675_v41, %v674_v37 }
  0xf2   : > { %v799_v8 = vsel %vm2417_vm10, %v739_v26, 0.0  ;;  %v798_v13 = vadd.f32 %v797_v14, %v796_v31  ;;  %vm2419_vm9 = vmmov %vm2319_vm0  ;;  %v507_v14 = vld [vmem:[#allocation2] sm:$0xf]  ;;  %vm607_vm10 = vcmask 3072  }
  0xf3   : > { %v679_v10 = vsel %vm2419_vm9, %v629_v49, 0.0  ;;  %vm2420_vm11 = vmmov %vm2319_vm0  ;;  %v678_v11 = vadd.f32 %v677_v61, %v676_v46  ;;  %v609_v61 = vld [vmem:[#allocation3] sm:$0xf] }
  0xf4   : > { %v801_v18 = vsel %vm2420_vm11, %v740_v29, 0.0  ;;  %v800_v3 = vadd.f32 %v799_v8, %v798_v13  ;;  %vm2422_vm12 = vmmov %vm2319_vm0 }
  0xf5   : > { %v681_v27 = vsel %vm2422_vm12, %v630_v58, 0.0  ;;  %vm2423_vm8 = vmmov %vm2319_vm0  ;;  %v680_v7 = vadd.f32 %v679_v10, %v678_v11 }
  0xf6   : > { %v803_v0 = vsel %vm2423_vm8, %v741_v5, 0.0  ;;  %v802_v62 = vadd.f32 %v801_v18, %v800_v3  ;;  %vm2425_vm14 = vmmov %vm2319_vm0 }
  0xf7   : > { %v683_v43 = vsel %vm2425_vm14, %v631_v45, 0.0  ;;  %v682_v16 = vadd.f32 %v681_v27, %v680_v7  ;;  %vm2427_vm13 = vmmov %vm2319_vm0 }
  0xf8   : > { %v804_v19 = vadd.f32 %v803_v0, %v802_v62  ;;  %v685_v35 = vsel %vm2427_vm13, %v632_v32, 0.0  ;;  %vm2429_vm15 = vmmov %vm2319_vm0 }
  0xf9   : > { %v684_v51 = vadd.f32 %v683_v43, %v682_v16  ;;  %v687_v59 = vsel %vm2429_vm15, %v633_v20, 0.0  ;;  %vm2431_vm4 = vmmov %vm2319_vm0 }
  0xfa   : > { %805 = vadd.xlane.f32.xlu1 %v804_v19  ;;  %v689_v50 = vsel %vm2431_vm4, %v634_v38, 0.0  ;;  %vm2433_vm7 = vmmov %vm2319_vm0 }
  0xfb   : > { %v686_v33 = vadd.f32 %v685_v35, %v684_v51  ;;  %v691_v34 = vsel %vm2433_vm7, %v635_v56, 0.0  ;;  %vm2436_vm5 = vmmov %vm2319_vm0 }
  0xfc   : > { %v695_v40 = vsel %vm2436_vm5, %v637_v39, 0.0  ;;  %vm2438_vm1 = vmmov %vm2319_vm0 }
  0xfd   : > { %v688_v23 = vadd.f32 %v687_v59, %v686_v33  ;;  %v697_v44 = vsel %vm2438_vm1, %v638_v25, 0.0  ;;  %vm2439_vm2 = vmmov %vm2319_vm0 }
  0xfe   : > { %v699_v26 = vsel %vm2439_vm2, %v639_v53, 0.0  ;;  %vm2440_vm6 = vmmov %vm2319_vm0 }
  0xff   : > { %v690_v36 = vadd.f32 %v689_v50, %v688_v23  ;;  %v701_v21 = vsel %vm2440_vm6, %v640_v2, 0.0  ;;  %vm2441_vm3 = vmmov %vm2319_vm0 }
 0x100   : > { %v703_v49 = vsel %vm2441_vm3, %v641_v57, 0.0 }
 0x101   : > { %v692_v47 = vadd.f32 %v691_v34, %v690_v36 }
 0x103   : > { %v694_v4 = vadd.f32 %v693_v42, %v692_v47 }
 0x105   : > { %v696_v15 = vadd.f32 %v695_v40, %v694_v4 }
 0x107   : > { %v698_v6 = vadd.f32 %v697_v44, %v696_v15 }
 0x109   : > { %v700_v60 = vadd.f32 %v699_v26, %v698_v6 }
 0x10b   : > { %v702_v41 = vadd.f32 %v701_v21, %v700_v60 }
 0x10d   : > { %v704_v29 = vadd.f32 %v703_v49, %v702_v41 }
 0x10f   : > { %705 = vadd.xlane.f32.xlu0 %v704_v29 }
 0x173   : > { %v605_v37 = vpop.xlane.xlu0 %604 }
 0x174   : > { %v606_v31 = vadd.f32 %v605_v37, %v507_v14 }
 0x176   : > { %608 = vst.msk [vmem:[#allocation2] sm:$0xf] %vm607_vm10, %v606_v31 }
 0x17d   : > { %v813_v18 = vld [vmem:[#allocation2] sm:$0xf] (!%p924_p8) }
 0x187   : > { %v806_v58 = vpop.xlane.xlu1 %805 }
 0x188   : > { %v807_v30 = vadd.f32 %v806_v58, %v709_v1 }
 0x18a   : > { %808 = vst.msk [vmem:[#allocation4] sm:$0xf] %vm607_vm10, %v807_v30 }
 0x191   : > { %v815_v13 = vld [vmem:[#allocation4] sm:$0xf] (!%p924_p8) }
 0x192   : > { %v817_v45 = vmax.f32 (!%p924_p8), %v815_v13, 1e-16 }
 0x199   : > { %812 = sbr.rel (%p924_p8) target bundleno = 441 (0x1b9), region = 44 }
 0x19c   : > { %v706_v5 = vpop.xlane.xlu0 %705 }
 0x19d   : > { %v707_v8 = vadd.f32 %v706_v5, %v609_v61 }
 0x19f   : > { %708 = vst.msk [vmem:[#allocation3] sm:$0xf] %vm607_vm10, %v707_v8 }
 0x1a6   : > { %v814_v46 = vld [vmem:[#allocation3] sm:$0xf] }
 0x1a7   : > { %v816_v48 = vmax.f32 %v814_v46, 1e-16 }
 0x1a9   : > { %v818_v10 = vmul.f32 %v817_v45, %v816_v48 }
 0x1ab   : > { %1005 = vrsqrt.f32 %v818_v10 }
 0x1b5   : > { %v1006_v11 = vpop.eup %1005 }
 0x1b6   : > { %v820_v3 = vmul.f32 %v1006_v11, %v813_v18 }
 0x1b8   : > { %821 = vst.msk [vmem:[#allocation10] sm:$0xf] %vm607_vm10, %v820_v3 }
 0x1b9 PF: > { %p937_p10 = scmp.eq.s32.totalorder %s1171_s13, 1  ;;  %s1136_s19 = smov [#allocation10]  }
 0x1ba   : > { %s829_s18 = sshll.u32 %s1136_s19, 4  ;;  %s830_s18 = int_to_ptr.vmem [resolvable:$true] %s829_s18 }
 0x1bb   : > { %s1063_s26 = scalar_lea.vmem %s830_s18, 64  ;;  %p1070_p13 = scmp.lt.s32.totalorder %s830_s18, %s830_s18 }
 0x1bc   : > { %p1064_p11 = scmp.ne.s32.totalorder %s830_s18, %s1063_s26  ;;  %p1071_p6 = scmp.lt.s32.totalorder %s1063_s26, %s1063_s26 }
 0x1be   : > { %p1065_p0 = pnand %p1064_p11, %p937_p10  ;;  %p1072_p9 = por %p1071_p6, %p1070_p13 }
 0x1c0   : > { %p1066_p12 = pneg %p1065_p0 }
 0x1c2   : > { %p1073_p2 = pnand %p1072_p9, %p1066_p12 }
 0x1c4   : > { %1076 = shalt.err (!%p1073_p2)
}
 0x1c5   : > { %s1077_s6 = scalar_lea.hbm %s2187_s2, 64 }
 0x1c6   : > { %p1078_p1 = scmp.ne.s32.totalorder %s2187_s2, %s1077_s6  ;;  %p1083_p7 = scmp.lt.u32.totalorder %s1077_s6, %s2187_s2 }
 0x1c8   : > { %p1079_p3 = pnand %p1078_p1, %p937_p10 }
 0x1ca   : > { %p1080_p5 = pneg %p1079_p3 }
 0x1cc   : > { %p1085_p4 = pnand %p1083_p7, %p1080_p5 }
 0x1ce   : > { %1088 = shalt.err (!%p1085_p4)
}
 0x1cf   : > { %934 = dma.vmem_to_hbm [thread:$0]  (%p937_p10), %s830_s18, 64, %s2187_s2, [#allocation7]  }
 0x1d0   : > { %1114 = dma.done.wait (%p937_p10), [#allocation7], 64  }
 0x1d1   : > { %1116 = vsyncadd (%p937_p10), [#allocation7], 4294967232 }
 0x1d2 PF: > { %p16_p8 = scmp.ge.s32.totalorder %s1174_s14, 4   ;;  %s2442_s9 = smov %s1123_s10 }
 0x1d3   : > { %s2443_s10 = smov %s1127_s11  ;;  %s2444_s11 = smov %s1184_s17 }
 0x1d4   : > { %s2445_s12 = smov %s1174_s14  ;;  %18 = sbr.rel (!%p16_p8) target bundleno = 6 (0x6), region = 86 }
 0x1db   :  { %842 = vsyncpa [#allocation6], 1 }
 0x1dc   :  { %844 = vsyncpa [#allocation6 + $0x1], 1 }
 0x1dd   :  { %845 = vsyncpa [#allocation9], 1 }
 0x1de   :  { %847 = vsyncpa [#allocation9 + $0x1], 1 }
 0x1df   :  { %848 = vsyncpa [#allocation7], 1 }
 0x1e0   :  { %850 = vsyncpa [#allocation7 + $0x1], 1 }

// kernel: dckd_loss.7
= control target key start
LH: loop header
LB: loop body
LE: loop exit
PB: predicated region body
PF: predicated region fallthrough
CT: control target
= control target key end

     0   :  { %9 = vsyncpa [#allocation7], 0  ;;  %s537_s0 = inlined_call_operand.hbm [shape: f32[4,128], index: 0, kind: input, shape index: {}]   ;;  %s538_s1 = inlined_call_operand.hbm [shape: f32[128,256], index: 1, kind: input, shape index: {}]   ;;  %s539_s2 = inlined_call_operand.hbm [shape: f32[1,256], index: 2, kind: input, shape index: {}]   ;;  %s540_s3 = inlined_call_operand.hbm [shape: f32[4,256], index: 3, kind: input, shape index: {}]   ;;  %s541_s4 = inlined_call_operand.hbm [shape: f32[4,1], index: 4, kind: output, shape index: {}]  }
   0x1   :  { %10 = vsyncpa [#allocation10], 0 }
   0x2   :  { %11 = vsyncpa [#allocation13], 0 }
   0x3   :  { %12 = vsyncpa [#allocation8], 0  ;;  %s437_s15 = smov [#allocation9]   ;;  %s319_s19 = scalar_lea.hbm %s538_s1, 4096 }
   0x4   :  { %s28_s16 = sshll.u32 %s437_s15, 4  ;;  %p320_p0 = scmp.ne.s32.totalorder %s538_s1, %s319_s19  ;;  %s29_s16 = int_to_ptr.vmem [resolvable:$true] %s28_s16 }
   0x5   :  { %p323_p1 = scmp.lt.u32.totalorder %s319_s19, %s538_s1 }
   0x7   :  { %p325_p2 = pnand %p323_p1, %p320_p0 }
   0x9   :  { %328 = shalt.err (!%p325_p2)
}
   0xa   :  { %s329_s24 = scalar_lea.vmem %s29_s16, 4096  ;;  %p334_p4 = scmp.lt.s32.totalorder %s29_s16, %s29_s16 }
   0xb   :  { %p330_p3 = scmp.ne.s32.totalorder %s29_s16, %s329_s24  ;;  %p335_p5 = scmp.lt.s32.totalorder %s329_s24, %s329_s24 }
   0xd   :  { %p336_p6 = por %p335_p5, %p334_p4 }
   0xf   :  { %p337_p7 = pnand %p336_p6, %p330_p3 }
  0x11   :  { %340 = shalt.err (!%p337_p7)
}
  0x12   :  { %s438_s25 = smov 256   ;;  %s439_s26 = smov 16  }
  0x13   :  { %34 = dma.hbm_to_vmem [thread:$0]  %s538_s1, 4096, %s29_s16, [#allocation10], %s438_s25, %s438_s25, %s439_s26  }
  0x14   :  { %s440_s29 = smov [#allocation6]   ;;  %s441_s5 = smov [#allocation11]  }
  0x15   :  { %s19_s30 = sshll.u32 %s440_s29, 4  ;;  %s41_s6 = sshll.u32 %s441_s5, 4  ;;  %s20_s30 = int_to_ptr.vmem [resolvable:$true] %s19_s30  ;;  %s42_s6 = int_to_ptr.vmem [resolvable:$true] %s41_s6 }
  0x16   :  { %s341_s9 = scalar_lea.hbm %s537_s0, 64 }
  0x17   :  { %p342_p8 = scmp.ne.s32.totalorder %s537_s0, %s341_s9  ;;  %p345_p9 = scmp.lt.u32.totalorder %s341_s9, %s537_s0 }
  0x19   :  { %p347_p10 = pnand %p345_p9, %p342_p8 }
  0x1b   :  { %350 = shalt.err (!%p347_p10)
}
  0x1c   :  { %s351_s1 = scalar_lea.vmem %s20_s30, 64  ;;  %p356_p12 = scmp.lt.s32.totalorder %s20_s30, %s20_s30 }
  0x1d   :  { %p352_p11 = scmp.ne.s32.totalorder %s20_s30, %s351_s1  ;;  %p357_p13 = scmp.lt.s32.totalorder %s351_s1, %s351_s1 }
  0x1f   :  { %p358_p0 = por %p357_p13, %p356_p12 }
  0x21   :  { %p359_p1 = pnand %p358_p0, %p352_p11 }
  0x23   :  { %362 = shalt.err (!%p359_p1)
}
  0x24   :  { %22 = dma.hbm_to_vmem [thread:$0]  %s537_s0, 64, %s20_s30, [#allocation7]  }
  0x25   :  { %s363_s18 = scalar_lea.hbm %s539_s2, 32 }
  0x26   :  { %p364_p2 = scmp.ne.s32.totalorder %s539_s2, %s363_s18  ;;  %p367_p3 = scmp.lt.u32.totalorder %s363_s18, %s539_s2 }
  0x28   :  { %p369_p4 = pnand %p367_p3, %p364_p2 }
  0x2a   :  { %372 = shalt.err (!%p369_p4)
}
  0x2b   :  { %s373_s23 = scalar_lea.vmem %s42_s6, 32  ;;  %p378_p6 = scmp.lt.s32.totalorder %s42_s6, %s42_s6 }
  0x2c   :  { %p374_p5 = scmp.ne.s32.totalorder %s42_s6, %s373_s23  ;;  %p379_p7 = scmp.lt.s32.totalorder %s373_s23, %s373_s23 }
  0x2e   :  { %p380_p8 = por %p379_p7, %p378_p6 }
  0x30   :  { %p381_p9 = pnand %p380_p8, %p374_p5 }
  0x32   :  { %384 = shalt.err (!%p381_p9)
}
  0x33   :  { %44 = dma.hbm_to_vmem [thread:$0]  %s539_s2, 32, %s42_s6, [#allocation10]  }
  0x34   :  { %s442_s25 = smov [#allocation12]   ;;  %s385_s29 = scalar_lea.hbm %s540_s3, 128 }
  0x35   :  { %s51_s26 = sshll.u32 %s442_s25, 4  ;;  %p386_p10 = scmp.ne.s32.totalorder %s540_s3, %s385_s29  ;;  %s52_s26 = int_to_ptr.vmem [resolvable:$true] %s51_s26 }
  0x36   :  { %p389_p11 = scmp.lt.u32.totalorder %s385_s29, %s540_s3 }
  0x38   :  { %p391_p12 = pnand %p389_p11, %p386_p10 }
  0x3a   :  { %394 = shalt.err (!%p391_p12)
}
  0x3b   :  { %s395_s9 = scalar_lea.vmem %s52_s26, 128  ;;  %p400_p0 = scmp.lt.s32.totalorder %s52_s26, %s52_s26 }
  0x3c   :  { %p396_p13 = scmp.ne.s32.totalorder %s52_s26, %s395_s9  ;;  %p401_p1 = scmp.lt.s32.totalorder %s395_s9, %s395_s9 }
  0x3e   :  { %p402_p2 = por %p401_p1, %p400_p0 }
  0x40   :  { %p403_p3 = pnand %p402_p2, %p396_p13 }
  0x42   :  { %406 = shalt.err (!%p403_p3)
}
  0x43   :  { %54 = dma.hbm_to_vmem [thread:$0]  %s540_s3, 128, %s52_s26, [#allocation13]  }
  0x44   :  { %429 = dma.done.wait [#allocation7], 64  }
  0x45   :  { %430 = vsyncadd [#allocation7], 4294967232 }
  0x46   :  { %431 = dma.done.wait [#allocation10], 4128  }
  0x47   :  { %432 = vsyncadd [#allocation10], 4294963168 }
  0x48   :  { %433 = dma.done.wait [#allocation13], 128  }
  0x49   :  { %434 = vsyncadd [#allocation13], 4294967168  ;;  %vm73_vm0 = vcmask 3072   ;;  %v443_v0 = vmov 0.0   ;;  %v83_v1 = vld [vmem:[#allocation9 + $0x8] sm:$0xff]  ;;  %v85_v2 = vld [vmem:[#allocation9 + $0x18] sm:$0xff]  ;;  %v198_v50 = vlaneseq }
  0x4a   :  { %74 = vst.msk [vmem:[#allocation3] sm:$0xf] %vm73_vm0, %v443_v0  ;;  %75 = vst.msk [vmem:[#allocation4] sm:$0xf] %vm73_vm0, %v443_v0  ;;  %179 = vmatprep.mubr.f32.mxu0 %v443_v0  ;;  %v82_v3 = vld [vmem:[#allocation9] sm:$0xff]  ;;  %v277_v4 = vpack.c.bf16 %v85_v2, %v83_v1  ;;  %v84_v5 = vld [vmem:[#allocation9 + $0x10] sm:$0xff] }
  0x4b   :  { %76 = vst.msk [vmem:[#allocation5] sm:$0xf] %vm73_vm0, %v443_v0  ;;  %v87_v6 = vld [vmem:[#allocation9 + $0x28] sm:$0xff]  ;;  %v89_v7 = vld [vmem:[#allocation9 + $0x38] sm:$0xff]  ;;  %v279_v8 = vpack.c.bf16 %v84_v5, %v82_v3  ;;  %v86_v10 = vld [vmem:[#allocation9 + $0x20] sm:$0xff]  ;;  %v199_v51 = vshrl.u32 %v198_v50, 7 }
  0x4c   :  { %v281_v9 = vpack.c.bf16 %v89_v7, %v87_v6  ;;  %v88_v11 = vld [vmem:[#allocation9 + $0x30] sm:$0xff]  ;;  %v91_v12 = vld [vmem:[#allocation9 + $0x48] sm:$0xff]  ;;  %278 = vmatprep.subr.bf16.mxu0 %v277_v4  ;;  %v93_v13 = vld [vmem:[#allocation9 + $0x58] sm:$0xff]  ;;  %vm215_vm1 = vcmask 1043456   ;;  %s444_s3 = smov [#allocation14]  }
  0x4d   :  { %280 = vmatpush1.bf16.msra.mxu0 %v279_v8  ;;  %v283_v14 = vpack.c.bf16 %v88_v11, %v86_v10  ;;  %v285_v15 = vpack.c.bf16 %v93_v13, %v91_v12  ;;  %v90_v16 = vld [vmem:[#allocation9 + $0x40] sm:$0xff]  ;;  %v92_v17 = vld [vmem:[#allocation9 + $0x50] sm:$0xff]  ;;  %v95_v18 = vld [vmem:[#allocation9 + $0x68] sm:$0xff]  ;;  %v200_v52 = vsub.s32 0, %v199_v51  ;;  %v204_v53 = vsub.s32 1, %v199_v51  ;;  %s266_s10 = sshll.u32 %s444_s3, 4  ;;  %s267_s10 = int_to_ptr.vmem [resolvable:$true] %s266_s10 }
  0x4e   :  { %282 = vmatprep.subr.bf16.mxu0 %v281_v9  ;;  %v97_v19 = vld [vmem:[#allocation9 + $0x78] sm:$0xff]  ;;  %v287_v20 = vpack.c.bf16 %v92_v17, %v90_v16  ;;  %v94_v22 = vld [vmem:[#allocation9 + $0x60] sm:$0xff]  ;;  %v96_v23 = vld [vmem:[#allocation9 + $0x70] sm:$0xff]  ;;  %s407_s11 = scalar_lea.vmem %s267_s10, 64  ;;  %p412_p5 = scmp.lt.s32.totalorder %s267_s10, %s267_s10 }
  0x4f   :  { %v289_v21 = vpack.c.bf16 %v97_v19, %v95_v18  ;;  %v99_v24 = vld [vmem:[#allocation9 + $0x88] sm:$0xff]  ;;  %v101_v25 = vld [vmem:[#allocation9 + $0x98] sm:$0xff]  ;;  %v291_v26 = vpack.c.bf16 %v96_v23, %v94_v22  ;;  %v98_v28 = vld [vmem:[#allocation9 + $0x80] sm:$0xff]  ;;  %p408_p4 = scmp.ne.s32.totalorder %s267_s10, %s407_s11  ;;  %p413_p6 = scmp.lt.s32.totalorder %s407_s11, %s407_s11 }
  0x50   :  { %v293_v27 = vpack.c.bf16 %v101_v25, %v99_v24  ;;  %v100_v29 = vld [vmem:[#allocation9 + $0x90] sm:$0xff]  ;;  %v103_v30 = vld [vmem:[#allocation9 + $0xa8] sm:$0xff]  ;;  %v105_v31 = vld [vmem:[#allocation9 + $0xb8] sm:$0xff] }
  0x51   :  { %284 = vmatpush1.bf16.msra.mxu0 %v283_v14  ;;  %v295_v32 = vpack.c.bf16 %v100_v29, %v98_v28  ;;  %v297_v33 = vpack.c.bf16 %v105_v31, %v103_v30  ;;  %v102_v34 = vld [vmem:[#allocation9 + $0xa0] sm:$0xff]  ;;  %v104_v35 = vld [vmem:[#allocation9 + $0xb0] sm:$0xff]  ;;  %v107_v36 = vld [vmem:[#allocation9 + $0xc8] sm:$0xff]  ;;  %p414_p7 = por %p413_p6, %p412_p5 }
  0x52   :  { %286 = vmatprep.subr.bf16.mxu0 %v285_v15  ;;  %v109_v37 = vld [vmem:[#allocation9 + $0xd8] sm:$0xff]  ;;  %v299_v38 = vpack.c.bf16 %v104_v35, %v102_v34  ;;  %v106_v40 = vld [vmem:[#allocation9 + $0xc0] sm:$0xff]  ;;  %v108_v41 = vld [vmem:[#allocation9 + $0xd0] sm:$0xff] }
  0x53   :  { %v301_v39 = vpack.c.bf16 %v109_v37, %v107_v36  ;;  %v111_v42 = vld [vmem:[#allocation9 + $0xe8] sm:$0xff]  ;;  %v113_v43 = vld [vmem:[#allocation9 + $0xf8] sm:$0xff]  ;;  %v303_v44 = vpack.c.bf16 %v108_v41, %v106_v40  ;;  %v110_v46 = vld [vmem:[#allocation9 + $0xe0] sm:$0xff]  ;;  %p415_p8 = pnand %p414_p7, %p408_p4 }
  0x54   :  { %v305_v45 = vpack.c.bf16 %v113_v43, %v111_v42  ;;  %v112_v47 = vld [vmem:[#allocation9 + $0xf0] sm:$0xff]  ;;  %v81_v49 = vld [vmem:[#allocation6] sm:$0xf]  ;;  %v196_v54 = vld [vmem:[#allocation11] sm:$0x3] }
  0x55   :  { %288 = vmatpush1.bf16.msra.mxu0 %v287_v20  ;;  %v307_v48 = vpack.c.bf16 %v112_v47, %v110_v46  ;;  %v201_v55 = vrot.slane %v196_v54, %v200_v52  ;;  %v205_v56 = vrot.slane %v196_v54, %v204_v53  ;;  %v209_v59 = vld [vmem:[#allocation12] sm:$0xff]  ;;  %v224_v14 = vld [vmem:[#allocation4] sm:$0xf]  ;;  %v210_v15 = vld [vmem:[#allocation3] sm:$0xf] }
  0x56   :  { %290 = vmatprep.subr.bf16.mxu0 %v289_v21  ;;  %v237_v61 = vmul.f32 %v209_v59, %v209_v59  ;;  %v236_v20 = vld [vmem:[#allocation5] sm:$0xf] }
  0x57   :  { %v206_v58 = vcombine.low %v201_v55, %v205_v56 }
  0x58   :  { %v239_v0 = vcombine.high %v237_v61, %v237_v61  ;;  %v241_v5 = vsel %vm215_vm1, %v237_v61, 0.0 }
  0x59   :  { %292 = vmatpush1.bf16.msra.mxu0 %v291_v26 }
  0x5a   :  { %294 = vmatprep.subr.bf16.mxu0 %v293_v27  ;;  %v242_v6 = vsel %vm215_vm1, %v239_v0, 0.0 }
  0x5b   :  { %v243_v13 = vadd.f32 %v242_v6, %v241_v5 }
  0x5d   :  { %296 = vmatpush1.bf16.msra.mxu0 %v295_v32 }
  0x5e   :  { %298 = vmatprep.subr.bf16.mxu0 %v297_v33 }
  0x61   :  { %300 = vmatpush1.bf16.msra.mxu0 %v299_v38 }
  0x62   :  { %302 = vmatprep.subr.bf16.mxu0 %v301_v39 }
  0x65   :  { %304 = vmatpush1.bf16.msra.mxu0 %v303_v44 }
  0x66   :  { %306 = vmatprep.subr.bf16.mxu0 %v305_v45 }
  0x69   :  { %308 = vmatpush1.bf16.msra.mxu0 %v307_v48 }
  0x6c   :  { %180 = vmatmul.mubr.f32.vlgmr.msra.gmra.mrb[0].mxu0 %v81_v49 }
 0x13f   :  { %v181_v57 = vpop.f32.mrb[0].mxu0 }
 0x140   :  { %v183_v60 = vpop.f32.mrb[1].mxu0 }
 0x141   :  { %v188_v62 = vcombine.low %v181_v57, %v183_v60 }
 0x143   :  { %v208_v63 = vadd.f32 %v206_v58, %v188_v62 }
 0x145   :  { %v225_v1 = vmul.f32 %v208_v63, %v208_v63  ;;  %v211_v2 = vmul.f32 %v209_v59, %v208_v63 }
 0x147   :  { %v227_v3 = vcombine.high %v225_v1, %v225_v1  ;;  %v213_v4 = vcombine.high %v211_v2, %v211_v2  ;;  %v229_v7 = vsel %vm215_vm1, %v225_v1, 0.0  ;;  %v216_v9 = vsel %vm215_vm1, %v211_v2, 0.0 }
 0x149   :  { %v230_v8 = vsel %vm215_vm1, %v227_v3, 0.0  ;;  %v217_v10 = vsel %vm215_vm1, %v213_v4, 0.0 }
 0x14a   :  { %v231_v11 = vadd.f32 %v230_v8, %v229_v7  ;;  %v218_v12 = vadd.f32 %v217_v10, %v216_v9 }
 0x14c   :  { %232 = vadd.xlane.f32.xlu0 %v231_v11  ;;  %219 = vadd.xlane.f32.xlu1 %v218_v12 }
 0x150   :  { %244 = vadd.xlane.f32.xlu0 %v243_v13 }
 0x1d9   :  { %v233_v16 = vpop.xlane.xlu0 %232  ;;  %v220_v17 = vpop.xlane.xlu1 %219 }
 0x1da   :  { %v234_v18 = vadd.f32 %v233_v16, %v224_v14  ;;  %v221_v19 = vadd.f32 %v220_v17, %v210_v15 }
 0x1dc   :  { %235 = vst.msk [vmem:[#allocation4] sm:$0xf] %vm73_vm0, %v234_v18  ;;  %223 = vst.msk [vmem:[#allocation3] sm:$0xf] %vm73_vm0, %v221_v19 }
 0x1dd   :  { %v245_v21 = vpop.xlane.xlu0 %244 }
 0x1de   :  { %v246_v22 = vadd.f32 %v245_v21, %v236_v20 }
 0x1e0   :  { %247 = vst.msk [vmem:[#allocation5] sm:$0xf] %vm73_vm0, %v246_v22 }
 0x1e3   :  { %v251_v23 = vld [vmem:[#allocation4] sm:$0xf]  ;;  %v250_v29 = vld [vmem:[#allocation3] sm:$0xf] }
 0x1e4   :  { %v253_v25 = vmax.f32 %v251_v23, 1e-16 }
 0x1e7   :  { %v252_v24 = vld [vmem:[#allocation5] sm:$0xf] }
 0x1e8   :  { %v254_v26 = vmax.f32 %v252_v24, 1e-16 }
 0x1ea   :  { %v255_v27 = vmul.f32 %v254_v26, %v253_v25 }
 0x1ec   :  { %317 = vrsqrt.f32 %v255_v27 }
 0x1f6   :  { %v318_v28 = vpop.eup %317 }
 0x1f7   :  { %v257_v30 = vmul.f32 %v318_v28, %v250_v29 }
 0x1f9   :  { %259 = vst.msk [vmem:[#allocation14] sm:$0xf] %vm73_vm0, %v257_v30 }
 0x1fa   :  { %418 = shalt.err (!%p415_p8)
}
 0x1fb   :  { %s419_s1 = scalar_lea.hbm %s541_s4, 64 }
 0x1fc   :  { %p420_p9 = scmp.ne.s32.totalorder %s541_s4, %s419_s1  ;;  %p423_p10 = scmp.lt.u32.totalorder %s419_s1, %s541_s4 }
 0x1fe   :  { %p425_p11 = pnand %p423_p10, %p420_p9 }
 0x200   :  { %428 = shalt.err (!%p425_p11)
}
 0x201   :  { %269 = dma.vmem_to_hbm [thread:$0]  %s267_s10, 64, %s541_s4, [#allocation8]  }
 0x202   :  { %435 = dma.done.wait [#allocation8], 64  }
 0x203   :  { %436 = vsyncadd [#allocation8], 4294967232 }
 0x204   :  { %273 = vsyncpa [#allocation7], 1 }
 0x205   :  { %274 = vsyncpa [#allocation10], 1 }
 0x206   :  { %275 = vsyncpa [#allocation13], 1 }
 0x207   :  { %276 = vsyncpa [#allocation8], 1 }

// kernel: dckd_loss.6
= control target key start
LH: loop header
LB: loop body
LE: loop exit
PB: predicated region body
PF: predicated region fallthrough
CT: control target
= control target key end

     0   :  { %7 = vsyncpa [#allocation6], 0  ;;  %s290_s0 = inlined_call_operand.hbm [shape: f32[4,512], index: 0, kind: input, shape index: {}]   ;;  %s291_s1 = inlined_call_operand.hbm [shape: f32[4,512], index: 1, kind: input, shape index: {}]   ;;  %s292_s2 = inlined_call_operand.hbm [shape: f32[4,1], index: 2, kind: output, shape index: {}]  }
   0x1   :  { %8 = vsyncpa [#allocation9], 0 }
   0x2   :  { %9 = vsyncpa [#allocation7], 0  ;;  %s216_s9 = smov [#allocation5]   ;;  %s217_s11 = smov [#allocation8]  }
   0x3   :  { %s16_s10 = sshll.u32 %s216_s9, 4  ;;  %s26_s12 = sshll.u32 %s217_s11, 4  ;;  %s17_s10 = int_to_ptr.vmem [resolvable:$true] %s16_s10  ;;  %s27_s12 = int_to_ptr.vmem [resolvable:$true] %s26_s12 }
   0x4   :  { %s144_s15 = scalar_lea.hbm %s290_s0, 256 }
   0x5   :  { %p145_p0 = scmp.ne.s32.totalorder %s290_s0, %s144_s15  ;;  %p148_p1 = scmp.lt.u32.totalorder %s144_s15, %s290_s0 }
   0x7   :  { %p150_p2 = pnand %p148_p1, %p145_p0 }
   0x9   :  { %153 = shalt.err (!%p150_p2)
}
   0xa   :  { %s154_s20 = scalar_lea.vmem %s17_s10, 256  ;;  %p159_p4 = scmp.lt.s32.totalorder %s17_s10, %s17_s10 }
   0xb   :  { %p155_p3 = scmp.ne.s32.totalorder %s17_s10, %s154_s20  ;;  %p160_p5 = scmp.lt.s32.totalorder %s154_s20, %s154_s20 }
   0xd   :  { %p161_p6 = por %p160_p5, %p159_p4 }
   0xf   :  { %p162_p7 = pnand %p161_p6, %p155_p3 }
  0x11   :  { %165 = shalt.err (!%p162_p7)
}
  0x12   :  { %19 = dma.hbm_to_vmem [thread:$0]  %s290_s0, 256, %s17_s10, [#allocation6]  }
  0x13   :  { %s166_s25 = scalar_lea.hbm %s291_s1, 256 }
  0x14   :  { %p167_p8 = scmp.ne.s32.totalorder %s291_s1, %s166_s25  ;;  %p170_p9 = scmp.lt.u32.totalorder %s166_s25, %s291_s1 }
  0x16   :  { %p172_p10 = pnand %p170_p9, %p167_p8 }
  0x18   :  { %175 = shalt.err (!%p172_p10)
}
  0x19   :  { %s176_s30 = scalar_lea.vmem %s27_s12, 256  ;;  %p181_p12 = scmp.lt.s32.totalorder %s27_s12, %s27_s12 }
  0x1a   :  { %p177_p11 = scmp.ne.s32.totalorder %s27_s12, %s176_s30  ;;  %p182_p13 = scmp.lt.s32.totalorder %s176_s30, %s176_s30 }
  0x1c   :  { %p183_p0 = por %p182_p13, %p181_p12 }
  0x1e   :  { %p184_p1 = pnand %p183_p0, %p177_p11 }
  0x20   :  { %187 = shalt.err (!%p184_p1)
}
  0x21   :  { %29 = dma.hbm_to_vmem [thread:$0]  %s291_s1, 256, %s27_s12, [#allocation9]  }
  0x22   :  { %210 = dma.done.wait [#allocation6], 256  }
  0x23   :  { %211 = vsyncadd [#allocation6], 4294967040 }
  0x24   :  { %212 = dma.done.wait [#allocation9], 256  }
  0x25   :  { %213 = vsyncadd [#allocation9], 4294967040  ;;  %vm40_vm0 = vcmask 3072   ;;  %v218_v0 = vmov 0.0   ;;  %v44_v1 = vld [vmem:[#allocation5] sm:$0xff]  ;;  %v45_v2 = vld [vmem:[#allocation5 + $0x8] sm:$0xff] }
  0x26   :  { %42 = vst.msk [vmem:[#allocation3] sm:$0xf] %vm40_vm0, %v218_v0  ;;  %41 = vst.msk [vmem:[#allocation2] sm:$0xf] %vm40_vm0, %v218_v0  ;;  %vm57_vm1 = vcmask 1043456   ;;  %v46_v3 = vld [vmem:[#allocation8] sm:$0xff]  ;;  %v71_v4 = vmul.f32 %v44_v1, %v44_v1  ;;  %v72_v5 = vmul.f32 %v45_v2, %v45_v2 }
  0x27   :  { %43 = vst.msk [vmem:[#allocation4] sm:$0xf] %vm40_vm0, %v218_v0  ;;  %v47_v6 = vld [vmem:[#allocation8 + $0x8] sm:$0xff]  ;;  %v91_v7 = vmul.f32 %v46_v3, %v46_v3  ;;  %v49_v8 = vmul.f32 %v46_v3, %v44_v1  ;;  %s219_s1 = smov [#allocation10]  }
  0x28   :  { %v92_v9 = vmul.f32 %v47_v6, %v47_v6  ;;  %v50_v10 = vmul.f32 %v47_v6, %v45_v2  ;;  %v75_v11 = vcombine.high %v71_v4, %v71_v4  ;;  %v76_v12 = vcombine.high %v72_v5, %v72_v5  ;;  %s128_s4 = sshll.u32 %s219_s1, 4  ;;  %s129_s4 = int_to_ptr.vmem [resolvable:$true] %s128_s4 }
  0x29   :  { %v79_v13 = vsel %vm57_vm1, %v71_v4, 0.0  ;;  %v82_v14 = vsel %vm57_vm1, %v72_v5, 0.0  ;;  %v95_v15 = vcombine.high %v91_v7, %v91_v7  ;;  %v99_v16 = vsel %vm57_vm1, %v91_v7, 0.0  ;;  %s188_s5 = scalar_lea.vmem %s129_s4, 64  ;;  %p193_p3 = scmp.lt.s32.totalorder %s129_s4, %s129_s4 }
  0x2a   :  { %v80_v17 = vsel %vm57_vm1, %v75_v11, 0.0  ;;  %v96_v18 = vcombine.high %v92_v9, %v92_v9  ;;  %v53_v19 = vcombine.high %v49_v8, %v49_v8  ;;  %v54_v20 = vcombine.high %v50_v10, %v50_v10  ;;  %p189_p2 = scmp.ne.s32.totalorder %s129_s4, %s188_s5  ;;  %p194_p4 = scmp.lt.s32.totalorder %s188_s5, %s188_s5 }
  0x2b   :  { %v81_v21 = vadd.f32 %v80_v17, %v79_v13  ;;  %v100_v22 = vsel %vm57_vm1, %v95_v15, 0.0  ;;  %v102_v23 = vsel %vm57_vm1, %v92_v9, 0.0  ;;  %v58_v24 = vsel %vm57_vm1, %v49_v8, 0.0 }
  0x2c   :  { %v84_v25 = vsel %vm57_vm1, %v76_v12, 0.0  ;;  %v101_v26 = vadd.f32 %v100_v22, %v99_v16  ;;  %v59_v27 = vsel %vm57_vm1, %v53_v19, 0.0  ;;  %v61_v28 = vsel %vm57_vm1, %v50_v10, 0.0  ;;  %p195_p5 = por %p194_p4, %p193_p3 }
  0x2d   :  { %v83_v29 = vadd.f32 %v82_v14, %v81_v21  ;;  %v60_v30 = vadd.f32 %v59_v27, %v58_v24  ;;  %v104_v32 = vsel %vm57_vm1, %v96_v18, 0.0  ;;  %v63_v33 = vsel %vm57_vm1, %v54_v20, 0.0  ;;  %v70_v38 = vld [vmem:[#allocation3] sm:$0xf]  ;;  %v48_v40 = vld [vmem:[#allocation2] sm:$0xf] }
  0x2e   :  { %v103_v31 = vadd.f32 %v102_v23, %v101_v26  ;;  %v90_v42 = vld [vmem:[#allocation4] sm:$0xf]  ;;  %p196_p6 = pnand %p195_p5, %p189_p2 }
  0x2f   :  { %v85_v34 = vadd.f32 %v84_v25, %v83_v29  ;;  %v62_v35 = vadd.f32 %v61_v28, %v60_v30 }
  0x30   :  { %v105_v36 = vadd.f32 %v104_v32, %v103_v31 }
  0x31   :  { %86 = vadd.xlane.f32.xlu0 %v85_v34  ;;  %v64_v37 = vadd.f32 %v63_v33, %v62_v35 }
  0x33   :  { %65 = vadd.xlane.f32.xlu1 %v64_v37 }
  0x35   :  { %106 = vadd.xlane.f32.xlu0 %v105_v36 }
  0xbe   :  { %v87_v39 = vpop.xlane.xlu0 %86 }
  0xbf   :  { %v88_v41 = vadd.f32 %v87_v39, %v70_v38 }
  0xc0   :  { %v66_v43 = vpop.xlane.xlu1 %65 }
  0xc1   :  { %89 = vst.msk [vmem:[#allocation3] sm:$0xf] %vm40_vm0, %v88_v41  ;;  %v67_v44 = vadd.f32 %v66_v43, %v48_v40 }
  0xc2   :  { %v107_v45 = vpop.xlane.xlu0 %106 }
  0xc3   :  { %v108_v46 = vadd.f32 %v107_v45, %v90_v42  ;;  %69 = vst.msk [vmem:[#allocation2] sm:$0xf] %vm40_vm0, %v67_v44 }
  0xc5   :  { %109 = vst.msk [vmem:[#allocation4] sm:$0xf] %vm40_vm0, %v108_v46 }
  0xc8   :  { %v114_v47 = vld [vmem:[#allocation3] sm:$0xf] }
  0xc9   :  { %v116_v49 = vmax.f32 %v114_v47, 1e-16 }
  0xca   :  { %v113_v52 = vld [vmem:[#allocation2] sm:$0xf] }
  0xcc   :  { %v115_v48 = vld [vmem:[#allocation4] sm:$0xf] }
  0xcd   :  { %v117_v50 = vmax.f32 %v115_v48, 1e-16 }
  0xcf   :  { %v118_v51 = vmul.f32 %v117_v50, %v116_v49 }
  0xd1   :  { %142 = vrsqrt.f32 %v118_v51 }
  0xdb   :  { %v143_v53 = vpop.eup %142 }
  0xdc   :  { %v120_v54 = vmul.f32 %v143_v53, %v113_v52 }
  0xde   :  { %121 = vst.msk [vmem:[#allocation10] sm:$0xf] %vm40_vm0, %v120_v54 }
  0xdf   :  { %199 = shalt.err (!%p196_p6)
}
  0xe0   :  { %s200_s8 = scalar_lea.hbm %s292_s2, 64 }
  0xe1   :  { %p201_p7 = scmp.ne.s32.totalorder %s292_s2, %s200_s8  ;;  %p204_p8 = scmp.lt.u32.totalorder %s200_s8, %s292_s2 }
  0xe3   :  { %p206_p9 = pnand %p204_p8, %p201_p7 }
  0xe5   :  { %209 = shalt.err (!%p206_p9)
}
  0xe6   :  { %131 = dma.vmem_to_hbm [thread:$0]  %s129_s4, 64, %s292_s2, [#allocation7]  }
  0xe7   :  { %214 = dma.done.wait [#allocation7], 64  }
  0xe8   :  { %215 = vsyncadd [#allocation7], 4294967232 }
  0xe9   :  { %135 = vsyncpa [#allocation6], 1 }
  0xea   :  { %136 = vsyncpa [#allocation9], 1 }
  0xeb   :  { %137 = vsyncpa [#allocation7], 1 }

// kernel: dckd_loss.5
= control target key start
LH: loop header
LB: loop body
LE: loop exit
PB: predicated region body
PF: predicated region fallthrough
CT: control target
= control target key end

     0   :  { %7 = vsyncpa [#allocation3], 0  ;;  %s235_s0 = inlined_call_operand.hbm [shape: f32[4,100], index: 0, kind: input, shape index: {}]   ;;  %s236_s1 = inlined_call_operand.hbm [shape: f32[4,100], index: 1, kind: input, shape index: {}]   ;;  %s237_s2 = inlined_call_operand.hbm [shape: f32[4,1], index: 2, kind: output, shape index: {}]  }
   0x1   :  { %8 = vsyncpa [#allocation6], 0 }
   0x2   :  { %9 = vsyncpa [#allocation4], 0  ;;  %s176_s9 = smov [#allocation2]   ;;  %s177_s11 = smov [#allocation5]  }
   0x3   :  { %s16_s10 = sshll.u32 %s176_s9, 4  ;;  %s26_s12 = sshll.u32 %s177_s11, 4  ;;  %s17_s10 = int_to_ptr.vmem [resolvable:$true] %s16_s10  ;;  %s27_s12 = int_to_ptr.vmem [resolvable:$true] %s26_s12 }
   0x4   :  { %s104_s15 = scalar_lea.hbm %s235_s0, 64 }
   0x5   :  { %p105_p0 = scmp.ne.s32.totalorder %s235_s0, %s104_s15  ;;  %p108_p1 = scmp.lt.u32.totalorder %s104_s15, %s235_s0 }
   0x7   :  { %p110_p2 = pnand %p108_p1, %p105_p0 }
   0x9   :  { %113 = shalt.err (!%p110_p2)
}
   0xa   :  { %s114_s20 = scalar_lea.vmem %s17_s10, 64  ;;  %p119_p4 = scmp.lt.s32.totalorder %s17_s10, %s17_s10 }
   0xb   :  { %p115_p3 = scmp.ne.s32.totalorder %s17_s10, %s114_s20  ;;  %p120_p5 = scmp.lt.s32.totalorder %s114_s20, %s114_s20 }
   0xd   :  { %p121_p6 = por %p120_p5, %p119_p4 }
   0xf   :  { %p122_p7 = pnand %p121_p6, %p115_p3 }
  0x11   :  { %125 = shalt.err (!%p122_p7)
}
  0x12   :  { %19 = dma.hbm_to_vmem [thread:$0]  %s235_s0, 64, %s17_s10, [#allocation3]  }
  0x13   :  { %s126_s25 = scalar_lea.hbm %s236_s1, 64 }
  0x14   :  { %p127_p8 = scmp.ne.s32.totalorder %s236_s1, %s126_s25  ;;  %p130_p9 = scmp.lt.u32.totalorder %s126_s25, %s236_s1 }
  0x16   :  { %p132_p10 = pnand %p130_p9, %p127_p8 }
  0x18   :  { %135 = shalt.err (!%p132_p10)
}
  0x19   :  { %s136_s30 = scalar_lea.vmem %s27_s12, 64  ;;  %p141_p12 = scmp.lt.s32.totalorder %s27_s12, %s27_s12 }
  0x1a   :  { %p137_p11 = scmp.ne.s32.totalorder %s27_s12, %s136_s30  ;;  %p142_p13 = scmp.lt.s32.totalorder %s136_s30, %s136_s30 }
  0x1c   :  { %p143_p0 = por %p142_p13, %p141_p12 }
  0x1e   :  { %p144_p1 = pnand %p143_p0, %p137_p11 }
  0x20   :  { %147 = shalt.err (!%p144_p1)
}
  0x21   :  { %29 = dma.hbm_to_vmem [thread:$0]  %s236_s1, 64, %s27_s12, [#allocation6]  }
  0x22   :  { %170 = dma.done.wait [#allocation3], 64  }
  0x23   :  { %171 = vsyncadd [#allocation3], 4294967232 }
  0x24   :  { %172 = dma.done.wait [#allocation6], 64  }
  0x25   :  { %173 = vsyncadd [#allocation6], 4294967232  ;;  %v39_v0 = vld [vmem:[#allocation5] sm:$0xf]  ;;  %vm41_vm0 = vcmask 814080   ;;  %s178_s1 = smov [#allocation7]  }
  0x26   :  { %v36_v1 = vld [vmem:[#allocation2] sm:$0xf]  ;;  %v40_v2 = vmul.f32 0.25, %v39_v0  ;;  %s81_s4 = sshll.u32 %s178_s1, 4  ;;  %vm73_vm1 = vcmask 3072   ;;  %s82_s4 = int_to_ptr.vmem [resolvable:$true] %s81_s4 }
  0x27   :  { %v38_v3 = vmul.f32 0.25, %v36_v1  ;;  %s148_s5 = scalar_lea.vmem %s82_s4, 64  ;;  %p153_p3 = scmp.lt.s32.totalorder %s82_s4, %s82_s4 }
  0x28   :  { %v54_v4 = vsel %vm41_vm0, %v40_v2, -inf  ;;  %p149_p2 = scmp.ne.s32.totalorder %s82_s4, %s148_s5  ;;  %p154_p4 = scmp.lt.s32.totalorder %s148_s5, %s148_s5 }
  0x29   :  { %55 = vmax.xlane.f32.xlu0 %v54_v4  ;;  %v42_v5 = vsel %vm41_vm0, %v38_v3, -inf }
  0x2a   :  { %p155_p5 = por %p154_p4, %p153_p3 }
  0x2c   :  { %p156_p6 = pnand %p155_p5, %p149_p2 }
  0x2d   :  { %43 = vmax.xlane.f32.xlu0 %v42_v5 }
  0xb6   :  { %v56_v6 = vpop.xlane.xlu0 %55 }
  0xb7   :  { %v57_v7 = vsub.f32 %v40_v2, %v56_v6 }
  0xb9   :  { %v58_v8 = vmul.f32 1.442695, %v57_v7 }
  0xba   :  { %v44_v9 = vpop.xlane.xlu0 %43 }
  0xbb   :  { %94 = vpow2.f32 %v58_v8  ;;  %v45_v10 = vsub.f32 %v38_v3, %v44_v9 }
  0xbd   :  { %v46_v11 = vmul.f32 1.442695, %v45_v10 }
  0xbf   :  { %96 = vpow2.f32 %v46_v11 }
  0xc5   :  { %v95_v12 = vpop.eup %94 }
  0xc6   :  { %v60_v13 = vsel %vm41_vm0, %v95_v12, 0.0 }
  0xc7   :  { %61 = vadd.xlane.f32.xlu1 %v60_v13 }
  0xc9   :  { %v97_v14 = vpop.eup %96 }
  0xca   :  { %v48_v15 = vsel %vm41_vm0, %v97_v14, 0.0 }
  0xcb   :  { %49 = vadd.xlane.f32.xlu1 %v48_v15 }
 0x154   :  { %v62_v16 = vpop.xlane.xlu1 %61 }
 0x155   :  { %98 = vlog2.f32 %v62_v16 }
 0x158   :  { %v50_v17 = vpop.xlane.xlu1 %49 }
 0x159   :  { %100 = vlog2.f32 %v50_v17 }
 0x15f   :  { %v99_v18 = vpop.eup %98 }
 0x160   :  { %v64_v19 = vmul.f32 0.6931472, %v99_v18 }
 0x162   :  { %v65_v20 = vsub.f32 %v57_v7, %v64_v19 }
 0x163   :  { %v101_v21 = vpop.eup %100 }
 0x164   :  { %v66_v22 = vmul.f32 1.442695, %v65_v20  ;;  %v52_v23 = vmul.f32 0.6931472, %v101_v21 }
 0x166   :  { %102 = vpow2.f32 %v66_v22  ;;  %v53_v24 = vsub.f32 %v45_v10, %v52_v23 }
 0x168   :  { %v68_v25 = vsub.f32 %v65_v20, %v53_v24 }
 0x170   :  { %v103_v26 = vpop.eup %102 }
 0x171   :  { %v69_v27 = vmul.f32 %v103_v26, %v68_v25 }
 0x173   :  { %v70_v28 = vsel %vm41_vm0, %v69_v27, 0.0 }
 0x174   :  { %71 = vadd.xlane.f32.xlu0 %v70_v28 }
 0x201   :  { %v72_v29 = vpop.xlane.xlu0 %71 }
 0x202   :  { %74 = vst.msk [vmem:[#allocation7] sm:$0xf] %vm73_vm1, %v72_v29 }
 0x203   :  { %159 = shalt.err (!%p156_p6)
}
 0x204   :  { %s160_s8 = scalar_lea.hbm %s237_s2, 64 }
 0x205   :  { %p161_p7 = scmp.ne.s32.totalorder %s237_s2, %s160_s8  ;;  %p164_p8 = scmp.lt.u32.totalorder %s160_s8, %s237_s2 }
 0x207   :  { %p166_p9 = pnand %p164_p8, %p161_p7 }
 0x209   :  { %169 = shalt.err (!%p166_p9)
}
 0x20a   :  { %84 = dma.vmem_to_hbm [thread:$0]  %s82_s4, 64, %s237_s2, [#allocation4]  }
 0x20b   :  { %174 = dma.done.wait [#allocation4], 64  }
 0x20c   :  { %175 = vsyncadd [#allocation4], 4294967232 }
 0x20d   :  { %88 = vsyncpa [#allocation3], 1 }
 0x20e   :  { %89 = vsyncpa [#allocation6], 1 }
 0x20f   :  { %90 = vsyncpa [#allocation4], 1 }

// kernel: dckd_loss.9
= control target key start
LH: loop header
LB: loop body
LE: loop exit
PB: predicated region body
PF: predicated region fallthrough
CT: control target
= control target key end

     0   :  { %s11643_s0 = inlined_call_operand.hbm [shape: f32[4,2176], index: 0, kind: input, shape index: {}]   ;;  %s11644_s1 = inlined_call_operand.hbm [shape: f32[2176,640], index: 1, kind: input, shape index: {}]   ;;  %s11645_s2 = inlined_call_operand.hbm [shape: f32[1,640], index: 2, kind: input, shape index: {}]   ;;  %s11646_s3 = inlined_call_operand.hbm [shape: f32[4,640], index: 3, kind: input, shape index: {}]   ;;  %s11647_s4 = inlined_call_operand.hbm [shape: f32[4,1], index: 4, kind: output, shape index: {}]  }
   0x1   :  { %11659 = sst [smem:[#allocation30_spill]] %s11643_s0 }
   0x2   :  { %11660 = sst [smem:[#allocation31_spill]] %s11647_s4 }
   0x3   :  { %9 = vsyncpa [#allocation7], 0 }
   0x4   :  { %11 = vsyncpa [#allocation7 + $0x1], 0 }
   0x5   :  { %12 = vsyncpa [#allocation10], 0 }
   0x6   :  { %14 = vsyncpa [#allocation10 + $0x1], 0 }
   0x7   :  { %15 = vsyncpa [#allocation13], 0 }
   0x8   :  { %17 = vsyncpa [#allocation13 + $0x1], 0 }
   0x9   :  { %18 = vsyncpa [#allocation8], 0  ;;  %s7841_s15 = smov 0   ;;  %s7843_s16 = smov 0  }
   0xa   :  { %s7845_s17 = smov 0   ;;  %s7847_s18 = smov 0  }
   0xb   :  { %s7849_s19 = smov 0   ;;  %s7851_s20 = smov 0  }
   0xc   :  { %s7853_s21 = smov 0   ;;  %s7855_s22 = smov 0  }
   0xd   :  { %s7857_s23 = smov 0   ;;  %s7859_s24 = smov 0  }
   0xe   :  { %s7861_s25 = smov 0   ;;  %s7863_s26 = smov 0  }
   0xf   :  { %s7865_s27 = smov 0   ;;  %s7867_s28 = smov 0  }
  0x10 LB: > { %11661 = sst [smem:[#allocation20_spill]] %s7785_s23  ;;  %s7910_s29 = sadd.s32 4294967295, %s7805_s28   ;;  %s7805_s28 = sphi %s7867_s28, %s24_s28   ;;  %s7801_s27 = sphi %s7865_s27, %s11964_s27   ;;  %s7797_s26 = sphi %s7863_s26, %s11963_s26   ;;  %s7793_s25 = sphi %s7861_s25, %s11962_s25   ;;  %s7789_s24 = sphi %s7859_s24, %s11951_s24   ;;  %s7785_s23 = sphi %s7857_s23, %s11950_s23   ;;  %s7781_s22 = sphi %s7855_s22, %s11961_s22   ;;  %s7777_s21 = sphi %s7853_s21, %s11960_s21   ;;  %s7773_s20 = sphi %s7851_s20, %s11959_s20   ;;  %s7769_s19 = sphi %s7849_s19, %s11958_s19   ;;  %s7765_s18 = sphi %s7847_s18, %s11957_s18   ;;  %s7761_s17 = sphi %s7845_s17, %s11956_s17   ;;  %s7757_s16 = sphi %s7843_s16, %s11955_s16   ;;  %s7753_s15 = sphi %s7841_s15, %s11954_s15  }
  0x11   : > { %11662 = sst [smem:[#allocation21_spill]] %s7789_s24  ;;  %s33_s30 = sadd.s32 1, %s7797_s26 }
  0x12   : > { %11663 = sst [smem:[#allocation22_spill]] %s7793_s25  ;;  %p34_p0 = scmp.ge.s32.totalorder %s33_s30, 2 }
  0x13   : > { %11664 = sst [smem:[#allocation23_spill]] %s7797_s26  ;;  %s36_s5 = sadd.s32 1, %s7801_s27 }
  0x14   : > { %s43_s6 = sadd.s32 1, %s7785_s23  ;;  %p50_p1 = scmp.ne.s32.totalorder %s7785_s23, %s7781_s22 }
  0x15   : > { %s11966_s30 = smov (%p34_p0, %s33_s30), 0  ;;  %s11968_s5 = smov (!%p34_p0, %s36_s5), %s7801_s27 }
  0x16   : > { %11665 = sst [smem:[#allocation24_spill]] %s11966_s30  ;;  %s40_s7 = ssub.s32 %s7797_s26, %s11966_s30 }
  0x17   : > { %p51_p2 = scmp.eq.s32.totalorder %s7805_s28, 0  ;;  %p38_p3 = scmp.ge.s32.totalorder %s11968_s5, 2 }
  0x18   : > { %p41_p4 = scmp.eq.s32.totalorder %s40_s7, 0  ;;  %p56_p6 = scmp.ne.s32.totalorder %s7781_s22, %s7777_s21 }
  0x19   : > { %p7925_p5 = por %p51_p2, %p50_p1  ;;  %s11970_s5 = smov (%p38_p3, %s11968_s5), 0 }
  0x1a   : > { %11667 = sst [smem:[#allocation25_spill]] %s11970_s5  ;;  %p57_p7 = scmp.eq.s32.totalorder %s7910_s29, 0 }
  0x1b   : > { %s7933_s9 = scalar_select %p41_p4, %s7785_s23, %s43_s6  }
  0x1c   : > { %s67_s10 = ssub.s32 %s7801_s27, %s11970_s5  ;;  %s71_s12 = sadd.s32 1, %s7773_s20 }
  0x1d   : > { %11668 = sst [smem:[#allocation26_spill]] %s7933_s9  ;;  %s68_s11 = sor.u32 %s67_s10, %s40_s7 }
  0x1e   : > { %p7941_p8 = por %p57_p7, %p56_p6  ;;  %p69_p9 = scmp.eq.s32.totalorder %s68_s11, 0 }
  0x1f   : > { %p78_p10 = scmp.ne.s32.totalorder %s7773_s20, %s7769_s19  ;;  %p84_p11 = scmp.ne.s32.totalorder %s7769_s19, %s7765_s18 }
  0x20   : > { %s11669_s13 = scalar_select %p7941_p8, 1, 0 }
  0x21   : > { %s7950_s14 = scalar_select %p69_p9, %s7773_s20, %s71_s12  }
  0x22   : > { %p7954_p12 = por %p78_p10, %p51_p2  ;;  %p7960_p13 = por %p84_p11, %p57_p7 }
  0x23   : > { %11670 = sst [smem:[#allocation27_spill]] %s7950_s14  ;;  %p95_p0 = scmp.eq.s32.totalorder %s67_s10, 0 }
  0x24   : > { %s11671_s21 = scalar_select %p7954_p12, 1, 0 }
  0x25   : > { %s11672_s6 = scalar_select %p7960_p13, 1, 0 }
  0x26   : > { %s97_s7 = sadd.s32 1, %s7761_s17  ;;  %p104_p1 = scmp.ne.s32.totalorder %s7761_s17, %s7757_s16 }
  0x27   : > { %p110_p3 = scmp.ne.s32.totalorder %s7757_s16, %s7753_s15  ;;  %p4733_p9 = scmp.ge.s32.totalorder %s7805_s28, 4 }
  0x28   : > { %s7970_s5 = scalar_select %p95_p0, %s7761_s17, %s97_s7  }
  0x29   : > { %p7974_p4 = por %p104_p1, %p51_p2  ;;  %p7980_p6 = por %p110_p3, %p57_p7 }
  0x2a   : > { %11673 = sst [smem:[#allocation28_spill]] %s7970_s5  ;;  %177 = sbr.rel (%p4733_p9) target bundleno = 201 (0xc9), region = 16 }
  0x2b   : > { %s11674_s18 = scalar_select %p7974_p4, 1, 0 }
  0x2c   : > { %s11675_s11 = scalar_select %p7980_p6, 1, 0 }
  0x2e   : > { %11676 = sst [smem:[#allocation29_spill]] %s11675_s11 }
  0x31   : > { %180 = sbr.rel (!%p7925_p5) target bundleno = 88 (0x58), region = 20  ;;  %s181_s15 = sand.u32 (%p7925_p5), 1, %s7785_s23  }
  0x32   : > { %s4735_s10 = sshll.u32 (%p7925_p5), %s7797_s26, 4  ;;  %s4734_s12 = sshll.u32 (%p7925_p5), %s181_s15, 6 }
  0x33   : > { %s187_s7 = ssub.s32 (%p7925_p5), 17, %s4735_s10  ;;  %s7992_s14 = scalar_lea.sflag (%p7925_p5), [#allocation7], %s181_s15 }
  0x34   : > { %p188_p2 = scmp.lt.s32.totalorder (%p7925_p5), %s187_s7, 16  ;;  %s185_s5 = scalar_lea.vmem (%p7925_p5), [#allocation6], %s4734_s12 }
  0x38   : > { %s11972_s7 = smov (!%p188_p2, %s187_s7), 16 }
  0x39   : > { %s7989_s30 = sshll.u32 %s11972_s7, 6 }
  0x3a   : > { %s192_s9 = ssub.s32 1024, %s7989_s30 }
  0x3b   : > { %193 = vsyncadd %s7992_s14, %s192_s9  ;;  %p4737_p5 = scmp.ne.s32.totalorder %s7989_s30, 0  ;;  %s5830_s8 = sshll.u32 %s7797_s26, 10 }
  0x3c   : > { %s11677_s0 = sld [smem:[#allocation30_spill]]  ;;  %s199_s15 = sshll.u32 %s185_s5, 4  ;;  %s200_s15 = int_to_ptr.vmem [resolvable:$true] %s199_s15 }
  0x42   : > { %s8000_s10 = scalar_lea.hbm %s11677_s0, %s5830_s8  ;;  %s7541_s24 = scalar_lea.hbm %s11677_s0, 1088 }
  0x43   : > { %s7537_s7 = scalar_lea.hbm %s8000_s10, %s7989_s30  ;;  %p7542_p0 = scmp.lt.u32.totalorder %s8000_s10, %s11677_s0 }
  0x44   : > { %p7538_p7 = scmp.ne.s32.totalorder %s8000_s10, %s7537_s7  ;;  %p7543_p1 = scmp.lt.u32.totalorder %s7541_s24, %s7537_s7 }
  0x45   : > { %p7545_p9 = scmp.lt.u32.totalorder %s7537_s7, %s8000_s10 }
  0x46   : > { %p7539_p10 = pnand %p7538_p7, %p4737_p5  ;;  %p7544_p3 = por %p7543_p1, %p7542_p0 }
  0x48   : > { %p7540_p11 = pneg %p7539_p10  ;;  %p7546_p2 = por %p7545_p9, %p7544_p3 }
  0x4a   : > { %p7547_p6 = pnand %p7546_p2, %p7540_p11 }
  0x4c   : > { %7550 = shalt.err (!%p7547_p6)
}
  0x4d   : > { %s7551_s4 = scalar_lea.vmem %s200_s15, %s7989_s30  ;;  %s7807_s23 = smov [#allocation6]  }
  0x4e   : > { %p7552_p13 = scmp.ne.s32.totalorder %s200_s15, %s7551_s4  ;;  %s7555_s5 = sshll.u32 %s7807_s23, 4  ;;  %s7556_s5 = int_to_ptr.vmem [resolvable:$false] %s7555_s5 }
  0x4f   : > { %s7557_s8 = scalar_lea.vmem %s7556_s5, 2048  ;;  %p7558_p8 = scmp.lt.s32.totalorder %s200_s15, %s7556_s5 }
  0x50   : > { %p7553_p7 = pnand %p7552_p13, %p4737_p5  ;;  %p7559_p4 = scmp.lt.s32.totalorder %s7557_s8, %s7551_s4 }
  0x52   : > { %p7554_p10 = pneg %p7553_p7  ;;  %p7560_p12 = por %p7559_p4, %p7558_p8 }
  0x54   : > { %p7561_p0 = pnand %p7560_p12, %p7554_p10 }
  0x56   : > { %7564 = shalt.err (!%p7561_p0)
}
  0x57   : > { %202 = dma.hbm_to_vmem [thread:$0]  (%p4737_p5), %s8000_s10, %s7989_s30, %s200_s15, %s7992_s14  }
  0x58 PF: > { %p11678_p6 = scmp.ne.s32.totalorder %s11671_s21, 0 }
  0x59   : > { %s206_s24 = sand.u32 (%p11678_p6), 1, %s7805_s28   ;;  %s208_s25 = sand.u32 (%p11678_p6), 1, %s7773_s20  }
  0x5a   : > { %205 = sbr.rel (!%p11678_p6) target bundleno = 129 (0x81), region = 24  ;;  %s4741_s11 = sshll.u32 (%p11678_p6), %s208_s25, 13 }
  0x5b   : > { %s4742_s7 = sshll.u32 (%p11678_p6), %s7797_s26, 8  ;;  %s4743_s9 = sshll.u32 (%p11678_p6), %s7801_s27, 2 }
  0x5c   : > { %s213_s12 = ssub.s32 (%p11678_p6), 272, %s4742_s7  ;;  %s217_s4 = ssub.s32 (%p11678_p6), 5, %s4743_s9 }
  0x5d   : > { %p214_p8 = scmp.lt.s32.totalorder (%p11678_p6), %s213_s12, 256  ;;  %p218_p12 = scmp.lt.s32.totalorder (%p11678_p6), %s217_s4, 4 }
  0x5e   : > { %s8035_s10 = scalar_lea.sflag (%p11678_p6), [#allocation10], %s206_s24  ;;  %s210_s15 = scalar_lea.vmem (%p11678_p6), [#allocation9], %s4741_s11 }
  0x61   : > { %s11974_s12 = smov (!%p214_p8, %s213_s12), 256  ;;  %s11976_s4 = smov (!%p218_p12, %s217_s4), 4 }
  0x62   : > { %s4744_s30 = sshll.u32 %s11974_s12, 7 }
  0x63   : > { %s8032_s14 = smul.u32 %s4744_s30, %s11976_s4 }
  0x65   : > { %s222_s21 = ssub.s32 131072, %s8032_s14 }
  0x66   : > { %223 = vsyncadd %s8035_s10, %s222_s21  ;;  %p4745_p13 = scmp.ne.s32.totalorder %s8032_s14, 0  ;;  %s7397_s23 = smul.u32 1280, %s7797_s26 }
  0x67   : > { %s4748_s5 = sshll.u32 %s11976_s4, 3  ;;  %s231_s8 = sshll.u32 %s210_s15, 4  ;;  %s8043_s8 = int_to_ptr.vmem [resolvable:$true] %s231_s8 }
  0x68   : > { %s226_s25 = sadd.s32 %s7397_s23, %s4743_s9  ;;  %s230_s7 = smul.u32 %s4748_s5, %s11974_s12 }
  0x69   : > { %s4747_s30 = sshll.u32 %s226_s25, 7  ;;  %s7569_s15 = scalar_lea.hbm %s11644_s1, 174080 }
  0x6a   : > { %s8048_s11 = scalar_lea.hbm %s11644_s1, %s4747_s30  ;;  %s8050_s21 = sshll.u32 %s230_s7, 4 }
  0x6b   : > { %s7565_s26 = scalar_lea.hbm %s8048_s11, %s8050_s21  ;;  %p7570_p1 = scmp.lt.u32.totalorder %s8048_s11, %s11644_s1 }
  0x6c   : > { %p7566_p4 = scmp.ne.s32.totalorder %s8048_s11, %s7565_s26  ;;  %p7571_p3 = scmp.lt.u32.totalorder %s7569_s15, %s7565_s26 }
  0x6d   : > { %p7573_p2 = scmp.lt.u32.totalorder %s7565_s26, %s8048_s11 }
  0x6e   : > { %p7567_p5 = pnand %p7566_p4, %p4745_p13  ;;  %p7572_p9 = por %p7571_p3, %p7570_p1 }
  0x70   : > { %p7568_p11 = pneg %p7567_p5  ;;  %p7574_p7 = por %p7573_p2, %p7572_p9 }
  0x72   : > { %p7575_p10 = pnand %p7574_p7, %p7568_p11 }
  0x74   : > { %7578 = shalt.err (!%p7575_p10)
}
  0x75   : > { %s7579_s25 = scalar_lea.vmem %s8043_s8, %s8050_s21  ;;  %s7808_s7 = smov [#allocation9]  }
  0x76   : > { %p7580_p0 = scmp.ne.s32.totalorder %s8043_s8, %s7579_s25  ;;  %s7583_s30 = sshll.u32 %s7808_s7, 4  ;;  %s7584_s30 = int_to_ptr.vmem [resolvable:$false] %s7583_s30 }
  0x77   : > { %s7585_s24 = scalar_lea.vmem %s7584_s30, 262144  ;;  %p7586_p12 = scmp.lt.s32.totalorder %s8043_s8, %s7584_s30 }
  0x78   : > { %p7581_p6 = pnand %p7580_p0, %p4745_p13  ;;  %p7587_p4 = scmp.lt.s32.totalorder %s7585_s24, %s7579_s25 }
  0x7a   : > { %p7582_p8 = pneg %p7581_p6  ;;  %p7588_p5 = por %p7587_p4, %p7586_p12 }
  0x7c   : > { %p7589_p1 = pnand %p7588_p5, %p7582_p8 }
  0x7e   : > { %7592 = shalt.err (!%p7589_p1)
}
  0x7f   : > { %s7809_s26 = smov 640   ;;  %s7810_s9 = smov 512  }
  0x80   : > { %237 = dma.hbm_to_vmem [thread:$0]  (%p4745_p13), %s8048_s11, %s8050_s21, %s8043_s8, %s8035_s10, %s7809_s26, %s7810_s9, %s4748_s5  }
  0x81 PF: > { %p11679_p11 = scmp.ne.s32.totalorder %s11674_s18, 0 }
  0x82   : > { %s241_s12 = sand.u32 (%p11679_p11), 1, %s7805_s28   ;;  %s243_s15 = sand.u32 (%p11679_p11), 1, %s7761_s17  }
  0x83   : > { %240 = sbr.rel (!%p11679_p11) target bundleno = 165 (0xa5), region = 28  ;;  %s4749_s23 = sshll.u32 (%p11679_p11), %s243_s15, 2 }
  0x84   : > { %s4750_s0 = sshll.u32 (%p11679_p11), %s7801_s27, 2  ;;  %s8087_s4 = scalar_lea.sflag (%p11679_p11), [#allocation10], %s241_s12 }
  0x85   : > { %s247_s25 = ssub.s32 (%p11679_p11), 5, %s4750_s0  ;;  %s245_s10 = scalar_lea.vmem (%p11679_p11), [#allocation11], %s4749_s23 }
  0x86   : > { %p248_p3 = scmp.lt.s32.totalorder (%p11679_p11), %s247_s25, 4 }
  0x8a   : > { %s11978_s25 = smov (!%p248_p3, %s247_s25), 4 }
  0x8b   : > { %s8084_s7 = sshll.u32 %s11978_s25, 4 }
  0x8c   : > { %s252_s14 = ssub.s32 64, %s8084_s7 }
  0x8d   : > { %253 = vsyncadd %s8087_s4, %s252_s14  ;;  %p4752_p13 = scmp.ne.s32.totalorder %s8084_s7, 0  ;;  %s5831_s5 = sshll.u32 %s7801_s27, 6 }
  0x8e   : > { %s8095_s21 = scalar_lea.hbm %s11645_s2, %s5831_s5  ;;  %s258_s30 = sshll.u32 %s245_s10, 4  ;;  %s259_s30 = int_to_ptr.vmem [resolvable:$true] %s258_s30 }
  0x8f   : > { %s7593_s24 = scalar_lea.hbm %s8095_s21, %s8084_s7  ;;  %s7597_s12 = scalar_lea.hbm %s11645_s2, 80 }
  0x90   : > { %p7594_p9 = scmp.ne.s32.totalorder %s8095_s21, %s7593_s24  ;;  %p7598_p10 = scmp.lt.u32.totalorder %s8095_s21, %s11645_s2 }
  0x91   : > { %p7599_p0 = scmp.lt.u32.totalorder %s7597_s12, %s7593_s24  ;;  %p7601_p8 = scmp.lt.u32.totalorder %s7593_s24, %s8095_s21 }
  0x92   : > { %p7595_p2 = pnand %p7594_p9, %p4752_p13 }
  0x93   : > { %p7600_p6 = por %p7599_p0, %p7598_p10 }
  0x94   : > { %p7596_p7 = pneg %p7595_p2 }
  0x95   : > { %p7602_p12 = por %p7601_p8, %p7600_p6 }
  0x97   : > { %p7603_p4 = pnand %p7602_p12, %p7596_p7 }
  0x99   : > { %7606 = shalt.err (!%p7603_p4)
}
  0x9a   : > { %s7607_s0 = scalar_lea.vmem %s259_s30, %s8084_s7  ;;  %s7811_s25 = smov [#allocation11]  }
  0x9b   : > { %p7608_p5 = scmp.ne.s32.totalorder %s259_s30, %s7607_s0  ;;  %s7611_s14 = sshll.u32 %s7811_s25, 4  ;;  %s7612_s14 = int_to_ptr.vmem [resolvable:$false] %s7611_s14 }
  0x9c   : > { %s7613_s10 = scalar_lea.vmem %s7612_s14, 128  ;;  %p7614_p3 = scmp.lt.s32.totalorder %s259_s30, %s7612_s14 }
  0x9d   : > { %p7609_p1 = pnand %p7608_p5, %p4752_p13  ;;  %p7615_p9 = scmp.lt.s32.totalorder %s7613_s10, %s7607_s0 }
  0x9f   : > { %p7610_p11 = pneg %p7609_p1  ;;  %p7616_p2 = por %p7615_p9, %p7614_p3 }
  0xa1   : > { %p7617_p0 = pnand %p7616_p2, %p7610_p11 }
  0xa3   : > { %7620 = shalt.err (!%p7617_p0)
}
  0xa4   : > { %261 = dma.hbm_to_vmem [thread:$0]  (%p4752_p13), %s8095_s21, %s8084_s7, %s259_s30, %s8087_s4  }
  0xa5 PF: > { %p11680_p7 = scmp.ne.s32.totalorder %s11674_s18, 0 }
  0xa6   : > { %s265_s5 = sand.u32 (%p11680_p7), 1, %s7761_s17   ;;  %s4755_s8 = sshll.u32 (%p11680_p7), %s7801_s27, 2 }
  0xa7   : > { %264 = sbr.rel (!%p11680_p7) target bundleno = 201 (0xc9), region = 32  ;;  %s4754_s11 = sshll.u32 (%p11680_p7), %s265_s5, 4 }
  0xa8   : > { %s271_s24 = ssub.s32 (%p11680_p7), 5, %s4755_s8  ;;  %s8125_s12 = scalar_lea.sflag (%p11680_p7), [#allocation13], %s265_s5 }
  0xa9   : > { %p272_p10 = scmp.lt.s32.totalorder (%p11680_p7), %s271_s24, 4  ;;  %s269_s7 = scalar_lea.vmem (%p11680_p7), [#allocation12], %s4754_s11 }
  0xae   : > { %s11980_s24 = smov (!%p272_p10, %s271_s24), 4 }
  0xaf   : > { %s8122_s26 = sshll.u32 %s11980_s24, 6 }
  0xb0   : > { %s276_s9 = ssub.s32 256, %s8122_s26 }
  0xb1   : > { %277 = vsyncadd %s8125_s12, %s276_s9  ;;  %p4757_p13 = scmp.ne.s32.totalorder %s8122_s26, 0  ;;  %s5832_s18 = sshll.u32 %s7801_s27, 8 }
  0xb2   : > { %s8133_s30 = scalar_lea.hbm %s11646_s3, %s5832_s18  ;;  %s283_s15 = sshll.u32 %s269_s7, 4  ;;  %s284_s15 = int_to_ptr.vmem [resolvable:$true] %s283_s15 }
  0xb3   : > { %s7621_s23 = scalar_lea.hbm %s8133_s30, %s8122_s26  ;;  %s7625_s14 = scalar_lea.hbm %s11646_s3, 320 }
  0xb4   : > { %p7622_p6 = scmp.ne.s32.totalorder %s8133_s30, %s7621_s23  ;;  %p7626_p4 = scmp.lt.u32.totalorder %s8133_s30, %s11646_s3 }
  0xb5   : > { %p7627_p5 = scmp.lt.u32.totalorder %s7625_s14, %s7621_s23  ;;  %p7629_p11 = scmp.lt.u32.totalorder %s7621_s23, %s8133_s30 }
  0xb6   : > { %p7623_p8 = pnand %p7622_p6, %p4757_p13 }
  0xb7   : > { %p7628_p1 = por %p7627_p5, %p7626_p4 }
  0xb8   : > { %p7624_p12 = pneg %p7623_p8 }
  0xb9   : > { %p7630_p3 = por %p7629_p11, %p7628_p1 }
  0xbb   : > { %p7631_p9 = pnand %p7630_p3, %p7624_p12 }
  0xbd   : > { %7634 = shalt.err (!%p7631_p9)
}
  0xbe   : > { %s7635_s8 = scalar_lea.vmem %s284_s15, %s8122_s26  ;;  %s7812_s11 = smov [#allocation12]  }
  0xbf   : > { %p7636_p2 = scmp.ne.s32.totalorder %s284_s15, %s7635_s8  ;;  %s7639_s24 = sshll.u32 %s7812_s11, 4  ;;  %s7640_s24 = int_to_ptr.vmem [resolvable:$false] %s7639_s24 }
  0xc0   : > { %s7641_s9 = scalar_lea.vmem %s7640_s24, 512  ;;  %p7642_p10 = scmp.lt.s32.totalorder %s284_s15, %s7640_s24 }
  0xc1   : > { %p7637_p0 = pnand %p7636_p2, %p4757_p13  ;;  %p7643_p6 = scmp.lt.s32.totalorder %s7641_s9, %s7635_s8 }
  0xc3   : > { %p7638_p7 = pneg %p7637_p0  ;;  %p7644_p8 = por %p7643_p6, %p7642_p10 }
  0xc5   : > { %p7645_p4 = pnand %p7644_p8, %p7638_p7 }
  0xc7   : > { %7648 = shalt.err (!%p7645_p4)
}
  0xc8   : > { %286 = dma.hbm_to_vmem [thread:$0]  (%p4757_p13), %s8133_s30, %s8122_s26, %s284_s15, %s8125_s12  }
  0xc9 PF: > { %p4761_p12 = scmp.ge.s32.totalorder %s7805_s28, 1  ;;  %p288_p5 = scmp.lt.s32.totalorder %s7805_s28, 5 }
  0xcb   : > { %p289_p1 = pnand %p4761_p12, %p288_p5 }
  0xcc   : > { %s294_s7 = sand.u32 (!%p289_p1), 1, %s7781_s22   ;;  %p11681_p11 = scmp.ne.s32.totalorder (!%p289_p1), %s11669_s13, 0 }
  0xcd   : > { %292 = sbr.rel (%p289_p1) target bundleno = 1233 (0x4d1), region = 36  ;;  %s4762_s18 = sshll.u32 (!%p289_p1), %s294_s7, 6 }
  0xce   : > { %s295_s4 = scalar_lea.sflag (!%p289_p1), [#allocation7], %s294_s7  ;;  %s8159_s21 = scalar_lea.vmem (!%p289_p1), [#allocation6], %s4762_s18 }
  0xd4   : > { %7732 = dma.done.wait (%p11681_p11), %s295_s4, 1024  }
  0xd5   : > { %7734 = vsyncadd (%p11681_p11), %s295_s4, 4294966272  ;;  %s303_s26 = sand.u32 1, %s7910_s29   ;;  %s305_s12 = sand.u32 1, %s7769_s19  }
  0xd6   : > { %s4763_s30 = sshll.u32 %s305_s12, 13  ;;  %s304_s15 = scalar_lea.sflag [#allocation10], %s303_s26 }
  0xd7   : > { %s8167_s23 = scalar_lea.vmem [#allocation9], %s4763_s30  ;;  %p11682_p13 = scmp.ne.s32.totalorder %s11672_s6, 0 }
  0xd9   : > { %7736 = dma.done.wait (%p11682_p13), %s304_s15, 131072  }
  0xda   : > { %7738 = vsyncadd (%p11682_p13), %s304_s15, 4294836224  ;;  %s11683_s0 = sld [smem:[#allocation29_spill]]  ;;  %s314_s25 = sand.u32 1, %s7757_s16  }
  0xdb   : > { %s4764_s14 = sshll.u32 %s314_s25, 2 }
  0xdc   : > { %s8174_s13 = scalar_lea.vmem [#allocation11], %s4764_s14 }
  0xe0   : > { %p11684_p3 = scmp.ne.s32.totalorder %s11683_s0, 0 }
  0xe2   : > { %7740 = dma.done.wait (%p11684_p3), %s304_s15, 64  }
  0xe3   : > { %7742 = vsyncadd (%p11684_p3), %s304_s15, 4294967232  ;;  %s4765_s10 = sshll.u32 %s314_s25, 4  ;;  %s322_s5 = scalar_lea.sflag [#allocation13], %s314_s25 }
  0xe4   : > { %s8180_s8 = scalar_lea.vmem [#allocation12], %s4765_s10 }
  0xe5   : > { %7744 = dma.done.wait (%p11684_p3), %s322_s5, 256  }
  0xe6   : > { %7746 = vsyncadd (%p11684_p3), %s322_s5, 4294967040  ;;  %s11685_s6 = sld [smem:[#allocation22_spill]]  ;;  %s11686_s11 = sld [smem:[#allocation21_spill]] }
  0xec   : > { %p385_p9 = scmp.eq.s32.totalorder %s11685_s6, 0  ;;  %p386_p2 = scmp.eq.s32.totalorder %s11686_s11, 0 }
  0xee   : > { %p387_p0 = pnand %p386_p2, %p385_p9 }
  0xef   : > { %vm391_vm0 = vcmask (!%p387_p0), 3072   ;;  %v7813_v0 = vmov (!%p387_p0), 0.0  }
  0xf0   : > { %390 = sbr.rel (%p387_p0) target bundleno = 247 (0xf7), region = 56  ;;  %392 = vst.msk [vmem:[#allocation3] sm:$0xf] (!%p387_p0), %vm391_vm0, %v7813_v0  ;;  %393 = vst.msk [vmem:[#allocation4] sm:$0xf] (!%p387_p0), %vm391_vm0, %v7813_v0 }
  0xf1   : > { %394 = vst.msk [vmem:[#allocation5] sm:$0xf] (!%p387_p0), %vm391_vm0, %v7813_v0 }
  0xf7 PF: > { %s11687_s24 = sld [smem:[#allocation21_spill]] }
  0xfd   : > { %p4766_p7 = scmp.ne.s32.totalorder %s11687_s24, 0 }
  0xfe   : > { %v7814_v1 = vmov (!%p4766_p7), 0.0  }
  0xff   : > { %397 = sbr.rel (%p4766_p7) target bundleno = 262 (0x106), region = 60  ;;  %398 = vst [vmem:[#allocation2] sm:$0xff] (!%p4766_p7), %v7814_v1  ;;  %399 = vst [vmem:[#allocation2 + $0x8] sm:$0xff] (!%p4766_p7), %v7814_v1 }
 0x106 PF: > { %v1432_v2 = vlaneseq  ;;  %s11688_s9 = sld [smem:[#allocation21_spill]]  ;;  %v409_v3 = vld [vmem:[%s8167_s23 + $0x8] sm:$0xff]  ;;  %v411_v6 = vld [vmem:[%s8167_s23 + $0x18] sm:$0xff]  ;;  %v408_v9 = vld [vmem:[%s8167_s23] sm:$0xff] }
 0x107   : > { %v413_v4 = vld [vmem:[%s8167_s23 + $0x28] sm:$0xff]  ;;  %v415_v8 = vld [vmem:[%s8167_s23 + $0x38] sm:$0xff]  ;;  %v412_v10 = vld [vmem:[%s8167_s23 + $0x20] sm:$0xff] }
 0x108   : > { %v8196_v7 = vshrl.u32 %v1432_v2, 7  ;;  %v410_v11 = vld [vmem:[%s8167_s23 + $0x10] sm:$0xff]  ;;  %v417_v15 = vld [vmem:[%s8167_s23 + $0x48] sm:$0xff]  ;;  %v5833_v19 = vpack.c.bf16 %v413_v4, %v409_v3  ;;  %v6601_v20 = vpack.c.bf16 %v415_v8, %v411_v6  ;;  %v5836_v21 = vpack.c.bf16 %v412_v10, %v408_v9  ;;  %v419_v22 = vld [vmem:[%s8167_s23 + $0x58] sm:$0xff] }
 0x109   : > { %v414_v14 = vld [vmem:[%s8167_s23 + $0x30] sm:$0xff]  ;;  %v421_v16 = vld [vmem:[%s8167_s23 + $0x68] sm:$0xff]  ;;  %v423_v23 = vld [vmem:[%s8167_s23 + $0x78] sm:$0xff] }
 0x10a   : > { %v1525_v12 = vadd.s32 8, %v8196_v7  ;;  %v1526_v17 = vadd.s32 16, %v8196_v7  ;;  %v1527_v18 = vadd.s32 24, %v8196_v7  ;;  %v1528_v24 = vadd.s32 32, %v8196_v7  ;;  %v416_v28 = vld [vmem:[%s8167_s23 + $0x40] sm:$0xff]  ;;  %v418_v32 = vld [vmem:[%s8167_s23 + $0x50] sm:$0xff] }
 0x10b   : > { %v420_v29 = vld [vmem:[%s8167_s23 + $0x60] sm:$0xff]  ;;  %v6604_v30 = vpack.c.bf16 %v414_v14, %v410_v11  ;;  %v5839_v31 = vpack.c.bf16 %v421_v16, %v417_v15  ;;  %v422_v33 = vld [vmem:[%s8167_s23 + $0x70] sm:$0xff]  ;;  %v1529_v34 = vadd.s32 40, %v8196_v7  ;;  %v6607_v36 = vpack.c.bf16 %v423_v23, %v419_v22  ;;  %v425_v37 = vld [vmem:[%s8167_s23 + $0x88] sm:$0xff] }
 0x10c   : > { %s4767_s7 = sshll.u32 %s11688_s9, 11  ;;  %v429_v38 = vld [vmem:[%s8167_s23 + $0xa8] sm:$0xff]  ;;  %v5842_v39 = vpack.c.bf16 %v420_v29, %v416_v28  ;;  %v427_v41 = vld [vmem:[%s8167_s23 + $0x98] sm:$0xff]  ;;  %v6610_v44 = vpack.c.bf16 %v422_v33, %v418_v32  ;;  %v1530_v45 = vadd.s32 48, %v8196_v7  ;;  %v1531_v46 = vadd.s32 56, %v8196_v7  ;;  %v424_v48 = vld [vmem:[%s8167_s23 + $0x80] sm:$0xff] }
 0x10d   : > { %v8192_v5 = vstv %s4767_s7  ;;  %v431_v42 = vld [vmem:[%s8167_s23 + $0xb8] sm:$0xff]  ;;  %v5845_v47 = vpack.c.bf16 %v429_v38, %v425_v37  ;;  %v428_v49 = vld [vmem:[%s8167_s23 + $0xa0] sm:$0xff]  ;;  %v426_v50 = vld [vmem:[%s8167_s23 + $0x90] sm:$0xff]  ;;  %v1532_v51 = vadd.s32 64, %v8196_v7  ;;  %v1533_v52 = vadd.s32 72, %v8196_v7  ;;  %p4466_p10 = scmp.eq.s32.totalorder %s11688_s9, 1 }
 0x10e   : > { %v1780_v13 = vadd.s32 %v8196_v7, %v8192_v5  ;;  %v1781_v25 = vadd.s32 %v1525_v12, %v8192_v5  ;;  %v1782_v26 = vadd.s32 %v1526_v17, %v8192_v5  ;;  %v1783_v27 = vadd.s32 %v1527_v18, %v8192_v5  ;;  %v430_v54 = vld [vmem:[%s8167_s23 + $0xb0] sm:$0xff]  ;;  %v433_v55 = vld [vmem:[%s8167_s23 + $0xc8] sm:$0xff]  ;;  %v435_v60 = vld [vmem:[%s8167_s23 + $0xd8] sm:$0xff]  ;;  %p5824_p6 = scmp.ne.s32.totalorder %s11688_s9, 1 }
 0x10f   : > { %v1784_v35 = vadd.s32 %v1528_v24, %v8192_v5  ;;  %v1785_v40 = vadd.s32 %v1529_v34, %v8192_v5  ;;  %v6613_v53 = vpack.c.bf16 %v431_v42, %v427_v41  ;;  %v437_v56 = vld [vmem:[%s8167_s23 + $0xe8] sm:$0xff]  ;;  %v1786_v57 = vadd.s32 %v1530_v45, %v8192_v5  ;;  %v439_v61 = vld [vmem:[%s8167_s23 + $0xf8] sm:$0xff]  ;;  %v432_v6 = vld [vmem:[%s8167_s23 + $0xc0] sm:$0xff]  ;;  %s11941_s18 = sld [smem:[#allocation22_spill]] (!%p5824_p6) }
 0x110   : > { %vm2036_vm1 = vcmp.lt.s32.totalorder %v1780_v13, 2176  ;;  %vm2037_vm2 = vcmp.lt.s32.totalorder %v1781_v25, 2176  ;;  %vm2038_vm3 = vcmp.lt.s32.totalorder %v1782_v26, 2176  ;;  %vm2039_vm4 = vcmp.lt.s32.totalorder %v1783_v27, 2176  ;;  %v436_v8 = vld [vmem:[%s8167_s23 + $0xe0] sm:$0xff]  ;;  %v434_v9 = vld [vmem:[%s8167_s23 + $0xd0] sm:$0xff] }
 0x111   : > { %vm5834_vm5 = vmpackc.low %vm2037_vm2, %vm2036_vm1  ;;  %vm2040_vm7 = vcmp.lt.s32.totalorder %v1784_v35, 2176  ;;  %vm2041_vm8 = vcmp.lt.s32.totalorder %v1785_v40, 2176  ;;  %v1787_v58 = vadd.s32 %v1531_v46, %v8192_v5  ;;  %v1788_v62 = vadd.s32 %v1532_v51, %v8192_v5  ;;  %v438_v12 = vld [vmem:[%s8167_s23 + $0xf0] sm:$0xff]  ;;  %v441_v13 = vld [vmem:[%s8167_s23 + $0x108] sm:$0xff] }
 0x112   : > { %5835 = vmatprep.subr.msk.bf16.mxu0 %vm5834_vm5, %v5833_v19  ;;  %6603 = vmatprep.subr.msk.bf16.mxu1 %vm5834_vm5, %v6601_v20  ;;  %vm8228_vm6 = vmpackc.low %vm2039_vm4, %vm2038_vm3  ;;  %v1789_v63 = vadd.s32 %v1533_v52, %v8192_v5  ;;  %vm2042_vm10 = vcmp.lt.s32.totalorder %v1786_v57, 2176  ;;  %v1534_v0 = vadd.s32 80, %v8196_v7  ;;  %v1535_v1 = vadd.s32 88, %v8196_v7  ;;  %v445_v14 = vld [vmem:[%s8167_s23 + $0x128] sm:$0xff]  ;;  %v443_v16 = vld [vmem:[%s8167_s23 + $0x118] sm:$0xff] }
 0x113   : > { %5838 = vmatpush1.bf16.msk.msra.mxu0 %vm5834_vm5, %v5836_v21  ;;  %6606 = vmatpush1.bf16.msk.msra.mxu1 %vm5834_vm5, %v6604_v30  ;;  %vm8250_vm9 = vmpackc.low %vm2041_vm8, %vm2040_vm7  ;;  %vm2043_vm11 = vcmp.lt.s32.totalorder %v1787_v58, 2176  ;;  %v5848_v3 = vpack.c.bf16 %v428_v49, %v424_v48  ;;  %v6616_v4 = vpack.c.bf16 %v430_v54, %v426_v50  ;;  %v5851_v10 = vpack.c.bf16 %v437_v56, %v433_v55  ;;  %v447_v17 = vld [vmem:[%s8167_s23 + $0x138] sm:$0xff]  ;;  %v440_v18 = vld [vmem:[%s8167_s23 + $0x100] sm:$0xff] }
 0x114   : > { %5841 = vmatprep.subr.msk.bf16.mxu0 %vm8228_vm6, %v5839_v31  ;;  %6609 = vmatprep.subr.msk.bf16.mxu1 %vm8228_vm6, %v6607_v36  ;;  %v6619_v11 = vpack.c.bf16 %v439_v61, %v435_v60  ;;  %vm8276_vm12 = vmpackc.low %vm2043_vm11, %vm2042_vm10  ;;  %vm2044_vm13 = vcmp.lt.s32.totalorder %v1788_v62, 2176  ;;  %vm2045_vm14 = vcmp.lt.s32.totalorder %v1789_v63, 2176  ;;  %v444_v19 = vld [vmem:[%s8167_s23 + $0x120] sm:$0xff]  ;;  %v1790_v20 = vadd.s32 %v1534_v0, %v8192_v5  ;;  %v442_v26 = vld [vmem:[%s8167_s23 + $0x110] sm:$0xff] }
 0x115   : > { %v1791_v21 = vadd.s32 %v1535_v1, %v8192_v5  ;;  %v1536_v22 = vadd.s32 96, %v8196_v7  ;;  %v1537_v23 = vadd.s32 104, %v8196_v7  ;;  %v5854_v24 = vpack.c.bf16 %v436_v8, %v432_v6  ;;  %v446_v27 = vld [vmem:[%s8167_s23 + $0x130] sm:$0xff]  ;;  %v449_v28 = vld [vmem:[%s8167_s23 + $0x148] sm:$0xff]  ;;  %v451_v32 = vld [vmem:[%s8167_s23 + $0x158] sm:$0xff]  ;;  %s5825_s4 = sshll.u32 (!%p5824_p6), %s11941_s18, 9 }
 0x116   : > { %v6622_v25 = vpack.c.bf16 %v438_v12, %v434_v9  ;;  %v5857_v29 = vpack.c.bf16 %v445_v14, %v441_v13  ;;  %v6625_v30 = vpack.c.bf16 %v447_v17, %v443_v16  ;;  %v453_v31 = vld [vmem:[%s8167_s23 + $0x168] sm:$0xff]  ;;  %v455_v33 = vld [vmem:[%s8167_s23 + $0x178] sm:$0xff]  ;;  %v1538_v34 = vadd.s32 112, %v8196_v7  ;;  %vm8306_vm15 = vmpackc.low %vm2045_vm14, %vm2044_vm13 }
 0x117   : > { %5844 = vmatpush1.bf16.msk.msra.mxu0 %vm8228_vm6, %v5842_v39  ;;  %6612 = vmatpush1.bf16.msk.msra.mxu1 %vm8228_vm6, %v6610_v44  ;;  %v1539_v35 = vadd.s32 120, %v8196_v7  ;;  %v5860_v37 = vpack.c.bf16 %v444_v19, %v440_v18  ;;  %vm2046_vm0 = vcmp.lt.s32.totalorder %v1790_v20, 2176  ;;  %vm2047_vm1 = vcmp.lt.s32.totalorder %v1791_v21, 2176  ;;  %v448_v38 = vld [vmem:[%s8167_s23 + $0x140] sm:$0xff]  ;;  %v450_v45 = vld [vmem:[%s8167_s23 + $0x150] sm:$0xff]  ;;  %v461_v48 = vld [vmem:[%s8167_s23 + $0x1a8] sm:$0xff] }
 0x118   : > { %5847 = vmatprep.subr.msk.bf16.mxu0 %vm8250_vm9, %v5845_v47  ;;  %6615 = vmatprep.subr.msk.bf16.mxu1 %vm8250_vm9, %v6613_v53  ;;  %v452_v39 = vld [vmem:[%s8167_s23 + $0x160] sm:$0xff]  ;;  %v1792_v40 = vadd.s32 %v1536_v22, %v8192_v5  ;;  %v1793_v41 = vadd.s32 %v1537_v23, %v8192_v5  ;;  %v6628_v42 = vpack.c.bf16 %v446_v27, %v442_v26  ;;  %v454_v46 = vld [vmem:[%s8167_s23 + $0x170] sm:$0xff]  ;;  %v457_v47 = vld [vmem:[%s8167_s23 + $0x188] sm:$0xff]  ;;  %v1540_v53 = vadd.s32 128, %v8196_v7 }
 0x119   : > { %v5863_v43 = vpack.c.bf16 %v453_v31, %v449_v28  ;;  %v6631_v44 = vpack.c.bf16 %v455_v33, %v451_v32  ;;  %v459_v49 = vld [vmem:[%s8167_s23 + $0x198] sm:$0xff]  ;;  %v1794_v51 = vadd.s32 %v1538_v34, %v8192_v5  ;;  %v1795_v52 = vadd.s32 %v1539_v35, %v8192_v5  ;;  %vm8334_vm2 = vmpackc.low %vm2047_vm1, %vm2046_vm0  ;;  %v456_v60 = vld [vmem:[%s8167_s23 + $0x180] sm:$0xff] }
 0x11a   : > { %v463_v50 = vld [vmem:[%s8167_s23 + $0x1b8] sm:$0xff]  ;;  %v1541_v54 = vadd.s32 136, %v8196_v7  ;;  %v5866_v56 = vpack.c.bf16 %v452_v39, %v448_v38  ;;  %vm2048_vm3 = vcmp.lt.s32.totalorder %v1792_v40, 2176  ;;  %vm2049_vm4 = vcmp.lt.s32.totalorder %v1793_v41, 2176  ;;  %v460_v61 = vld [vmem:[%s8167_s23 + $0x1a0] sm:$0xff]  ;;  %v458_v62 = vld [vmem:[%s8167_s23 + $0x190] sm:$0xff] }
 0x11b   : > { %5850 = vmatpush1.bf16.msk.msra.mxu0 %vm8250_vm9, %v5848_v3  ;;  %6618 = vmatpush1.bf16.msk.msra.mxu1 %vm8250_vm9, %v6616_v4  ;;  %v6634_v57 = vpack.c.bf16 %v454_v46, %v450_v45  ;;  %v5869_v58 = vpack.c.bf16 %v461_v48, %v457_v47  ;;  %v6637_v59 = vpack.c.bf16 %v463_v50, %v459_v49  ;;  %v462_v63 = vld [vmem:[%s8167_s23 + $0x1b0] sm:$0xff]  ;;  %v465_v0 = vld [vmem:[%s8167_s23 + $0x1c8] sm:$0xff]  ;;  %vm2050_vm5 = vcmp.lt.s32.totalorder %v1794_v51, 2176  ;;  %vm8356_vm7 = vmpackc.low %vm2049_vm4, %vm2048_vm3 }
 0x11c   : > { %5853 = vmatprep.subr.msk.bf16.mxu0 %vm8276_vm12, %v5851_v10  ;;  %6621 = vmatprep.subr.msk.bf16.mxu1 %vm8276_vm12, %v6619_v11  ;;  %v469_v1 = vld [vmem:[%s8167_s23 + $0x1e8] sm:$0xff]  ;;  %vm2051_vm6 = vcmp.lt.s32.totalorder %v1795_v52, 2176  ;;  %v1796_v3 = vadd.s32 %v1540_v53, %v8192_v5  ;;  %v1797_v4 = vadd.s32 %v1541_v54, %v8192_v5  ;;  %v467_v8 = vld [vmem:[%s8167_s23 + $0x1d8] sm:$0xff]  ;;  %v1542_v10 = vadd.s32 144, %v8196_v7  ;;  %v464_v15 = vld [vmem:[%s8167_s23 + $0x1c0] sm:$0xff] }
 0x11d   : > { %v471_v9 = vld [vmem:[%s8167_s23 + $0x1f8] sm:$0xff]  ;;  %v1543_v11 = vadd.s32 152, %v8196_v7  ;;  %v5872_v12 = vpack.c.bf16 %v460_v61, %v456_v60  ;;  %v6640_v13 = vpack.c.bf16 %v462_v63, %v458_v62  ;;  %vm8368_vm8 = vmpackc.low %vm2051_vm6, %vm2050_vm5  ;;  %v468_v16 = vld [vmem:[%s8167_s23 + $0x1e0] sm:$0xff]  ;;  %v5875_v17 = vpack.c.bf16 %v469_v1, %v465_v0 }
 0x11e   : > { %v6643_v18 = vpack.c.bf16 %v471_v9, %v467_v8  ;;  %v466_v19 = vld [vmem:[%s8167_s23 + $0x1d0] sm:$0xff]  ;;  %v473_v21 = vld [vmem:[%s8167_s23 + $0x208] sm:$0xff]  ;;  %vm2052_vm9 = vcmp.lt.s32.totalorder %v1796_v3, 2176  ;;  %vm2053_vm10 = vcmp.lt.s32.totalorder %v1797_v4, 2176  ;;  %v475_v23 = vld [vmem:[%s8167_s23 + $0x218] sm:$0xff]  ;;  %v1798_v26 = vadd.s32 %v1542_v10, %v8192_v5 }
 0x11f   : > { %5856 = vmatpush1.bf16.msk.msra.mxu0 %vm8276_vm12, %v5854_v24  ;;  %6624 = vmatpush1.bf16.msk.msra.mxu1 %vm8276_vm12, %v6622_v25  ;;  %v470_v20 = vld [vmem:[%s8167_s23 + $0x1f0] sm:$0xff]  ;;  %v477_v22 = vld [vmem:[%s8167_s23 + $0x228] sm:$0xff]  ;;  %v479_v24 = vld [vmem:[%s8167_s23 + $0x238] sm:$0xff]  ;;  %v1544_v25 = vadd.s32 160, %v8196_v7  ;;  %v1799_v27 = vadd.s32 %v1543_v11, %v8192_v5  ;;  %v1545_v28 = vadd.s32 168, %v8196_v7  ;;  %v1546_v34 = vadd.s32 176, %v8196_v7 }
 0x120   : > { %5859 = vmatprep.subr.msk.bf16.mxu0 %vm8306_vm15, %v5857_v29  ;;  %6627 = vmatprep.subr.msk.bf16.mxu1 %vm8306_vm15, %v6625_v30  ;;  %v5878_v29 = vpack.c.bf16 %v468_v16, %v464_v15  ;;  %v6646_v30 = vpack.c.bf16 %v470_v20, %v466_v19  ;;  %vm8392_vm11 = vmpackc.low %vm2053_vm10, %vm2052_vm9  ;;  %v472_v32 = vld [vmem:[%s8167_s23 + $0x200] sm:$0xff]  ;;  %v1547_v35 = vadd.s32 184, %v8196_v7  ;;  %v5881_v36 = vpack.c.bf16 %v477_v22, %v473_v21  ;;  %v474_v38 = vld [vmem:[%s8167_s23 + $0x210] sm:$0xff] }
 0x121   : > { %v476_v33 = vld [vmem:[%s8167_s23 + $0x220] sm:$0xff]  ;;  %v478_v39 = vld [vmem:[%s8167_s23 + $0x230] sm:$0xff]  ;;  %v481_v40 = vld [vmem:[%s8167_s23 + $0x248] sm:$0xff]  ;;  %v8412_v45 = vand.u32 127, %v1432_v2  ;;  %vm2054_vm12 = vcmp.lt.s32.totalorder %v1798_v26, 2176  ;;  %vm2055_vm13 = vcmp.lt.s32.totalorder %v1799_v27, 2176  ;;  %v1801_v49 = vadd.s32 %v1545_v28, %v8192_v5 }
 0x122   : > { %v485_v41 = vld [vmem:[%s8167_s23 + $0x268] sm:$0xff]  ;;  %v5884_v46 = vpack.c.bf16 %v476_v33, %v472_v32  ;;  %v480_v47 = vld [vmem:[%s8167_s23 + $0x240] sm:$0xff]  ;;  %v6652_v50 = vpack.c.bf16 %v478_v39, %v474_v38  ;;  %v482_v51 = vld [vmem:[%s8167_s23 + $0x250] sm:$0xff]  ;;  %v1802_v52 = vadd.s32 %v1546_v34, %v8192_v5  ;;  %v1803_v53 = vadd.s32 %v1547_v35, %v8192_v5 }
 0x123   : > { %5862 = vmatpush1.bf16.msk.msra.mxu0 %vm8306_vm15, %v5860_v37  ;;  %6630 = vmatpush1.bf16.msk.msra.mxu1 %vm8306_vm15, %v6628_v42  ;;  %v6649_v37 = vpack.c.bf16 %v479_v24, %v475_v23  ;;  %v483_v42 = vld [vmem:[%s8167_s23 + $0x258] sm:$0xff]  ;;  %v484_v48 = vld [vmem:[%s8167_s23 + $0x260] sm:$0xff]  ;;  %v486_v2 = vld [vmem:[%s8167_s23 + $0x270] sm:$0xff]  ;;  %v5887_v54 = vpack.c.bf16 %v485_v41, %v481_v40  ;;  %vm2057_vm0 = vcmp.lt.s32.totalorder %v1801_v49, 2176  ;;  %v1550_v1 = vadd.s32 208, %v8196_v7 }
 0x124   : > { %5865 = vmatprep.subr.msk.bf16.mxu0 %vm8334_vm2, %v5863_v43  ;;  %6633 = vmatprep.subr.msk.bf16.mxu1 %vm8334_vm2, %v6631_v44  ;;  %v487_v43 = vld [vmem:[%s8167_s23 + $0x278] sm:$0xff]  ;;  %v1800_v44 = vadd.s32 %v1544_v25, %v8192_v5  ;;  %vm8435_vm14 = vmpackc.low %vm2055_vm13, %vm2054_vm12  ;;  %v5890_v61 = vpack.c.bf16 %v484_v48, %v480_v47  ;;  %v6658_v0 = vpack.c.bf16 %v486_v2, %v482_v51  ;;  %v8443_v3 = vadd.s32 128, %v8412_v45  ;;  %v488_v6 = vld [vmem:[%s8167_s23 + $0x280] sm:$0xff] }
 0x125   : > { %v6655_v55 = vpack.c.bf16 %v487_v43, %v483_v42  ;;  %v491_v62 = vld [vmem:[%s8167_s23 + $0x298] sm:$0xff]  ;;  %v492_v8 = vld [vmem:[%s8167_s23 + $0x2a0] sm:$0xff]  ;;  %v490_v9 = vld [vmem:[%s8167_s23 + $0x290] sm:$0xff]  ;;  %vm2058_vm1 = vcmp.lt.s32.totalorder %v1802_v52, 2176  ;;  %v1551_v10 = vadd.s32 216, %v8196_v7  ;;  %v1806_v22 = vadd.s32 %v1550_v1, %v8192_v5 }
 0x126   : > { %vm2056_vm15 = vcmp.lt.s32.totalorder %v1800_v44, 2176  ;;  %v495_v63 = vld [vmem:[%s8167_s23 + $0x2b8] sm:$0xff]  ;;  %v501_v14 = vld [vmem:[%s8167_s23 + $0x2e8] sm:$0xff]  ;;  %v5896_v20 = vpack.c.bf16 %v492_v8, %v488_v6  ;;  %v1452_v23 = vadd.s32 %v8192_v5, %v8443_v3  ;;  %v496_v26 = vld [vmem:[%s8167_s23 + $0x2c0] sm:$0xff]  ;;  %v1553_v34 = vadd.s32 232, %v8196_v7 }
 0x127   : > { %5868 = vmatpush1.bf16.msk.msra.mxu0 %vm8334_vm2, %v5866_v56  ;;  %6636 = vmatpush1.bf16.msk.msra.mxu1 %vm8334_vm2, %v6634_v57  ;;  %v489_v56 = vld [vmem:[%s8167_s23 + $0x288] sm:$0xff]  ;;  %vm2059_vm2 = vcmp.lt.s32.totalorder %v1803_v53, 2176  ;;  %v6661_v11 = vpack.c.bf16 %v495_v63, %v491_v62  ;;  %vm8464_vm3 = vmpackc.low %vm2057_vm0, %vm2056_vm15  ;;  %v503_v19 = vld [vmem:[%s8167_s23 + $0x2f8] sm:$0xff]  ;;  %v1554_v40 = vadd.s32 240, %v8196_v7  ;;  %v1555_v48 = vadd.s32 248, %v8196_v7 }
 0x128   : > { %5871 = vmatprep.subr.msk.bf16.mxu0 %vm8356_vm7, %v5869_v58  ;;  %6639 = vmatprep.subr.msk.bf16.mxu1 %vm8356_vm7, %v6637_v59  ;;  %v493_v57 = vld [vmem:[%s8167_s23 + $0x2a8] sm:$0xff]  ;;  %v1548_v58 = vadd.s32 192, %v8196_v7  ;;  %v1549_v59 = vadd.s32 200, %v8196_v7  ;;  %vm8471_vm4 = vmpackc.low %vm2059_vm2, %vm2058_vm1  ;;  %v500_v27 = vld [vmem:[%s8167_s23 + $0x2e0] sm:$0xff]  ;;  %v1809_v53 = vadd.s32 %v1553_v34, %v8192_v5 }
 0x129   : > { %v5893_v4 = vpack.c.bf16 %v493_v57, %v489_v56  ;;  %v498_v28 = vld [vmem:[%s8167_s23 + $0x2d0] sm:$0xff]  ;;  %v505_v33 = vld [vmem:[%s8167_s23 + $0x308] sm:$0xff]  ;;  %v8495_v35 = vld [vmem:[%s8159_s21] sm:$0xff]  ;;  %v5902_v41 = vpack.c.bf16 %v500_v27, %v496_v26  ;;  %v1810_v57 = vadd.s32 %v1554_v40, %v8192_v5  ;;  %v1559_v27 = vadd.s32 280, %v8196_v7 }
 0x12a   : > { %v1804_v15 = vadd.s32 %v1548_v58, %v8192_v5  ;;  %v1805_v16 = vadd.s32 %v1549_v59, %v8192_v5  ;;  %v502_v32 = vld [vmem:[%s8167_s23 + $0x2f0] sm:$0xff]  ;;  %v511_v38 = vld [vmem:[%s8167_s23 + $0x338] sm:$0xff]  ;;  %v1491_v39 = vcombine.high %v8495_v35, %v8495_v35  ;;  %v504_v44 = vld [vmem:[%s8167_s23 + $0x300] sm:$0xff]  ;;  %v1556_v58 = vadd.s32 256, %v8196_v7 }
 0x12b   : > { %5874 = vmatpush1.bf16.msk.msra.mxu0 %vm8356_vm7, %v5872_v12  ;;  %6642 = vmatpush1.bf16.msk.msra.mxu1 %vm8356_vm7, %v6640_v13  ;;  %v494_v12 = vld [vmem:[%s8167_s23 + $0x2b0] sm:$0xff]  ;;  %v497_v13 = vld [vmem:[%s8167_s23 + $0x2c8] sm:$0xff]  ;;  %vm2062_vm7 = vcmp.lt.s32.totalorder %v1806_v22, 2176  ;;  %v6670_v42 = vpack.c.bf16 %v502_v32, %v498_v28  ;;  %v519_v56 = vld [vmem:[%s8167_s23 + $0x378] sm:$0xff]  ;;  %vm2065_vm13 = vcmp.lt.s32.totalorder %v1809_v53, 2176 }
 0x12c   : > { %5877 = vmatprep.subr.msk.bf16.mxu0 %vm8368_vm8, %v5875_v17  ;;  %6645 = vmatprep.subr.msk.bf16.mxu1 %vm8368_vm8, %v6643_v18  ;;  %v499_v18 = vld [vmem:[%s8167_s23 + $0x2d8] sm:$0xff]  ;;  %v6664_v24 = vpack.c.bf16 %v494_v12, %v490_v9  ;;  %v5899_v25 = vpack.c.bf16 %v501_v14, %v497_v13  ;;  %vm2060_vm5 = vcmp.lt.s32.totalorder %v1804_v15, 2176  ;;  %vm2061_vm6 = vcmp.lt.s32.totalorder %v1805_v16, 2176  ;;  %v506_v51 = vld [vmem:[%s8167_s23 + $0x310] sm:$0xff]  ;;  %v513_v52 = vld [vmem:[%s8167_s23 + $0x348] sm:$0xff] }
 0x12d   : > { %v6667_v31 = vpack.c.bf16 %v503_v19, %v499_v18  ;;  %vm8508_vm9 = vmpackc.low %vm2061_vm6, %vm2060_vm5  ;;  %v510_v2 = vld [vmem:[%s8167_s23 + $0x330] sm:$0xff]  ;;  %v512_v62 = vld [vmem:[%s8167_s23 + $0x340] sm:$0xff]  ;;  %v1812_v14 = vadd.s32 %v1556_v58, %v8192_v5  ;;  %v1563_v58 = vadd.s32 312, %v8196_v7 }
 0x12e   : > { %v6676_v60 = vpack.c.bf16 %v510_v2, %v506_v51  ;;  %v516_v63 = vld [vmem:[%s8167_s23 + $0x360] sm:$0xff]  ;;  %v514_v6 = vld [vmem:[%s8167_s23 + $0x350] sm:$0xff]  ;;  %v521_v9 = vld [vmem:[%s8167_s23 + $0x388] sm:$0xff]  ;;  %v1562_v2 = vadd.s32 304, %v8196_v7 }
 0x12f   : > { %5880 = vmatpush1.bf16.msk.msra.mxu0 %vm8368_vm8, %v5878_v29  ;;  %6648 = vmatpush1.bf16.msk.msra.mxu1 %vm8368_vm8, %v6646_v30  ;;  %v1807_v29 = vadd.s32 %v1551_v10, %v8192_v5  ;;  %v1552_v30 = vadd.s32 224, %v8196_v7  ;;  %vm1468_vm8 = vcmp.lt.s32.totalorder %v1452_v23, 2176  ;;  %v518_v8 = vld [vmem:[%s8167_s23 + $0x370] sm:$0xff]  ;;  %v1557_v10 = vadd.s32 264, %v8196_v7  ;;  %v523_v12 = vld [vmem:[%s8167_s23 + $0x398] sm:$0xff]  ;;  %v520_v18 = vld [vmem:[%s8167_s23 + $0x380] sm:$0xff] }
 0x130   : > { %5883 = vmatprep.subr.msk.bf16.mxu0 %vm8392_vm11, %v5881_v36  ;;  %6651 = vmatprep.subr.msk.bf16.mxu1 %vm8392_vm11, %v6649_v37  ;;  %v509_v36 = vld [vmem:[%s8167_s23 + $0x328] sm:$0xff]  ;;  %v507_v37 = vld [vmem:[%s8167_s23 + $0x318] sm:$0xff]  ;;  %v5914_v15 = vpack.c.bf16 %v516_v63, %v512_v62  ;;  %v6682_v16 = vpack.c.bf16 %v518_v8, %v514_v6  ;;  %v524_v19 = vld [vmem:[%s8167_s23 + $0x3a0] sm:$0xff]  ;;  %vm2068_vm1 = vcmp.lt.s32.totalorder %v1812_v14, 2176  ;;  %v1818_v6 = vadd.s32 %v1562_v2, %v8192_v5 }
 0x131   : > { %v1808_v47 = vadd.s32 %v1552_v30, %v8192_v5  ;;  %v5905_v49 = vpack.c.bf16 %v509_v36, %v505_v33  ;;  %vm2063_vm10 = vcmp.lt.s32.totalorder %v1807_v29, 2176  ;;  %4832 = vmatprep.mubr.msk.f32.mxu0 %vm1468_vm8, %v1491_v39  ;;  %5360 = vmatprep.mubr.msk.f32.mxu1 %vm1468_vm8, %v1491_v39  ;;  %v527_v13 = vld [vmem:[%s8167_s23 + $0x3b8] sm:$0xff]  ;;  %v522_v23 = vld [vmem:[%s8167_s23 + $0x390] sm:$0xff]  ;;  %v1813_v26 = vadd.s32 %v1557_v10, %v8192_v5  ;;  %v533_v28 = vld [vmem:[%s8167_s23 + $0x3e8] sm:$0xff] }
 0x132   : > { %v6685_v22 = vpack.c.bf16 %v527_v13, %v523_v12  ;;  %v531_v29 = vld [vmem:[%s8167_s23 + $0x3d8] sm:$0xff]  ;;  %v5920_v32 = vpack.c.bf16 %v524_v19, %v520_v18  ;;  %v528_v36 = vld [vmem:[%s8167_s23 + $0x3c0] sm:$0xff]  ;;  %v1561_v39 = vadd.s32 296, %v8196_v7  ;;  %v534_v43 = vld [vmem:[%s8167_s23 + $0x3f0] sm:$0xff]  ;;  %v1819_v13 = vadd.s32 %v1563_v58, %v8192_v5 }
 0x133   : > { %5886 = vmatpush1.bf16.msk.msra.mxu0 %vm8392_vm11, %v5884_v46  ;;  %6654 = vmatpush1.bf16.msk.msra.mxu1 %vm8392_vm11, %v6652_v50  ;;  %v508_v46 = vld [vmem:[%s8167_s23 + $0x320] sm:$0xff]  ;;  %v6673_v50 = vpack.c.bf16 %v511_v38, %v507_v37  ;;  %vm8536_vm11 = vmpackc.low %vm2063_vm10, %vm2062_vm7  ;;  %vm2064_vm12 = vcmp.lt.s32.totalorder %v1808_v47, 2176  ;;  %v535_v30 = vld [vmem:[%s8167_s23 + $0x3f8] sm:$0xff]  ;;  %v1564_v14 = vadd.s32 320, %v8196_v7 }
 0x134   : > { %5889 = vmatprep.subr.msk.bf16.mxu0 %vm8435_vm14, %v5887_v54  ;;  %6657 = vmatprep.subr.msk.bf16.mxu1 %vm8435_vm14, %v6655_v55  ;;  %v517_v54 = vld [vmem:[%s8167_s23 + $0x368] sm:$0xff]  ;;  %v515_v55 = vld [vmem:[%s8167_s23 + $0x358] sm:$0xff]  ;;  %v5908_v59 = vpack.c.bf16 %v508_v46, %v504_v44  ;;  %vm8560_vm15 = vmpackc.low %vm2065_vm13, %vm2064_vm12  ;;  %v1815_v46 = vadd.s32 %v1559_v27, %v8192_v5  ;;  %vm2075_vm13 = vcmp.lt.s32.totalorder %v1819_v13, 2176 }
 0x135   : > { %v5911_v1 = vpack.c.bf16 %v517_v54, %v513_v52  ;;  %v532_v37 = vld [vmem:[%s8167_s23 + $0x3e0] sm:$0xff]  ;;  %v537_v44 = vld [vmem:[%s8167_s23 + $0x408] sm:$0xff]  ;;  %v542_v62 = vld [vmem:[%s8167_s23 + $0x430] sm:$0xff] }
 0x136   : > { %v541_v47 = vld [vmem:[%s8167_s23 + $0x428] sm:$0xff]  ;;  %v5926_v52 = vpack.c.bf16 %v532_v37, %v528_v36  ;;  %vm2071_vm6 = vcmp.lt.s32.totalorder %v1815_v46, 2176  ;;  %v548_v12 = vld [vmem:[%s8167_s23 + $0x460] sm:$0xff]  ;;  %v546_v17 = vld [vmem:[%s8167_s23 + $0x450] sm:$0xff]  ;;  %v1567_v37 = vadd.s32 344, %v8196_v7 }
 0x137   : > { %5892 = vmatpush1.bf16.msk.msra.mxu0 %vm8435_vm14, %v5890_v61  ;;  %6660 = vmatpush1.bf16.msk.msra.mxu1 %vm8435_vm14, %v6658_v0  ;;  %v1811_v0 = vadd.s32 %v1555_v48, %v8192_v5  ;;  %vm2066_vm14 = vcmp.lt.s32.totalorder %v1810_v57, 2176  ;;  %v539_v48 = vld [vmem:[%s8167_s23 + $0x418] sm:$0xff]  ;;  %v1817_v57 = vadd.s32 %v1561_v39, %v8192_v5  ;;  %v538_v61 = vld [vmem:[%s8167_s23 + $0x410] sm:$0xff]  ;;  %v545_v63 = vld [vmem:[%s8167_s23 + $0x448] sm:$0xff] }
 0x138   : > { %5895 = vmatprep.subr.msk.bf16.mxu0 %vm8464_vm3, %v5893_v4  ;;  %6663 = vmatprep.subr.msk.bf16.mxu1 %vm8464_vm3, %v6661_v11  ;;  %v6679_v4 = vpack.c.bf16 %v519_v56, %v515_v55  ;;  %v525_v11 = vld [vmem:[%s8167_s23 + $0x3a8] sm:$0xff]  ;;  %v536_v55 = vld [vmem:[%s8167_s23 + $0x400] sm:$0xff]  ;;  %v550_v18 = vld [vmem:[%s8167_s23 + $0x470] sm:$0xff]  ;;  %v1823_v54 = vadd.s32 %v1567_v37, %v8192_v5 }
 0x139   : > { %vm2067_vm0 = vcmp.lt.s32.totalorder %v1811_v0, 2176  ;;  %v5917_v21 = vpack.c.bf16 %v525_v11, %v521_v9  ;;  %v540_v56 = vld [vmem:[%s8167_s23 + $0x420] sm:$0xff]  ;;  %v549_v0 = vld [vmem:[%s8167_s23 + $0x468] sm:$0xff]  ;;  %v6700_v9 = vpack.c.bf16 %v542_v62, %v538_v61  ;;  %vm2073_vm10 = vcmp.lt.s32.totalorder %v1817_v57, 2176  ;;  %v563_v39 = vld [vmem:[%s8167_s23 + $0x4d8] sm:$0xff] }
 0x13a   : > { %vm8586_vm2 = vmpackc.low %vm2067_vm0, %vm2066_vm14  ;;  %v5932_v8 = vpack.c.bf16 %v540_v56, %v536_v55  ;;  %v544_v11 = vld [vmem:[%s8167_s23 + $0x440] sm:$0xff]  ;;  %v553_v19 = vld [vmem:[%s8167_s23 + $0x488] sm:$0xff] }
 0x13b   : > { %5898 = vmatpush1.bf16.msk.msra.mxu0 %vm8464_vm3, %v5896_v20  ;;  %6666 = vmatpush1.bf16.msk.msra.mxu1 %vm8464_vm3, %v6664_v24  ;;  %v1558_v20 = vadd.s32 272, %v8196_v7  ;;  %v526_v24 = vld [vmem:[%s8167_s23 + $0x3b0] sm:$0xff]  ;;  %vm2069_vm3 = vcmp.lt.s32.totalorder %v1813_v26, 2176  ;;  %v6706_v26 = vpack.c.bf16 %v550_v18, %v546_v17  ;;  %v561_v34 = vld [vmem:[%s8167_s23 + $0x4c8] sm:$0xff]  ;;  %v571_v56 = vld [vmem:[%s8167_s23 + $0x518] sm:$0xff] }
 0x13c   : > { %5901 = vmatprep.subr.msk.bf16.mxu0 %vm8471_vm4, %v5899_v25  ;;  %6669 = vmatprep.subr.msk.bf16.mxu1 %vm8471_vm4, %v6667_v31  ;;  %v529_v25 = vld [vmem:[%s8167_s23 + $0x3c8] sm:$0xff]  ;;  %v1560_v31 = vadd.s32 288, %v8196_v7  ;;  %v6688_v33 = vpack.c.bf16 %v526_v24, %v522_v23  ;;  %v559_v23 = vld [vmem:[%s8167_s23 + $0x4b8] sm:$0xff]  ;;  %v1566_v24 = vadd.s32 336, %v8196_v7  ;;  %v562_v2 = vld [vmem:[%s8167_s23 + $0x4d0] sm:$0xff] }
 0x13d   : > { %v1814_v38 = vadd.s32 %v1558_v20, %v8192_v5  ;;  %v5923_v40 = vpack.c.bf16 %v533_v28, %v529_v25  ;;  %v1565_v20 = vadd.s32 328, %v8196_v7  ;;  %v5938_v25 = vpack.c.bf16 %v548_v12, %v544_v11  ;;  %v556_v28 = vld [vmem:[%s8167_s23 + $0x4a0] sm:$0xff]  ;;  %v573_v55 = vld [vmem:[%s8167_s23 + $0x528] sm:$0xff]  ;;  %v575_v57 = vld [vmem:[%s8167_s23 + $0x538] sm:$0xff] }
 0x13e   : > { %v1816_v51 = vadd.s32 %v1560_v31, %v8192_v5  ;;  %v577_v10 = vld [vmem:[%s8167_s23 + $0x548] sm:$0xff]  ;;  %v579_v13 = vld [vmem:[%s8167_s23 + $0x558] sm:$0xff]  ;;  %v598_v62 = vld [vmem:[%s8167_s23 + $0x5f0] sm:$0xff] }
 0x13f   : > { %5904 = vmatpush1.bf16.msk.msra.mxu0 %vm8471_vm4, %v5902_v41  ;;  %6672 = vmatpush1.bf16.msk.msra.mxu1 %vm8471_vm4, %v6670_v42  ;;  %v6691_v41 = vpack.c.bf16 %v535_v30, %v531_v29  ;;  %v530_v42 = vld [vmem:[%s8167_s23 + $0x3d0] sm:$0xff]  ;;  %vm8614_vm4 = vmpackc.low %vm2069_vm3, %vm2068_vm1  ;;  %vm2070_vm5 = vcmp.lt.s32.totalorder %v1814_v38, 2176  ;;  %v1820_v29 = vadd.s32 %v1564_v14, %v8192_v5  ;;  %v1821_v36 = vadd.s32 %v1565_v20, %v8192_v5  ;;  %v565_v38 = vld [vmem:[%s8167_s23 + $0x4e8] sm:$0xff] }
 0x140   : > { %5907 = vmatprep.subr.msk.bf16.mxu0 %vm8508_vm9, %v5905_v49  ;;  %6675 = vmatprep.subr.msk.bf16.mxu1 %vm8508_vm9, %v6673_v50  ;;  %v543_v49 = vld [vmem:[%s8167_s23 + $0x438] sm:$0xff]  ;;  %v1451_v50 = vadd.s32 %v8192_v5, %v8412_v45  ;;  %v6694_v53 = vpack.c.bf16 %v534_v43, %v530_v42  ;;  %vm2072_vm8 = vcmp.lt.s32.totalorder %v1816_v51, 2176  ;;  %v1568_v42 = vadd.s32 352, %v8196_v7  ;;  %v581_v12 = vld [vmem:[%s8167_s23 + $0x568] sm:$0xff]  ;;  %v576_v20 = vld [vmem:[%s8167_s23 + $0x540] sm:$0xff] }
 0x141   : > { %vm8666_vm12 = vmpackc.low %vm2073_vm10, %vm2072_vm8  ;;  %vm2077_vm0 = vcmp.lt.s32.totalorder %v1821_v36, 2176  ;;  %vm2079_vm3 = vcmp.lt.s32.totalorder %v1823_v54, 2176  ;;  %v583_v14 = vld [vmem:[%s8167_s23 + $0x578] sm:$0xff]  ;;  %v585_v27 = vld [vmem:[%s8167_s23 + $0x588] sm:$0xff] }
 0x142   : > { %vm1467_vm7 = vcmp.lt.s32.totalorder %v1451_v50, 2176  ;;  %v5947_v50 = vpack.c.bf16 %v565_v38, %v561_v34  ;;  %v1824_v58 = vadd.s32 %v1568_v42, %v8192_v5  ;;  %v584_v38 = vld [vmem:[%s8167_s23 + $0x580] sm:$0xff]  ;;  %v586_v42 = vld [vmem:[%s8167_s23 + $0x590] sm:$0xff] }
 0x143   : > { %5910 = vmatpush1.bf16.msk.msra.mxu0 %vm8508_vm9, %v5908_v59  ;;  %6678 = vmatpush1.bf16.msk.msra.mxu1 %vm8508_vm9, %v6676_v60  ;;  %v5929_v59 = vpack.c.bf16 %v541_v47, %v537_v44  ;;  %v6697_v60 = vpack.c.bf16 %v543_v49, %v539_v48  ;;  %vm8637_vm9 = vmpackc.low %vm2071_vm6, %vm2070_vm5  ;;  %v560_v47 = vld [vmem:[%s8167_s23 + $0x4c0] sm:$0xff]  ;;  %v1569_v49 = vadd.s32 360, %v8196_v7  ;;  %v610_v37 = vld [vmem:[%s8167_s23 + $0x650] sm:$0xff] }
 0x144   : > { %5913 = vmatprep.subr.msk.bf16.mxu0 %vm8536_vm11, %v5911_v1  ;;  %6681 = vmatprep.subr.msk.bf16.mxu1 %vm8536_vm11, %v6679_v4  ;;  %v547_v1 = vld [vmem:[%s8167_s23 + $0x458] sm:$0xff]  ;;  %v564_v48 = vld [vmem:[%s8167_s23 + $0x4e0] sm:$0xff]  ;;  %vm2080_vm5 = vcmp.lt.s32.totalorder %v1824_v58, 2176 }
 0x145   : > { %v551_v4 = vld [vmem:[%s8167_s23 + $0x478] sm:$0xff]  ;;  %v1825_v11 = vadd.s32 %v1569_v49, %v8192_v5 }
 0x146   : > { %v595_v49 = vld [vmem:[%s8167_s23 + $0x5d8] sm:$0xff] }
 0x147   : > { %5916 = vmatpush1.bf16.msk.msra.mxu0 %vm8536_vm11, %v5914_v15  ;;  %6684 = vmatpush1.bf16.msk.msra.mxu1 %vm8536_vm11, %v6682_v16  ;;  %v5935_v15 = vpack.c.bf16 %v549_v0, %v545_v63  ;;  %v6703_v16 = vpack.c.bf16 %v551_v4, %v547_v1  ;;  %vm2074_vm11 = vcmp.lt.s32.totalorder %v1818_v6, 2176  ;;  %v568_v63 = vld [vmem:[%s8167_s23 + $0x500] sm:$0xff]  ;;  %v1571_v1 = vadd.s32 376, %v8196_v7 }
 0x148   : > { %5919 = vmatprep.subr.msk.bf16.mxu0 %vm8560_vm15, %v5917_v21  ;;  %6687 = vmatprep.subr.msk.bf16.mxu1 %vm8560_vm15, %v6685_v22  ;;  %v557_v21 = vld [vmem:[%s8167_s23 + $0x4a8] sm:$0xff]  ;;  %v555_v22 = vld [vmem:[%s8167_s23 + $0x498] sm:$0xff]  ;;  %vm8693_vm14 = vmpackc.low %vm2075_vm13, %vm2074_vm11  ;;  %v6721_v6 = vpack.c.bf16 %v575_v57, %v571_v56  ;;  %vm2081_vm6 = vcmp.lt.s32.totalorder %v1825_v11, 2176  ;;  %v1578_v11 = vadd.s32 432, %v8196_v7 }
 0x149   : > { %v5941_v30 = vpack.c.bf16 %v557_v21, %v553_v19  ;;  %v6709_v31 = vpack.c.bf16 %v559_v23, %v555_v22  ;;  %v572_v0 = vld [vmem:[%s8167_s23 + $0x520] sm:$0xff]  ;;  %v1827_v22 = vadd.s32 %v1571_v1, %v8192_v5  ;;  %v5959_v23 = vpack.c.bf16 %v581_v12, %v577_v10  ;;  %v594_v57 = vld [vmem:[%s8167_s23 + $0x5d0] sm:$0xff]  ;;  %v8813_v1 = vld [vmem:[%s8159_s21 + $0x8] sm:$0xff] }
 0x14a   : > { %v5956_v17 = vpack.c.bf16 %v572_v0, %v568_v63  ;;  %v580_v21 = vld [vmem:[%s8167_s23 + $0x560] sm:$0xff]  ;;  %v601_v63 = vld [vmem:[%s8167_s23 + $0x608] sm:$0xff] }
 0x14b   : > { %5922 = vmatpush1.bf16.msk.msra.mxu0 %vm8560_vm15, %v5920_v32  ;;  %6690 = vmatpush1.bf16.msk.msra.mxu1 %vm8560_vm15, %v6688_v33  ;;  %v554_v32 = vld [vmem:[%s8167_s23 + $0x490] sm:$0xff]  ;;  %vm2076_vm15 = vcmp.lt.s32.totalorder %v1820_v29, 2176  ;;  %v587_v29 = vld [vmem:[%s8167_s23 + $0x598] sm:$0xff]  ;;  %v5962_v34 = vpack.c.bf16 %v580_v21, %v576_v20  ;;  %v596_v56 = vld [vmem:[%s8167_s23 + $0x5e0] sm:$0xff] }
 0x14c   : > { %5925 = vmatprep.subr.msk.bf16.mxu0 %vm8586_vm2, %v5923_v40  ;;  %6693 = vmatprep.subr.msk.bf16.mxu1 %vm8586_vm2, %v6691_v41  ;;  %v558_v33 = vld [vmem:[%s8167_s23 + $0x4b0] sm:$0xff]  ;;  %v567_v40 = vld [vmem:[%s8167_s23 + $0x4f8] sm:$0xff]  ;;  %v1822_v41 = vadd.s32 %v1566_v24, %v8192_v5  ;;  %vm8718_vm1 = vmpackc.low %vm2077_vm0, %vm2076_vm15  ;;  %v6727_v24 = vpack.c.bf16 %v583_v14, %v579_v13  ;;  %v6742_v13 = vpack.c.bf16 %v598_v62, %v594_v57 }
 0x14d   : > { %v6712_v44 = vpack.c.bf16 %v558_v33, %v554_v32  ;;  %v6715_v51 = vpack.c.bf16 %v567_v40, %v563_v39  ;;  %v1574_v32 = vadd.s32 400, %v8196_v7  ;;  %v8764_v33 = vadd.s32 384, %v8412_v45  ;;  %v588_v39 = vld [vmem:[%s8167_s23 + $0x5a0] sm:$0xff]  ;;  %v602_v20 = vld [vmem:[%s8167_s23 + $0x610] sm:$0xff]  ;;  %v625_v57 = vld [vmem:[%s8167_s23 + $0x6c8] sm:$0xff] }
 0x14e   : > { %v606_v21 = vld [vmem:[%s8167_s23 + $0x630] sm:$0xff] }
 0x14f   : > { %5928 = vmatpush1.bf16.msk.msra.mxu0 %vm8586_vm2, %v5926_v52  ;;  %6696 = vmatpush1.bf16.msk.msra.mxu1 %vm8586_vm2, %v6694_v53  ;;  %v566_v52 = vld [vmem:[%s8167_s23 + $0x4f0] sm:$0xff]  ;;  %v569_v53 = vld [vmem:[%s8167_s23 + $0x508] sm:$0xff]  ;;  %vm2078_vm2 = vcmp.lt.s32.totalorder %v1822_v41, 2176  ;;  %v1830_v58 = vadd.s32 %v1574_v32, %v8192_v5  ;;  %v612_v32 = vld [vmem:[%s8167_s23 + $0x660] sm:$0xff] }
 0x150   : > { %5931 = vmatprep.subr.msk.bf16.mxu0 %vm8614_vm4, %v5929_v59  ;;  %6699 = vmatprep.subr.msk.bf16.mxu1 %vm8614_vm4, %v6697_v60  ;;  %v1570_v59 = vadd.s32 368, %v8196_v7  ;;  %v5950_v60 = vpack.c.bf16 %v564_v48, %v560_v47  ;;  %v6718_v61 = vpack.c.bf16 %v566_v52, %v562_v2  ;;  %v5953_v4 = vpack.c.bf16 %v573_v55, %v569_v53  ;;  %v597_v48 = vld [vmem:[%s8167_s23 + $0x5e8] sm:$0xff]  ;;  %v592_v55 = vld [vmem:[%s8167_s23 + $0x5c0] sm:$0xff]  ;;  %v630_v14 = vld [vmem:[%s8167_s23 + $0x6f0] sm:$0xff] }
 0x151   : > { %v1575_v47 = vadd.s32 408, %v8196_v7  ;;  %v1576_v2 = vadd.s32 416, %v8196_v7  ;;  %v1454_v52 = vadd.s32 %v8192_v5, %v8764_v33  ;;  %v5968_v53 = vpack.c.bf16 %v588_v39, %v584_v38  ;;  %v614_v38 = vld [vmem:[%s8167_s23 + $0x670] sm:$0xff]  ;;  %v617_v39 = vld [vmem:[%s8167_s23 + $0x688] sm:$0xff] }
 0x152   : > { %4833 = vmatmul.mubr.msk.f32.vlgmr.msra.gmra.mrb[0].mxu0 %vm1467_vm7, %v8495_v35  ;;  %5361 = vmatmul.mubr.msk.f32.vlgmr.msra.gmra.mrb[0].mxu1 %vm1467_vm7, %v8495_v35  ;;  %v552_v35 = vld [vmem:[%s8167_s23 + $0x480] sm:$0xff]  ;;  %vm8771_vm7 = vmpackc.low %vm2081_vm6, %vm2080_vm5  ;;  %v5974_v12 = vpack.c.bf16 %v596_v56, %v592_v55  ;;  %vm2086_vm15 = vcmp.lt.s32.totalorder %v1830_v58, 2176  ;;  %v618_v55 = vld [vmem:[%s8167_s23 + $0x690] sm:$0xff] }
 0x153   : > { %5934 = vmatpush1.bf16.msk.msra.mxu0 %vm8614_vm4, %v5932_v8  ;;  %6702 = vmatpush1.bf16.msk.msra.mxu1 %vm8614_vm4, %v6700_v9  ;;  %v5944_v43 = vpack.c.bf16 %v556_v28, %v552_v35  ;;  %v570_v8 = vld [vmem:[%s8167_s23 + $0x510] sm:$0xff]  ;;  %vm8743_vm4 = vmpackc.low %vm2079_vm3, %vm2078_vm2  ;;  %v1573_v35 = vadd.s32 392, %v8196_v7  ;;  %v589_v28 = vld [vmem:[%s8167_s23 + $0x5a8] sm:$0xff]  ;;  %v1831_v0 = vadd.s32 %v1575_v47, %v8192_v5  ;;  %v1832_v10 = vadd.s32 %v1576_v2, %v8192_v5 }
 0x154   : > { %5937 = vmatprep.subr.msk.bf16.mxu0 %vm8637_vm9, %v5935_v15  ;;  %6705 = vmatprep.subr.msk.bf16.mxu1 %vm8637_vm9, %v6703_v16  ;;  %v574_v9 = vld [vmem:[%s8167_s23 + $0x530] sm:$0xff]  ;;  %v1826_v15 = vadd.s32 %v1570_v59, %v8192_v5  ;;  %v1572_v16 = vadd.s32 384, %v8196_v7  ;;  %v5965_v40 = vpack.c.bf16 %v589_v28, %v585_v27  ;;  %v1577_v59 = vadd.s32 424, %v8196_v7  ;;  %v620_v2 = vld [vmem:[%s8167_s23 + $0x6a0] sm:$0xff] }
 0x155   : > { %v6724_v18 = vpack.c.bf16 %v574_v9, %v570_v8  ;;  %v1829_v46 = vadd.s32 %v1573_v35, %v8192_v5  ;;  %v607_v8 = vld [vmem:[%s8167_s23 + $0x638] sm:$0xff]  ;;  %v1492_v9 = vcombine.high %v8813_v1, %v8813_v1  ;;  %vm1470_vm13 = vcmp.lt.s32.totalorder %v1454_v52, 2176  ;;  %v622_v56 = vld [vmem:[%s8167_s23 + $0x6b0] sm:$0xff] }
 0x156   : > { %vm2082_vm8 = vcmp.lt.s32.totalorder %v1826_v15, 2176  ;;  %v600_v15 = vld [vmem:[%s8167_s23 + $0x600] sm:$0xff]  ;;  %vm2087_vm0 = vcmp.lt.s32.totalorder %v1831_v0, 2176  ;;  %v1834_v27 = vadd.s32 %v1578_v11, %v8192_v5  ;;  %v1580_v35 = vadd.s32 448, %v8196_v7 }
 0x157   : > { %5940 = vmatpush1.bf16.msk.msra.mxu0 %vm8637_vm9, %v5938_v25  ;;  %6708 = vmatpush1.bf16.msk.msra.mxu1 %vm8637_vm9, %v6706_v26  ;;  %v578_v25 = vld [vmem:[%s8167_s23 + $0x550] sm:$0xff]  ;;  %vm2083_vm9 = vcmp.lt.s32.totalorder %v1827_v22, 2176  ;;  %v609_v22 = vld [vmem:[%s8167_s23 + $0x648] sm:$0xff]  ;;  %vm2088_vm2 = vcmp.lt.s32.totalorder %v1832_v10, 2176  ;;  %v1582_v47 = vadd.s32 464, %v8196_v7  ;;  %v1583_v52 = vadd.s32 472, %v8196_v7 }
 0x158   : > { %5943 = vmatprep.subr.msk.bf16.mxu0 %vm8666_vm12, %v5941_v30  ;;  %6711 = vmatprep.subr.msk.bf16.mxu1 %vm8666_vm12, %v6709_v31  ;;  %v582_v26 = vld [vmem:[%s8167_s23 + $0x570] sm:$0xff]  ;;  %v591_v30 = vld [vmem:[%s8167_s23 + $0x5b8] sm:$0xff]  ;;  %v1828_v31 = vadd.s32 %v1572_v16, %v8192_v5  ;;  %vm8789_vm10 = vmpackc.low %vm2083_vm9, %vm2082_vm8  ;;  %vm2090_vm5 = vcmp.lt.s32.totalorder %v1834_v27, 2176  ;;  %v6760_v0 = vpack.c.bf16 %v622_v56, %v618_v55  ;;  %v1584_v10 = vadd.s32 480, %v8196_v7 }
 0x159   : > { %v6730_v36 = vpack.c.bf16 %v582_v26, %v578_v25  ;;  %v6733_v41 = vpack.c.bf16 %v591_v30, %v587_v29  ;;  %v604_v16 = vld [vmem:[%s8167_s23 + $0x620] sm:$0xff]  ;;  %v611_v25 = vld [vmem:[%s8167_s23 + $0x658] sm:$0xff]  ;;  %4898 = vmatprep.mubr.msk.f32.mxu0 %vm1470_vm13, %v1492_v9  ;;  %5426 = vmatprep.mubr.msk.f32.mxu1 %vm1470_vm13, %v1492_v9  ;;  %v6748_v29 = vpack.c.bf16 %v606_v21, %v602_v20  ;;  %v1586_v20 = vadd.s32 496, %v8196_v7  ;;  %v641_v30 = vld [vmem:[%s8167_s23 + $0x748] sm:$0xff] }
 0x15a   : > { %vm2084_vm11 = vcmp.lt.s32.totalorder %v1828_v31, 2176  ;;  %v615_v26 = vld [vmem:[%s8167_s23 + $0x678] sm:$0xff]  ;;  %v5980_v28 = vpack.c.bf16 %v604_v16, %v600_v15  ;;  %v608_v31 = vld [vmem:[%s8167_s23 + $0x640] sm:$0xff]  ;;  %v1838_v62 = vadd.s32 %v1582_v47, %v8192_v5  ;;  %v1839_v9 = vadd.s32 %v1583_v52, %v8192_v5  ;;  %v633_v15 = vld [vmem:[%s8167_s23 + $0x708] sm:$0xff] }
 0x15b   : > { %5946 = vmatpush1.bf16.msk.msra.mxu0 %vm8666_vm12, %v5944_v43  ;;  %6714 = vmatpush1.bf16.msk.msra.mxu1 %vm8666_vm12, %v6712_v44  ;;  %v590_v43 = vld [vmem:[%s8167_s23 + $0x5b0] sm:$0xff]  ;;  %v593_v44 = vld [vmem:[%s8167_s23 + $0x5c8] sm:$0xff]  ;;  %vm2085_vm12 = vcmp.lt.s32.totalorder %v1829_v46, 2176  ;;  %v1836_v46 = vadd.s32 %v1580_v35, %v8192_v5  ;;  %v1585_v16 = vadd.s32 488, %v8196_v7 }
 0x15c   : > { %5949 = vmatprep.subr.msk.bf16.mxu0 %vm8693_vm14, %v5947_v50  ;;  %6717 = vmatprep.subr.msk.bf16.mxu1 %vm8693_vm14, %v6715_v51  ;;  %v599_v50 = vld [vmem:[%s8167_s23 + $0x5f8] sm:$0xff]  ;;  %v6736_v54 = vpack.c.bf16 %v590_v43, %v586_v42  ;;  %v621_v42 = vld [vmem:[%s8167_s23 + $0x6a8] sm:$0xff]  ;;  %v616_v51 = vld [vmem:[%s8167_s23 + $0x680] sm:$0xff] }
 0x15d   : > { %v619_v43 = vld [vmem:[%s8167_s23 + $0x698] sm:$0xff]  ;;  %v653_v52 = vld [vmem:[%s8167_s23 + $0x7a8] sm:$0xff] }
 0x15f   : > { %5952 = vmatpush1.bf16.msk.msra.mxu0 %vm8693_vm14, %v5950_v60  ;;  %6720 = vmatpush1.bf16.msk.msra.mxu1 %vm8693_vm14, %v6718_v61  ;;  %v5971_v60 = vpack.c.bf16 %v597_v48, %v593_v44  ;;  %v6739_v61 = vpack.c.bf16 %v599_v50, %v595_v49  ;;  %vm8827_vm14 = vmpackc.low %vm2085_vm12, %vm2084_vm11  ;;  %v623_v44 = vld [vmem:[%s8167_s23 + $0x6b8] sm:$0xff]  ;;  %v5986_v48 = vpack.c.bf16 %v612_v32, %v608_v31  ;;  %vm2095_vm12 = vcmp.lt.s32.totalorder %v1839_v9, 2176  ;;  %v646_v50 = vld [vmem:[%s8167_s23 + $0x770] sm:$0xff] }
 0x160   : > { %5955 = vmatprep.subr.msk.bf16.mxu0 %vm8718_vm1, %v5953_v4  ;;  %6723 = vmatprep.subr.msk.bf16.mxu1 %vm8718_vm1, %v6721_v6  ;;  %v605_v4 = vld [vmem:[%s8167_s23 + $0x628] sm:$0xff]  ;;  %v603_v6 = vld [vmem:[%s8167_s23 + $0x618] sm:$0xff]  ;;  %v6754_v49 = vpack.c.bf16 %v614_v38, %v610_v37  ;;  %v1841_v31 = vadd.s32 %v1585_v16, %v8192_v5  ;;  %v1587_v32 = vadd.s32 504, %v8196_v7  ;;  %v1842_v38 = vadd.s32 %v1586_v20, %v8192_v5 }
 0x161   : > { %v6745_v19 = vpack.c.bf16 %v607_v8, %v603_v6  ;;  %v624_v6 = vld [vmem:[%s8167_s23 + $0x6c0] sm:$0xff]  ;;  %v647_v37 = vld [vmem:[%s8167_s23 + $0x778] sm:$0xff]  ;;  %v1591_v9 = vadd.s32 536, %v8196_v7 }
 0x162   : > { %v628_v8 = vld [vmem:[%s8167_s23 + $0x6e0] sm:$0xff] }
 0x163   : > { %5958 = vmatpush1.bf16.msk.msra.mxu0 %vm8718_vm1, %v5956_v17  ;;  %6726 = vmatpush1.bf16.msk.msra.mxu1 %vm8718_vm1, %v6724_v18  ;;  %v1833_v17 = vadd.s32 %v1577_v59, %v8192_v5  ;;  %v5977_v18 = vpack.c.bf16 %v605_v4, %v601_v63  ;;  %vm8854_vm1 = vmpackc.low %vm2087_vm0, %vm2086_vm15  ;;  %v629_v59 = vld [vmem:[%s8167_s23 + $0x6e8] sm:$0xff]  ;;  %v5992_v63 = vpack.c.bf16 %v620_v2, %v616_v51  ;;  %vm2097_vm15 = vcmp.lt.s32.totalorder %v1841_v31, 2176  ;;  %v650_v4 = vld [vmem:[%s8167_s23 + $0x790] sm:$0xff] }
 0x164   : > { %5961 = vmatprep.subr.msk.bf16.mxu0 %vm8743_vm4, %v5959_v23  ;;  %6729 = vmatprep.subr.msk.bf16.mxu1 %vm8743_vm4, %v6727_v24  ;;  %v1579_v23 = vadd.s32 440, %v8196_v7  ;;  %v613_v24 = vld [vmem:[%s8167_s23 + $0x668] sm:$0xff]  ;;  %v5995_v11 = vpack.c.bf16 %v629_v59, %v625_v57  ;;  %v5998_v21 = vpack.c.bf16 %v628_v8, %v624_v6  ;;  %v1843_v2 = vadd.s32 %v1587_v32, %v8192_v5  ;;  %v648_v59 = vld [vmem:[%s8167_s23 + $0x780] sm:$0xff]  ;;  %v654_v6 = vld [vmem:[%s8167_s23 + $0x7b0] sm:$0xff] }
 0x165   : > { %vm2089_vm3 = vcmp.lt.s32.totalorder %v1833_v17, 2176  ;;  %v637_v17 = vld [vmem:[%s8167_s23 + $0x728] sm:$0xff]  ;;  %vm2098_vm0 = vcmp.lt.s32.totalorder %v1842_v38, 2176  ;;  %v6784_v16 = vpack.c.bf16 %v654_v6, %v650_v4  ;;  %v1594_v32 = vadd.s32 560, %v8196_v7  ;;  %v664_v38 = vld [vmem:[%s8167_s23 + $0x800] sm:$0xff]  ;;  %v683_v4 = vld [vmem:[%s8167_s23 + $0x898] sm:$0xff] }
 0x166   : > { %v6001_v27 = vpack.c.bf16 %v637_v17, %v633_v15  ;;  %v649_v51 = vld [vmem:[%s8167_s23 + $0x788] sm:$0xff]  ;;  %v687_v6 = vld [vmem:[%s8167_s23 + $0x8b8] sm:$0xff] }
 0x167   : > { %5964 = vmatpush1.bf16.msk.msra.mxu0 %vm8743_vm4, %v5962_v34  ;;  %6732 = vmatpush1.bf16.msk.msra.mxu1 %vm8743_vm4, %v6730_v36  ;;  %v5983_v34 = vpack.c.bf16 %v613_v24, %v609_v22  ;;  %v6751_v36 = vpack.c.bf16 %v615_v26, %v611_v25  ;;  %vm8880_vm4 = vmpackc.low %vm2089_vm3, %vm2088_vm2  ;;  %v632_v24 = vld [vmem:[%s8167_s23 + $0x700] sm:$0xff]  ;;  %v1840_v26 = vadd.s32 %v1584_v10, %v8192_v5  ;;  %v657_v8 = vld [vmem:[%s8167_s23 + $0x7c8] sm:$0xff]  ;;  %vm2099_vm2 = vcmp.lt.s32.totalorder %v1843_v2, 2176 }
 0x168   : > { %5967 = vmatprep.subr.msk.bf16.mxu0 %vm8771_vm7, %v5965_v40  ;;  %6735 = vmatprep.subr.msk.bf16.mxu1 %vm8771_vm7, %v6733_v41  ;;  %v1835_v40 = vadd.s32 %v1579_v23, %v8192_v5  ;;  %v1581_v41 = vadd.s32 456, %v8196_v7  ;;  %v636_v25 = vld [vmem:[%s8167_s23 + $0x720] sm:$0xff]  ;;  %v661_v10 = vld [vmem:[%s8167_s23 + $0x7e8] sm:$0xff]  ;;  %v658_v23 = vld [vmem:[%s8167_s23 + $0x7d0] sm:$0xff]  ;;  %v1596_v2 = vadd.s32 576, %v8196_v7 }
 0x16a   : > { %vm2091_vm6 = vcmp.lt.s32.totalorder %v1835_v40, 2176  ;;  %v1837_v58 = vadd.s32 %v1581_v41, %v8192_v5  ;;  %v6004_v40 = vpack.c.bf16 %v636_v25, %v632_v24  ;;  %v662_v24 = vld [vmem:[%s8167_s23 + $0x7f0] sm:$0xff]  ;;  %v665_v25 = vld [vmem:[%s8167_s23 + $0x808] sm:$0xff] }
 0x16b   : > { %5970 = vmatpush1.bf16.msk.msra.mxu0 %vm8771_vm7, %v5968_v53  ;;  %6738 = vmatpush1.bf16.msk.msra.mxu1 %vm8771_vm7, %v6736_v54  ;;  %v5989_v53 = vpack.c.bf16 %v621_v42, %v617_v39  ;;  %v6757_v54 = vpack.c.bf16 %v623_v44, %v619_v43  ;;  %vm2092_vm7 = vcmp.lt.s32.totalorder %v1836_v46, 2176  ;;  %vm8904_vm8 = vmpackc.low %vm2091_vm6, %vm2090_vm5  ;;  %v1588_v39 = vadd.s32 512, %v8196_v7  ;;  %v640_v43 = vld [vmem:[%s8167_s23 + $0x740] sm:$0xff] }
 0x16c   : > { %5973 = vmatprep.subr.msk.bf16.mxu0 %vm8789_vm10, %v5971_v60  ;;  %6741 = vmatprep.subr.msk.bf16.mxu1 %vm8789_vm10, %v6739_v61  ;;  %v627_v60 = vld [vmem:[%s8167_s23 + $0x6d8] sm:$0xff]  ;;  %vm2093_vm9 = vcmp.lt.s32.totalorder %v1837_v58, 2176  ;;  %v644_v44 = vld [vmem:[%s8167_s23 + $0x760] sm:$0xff]  ;;  %v1589_v46 = vadd.s32 520, %v8196_v7 }
 0x16d   : > { %v631_v61 = vld [vmem:[%s8167_s23 + $0x6f8] sm:$0xff]  ;;  %vm8929_vm11 = vmpackc.low %vm2093_vm9, %vm2092_vm7  ;;  %v1844_v55 = vadd.s32 %v1588_v39, %v8192_v5  ;;  %v6010_v56 = vpack.c.bf16 %v644_v44, %v640_v43  ;;  %v668_v39 = vld [vmem:[%s8167_s23 + $0x820] sm:$0xff] }
 0x16e   : > { %v666_v43 = vld [vmem:[%s8167_s23 + $0x810] sm:$0xff] }
 0x16f   : > { %5976 = vmatpush1.bf16.msk.msra.mxu0 %vm8789_vm10, %v5974_v12  ;;  %6744 = vmatpush1.bf16.msk.msra.mxu1 %vm8789_vm10, %v6742_v13  ;;  %v6763_v12 = vpack.c.bf16 %v631_v61, %v627_v60  ;;  %v626_v13 = vld [vmem:[%s8167_s23 + $0x6d0] sm:$0xff]  ;;  %vm2094_vm10 = vcmp.lt.s32.totalorder %v1838_v62, 2176  ;;  %v652_v60 = vld [vmem:[%s8167_s23 + $0x7a0] sm:$0xff]  ;;  %v1845_v61 = vadd.s32 %v1589_v46, %v8192_v5  ;;  %v1590_v62 = vadd.s32 528, %v8196_v7  ;;  %v673_v46 = vld [vmem:[%s8167_s23 + $0x848] sm:$0xff] }
 0x170   : > { %5979 = vmatprep.subr.msk.bf16.mxu0 %vm8827_vm14, %v5977_v18  ;;  %6747 = vmatprep.subr.msk.bf16.mxu1 %vm8827_vm14, %v6745_v19  ;;  %v635_v18 = vld [vmem:[%s8167_s23 + $0x718] sm:$0xff]  ;;  %v6766_v22 = vpack.c.bf16 %v630_v14, %v626_v13  ;;  %vm8956_vm13 = vmpackc.low %vm2095_vm12, %vm2094_vm10  ;;  %vm2100_vm3 = vcmp.lt.s32.totalorder %v1844_v55, 2176  ;;  %v9000_v13 = vadd.s32 256, %v8412_v45  ;;  %v1592_v14 = vadd.s32 544, %v8196_v7  ;;  %v670_v44 = vld [vmem:[%s8167_s23 + $0x830] sm:$0xff] }
 0x171   : > { %v639_v19 = vld [vmem:[%s8167_s23 + $0x738] sm:$0xff]  ;;  %v6016_v15 = vpack.c.bf16 %v652_v60, %v648_v59  ;;  %vm2101_vm5 = vcmp.lt.s32.totalorder %v1845_v61, 2176  ;;  %v1846_v20 = vadd.s32 %v1590_v62, %v8192_v5  ;;  %v674_v61 = vld [vmem:[%s8167_s23 + $0x850] sm:$0xff] }
 0x172   : > { %v6769_v35 = vpack.c.bf16 %v639_v19, %v635_v18  ;;  %v656_v18 = vld [vmem:[%s8167_s23 + $0x7c0] sm:$0xff]  ;;  %v1848_v31 = vadd.s32 %v1592_v14, %v8192_v5  ;;  %vm9037_vm6 = vmpackc.low %vm2101_vm5, %vm2100_vm3  ;;  %v678_v62 = vld [vmem:[%s8167_s23 + $0x870] sm:$0xff] }
 0x173   : > { %5982 = vmatpush1.bf16.msk.msra.mxu0 %vm8827_vm14, %v5980_v28  ;;  %6750 = vmatpush1.bf16.msk.msra.mxu1 %vm8827_vm14, %v6748_v29  ;;  %v634_v28 = vld [vmem:[%s8167_s23 + $0x710] sm:$0xff]  ;;  %vm2096_vm14 = vcmp.lt.s32.totalorder %v1840_v26, 2176  ;;  %v660_v19 = vld [vmem:[%s8167_s23 + $0x7e0] sm:$0xff]  ;;  %v1847_v26 = vadd.s32 %v1591_v9, %v8192_v5  ;;  %vm2102_vm7 = vcmp.lt.s32.totalorder %v1846_v20, 2176 }
 0x174   : > { %5985 = vmatprep.subr.msk.bf16.mxu0 %vm8854_vm1, %v5983_v34  ;;  %6753 = vmatprep.subr.msk.bf16.mxu1 %vm8854_vm1, %v6751_v36  ;;  %v638_v29 = vld [vmem:[%s8167_s23 + $0x730] sm:$0xff]  ;;  %v645_v34 = vld [vmem:[%s8167_s23 + $0x768] sm:$0xff]  ;;  %v643_v36 = vld [vmem:[%s8167_s23 + $0x758] sm:$0xff] }
 0x175   : > { %v6772_v41 = vpack.c.bf16 %v638_v29, %v634_v28  ;;  %v6007_v47 = vpack.c.bf16 %v645_v34, %v641_v30  ;;  %v667_v28 = vld [vmem:[%s8167_s23 + $0x818] sm:$0xff]  ;;  %v1453_v30 = vadd.s32 %v8192_v5, %v9000_v13  ;;  %v6022_v34 = vpack.c.bf16 %v660_v19, %v656_v18  ;;  %v680_v14 = vld [vmem:[%s8167_s23 + $0x880] sm:$0xff]  ;;  %v682_v19 = vld [vmem:[%s8167_s23 + $0x890] sm:$0xff] }
 0x176   : > { %v671_v29 = vld [vmem:[%s8167_s23 + $0x838] sm:$0xff]  ;;  %v6805_v18 = vpack.c.bf16 %v687_v6, %v683_v4  ;;  %v686_v20 = vld [vmem:[%s8167_s23 + $0x8b0] sm:$0xff]  ;;  %v1604_v4 = vadd.s32 640, %v8196_v7 }
 0x177   : > { %5988 = vmatpush1.bf16.msk.msra.mxu0 %vm8854_vm1, %v5986_v48  ;;  %6756 = vmatpush1.bf16.msk.msra.mxu1 %vm8854_vm1, %v6754_v49  ;;  %v6775_v48 = vpack.c.bf16 %v647_v37, %v643_v36  ;;  %v642_v49 = vld [vmem:[%s8167_s23 + $0x750] sm:$0xff]  ;;  %vm8980_vm1 = vmpackc.low %vm2097_vm15, %vm2096_vm14  ;;  %v6790_v36 = vpack.c.bf16 %v662_v24, %v658_v23  ;;  %v6793_v42 = vpack.c.bf16 %v671_v29, %v667_v28  ;;  %vm1469_vm9 = vcmp.lt.s32.totalorder %v1453_v30, 2176  ;;  %v693_v23 = vld [vmem:[%s8167_s23 + $0x8e8] sm:$0xff] }
 0x178   : > { %5991 = vmatprep.subr.msk.bf16.mxu0 %vm8880_vm4, %v5989_v53  ;;  %6759 = vmatprep.subr.msk.bf16.mxu1 %vm8880_vm4, %v6757_v54  ;;  %v651_v53 = vld [vmem:[%s8167_s23 + $0x798] sm:$0xff]  ;;  %v6778_v57 = vpack.c.bf16 %v646_v50, %v642_v49  ;;  %v6808_v28 = vpack.c.bf16 %v686_v20, %v682_v19  ;;  %v688_v29 = vld [vmem:[%s8167_s23 + $0x8c0] sm:$0xff]  ;;  %v717_v19 = vld [vmem:[%s8167_s23 + $0x9a8] sm:$0xff] }
 0x179   : > { %v655_v54 = vld [vmem:[%s8167_s23 + $0x7b8] sm:$0xff]  ;;  %v692_v30 = vld [vmem:[%s8167_s23 + $0x8e0] sm:$0xff] }
 0x17a   : > { %v675_v49 = vld [vmem:[%s8167_s23 + $0x858] sm:$0xff] }
 0x17b   : > { %5994 = vmatpush1.bf16.msk.msra.mxu0 %vm8880_vm4, %v5992_v63  ;;  %6762 = vmatpush1.bf16.msk.msra.mxu1 %vm8880_vm4, %v6760_v0  ;;  %v6013_v63 = vpack.c.bf16 %v653_v52, %v649_v51  ;;  %v6781_v0 = vpack.c.bf16 %v655_v54, %v651_v53  ;;  %vm9008_vm4 = vmpackc.low %vm2099_vm2, %vm2098_vm0  ;;  %v679_v50 = vld [vmem:[%s8167_s23 + $0x878] sm:$0xff]  ;;  %v1850_v51 = vadd.s32 %v1594_v32, %v8192_v5  ;;  %v1597_v52 = vadd.s32 584, %v8196_v7 }
 0x17c   : > { %5997 = vmatprep.subr.msk.bf16.mxu0 %vm8904_vm8, %v5995_v11  ;;  %6765 = vmatprep.subr.msk.bf16.mxu1 %vm8904_vm8, %v6763_v12  ;;  %v659_v11 = vld [vmem:[%s8167_s23 + $0x7d8] sm:$0xff]  ;;  %v6028_v53 = vpack.c.bf16 %v668_v39, %v664_v38  ;;  %v6796_v54 = vpack.c.bf16 %v670_v44, %v666_v43  ;;  %v6799_v60 = vpack.c.bf16 %v679_v50, %v675_v49  ;;  %v694_v38 = vld [vmem:[%s8167_s23 + $0x8f0] sm:$0xff]  ;;  %v697_v39 = vld [vmem:[%s8167_s23 + $0x908] sm:$0xff]  ;;  %v1603_v49 = vadd.s32 632, %v8196_v7 }
 0x17d   : > { %v663_v12 = vld [vmem:[%s8167_s23 + $0x7f8] sm:$0xff]  ;;  %v1853_v9 = vadd.s32 %v1597_v52, %v8192_v5  ;;  %v701_v43 = vld [vmem:[%s8167_s23 + $0x928] sm:$0xff]  ;;  %v6046_v50 = vpack.c.bf16 %v692_v30, %v688_v29  ;;  %v696_v52 = vld [vmem:[%s8167_s23 + $0x900] sm:$0xff] }
 0x17e   : > { %v691_v24 = vld [vmem:[%s8167_s23 + $0x8d8] sm:$0xff]  ;;  %v6049_v55 = vpack.c.bf16 %v701_v43, %v697_v39  ;;  %v714_v30 = vld [vmem:[%s8167_s23 + $0x990] sm:$0xff] }
 0x17f   : > { %6000 = vmatpush1.bf16.msk.msra.mxu0 %vm8904_vm8, %v5998_v21  ;;  %6768 = vmatpush1.bf16.msk.msra.mxu1 %vm8904_vm8, %v6766_v22  ;;  %v6019_v21 = vpack.c.bf16 %v661_v10, %v657_v8  ;;  %v6787_v22 = vpack.c.bf16 %v663_v12, %v659_v11  ;;  %vm2103_vm8 = vcmp.lt.s32.totalorder %v1847_v26, 2176  ;;  %v1852_v8 = vadd.s32 %v1596_v2, %v8192_v5  ;;  %v699_v44 = vld [vmem:[%s8167_s23 + $0x918] sm:$0xff]  ;;  %v712_v26 = vld [vmem:[%s8167_s23 + $0x980] sm:$0xff]  ;;  %v722_v2 = vld [vmem:[%s8167_s23 + $0x9d0] sm:$0xff] }
 0x180   : > { %6003 = vmatprep.subr.msk.bf16.mxu0 %vm8929_vm11, %v6001_v27  ;;  %6771 = vmatprep.subr.msk.bf16.mxu1 %vm8929_vm11, %v6769_v35  ;;  %v1593_v27 = vadd.s32 552, %v8196_v7  ;;  %v669_v35 = vld [vmem:[%s8167_s23 + $0x828] sm:$0xff]  ;;  %vm9063_vm10 = vmpackc.low %vm2103_vm8, %vm2102_vm7  ;;  %v1438_v10 = vadd.s32 640, %v8412_v45  ;;  %vm2109_vm2 = vcmp.lt.s32.totalorder %v1853_v9, 2176  ;;  %v1605_v12 = vadd.s32 648, %v8196_v7  ;;  %v715_v20 = vld [vmem:[%s8167_s23 + $0x998] sm:$0xff] }
 0x181   : > { %v727_v39 = vld [vmem:[%s8167_s23 + $0x9f8] sm:$0xff]  ;;  %v730_v9 = vld [vmem:[%s8167_s23 + $0xa10] sm:$0xff] }
 0x183   : > { %6006 = vmatpush1.bf16.msk.msra.mxu0 %vm8929_vm11, %v6004_v40  ;;  %6774 = vmatpush1.bf16.msk.msra.mxu1 %vm8929_vm11, %v6772_v41  ;;  %v1595_v40 = vadd.s32 568, %v8196_v7  ;;  %v6025_v41 = vpack.c.bf16 %v669_v35, %v665_v25  ;;  %vm2104_vm11 = vcmp.lt.s32.totalorder %v1848_v31, 2176  ;;  %v695_v25 = vld [vmem:[%s8167_s23 + $0x8f8] sm:$0xff]  ;;  %v690_v31 = vld [vmem:[%s8167_s23 + $0x8d0] sm:$0xff] }
 0x184   : > { %6009 = vmatprep.subr.msk.bf16.mxu0 %vm8956_vm13, %v6007_v47  ;;  %6777 = vmatprep.subr.msk.bf16.mxu1 %vm8956_vm13, %v6775_v48  ;;  %v1849_v47 = vadd.s32 %v1593_v27, %v8192_v5  ;;  %v677_v48 = vld [vmem:[%s8167_s23 + $0x868] sm:$0xff]  ;;  %v1456_v27 = vadd.s32 %v8192_v5, %v1438_v10  ;;  %v6811_v37 = vpack.c.bf16 %v695_v25, %v691_v24  ;;  %v704_v10 = vld [vmem:[%s8167_s23 + $0x940] sm:$0xff]  ;;  %v738_v25 = vld [vmem:[%s8167_s23 + $0xa50] sm:$0xff] }
 0x185   : > { %v1851_v58 = vadd.s32 %v1595_v40, %v8192_v5  ;;  %v6031_v59 = vpack.c.bf16 %v677_v48, %v673_v46  ;;  %v703_v46 = vld [vmem:[%s8167_s23 + $0x938] sm:$0xff]  ;;  %v1602_v48 = vadd.s32 624, %v8196_v7 }
 0x186   : > { %vm2105_vm12 = vcmp.lt.s32.totalorder %v1849_v47, 2176  ;;  %vm1472_vm3 = vcmp.lt.s32.totalorder %v1456_v27, 2176  ;;  %v716_v27 = vld [vmem:[%s8167_s23 + $0x9a0] sm:$0xff] }
 0x187   : > { %6012 = vmatpush1.bf16.msk.msra.mxu0 %vm8956_vm13, %v6010_v56  ;;  %6780 = vmatpush1.bf16.msk.msra.mxu1 %vm8956_vm13, %v6778_v57  ;;  %v672_v56 = vld [vmem:[%s8167_s23 + $0x840] sm:$0xff]  ;;  %vm2106_vm13 = vcmp.lt.s32.totalorder %v1850_v51, 2176  ;;  %vm9092_vm14 = vmpackc.low %vm2105_vm12, %vm2104_vm11  ;;  %vm2107_vm15 = vcmp.lt.s32.totalorder %v1851_v58, 2176  ;;  %v6814_v51 = vpack.c.bf16 %v694_v38, %v690_v31  ;;  %v702_v58 = vld [vmem:[%s8167_s23 + $0x930] sm:$0xff] }
 0x188   : > { %6015 = vmatprep.subr.msk.bf16.mxu0 %vm8980_vm1, %v6013_v63  ;;  %6783 = vmatprep.subr.msk.bf16.mxu1 %vm8980_vm1, %v6781_v0  ;;  %v676_v57 = vld [vmem:[%s8167_s23 + $0x860] sm:$0xff]  ;;  %v681_v63 = vld [vmem:[%s8167_s23 + $0x888] sm:$0xff]  ;;  %vm9111_vm0 = vmpackc.low %vm2107_vm15, %vm2106_vm13 }
 0x189   : > { %v685_v0 = vld [vmem:[%s8167_s23 + $0x8a8] sm:$0xff]  ;;  %v6034_v11 = vpack.c.bf16 %v676_v57, %v672_v56  ;;  %v6817_v56 = vpack.c.bf16 %v703_v46, %v699_v44  ;;  %v698_v57 = vld [vmem:[%s8167_s23 + $0x910] sm:$0xff]  ;;  %v723_v38 = vld [vmem:[%s8167_s23 + $0x9d8] sm:$0xff] }
 0x18a   : > { %v6037_v17 = vpack.c.bf16 %v685_v0, %v681_v63  ;;  %v711_v63 = vld [vmem:[%s8167_s23 + $0x978] sm:$0xff]  ;;  %v1858_v0 = vadd.s32 %v1602_v48, %v8192_v5  ;;  %v718_v31 = vld [vmem:[%s8167_s23 + $0x9b0] sm:$0xff]  ;;  %v720_v46 = vld [vmem:[%s8167_s23 + $0x9c0] sm:$0xff] }
 0x18b   : > { %6018 = vmatpush1.bf16.msk.msra.mxu0 %vm8980_vm1, %v6016_v15  ;;  %6786 = vmatpush1.bf16.msk.msra.mxu1 %vm8980_vm1, %v6784_v16  ;;  %v684_v15 = vld [vmem:[%s8167_s23 + $0x8a0] sm:$0xff]  ;;  %v1598_v16 = vadd.s32 592, %v8196_v7  ;;  %vm2108_vm1 = vcmp.lt.s32.totalorder %v1852_v8, 2176  ;;  %v6820_v8 = vpack.c.bf16 %v702_v58, %v698_v57  ;;  %v6832_v43 = vpack.c.bf16 %v718_v31, %v714_v30  ;;  %v735_v57 = vld [vmem:[%s8167_s23 + $0xa38] sm:$0xff] }
 0x18c   : > { %6021 = vmatprep.subr.msk.bf16.mxu0 %vm9008_vm4, %v6019_v21  ;;  %6789 = vmatprep.subr.msk.bf16.mxu1 %vm9008_vm4, %v6787_v22  ;;  %v689_v21 = vld [vmem:[%s8167_s23 + $0x8c8] sm:$0xff]  ;;  %v1599_v22 = vadd.s32 600, %v8196_v7  ;;  %v6040_v35 = vpack.c.bf16 %v684_v15, %v680_v14  ;;  %v747_v30 = vld [vmem:[%s8167_s23 + $0xa98] sm:$0xff] }
 0x18d   : > { %v1854_v32 = vadd.s32 %v1598_v16, %v8192_v5  ;;  %v706_v16 = vld [vmem:[%s8167_s23 + $0x950] sm:$0xff]  ;;  %v751_v31 = vld [vmem:[%s8167_s23 + $0xab8] sm:$0xff] }
 0x18e   : > { %v1855_v40 = vadd.s32 %v1599_v22, %v8192_v5  ;;  %v1860_v22 = vadd.s32 %v1604_v4, %v8192_v5  ;;  %v6853_v44 = vpack.c.bf16 %v751_v31, %v747_v30  ;;  %v768_v30 = vld [vmem:[%s8167_s23 + $0xb40] sm:$0xff] }
 0x18f   : > { %6024 = vmatpush1.bf16.msk.msra.mxu0 %vm9008_vm4, %v6022_v34  ;;  %6792 = vmatpush1.bf16.msk.msra.mxu1 %vm9008_vm4, %v6790_v36  ;;  %v1600_v34 = vadd.s32 608, %v8196_v7  ;;  %v6043_v36 = vpack.c.bf16 %v693_v23, %v689_v21  ;;  %vm9149_vm4 = vmpackc.low %vm2109_vm2, %vm2108_vm1  ;;  %vm2110_vm5 = vcmp.lt.s32.totalorder %v1854_v32, 2176  ;;  %v719_v21 = vld [vmem:[%s8167_s23 + $0x9b8] sm:$0xff]  ;;  %v721_v32 = vld [vmem:[%s8167_s23 + $0x9c8] sm:$0xff] }
 0x190   : > { %6027 = vmatprep.subr.msk.bf16.mxu0 %vm9037_vm6, %v6025_v41  ;;  %6795 = vmatprep.subr.msk.bf16.mxu1 %vm9037_vm6, %v6793_v42  ;;  %v1601_v41 = vadd.s32 616, %v8196_v7  ;;  %v9134_v42 = vld [vmem:[%s8159_s21 + $0x10] sm:$0xff]  ;;  %v6829_v29 = vpack.c.bf16 %v719_v21, %v715_v20  ;;  %vm2116_vm13 = vcmp.lt.s32.totalorder %v1860_v22, 2176  ;;  %v736_v20 = vld [vmem:[%s8167_s23 + $0xa40] sm:$0xff]  ;;  %v1612_v22 = vadd.s32 704, %v8196_v7 }
 0x191   : > { %v1493_v47 = vcombine.high %v9134_v42, %v9134_v42  ;;  %v740_v21 = vld [vmem:[%s8167_s23 + $0xa60] sm:$0xff] }
 0x192   : > { %4899 = vmatmul.mubr.msk.f32.vlgmr.msra.gmra.mrb[0].mxu0 %vm1469_vm9, %v8813_v1  ;;  %5427 = vmatmul.mubr.msk.f32.vlgmr.msra.gmra.mrb[0].mxu1 %vm1469_vm9, %v8813_v1  ;;  %v6802_v1 = vpack.c.bf16 %v678_v62, %v674_v61  ;;  %v709_v61 = vld [vmem:[%s8167_s23 + $0x968] sm:$0xff]  ;;  %v707_v62 = vld [vmem:[%s8167_s23 + $0x958] sm:$0xff]  ;;  %v772_v31 = vld [vmem:[%s8167_s23 + $0xb60] sm:$0xff] }
 0x193   : > { %6030 = vmatpush1.bf16.msk.msra.mxu0 %vm9037_vm6, %v6028_v53  ;;  %6798 = vmatpush1.bf16.msk.msra.mxu1 %vm9037_vm6, %v6796_v54  ;;  %v700_v53 = vld [vmem:[%s8167_s23 + $0x920] sm:$0xff]  ;;  %v1856_v54 = vadd.s32 %v1600_v34, %v8192_v5  ;;  %vm2111_vm6 = vcmp.lt.s32.totalorder %v1855_v40, 2176  ;;  %v6823_v15 = vpack.c.bf16 %v711_v63, %v707_v62  ;;  %v1861_v34 = vadd.s32 %v1605_v12, %v8192_v5  ;;  %v741_v12 = vld [vmem:[%s8167_s23 + $0xa68] sm:$0xff] }
 0x194   : > { %6033 = vmatprep.subr.msk.bf16.mxu0 %vm9063_vm10, %v6031_v59  ;;  %6801 = vmatprep.subr.msk.bf16.mxu1 %vm9063_vm10, %v6799_v60  ;;  %v705_v59 = vld [vmem:[%s8167_s23 + $0x948] sm:$0xff]  ;;  %v1857_v60 = vadd.s32 %v1601_v41, %v8192_v5  ;;  %v6052_v6 = vpack.c.bf16 %v700_v53, %v696_v52  ;;  %vm9176_vm7 = vmpackc.low %vm2111_vm6, %vm2110_vm5  ;;  %v1608_v40 = vadd.s32 672, %v8196_v7  ;;  %v6064_v41 = vpack.c.bf16 %v716_v27, %v712_v26  ;;  %v726_v52 = vld [vmem:[%s8167_s23 + $0x9f0] sm:$0xff] }
 0x195   : > { %4964 = vmatprep.mubr.msk.f32.mxu0 %vm1472_vm3, %v1493_v47  ;;  %5492 = vmatprep.mubr.msk.f32.mxu1 %vm1472_vm3, %v1493_v47  ;;  %v6055_v14 = vpack.c.bf16 %v709_v61, %v705_v59  ;;  %vm2112_vm8 = vcmp.lt.s32.totalorder %v1856_v54, 2176  ;;  %v724_v47 = vld [vmem:[%s8167_s23 + $0x9e0] sm:$0xff]  ;;  %v729_v53 = vld [vmem:[%s8167_s23 + $0xa08] sm:$0xff]  ;;  %vm2117_vm15 = vcmp.lt.s32.totalorder %v1861_v34, 2176  ;;  %v1610_v59 = vadd.s32 688, %v8196_v7  ;;  %v742_v26 = vld [vmem:[%s8167_s23 + $0xa70] sm:$0xff] }
 0x196   : > { %vm2113_vm9 = vcmp.lt.s32.totalorder %v1857_v60, 2176  ;;  %v1864_v58 = vadd.s32 %v1608_v40, %v8192_v5  ;;  %v6070_v60 = vpack.c.bf16 %v724_v47, %v720_v46  ;;  %v6838_v61 = vpack.c.bf16 %v726_v52, %v722_v2  ;;  %v728_v63 = vld [vmem:[%s8167_s23 + $0xa00] sm:$0xff]  ;;  %v745_v27 = vld [vmem:[%s8167_s23 + $0xa88] sm:$0xff]  ;;  %v746_v46 = vld [vmem:[%s8167_s23 + $0xa90] sm:$0xff] }
 0x197   : > { %6036 = vmatpush1.bf16.msk.msra.mxu0 %vm9063_vm10, %v6034_v11  ;;  %6804 = vmatpush1.bf16.msk.msra.mxu1 %vm9063_vm10, %v6802_v1  ;;  %v708_v11 = vld [vmem:[%s8167_s23 + $0x960] sm:$0xff]  ;;  %v1859_v1 = vadd.s32 %v1603_v49, %v8192_v5  ;;  %vm2114_vm10 = vcmp.lt.s32.totalorder %v1858_v0, 2176  ;;  %vm9199_vm11 = vmpackc.low %vm2113_vm9, %vm2112_vm8  ;;  %v1609_v49 = vadd.s32 680, %v8196_v7  ;;  %v6082_v34 = vpack.c.bf16 %v740_v21, %v736_v20  ;;  %v750_v47 = vld [vmem:[%s8167_s23 + $0xab0] sm:$0xff] }
 0x198   : > { %6039 = vmatprep.subr.msk.bf16.mxu0 %vm9092_vm14, %v6037_v17  ;;  %6807 = vmatprep.subr.msk.bf16.mxu1 %vm9092_vm14, %v6805_v18  ;;  %v710_v17 = vld [vmem:[%s8167_s23 + $0x970] sm:$0xff]  ;;  %v713_v18 = vld [vmem:[%s8167_s23 + $0x988] sm:$0xff]  ;;  %v6058_v23 = vpack.c.bf16 %v708_v11, %v704_v10  ;;  %v732_v0 = vld [vmem:[%s8167_s23 + $0xa20] sm:$0xff]  ;;  %vm2120_vm3 = vcmp.lt.s32.totalorder %v1864_v58, 2176  ;;  %v1868_v40 = vadd.s32 %v1612_v22, %v8192_v5 }
 0x199   : > { %v6826_v24 = vpack.c.bf16 %v710_v17, %v706_v16  ;;  %vm2115_vm12 = vcmp.lt.s32.totalorder %v1859_v1, 2176  ;;  %v1865_v4 = vadd.s32 %v1609_v49, %v8192_v5  ;;  %v734_v10 = vld [vmem:[%s8167_s23 + $0xa30] sm:$0xff]  ;;  %v737_v11 = vld [vmem:[%s8167_s23 + $0xa48] sm:$0xff]  ;;  %v1611_v1 = vadd.s32 696, %v8196_v7  ;;  %v759_v2 = vld [vmem:[%s8167_s23 + $0xaf8] sm:$0xff] }
 0x19a   : > { %v1866_v16 = vadd.s32 %v1610_v59, %v8192_v5  ;;  %v6076_v17 = vpack.c.bf16 %v732_v0, %v728_v63  ;;  %v756_v58 = vld [vmem:[%s8167_s23 + $0xae0] sm:$0xff]  ;;  %v754_v63 = vld [vmem:[%s8167_s23 + $0xad0] sm:$0xff]  ;;  %v769_v22 = vld [vmem:[%s8167_s23 + $0xb48] sm:$0xff] }
 0x19b   : > { %6042 = vmatpush1.bf16.msk.msra.mxu0 %vm9092_vm14, %v6040_v35  ;;  %6810 = vmatpush1.bf16.msk.msra.mxu1 %vm9092_vm14, %v6808_v28  ;;  %v1606_v35 = vadd.s32 656, %v8196_v7  ;;  %v6061_v28 = vpack.c.bf16 %v717_v19, %v713_v18  ;;  %vm9225_vm14 = vmpackc.low %vm2115_vm12, %vm2114_vm10  ;;  %v6844_v18 = vpack.c.bf16 %v734_v10, %v730_v9  ;;  %vm2121_vm5 = vcmp.lt.s32.totalorder %v1865_v4, 2176  ;;  %v758_v0 = vld [vmem:[%s8167_s23 + $0xaf0] sm:$0xff]  ;;  %v761_v4 = vld [vmem:[%s8167_s23 + $0xb08] sm:$0xff] }
 0x19c   : > { %6045 = vmatprep.subr.msk.bf16.mxu0 %vm9111_vm0, %v6043_v36  ;;  %6813 = vmatprep.subr.msk.bf16.mxu1 %vm9111_vm0, %v6811_v37  ;;  %v1607_v36 = vadd.s32 664, %v8196_v7  ;;  %v725_v37 = vld [vmem:[%s8167_s23 + $0x9e8] sm:$0xff]  ;;  %vm2122_vm6 = vcmp.lt.s32.totalorder %v1866_v16, 2176  ;;  %vm2124_vm10 = vcmp.lt.s32.totalorder %v1868_v40, 2176  ;;  %v767_v9 = vld [vmem:[%s8167_s23 + $0xb38] sm:$0xff]  ;;  %v762_v20 = vld [vmem:[%s8167_s23 + $0xb10] sm:$0xff] }
 0x19d   : > { %v1862_v48 = vadd.s32 %v1606_v35, %v8192_v5  ;;  %v1867_v35 = vadd.s32 %v1611_v1, %v8192_v5  ;;  %v6862_v1 = vpack.c.bf16 %v758_v0, %v754_v63  ;;  %v766_v21 = vld [vmem:[%s8167_s23 + $0xb30] sm:$0xff]  ;;  %v1437_v63 = vadd.s32 512, %v8412_v45 }
 0x19e   : > { %v1863_v54 = vadd.s32 %v1607_v36, %v8192_v5  ;;  %v6850_v36 = vpack.c.bf16 %v742_v26, %v738_v25  ;;  %v771_v25 = vld [vmem:[%s8167_s23 + $0xb58] sm:$0xff] }
 0x19f   : > { %6048 = vmatpush1.bf16.msk.msra.mxu0 %vm9111_vm0, %v6046_v50  ;;  %6816 = vmatpush1.bf16.msk.msra.mxu1 %vm9111_vm0, %v6814_v51  ;;  %v6067_v50 = vpack.c.bf16 %v725_v37, %v721_v32  ;;  %v6835_v51 = vpack.c.bf16 %v727_v39, %v723_v38  ;;  %vm9251_vm0 = vmpackc.low %vm2117_vm15, %vm2116_vm13  ;;  %vm2118_vm1 = vcmp.lt.s32.totalorder %v1862_v48, 2176  ;;  %v1614_v32 = vadd.s32 720, %v8196_v7  ;;  %v744_v38 = vld [vmem:[%s8167_s23 + $0xa80] sm:$0xff]  ;;  %v753_v48 = vld [vmem:[%s8167_s23 + $0xac8] sm:$0xff] }
 0x1a0   : > { %6051 = vmatprep.subr.msk.bf16.mxu0 %vm9149_vm4, %v6049_v55  ;;  %6819 = vmatprep.subr.msk.bf16.mxu1 %vm9149_vm4, %v6817_v56  ;;  %v733_v55 = vld [vmem:[%s8167_s23 + $0xa28] sm:$0xff]  ;;  %v731_v56 = vld [vmem:[%s8167_s23 + $0xa18] sm:$0xff]  ;;  %vm2119_vm2 = vcmp.lt.s32.totalorder %v1863_v54, 2176  ;;  %v748_v39 = vld [vmem:[%s8167_s23 + $0xaa0] sm:$0xff]  ;;  %vm2123_vm8 = vcmp.lt.s32.totalorder %v1867_v35, 2176 }
 0x1a1   : > { %v1870_v52 = vadd.s32 %v1614_v32, %v8192_v5  ;;  %v6088_v54 = vpack.c.bf16 %v748_v39, %v744_v38  ;;  %vm9327_vm9 = vmpackc.low %vm2123_vm8, %vm2122_vm6  ;;  %v775_v26 = vld [vmem:[%s8167_s23 + $0xb78] sm:$0xff]  ;;  %v770_v37 = vld [vmem:[%s8167_s23 + $0xb50] sm:$0xff] }
 0x1a2   : > { %v774_v38 = vld [vmem:[%s8167_s23 + $0xb70] sm:$0xff]  ;;  %v777_v39 = vld [vmem:[%s8167_s23 + $0xb88] sm:$0xff] }
 0x1a3   : > { %6054 = vmatpush1.bf16.msk.msra.mxu0 %vm9149_vm4, %v6052_v6  ;;  %6822 = vmatpush1.bf16.msk.msra.mxu1 %vm9149_vm4, %v6820_v8  ;;  %v6073_v6 = vpack.c.bf16 %v733_v55, %v729_v53  ;;  %v6841_v8 = vpack.c.bf16 %v735_v57, %v731_v56  ;;  %vm9275_vm4 = vmpackc.low %vm2119_vm2, %vm2118_vm1  ;;  %v1616_v53 = vadd.s32 736, %v8196_v7  ;;  %v6856_v55 = vpack.c.bf16 %v750_v47, %v746_v46  ;;  %v752_v57 = vld [vmem:[%s8167_s23 + $0xac0] sm:$0xff]  ;;  %v783_v46 = vld [vmem:[%s8167_s23 + $0xbb8] sm:$0xff] }
 0x1a4   : > { %6057 = vmatprep.subr.msk.bf16.mxu0 %vm9176_vm7, %v6055_v14  ;;  %6825 = vmatprep.subr.msk.bf16.mxu1 %vm9176_vm7, %v6823_v15  ;;  %v739_v14 = vld [vmem:[%s8167_s23 + $0xa58] sm:$0xff]  ;;  %vm2126_vm12 = vcmp.lt.s32.totalorder %v1870_v52, 2176  ;;  %v780_v52 = vld [vmem:[%s8167_s23 + $0xba0] sm:$0xff]  ;;  %v778_v56 = vld [vmem:[%s8167_s23 + $0xb90] sm:$0xff] }
 0x1a5   : > { %v743_v15 = vld [vmem:[%s8167_s23 + $0xa78] sm:$0xff]  ;;  %v1872_v10 = vadd.s32 %v1616_v53, %v8192_v5  ;;  %v1623_v53 = vadd.s32 792, %v8196_v7 }
 0x1a7   : > { %6060 = vmatpush1.bf16.msk.msra.mxu0 %vm9176_vm7, %v6058_v23  ;;  %6828 = vmatpush1.bf16.msk.msra.mxu1 %vm9176_vm7, %v6826_v24  ;;  %v6079_v23 = vpack.c.bf16 %v741_v12, %v737_v11  ;;  %v6847_v24 = vpack.c.bf16 %v743_v15, %v739_v14  ;;  %vm9301_vm7 = vmpackc.low %vm2121_vm5, %vm2120_vm3  ;;  %v6094_v11 = vpack.c.bf16 %v756_v58, %v752_v57  ;;  %v760_v14 = vld [vmem:[%s8167_s23 + $0xb00] sm:$0xff]  ;;  %vm2128_vm15 = vcmp.lt.s32.totalorder %v1872_v10, 2176  ;;  %v782_v57 = vld [vmem:[%s8167_s23 + $0xbb0] sm:$0xff] }
 0x1a8   : > { %6063 = vmatprep.subr.msk.bf16.mxu0 %vm9199_vm11, %v6061_v28  ;;  %6831 = vmatprep.subr.msk.bf16.mxu1 %vm9199_vm11, %v6829_v29  ;;  %v1613_v28 = vadd.s32 712, %v8196_v7  ;;  %v749_v29 = vld [vmem:[%s8167_s23 + $0xaa8] sm:$0xff]  ;;  %v764_v15 = vld [vmem:[%s8167_s23 + $0xb20] sm:$0xff] }
 0x1a9   : > { %v6100_v35 = vpack.c.bf16 %v764_v15, %v760_v14  ;;  %v785_v58 = vld [vmem:[%s8167_s23 + $0xbc8] sm:$0xff]  ;;  %v788_v10 = vld [vmem:[%s8167_s23 + $0xbe0] sm:$0xff]  ;;  %v786_v15 = vld [vmem:[%s8167_s23 + $0xbd0] sm:$0xff] }
 0x1aa   : > { %v1869_v49 = vadd.s32 %v1613_v28, %v8192_v5  ;;  %v6868_v28 = vpack.c.bf16 %v766_v21, %v762_v20  ;;  %v795_v20 = vld [vmem:[%s8167_s23 + $0xc18] sm:$0xff] }
 0x1ab   : > { %6066 = vmatpush1.bf16.msk.msra.mxu0 %vm9199_vm11, %v6064_v41  ;;  %6834 = vmatpush1.bf16.msk.msra.mxu1 %vm9199_vm11, %v6832_v43  ;;  %v1615_v41 = vadd.s32 728, %v8196_v7  ;;  %v6085_v43 = vpack.c.bf16 %v749_v29, %v745_v27  ;;  %v1620_v27 = vadd.s32 768, %v8196_v7  ;;  %v799_v21 = vld [vmem:[%s8167_s23 + $0xc38] sm:$0xff] }
 0x1ac   : > { %6069 = vmatprep.subr.msk.bf16.mxu0 %vm9225_vm14, %v6067_v50  ;;  %6837 = vmatprep.subr.msk.bf16.mxu1 %vm9225_vm14, %v6835_v51  ;;  %v757_v50 = vld [vmem:[%s8167_s23 + $0xae8] sm:$0xff]  ;;  %v755_v51 = vld [vmem:[%s8167_s23 + $0xad8] sm:$0xff]  ;;  %vm2125_vm11 = vcmp.lt.s32.totalorder %v1869_v49, 2176  ;;  %v6106_v49 = vpack.c.bf16 %v772_v31, %v768_v30  ;;  %v6889_v31 = vpack.c.bf16 %v799_v21, %v795_v20 }
 0x1ad   : > { %v1871_v59 = vadd.s32 %v1615_v41, %v8192_v5  ;;  %v6859_v62 = vpack.c.bf16 %v759_v2, %v755_v51  ;;  %vm9350_vm13 = vmpackc.low %vm2125_vm11, %vm2124_vm10  ;;  %v1621_v41 = vadd.s32 776, %v8196_v7  ;;  %v1876_v47 = vadd.s32 %v1620_v27, %v8192_v5  ;;  %v776_v2 = vld [vmem:[%s8167_s23 + $0xb80] sm:$0xff] }
 0x1ae   : > { %v800_v51 = vld [vmem:[%s8167_s23 + $0xc40] sm:$0xff]  ;;  %v1632_v27 = vadd.s32 864, %v8196_v7 }
 0x1af   : > { %6072 = vmatpush1.bf16.msk.msra.mxu0 %vm9225_vm14, %v6070_v60  ;;  %6840 = vmatpush1.bf16.msk.msra.mxu1 %vm9225_vm14, %v6838_v61  ;;  %v1617_v60 = vadd.s32 744, %v8196_v7  ;;  %v6091_v61 = vpack.c.bf16 %v757_v50, %v753_v48  ;;  %vm2127_vm14 = vcmp.lt.s32.totalorder %v1871_v59, 2176  ;;  %v1622_v48 = vadd.s32 784, %v8196_v7 }
 0x1b0   : > { %6075 = vmatprep.subr.msk.bf16.mxu0 %vm9251_vm0, %v6073_v6  ;;  %6843 = vmatprep.subr.msk.bf16.mxu1 %vm9251_vm0, %v6841_v8  ;;  %v765_v6 = vld [vmem:[%s8167_s23 + $0xb28] sm:$0xff]  ;;  %v763_v8 = vld [vmem:[%s8167_s23 + $0xb18] sm:$0xff]  ;;  %v6874_v50 = vpack.c.bf16 %v774_v38, %v770_v37  ;;  %v1877_v59 = vadd.s32 %v1621_v41, %v8192_v5  ;;  %vm2132_vm5 = vcmp.lt.s32.totalorder %v1876_v47, 2176  ;;  %v1627_v38 = vadd.s32 824, %v8196_v7 }
 0x1b1   : > { %v1873_v16 = vadd.s32 %v1617_v60, %v8192_v5  ;;  %v6865_v19 = vpack.c.bf16 %v767_v9, %v763_v8  ;;  %v789_v60 = vld [vmem:[%s8167_s23 + $0xbe8] sm:$0xff]  ;;  %v1878_v0 = vadd.s32 %v1622_v48, %v8192_v5  ;;  %v784_v9 = vld [vmem:[%s8167_s23 + $0xbc0] sm:$0xff]  ;;  %v807_v41 = vld [vmem:[%s8167_s23 + $0xc78] sm:$0xff] }
 0x1b2   : > { %v6115_v12 = vpack.c.bf16 %v789_v60, %v785_v58  ;;  %v1883_v58 = vadd.s32 %v1627_v38, %v8192_v5  ;;  %v811_v60 = vld [vmem:[%s8167_s23 + $0xc98] sm:$0xff]  ;;  %v808_v8 = vld [vmem:[%s8167_s23 + $0xc80] sm:$0xff]  ;;  %v1634_v38 = vadd.s32 880, %v8196_v7 }
 0x1b3   : > { %6078 = vmatpush1.bf16.msk.msra.mxu0 %vm9251_vm0, %v6076_v17  ;;  %6846 = vmatpush1.bf16.msk.msra.mxu1 %vm9251_vm0, %v6844_v18  ;;  %v1618_v17 = vadd.s32 752, %v8196_v7  ;;  %v6097_v18 = vpack.c.bf16 %v765_v6, %v761_v4  ;;  %vm9375_vm0 = vmpackc.low %vm2127_vm14, %vm2126_vm12  ;;  %vm2129_vm1 = vcmp.lt.s32.totalorder %v1873_v16, 2176  ;;  %v6112_v4 = vpack.c.bf16 %v780_v52, %v776_v2  ;;  %v790_v16 = vld [vmem:[%s8167_s23 + $0xbf0] sm:$0xff]  ;;  %v804_v2 = vld [vmem:[%s8167_s23 + $0xc60] sm:$0xff] }
 0x1b4   : > { %6081 = vmatprep.subr.msk.bf16.mxu0 %vm9275_vm4, %v6079_v23  ;;  %6849 = vmatprep.subr.msk.bf16.mxu1 %vm9275_vm4, %v6847_v24  ;;  %v1619_v23 = vadd.s32 760, %v8196_v7  ;;  %v773_v24 = vld [vmem:[%s8167_s23 + $0xb68] sm:$0xff]  ;;  %vm9402_vm2 = vmpackc.low %vm2129_vm1, %vm2128_vm15  ;;  %v6880_v6 = vpack.c.bf16 %v782_v57, %v778_v56  ;;  %vm2134_vm8 = vcmp.lt.s32.totalorder %v1878_v0, 2176  ;;  %v1629_v52 = vadd.s32 840, %v8196_v7  ;;  %v806_v56 = vld [vmem:[%s8167_s23 + $0xc70] sm:$0xff] }
 0x1b5   : > { %v1874_v32 = vadd.s32 %v1618_v17, %v8192_v5  ;;  %v793_v17 = vld [vmem:[%s8167_s23 + $0xc08] sm:$0xff]  ;;  %v1630_v0 = vadd.s32 848, %v8196_v7 }
 0x1b6   : > { %v1875_v40 = vadd.s32 %v1619_v23, %v8192_v5  ;;  %v1626_v23 = vadd.s32 816, %v8196_v7  ;;  %v809_v57 = vld [vmem:[%s8167_s23 + $0xc88] sm:$0xff] }
 0x1b7   : > { %6084 = vmatpush1.bf16.msk.msra.mxu0 %vm9275_vm4, %v6082_v34  ;;  %6852 = vmatpush1.bf16.msk.msra.mxu1 %vm9275_vm4, %v6850_v36  ;;  %v6103_v34 = vpack.c.bf16 %v773_v24, %v769_v22  ;;  %v6871_v36 = vpack.c.bf16 %v775_v26, %v771_v25  ;;  %vm2130_vm3 = vcmp.lt.s32.totalorder %v1874_v32, 2176  ;;  %v1455_v22 = vadd.s32 %v8192_v5, %v1437_v63  ;;  %v794_v32 = vld [vmem:[%s8167_s23 + $0xc10] sm:$0xff] }
 0x1b8   : > { %6087 = vmatprep.subr.msk.bf16.mxu0 %vm9301_vm7, %v6085_v43  ;;  %6855 = vmatprep.subr.msk.bf16.mxu1 %vm9301_vm7, %v6853_v44  ;;  %v781_v43 = vld [vmem:[%s8167_s23 + $0xba8] sm:$0xff]  ;;  %v779_v44 = vld [vmem:[%s8167_s23 + $0xb98] sm:$0xff]  ;;  %vm2131_vm4 = vcmp.lt.s32.totalorder %v1875_v40, 2176  ;;  %v1440_v24 = vadd.s32 896, %v8412_v45  ;;  %v6118_v25 = vpack.c.bf16 %v788_v10, %v784_v9  ;;  %v6886_v26 = vpack.c.bf16 %v790_v16, %v786_v15  ;;  %v812_v9 = vld [vmem:[%s8167_s23 + $0xca0] sm:$0xff] }
 0x1b9   : > { %vm9427_vm6 = vmpackc.low %vm2131_vm4, %vm2130_vm3  ;;  %v803_v40 = vld [vmem:[%s8167_s23 + $0xc58] sm:$0xff]  ;;  %vm1471_vm11 = vcmp.lt.s32.totalorder %v1455_v22, 2176  ;;  %v1631_v10 = vadd.s32 856, %v8196_v7  ;;  %v817_v15 = vld [vmem:[%s8167_s23 + $0xcc8] sm:$0xff]  ;;  %v1885_v16 = vadd.s32 %v1629_v52, %v8192_v5  ;;  %v1886_v20 = vadd.s32 %v1630_v0, %v8192_v5 }
 0x1ba   : > { %v1458_v47 = vadd.s32 %v8192_v5, %v1440_v24  ;;  %v6136_v21 = vpack.c.bf16 %v812_v9, %v808_v8  ;;  %v816_v24 = vld [vmem:[%s8167_s23 + $0xcc0] sm:$0xff]  ;;  %v1637_v0 = vadd.s32 904, %v8196_v7  ;;  %v838_v8 = vld [vmem:[%s8167_s23 + $0xd70] sm:$0xff]  ;;  %v841_v9 = vld [vmem:[%s8167_s23 + $0xd88] sm:$0xff] }
 0x1bb   : > { %6090 = vmatpush1.bf16.msk.msra.mxu0 %vm9301_vm7, %v6088_v54  ;;  %6858 = vmatpush1.bf16.msk.msra.mxu1 %vm9301_vm7, %v6856_v55  ;;  %v6109_v54 = vpack.c.bf16 %v781_v43, %v777_v39  ;;  %v6877_v55 = vpack.c.bf16 %v783_v46, %v779_v44  ;;  %vm2133_vm7 = vcmp.lt.s32.totalorder %v1877_v59, 2176  ;;  %v805_v39 = vld [vmem:[%s8167_s23 + $0xc68] sm:$0xff]  ;;  %v1882_v43 = vadd.s32 %v1626_v23, %v8192_v5  ;;  %v9476_v46 = vld [vmem:[%s8159_s21 + $0x18] sm:$0xff] }
 0x1bc   : > { %6093 = vmatprep.subr.msk.bf16.mxu0 %vm9327_vm9, %v6091_v61  ;;  %6861 = vmatprep.subr.msk.bf16.mxu1 %vm9327_vm9, %v6859_v62  ;;  %v787_v61 = vld [vmem:[%s8167_s23 + $0xbd8] sm:$0xff]  ;;  %v1628_v44 = vadd.s32 832, %v8196_v7  ;;  %v813_v59 = vld [vmem:[%s8167_s23 + $0xca8] sm:$0xff]  ;;  %vm1474_vm15 = vcmp.lt.s32.totalorder %v1458_v47, 2176  ;;  %v1888_v47 = vadd.s32 %v1632_v27, %v8192_v5  ;;  %v1893_v27 = vadd.s32 %v1637_v0, %v8192_v5 }
 0x1bd   : > { %v791_v62 = vld [vmem:[%s8167_s23 + $0xbf8] sm:$0xff]  ;;  %vm2138_vm1 = vcmp.lt.s32.totalorder %v1882_v43, 2176  ;;  %v824_v43 = vld [vmem:[%s8167_s23 + $0xd00] sm:$0xff]  ;;  %v1643_v0 = vadd.s32 952, %v8196_v7 }
 0x1be   : > { %v6883_v14 = vpack.c.bf16 %v791_v62, %v787_v61  ;;  %v815_v61 = vld [vmem:[%s8167_s23 + $0xcb8] sm:$0xff]  ;;  %v1494_v62 = vcombine.high %v9476_v46, %v9476_v46  ;;  %v1884_v63 = vadd.s32 %v1628_v44, %v8192_v5  ;;  %v828_v44 = vld [vmem:[%s8167_s23 + $0xd20] sm:$0xff] }
 0x1bf   : > { %6096 = vmatpush1.bf16.msk.msra.mxu0 %vm9327_vm9, %v6094_v11  ;;  %6864 = vmatpush1.bf16.msk.msra.mxu1 %vm9327_vm9, %v6862_v1  ;;  %v1879_v11 = vadd.s32 %v1623_v53, %v8192_v5  ;;  %v1624_v1 = vadd.s32 800, %v8196_v7  ;;  %vm9454_vm9 = vmpackc.low %vm2133_vm7, %vm2132_vm5  ;;  %vm2141_vm5 = vcmp.lt.s32.totalorder %v1885_v16, 2176 }
 0x1c0   : > { %6099 = vmatprep.subr.msk.bf16.mxu0 %vm9350_vm13, %v6097_v18  ;;  %6867 = vmatprep.subr.msk.bf16.mxu1 %vm9350_vm13, %v6865_v19  ;;  %v1625_v18 = vadd.s32 808, %v8196_v7  ;;  %v797_v19 = vld [vmem:[%s8167_s23 + $0xc28] sm:$0xff]  ;;  %vm2140_vm3 = vcmp.lt.s32.totalorder %v1884_v63, 2176  ;;  %v836_v63 = vld [vmem:[%s8167_s23 + $0xd60] sm:$0xff] }
 0x1c1   : > { %vm2135_vm10 = vcmp.lt.s32.totalorder %v1879_v11, 2176  ;;  %v1880_v29 = vadd.s32 %v1624_v1, %v8192_v5  ;;  %v6121_v30 = vpack.c.bf16 %v797_v19, %v793_v17  ;;  %v6133_v11 = vpack.c.bf16 %v813_v59, %v809_v57  ;;  %v821_v17 = vld [vmem:[%s8167_s23 + $0xce8] sm:$0xff]  ;;  %v823_v19 = vld [vmem:[%s8167_s23 + $0xcf8] sm:$0xff]  ;;  %vm9568_vm7 = vmpackc.low %vm2141_vm5, %vm2140_vm3 }
 0x1c2   : > { %v1881_v37 = vadd.s32 %v1625_v18, %v8192_v5  ;;  %vm9485_vm12 = vmpackc.low %vm2135_vm10, %vm2134_vm8  ;;  %v6901_v1 = vpack.c.bf16 %v815_v61, %v811_v60  ;;  %v819_v18 = vld [vmem:[%s8167_s23 + $0xcd8] sm:$0xff]  ;;  %v1890_v57 = vadd.s32 %v1634_v38, %v8192_v5  ;;  %v6148_v59 = vpack.c.bf16 %v828_v44, %v824_v43  ;;  %v850_v43 = vld [vmem:[%s8167_s23 + $0xdd0] sm:$0xff] }
 0x1c3   : > { %6102 = vmatpush1.bf16.msk.msra.mxu0 %vm9350_vm13, %v6100_v35  ;;  %6870 = vmatpush1.bf16.msk.msra.mxu1 %vm9350_vm13, %v6868_v28  ;;  %v792_v35 = vld [vmem:[%s8167_s23 + $0xc00] sm:$0xff]  ;;  %vm2136_vm13 = vcmp.lt.s32.totalorder %v1880_v29, 2176  ;;  %v818_v29 = vld [vmem:[%s8167_s23 + $0xcd0] sm:$0xff]  ;;  %vm2144_vm10 = vcmp.lt.s32.totalorder %v1888_v47, 2176  ;;  %v857_v47 = vld [vmem:[%s8167_s23 + $0xe08] sm:$0xff] }
 0x1c4   : > { %6105 = vmatprep.subr.msk.bf16.mxu0 %vm9375_vm0, %v6103_v34  ;;  %6873 = vmatprep.subr.msk.bf16.mxu1 %vm9375_vm0, %v6871_v36  ;;  %v796_v28 = vld [vmem:[%s8167_s23 + $0xc20] sm:$0xff]  ;;  %v798_v34 = vld [vmem:[%s8167_s23 + $0xc30] sm:$0xff]  ;;  %v801_v36 = vld [vmem:[%s8167_s23 + $0xc48] sm:$0xff]  ;;  %vm2137_vm14 = vcmp.lt.s32.totalorder %v1881_v37, 2176 }
 0x1c5   : > { %v6124_v48 = vpack.c.bf16 %v796_v28, %v792_v35  ;;  %v6127_v53 = vpack.c.bf16 %v805_v39, %v801_v36  ;;  %v6139_v35 = vpack.c.bf16 %v821_v17, %v817_v15  ;;  %v6907_v28 = vpack.c.bf16 %v823_v19, %v819_v18  ;;  %v827_v36 = vld [vmem:[%s8167_s23 + $0xd18] sm:$0xff]  ;;  %v840_v19 = vld [vmem:[%s8167_s23 + $0xd80] sm:$0xff]  ;;  %v854_v44 = vld [vmem:[%s8167_s23 + $0xdf0] sm:$0xff] }
 0x1c6   : > { %v831_v37 = vld [vmem:[%s8167_s23 + $0xd38] sm:$0xff]  ;;  %v1638_v15 = vadd.s32 912, %v8196_v7  ;;  %v862_v61 = vld [vmem:[%s8167_s23 + $0xe30] sm:$0xff] }
 0x1c7   : > { %6108 = vmatpush1.bf16.msk.msra.mxu0 %vm9375_vm0, %v6106_v49  ;;  %6876 = vmatpush1.bf16.msk.msra.mxu1 %vm9375_vm0, %v6874_v50  ;;  %v6892_v49 = vpack.c.bf16 %v798_v34, %v794_v32  ;;  %vm9517_vm0 = vmpackc.low %vm2137_vm14, %vm2136_vm13  ;;  %v1633_v32 = vadd.s32 872, %v8196_v7  ;;  %v829_v34 = vld [vmem:[%s8167_s23 + $0xd28] sm:$0xff]  ;;  %v826_v50 = vld [vmem:[%s8167_s23 + $0xd10] sm:$0xff]  ;;  %vm2146_vm13 = vcmp.lt.s32.totalorder %v1890_v57, 2176 }
 0x1c8   : > { %6111 = vmatprep.subr.msk.bf16.mxu0 %vm9402_vm2, %v6109_v54  ;;  %6879 = vmatprep.subr.msk.bf16.mxu1 %vm9402_vm2, %v6877_v55  ;;  %v6895_v54 = vpack.c.bf16 %v807_v41, %v803_v40  ;;  %v802_v55 = vld [vmem:[%s8167_s23 + $0xc50] sm:$0xff] }
 0x1c9   : > { %v1889_v52 = vadd.s32 %v1633_v32, %v8192_v5  ;;  %v866_v18 = vld [vmem:[%s8167_s23 + $0xe50] sm:$0xff] }
 0x1cb   : > { %6114 = vmatpush1.bf16.msk.msra.mxu0 %vm9402_vm2, %v6112_v4  ;;  %6882 = vmatpush1.bf16.msk.msra.mxu1 %vm9402_vm2, %v6880_v6  ;;  %v6130_v4 = vpack.c.bf16 %v804_v2, %v800_v51  ;;  %v6898_v6 = vpack.c.bf16 %v806_v56, %v802_v55  ;;  %vm2139_vm2 = vcmp.lt.s32.totalorder %v1883_v58, 2176  ;;  %v830_v51 = vld [vmem:[%s8167_s23 + $0xd30] sm:$0xff]  ;;  %v833_v2 = vld [vmem:[%s8167_s23 + $0xd48] sm:$0xff]  ;;  %v835_v55 = vld [vmem:[%s8167_s23 + $0xd58] sm:$0xff]  ;;  %v1636_v58 = vadd.s32 896, %v8196_v7 }
 0x1cc   : > { %6117 = vmatprep.subr.msk.bf16.mxu0 %vm9427_vm6, %v6115_v12  ;;  %6885 = vmatprep.subr.msk.bf16.mxu1 %vm9427_vm6, %v6883_v14  ;;  %v810_v12 = vld [vmem:[%s8167_s23 + $0xc90] sm:$0xff]  ;;  %vm9543_vm4 = vmpackc.low %vm2139_vm2, %vm2138_vm1  ;;  %v839_v56 = vld [vmem:[%s8167_s23 + $0xd78] sm:$0xff]  ;;  %v6916_v60 = vpack.c.bf16 %v830_v51, %v826_v50  ;;  %vm2149_vm1 = vcmp.lt.s32.totalorder %v1893_v27, 2176 }
 0x1cd   : > { %v814_v14 = vld [vmem:[%s8167_s23 + $0xcb0] sm:$0xff]  ;;  %v859_v50 = vld [vmem:[%s8167_s23 + $0xe18] sm:$0xff] }
 0x1ce   : > { %v6904_v22 = vpack.c.bf16 %v814_v14, %v810_v12  ;;  %v847_v12 = vld [vmem:[%s8167_s23 + $0xdb8] sm:$0xff]  ;;  %v1892_v14 = vadd.s32 %v1636_v58, %v8192_v5 }
 0x1cf   : > { %6120 = vmatpush1.bf16.msk.msra.mxu0 %vm9427_vm6, %v6118_v25  ;;  %6888 = vmatpush1.bf16.msk.msra.mxu1 %vm9427_vm6, %v6886_v26  ;;  %v820_v25 = vld [vmem:[%s8167_s23 + $0xce0] sm:$0xff]  ;;  %v1887_v26 = vadd.s32 %v1631_v10, %v8192_v5  ;;  %vm2142_vm6 = vcmp.lt.s32.totalorder %v1886_v20, 2176  ;;  %v863_v51 = vld [vmem:[%s8167_s23 + $0xe38] sm:$0xff] }
 0x1d0   : > { %6123 = vmatprep.subr.msk.bf16.mxu0 %vm9454_vm9, %v6121_v30  ;;  %6891 = vmatprep.subr.msk.bf16.mxu1 %vm9454_vm9, %v6889_v31  ;;  %v822_v30 = vld [vmem:[%s8167_s23 + $0xcf0] sm:$0xff]  ;;  %v825_v31 = vld [vmem:[%s8167_s23 + $0xd08] sm:$0xff]  ;;  %v6142_v39 = vpack.c.bf16 %v820_v25, %v816_v24  ;;  %v844_v20 = vld [vmem:[%s8167_s23 + $0xda0] sm:$0xff] }
 0x1d1   : > { %v6910_v40 = vpack.c.bf16 %v822_v30, %v818_v29  ;;  %vm2143_vm8 = vcmp.lt.s32.totalorder %v1887_v26, 2176  ;;  %v842_v24 = vld [vmem:[%s8167_s23 + $0xd90] sm:$0xff]  ;;  %v849_v26 = vld [vmem:[%s8167_s23 + $0xdc8] sm:$0xff]  ;;  %v855_v29 = vld [vmem:[%s8167_s23 + $0xdf8] sm:$0xff]  ;;  %v1894_v30 = vadd.s32 %v1638_v15, %v8192_v5  ;;  %v1645_v15 = vadd.s32 968, %v8196_v7 }
 0x1d2   : > { %4965 = vmatmul.mubr.msk.f32.vlgmr.msra.gmra.mrb[0].mxu0 %vm1471_vm11, %v9134_v42  ;;  %5493 = vmatmul.mubr.msk.f32.vlgmr.msra.gmra.mrb[0].mxu1 %vm1471_vm11, %v9134_v42  ;;  %v834_v42 = vld [vmem:[%s8167_s23 + $0xd50] sm:$0xff]  ;;  %vm2145_vm11 = vcmp.lt.s32.totalorder %v1889_v52, 2176 }
 0x1d3   : > { %6126 = vmatpush1.bf16.msk.msra.mxu0 %vm9454_vm9, %v6124_v48  ;;  %6894 = vmatpush1.bf16.msk.msra.mxu1 %vm9454_vm9, %v6892_v49  ;;  %v6145_v48 = vpack.c.bf16 %v829_v34, %v825_v31  ;;  %v6913_v49 = vpack.c.bf16 %v831_v37, %v827_v36  ;;  %vm9595_vm9 = vmpackc.low %vm2143_vm8, %vm2142_vm6  ;;  %v6922_v17 = vpack.c.bf16 %v838_v8, %v834_v42  ;;  %v846_v25 = vld [vmem:[%s8167_s23 + $0xdb0] sm:$0xff]  ;;  %v848_v36 = vld [vmem:[%s8167_s23 + $0xdc0] sm:$0xff]  ;;  %vm2150_vm2 = vcmp.lt.s32.totalorder %v1894_v30, 2176 }
 0x1d4   : > { %6129 = vmatprep.subr.msk.bf16.mxu0 %vm9485_vm12, %v6127_v53  ;;  %6897 = vmatprep.subr.msk.bf16.mxu1 %vm9485_vm12, %v6895_v54  ;;  %v1635_v53 = vadd.s32 888, %v8196_v7  ;;  %v837_v54 = vld [vmem:[%s8167_s23 + $0xd68] sm:$0xff]  ;;  %v6160_v31 = vpack.c.bf16 %v844_v20, %v840_v19  ;;  %v6928_v32 = vpack.c.bf16 %v846_v25, %v842_v24  ;;  %v852_v37 = vld [vmem:[%s8167_s23 + $0xde0] sm:$0xff]  ;;  %v871_v42 = vld [vmem:[%s8167_s23 + $0xe78] sm:$0xff]  ;;  %v1901_v30 = vadd.s32 %v1645_v15, %v8192_v5 }
 0x1d5   : > { %5030 = vmatprep.mubr.msk.f32.mxu0 %vm1474_vm15, %v1494_v62  ;;  %5558 = vmatprep.mubr.msk.f32.mxu1 %vm1474_vm15, %v1494_v62  ;;  %v832_v62 = vld [vmem:[%s8167_s23 + $0xd40] sm:$0xff]  ;;  %vm2148_vm15 = vcmp.lt.s32.totalorder %v1892_v14, 2176  ;;  %v6166_v52 = vpack.c.bf16 %v852_v37, %v848_v36  ;;  %v870_v19 = vld [vmem:[%s8167_s23 + $0xe70] sm:$0xff]  ;;  %v873_v20 = vld [vmem:[%s8167_s23 + $0xe88] sm:$0xff] }
 0x1d6   : > { %v1891_v10 = vadd.s32 %v1635_v53, %v8192_v5  ;;  %v6154_v16 = vpack.c.bf16 %v836_v63, %v832_v62  ;;  %v6934_v53 = vpack.c.bf16 %v854_v44, %v850_v43  ;;  %vm9669_vm3 = vmpackc.low %vm2149_vm1, %vm2148_vm15  ;;  %v865_v62 = vld [vmem:[%s8167_s23 + $0xe48] sm:$0xff]  ;;  %v868_v14 = vld [vmem:[%s8167_s23 + $0xe60] sm:$0xff]  ;;  %v6946_v27 = vpack.c.bf16 %v870_v19, %v866_v18 }
 0x1d7   : > { %6132 = vmatpush1.bf16.msk.msra.mxu0 %vm9485_vm12, %v6130_v4  ;;  %6900 = vmatpush1.bf16.msk.msra.mxu1 %vm9485_vm12, %v6898_v6  ;;  %v6151_v4 = vpack.c.bf16 %v837_v54, %v833_v2  ;;  %v6919_v6 = vpack.c.bf16 %v839_v56, %v835_v55  ;;  %vm9620_vm12 = vmpackc.low %vm2145_vm11, %vm2144_vm10  ;;  %v1642_v2 = vadd.s32 944, %v8196_v7  ;;  %v856_v55 = vld [vmem:[%s8167_s23 + $0xe00] sm:$0xff]  ;;  %v879_v24 = vld [vmem:[%s8167_s23 + $0xeb8] sm:$0xff]  ;;  %v1648_v44 = vadd.s32 992, %v8196_v7 }
 0x1d8   : > { %6135 = vmatprep.subr.msk.bf16.mxu0 %vm9517_vm0, %v6133_v11  ;;  %6903 = vmatprep.subr.msk.bf16.mxu1 %vm9517_vm0, %v6901_v1  ;;  %v845_v11 = vld [vmem:[%s8167_s23 + $0xda8] sm:$0xff]  ;;  %v843_v1 = vld [vmem:[%s8167_s23 + $0xd98] sm:$0xff]  ;;  %vm2147_vm14 = vcmp.lt.s32.totalorder %v1891_v10, 2176  ;;  %v860_v56 = vld [vmem:[%s8167_s23 + $0xe20] sm:$0xff] }
 0x1d9   : > { %v6925_v23 = vpack.c.bf16 %v847_v12, %v843_v1  ;;  %v1898_v8 = vadd.s32 %v1642_v2, %v8192_v5  ;;  %v6172_v10 = vpack.c.bf16 %v860_v56, %v856_v55  ;;  %v864_v12 = vld [vmem:[%s8167_s23 + $0xe40] sm:$0xff]  ;;  %v874_v36 = vld [vmem:[%s8167_s23 + $0xe90] sm:$0xff]  ;;  %v887_v43 = vld [vmem:[%s8167_s23 + $0xef8] sm:$0xff] }
 0x1da   : > { %v878_v37 = vld [vmem:[%s8167_s23 + $0xeb0] sm:$0xff]  ;;  %v889_v56 = vld [vmem:[%s8167_s23 + $0xf08] sm:$0xff]  ;;  %v903_v18 = vld [vmem:[%s8167_s23 + $0xf78] sm:$0xff] }
 0x1db   : > { %6138 = vmatpush1.bf16.msk.msra.mxu0 %vm9517_vm0, %v6136_v21  ;;  %6906 = vmatpush1.bf16.msk.msra.mxu1 %vm9517_vm0, %v6904_v22  ;;  %v1639_v21 = vadd.s32 920, %v8196_v7  ;;  %v6157_v22 = vpack.c.bf16 %v845_v11, %v841_v9  ;;  %vm9644_vm0 = vmpackc.low %vm2147_vm14, %vm2146_vm13  ;;  %v1644_v9 = vadd.s32 960, %v8196_v7  ;;  %vm2154_vm8 = vcmp.lt.s32.totalorder %v1898_v8, 2176  ;;  %v882_v54 = vld [vmem:[%s8167_s23 + $0xed0] sm:$0xff]  ;;  %v892_v8 = vld [vmem:[%s8167_s23 + $0xf20] sm:$0xff] }
 0x1dc   : > { %6141 = vmatprep.subr.msk.bf16.mxu0 %vm9543_vm4, %v6139_v35  ;;  %6909 = vmatprep.subr.msk.bf16.mxu1 %vm9543_vm4, %v6907_v28  ;;  %v853_v35 = vld [vmem:[%s8167_s23 + $0xde8] sm:$0xff]  ;;  %v851_v28 = vld [vmem:[%s8167_s23 + $0xdd8] sm:$0xff]  ;;  %vm2157_vm13 = vcmp.lt.s32.totalorder %v1901_v30, 2176  ;;  %v886_v55 = vld [vmem:[%s8167_s23 + $0xef0] sm:$0xff] }
 0x1dd   : > { %v1895_v38 = vadd.s32 %v1639_v21, %v8192_v5  ;;  %v6931_v41 = vpack.c.bf16 %v855_v29, %v851_v28  ;;  %v1899_v21 = vadd.s32 %v1643_v0, %v8192_v5  ;;  %v1900_v25 = vadd.s32 %v1644_v9, %v8192_v5  ;;  %v872_v28 = vld [vmem:[%s8167_s23 + $0xe80] sm:$0xff]  ;;  %v890_v1 = vld [vmem:[%s8167_s23 + $0xf10] sm:$0xff]  ;;  %v905_v30 = vld [vmem:[%s8167_s23 + $0xf88] sm:$0xff] }
 0x1de   : > { %v876_v29 = vld [vmem:[%s8167_s23 + $0xea0] sm:$0xff]  ;;  %v1651_v9 = vadd.s32 1016, %v8196_v7 }
 0x1df   : > { %6144 = vmatpush1.bf16.msk.msra.mxu0 %vm9543_vm4, %v6142_v39  ;;  %6912 = vmatpush1.bf16.msk.msra.mxu1 %vm9543_vm4, %v6910_v40  ;;  %v1640_v39 = vadd.s32 928, %v8196_v7  ;;  %v6163_v40 = vpack.c.bf16 %v853_v35, %v849_v26  ;;  %vm2151_vm4 = vcmp.lt.s32.totalorder %v1895_v38, 2176  ;;  %v6178_v26 = vpack.c.bf16 %v868_v14, %v864_v12  ;;  %v881_v38 = vld [vmem:[%s8167_s23 + $0xec8] sm:$0xff]  ;;  %v894_v12 = vld [vmem:[%s8167_s23 + $0xf30] sm:$0xff] }
 0x1e0   : > { %6147 = vmatprep.subr.msk.bf16.mxu0 %vm9568_vm7, %v6145_v48  ;;  %6915 = vmatprep.subr.msk.bf16.mxu1 %vm9568_vm7, %v6913_v49  ;;  %v1641_v48 = vadd.s32 936, %v8196_v7  ;;  %v861_v49 = vld [vmem:[%s8167_s23 + $0xe28] sm:$0xff]  ;;  %vm9696_vm5 = vmpackc.low %vm2151_vm4, %vm2150_vm2  ;;  %vm2155_vm10 = vcmp.lt.s32.totalorder %v1899_v21, 2176  ;;  %vm2156_vm11 = vcmp.lt.s32.totalorder %v1900_v25, 2176  ;;  %v900_v25 = vld [vmem:[%s8167_s23 + $0xf60] sm:$0xff] }
 0x1e1   : > { %v1896_v57 = vadd.s32 %v1640_v39, %v8192_v5  ;;  %v6169_v58 = vpack.c.bf16 %v861_v49, %v857_v47  ;;  %v1647_v39 = vadd.s32 984, %v8196_v7  ;;  %v6184_v47 = vpack.c.bf16 %v876_v29, %v872_v28  ;;  %vm9772_vm14 = vmpackc.low %vm2157_vm13, %vm2156_vm11  ;;  %v897_v14 = vld [vmem:[%s8167_s23 + $0xf48] sm:$0xff]  ;;  %v898_v28 = vld [vmem:[%s8167_s23 + $0xf50] sm:$0xff] }
 0x1e2   : > { %v1897_v63 = vadd.s32 %v1641_v48, %v8192_v5  ;;  %v6952_v48 = vpack.c.bf16 %v878_v37, %v874_v36  ;;  %v902_v29 = vld [vmem:[%s8167_s23 + $0xf70] sm:$0xff]  ;;  %v911_v36 = vld [vmem:[%s8167_s23 + $0xfb8] sm:$0xff] }
 0x1e3   : > { %6150 = vmatpush1.bf16.msk.msra.mxu0 %vm9568_vm7, %v6148_v59  ;;  %6918 = vmatpush1.bf16.msk.msra.mxu1 %vm9568_vm7, %v6916_v60  ;;  %v6937_v59 = vpack.c.bf16 %v863_v51, %v859_v50  ;;  %v858_v60 = vld [vmem:[%s8167_s23 + $0xe10] sm:$0xff]  ;;  %vm2152_vm6 = vcmp.lt.s32.totalorder %v1896_v57, 2176  ;;  %v880_v50 = vld [vmem:[%s8167_s23 + $0xec0] sm:$0xff]  ;;  %v1903_v57 = vadd.s32 %v1647_v39, %v8192_v5  ;;  %v6970_v39 = vpack.c.bf16 %v902_v29, %v898_v28  ;;  %v933_v29 = vld [vmem:[%s8167_s23 + $0x1068] sm:$0xff] }
 0x1e4   : > { %6153 = vmatprep.subr.msk.bf16.mxu0 %vm9595_vm9, %v6151_v4  ;;  %6921 = vmatprep.subr.msk.bf16.mxu1 %vm9595_vm9, %v6919_v6  ;;  %v869_v4 = vld [vmem:[%s8167_s23 + $0xe68] sm:$0xff]  ;;  %v867_v6 = vld [vmem:[%s8167_s23 + $0xe58] sm:$0xff]  ;;  %v6940_v11 = vpack.c.bf16 %v862_v61, %v858_v60  ;;  %vm2153_vm7 = vcmp.lt.s32.totalorder %v1897_v63, 2176  ;;  %v884_v51 = vld [vmem:[%s8167_s23 + $0xee0] sm:$0xff]  ;;  %v1650_v63 = vadd.s32 1008, %v8196_v7 }
 0x1e5   : > { %v891_v60 = vld [vmem:[%s8167_s23 + $0xf18] sm:$0xff]  ;;  %v6190_v0 = vpack.c.bf16 %v884_v51, %v880_v50  ;;  %v906_v50 = vld [vmem:[%s8167_s23 + $0xf90] sm:$0xff] }
 0x1e6   : > { %v895_v61 = vld [vmem:[%s8167_s23 + $0xf38] sm:$0xff]  ;;  %v1906_v19 = vadd.s32 %v1650_v63, %v8192_v5  ;;  %v910_v51 = vld [vmem:[%s8167_s23 + $0xfb0] sm:$0xff] }
 0x1e7   : > { %6156 = vmatpush1.bf16.msk.msra.mxu0 %vm9595_vm9, %v6154_v16  ;;  %6924 = vmatpush1.bf16.msk.msra.mxu1 %vm9595_vm9, %v6922_v17  ;;  %v6175_v16 = vpack.c.bf16 %v869_v4, %v865_v62  ;;  %v6943_v17 = vpack.c.bf16 %v871_v42, %v867_v6  ;;  %vm9720_vm9 = vmpackc.low %vm2153_vm7, %vm2152_vm6  ;;  %v1904_v62 = vadd.s32 %v1648_v44, %v8192_v5  ;;  %v888_v42 = vld [vmem:[%s8167_s23 + $0xf00] sm:$0xff]  ;;  %v914_v6 = vld [vmem:[%s8167_s23 + $0xfd0] sm:$0xff] }
 0x1e8   : > { %6159 = vmatprep.subr.msk.bf16.mxu0 %vm9620_vm12, %v6157_v22  ;;  %6927 = vmatprep.subr.msk.bf16.mxu1 %vm9620_vm12, %v6925_v23  ;;  %v877_v22 = vld [vmem:[%s8167_s23 + $0xea8] sm:$0xff]  ;;  %v875_v23 = vld [vmem:[%s8167_s23 + $0xe98] sm:$0xff]  ;;  %v6958_v4 = vpack.c.bf16 %v886_v55, %v882_v54  ;;  %v6196_v21 = vpack.c.bf16 %v892_v8, %v888_v42  ;;  %vm2162_vm4 = vcmp.lt.s32.totalorder %v1906_v19, 2176  ;;  %v918_v42 = vld [vmem:[%s8167_s23 + $0xff0] sm:$0xff] }
 0x1e9   : > { %v6949_v34 = vpack.c.bf16 %v879_v24, %v875_v23  ;;  %v896_v24 = vld [vmem:[%s8167_s23 + $0xf40] sm:$0xff]  ;;  %vm2160_vm2 = vcmp.lt.s32.totalorder %v1904_v62, 2176  ;;  %v915_v54 = vld [vmem:[%s8167_s23 + $0xfd8] sm:$0xff]  ;;  %v921_v8 = vld [vmem:[%s8167_s23 + $0x1008] sm:$0xff]  ;;  %v6982_v19 = vpack.c.bf16 %v918_v42, %v914_v6  ;;  %v1659_v23 = vadd.s32 1080, %v8196_v7 }
 0x1ea   : > { %v919_v55 = vld [vmem:[%s8167_s23 + $0xff8] sm:$0xff]  ;;  %v916_v62 = vld [vmem:[%s8167_s23 + $0xfe0] sm:$0xff]  ;;  %v945_v6 = vld [vmem:[%s8167_s23 + $0x10c8] sm:$0xff] }
 0x1eb   : > { %6162 = vmatpush1.bf16.msk.msra.mxu0 %vm9620_vm12, %v6160_v31  ;;  %6930 = vmatpush1.bf16.msk.msra.mxu1 %vm9620_vm12, %v6928_v32  ;;  %v1646_v31 = vadd.s32 976, %v8196_v7  ;;  %v6181_v32 = vpack.c.bf16 %v877_v22, %v873_v20  ;;  %vm9745_vm12 = vmpackc.low %vm2155_vm10, %vm2154_vm8  ;;  %v1652_v20 = vadd.s32 1024, %v8196_v7  ;;  %v6964_v22 = vpack.c.bf16 %v894_v12, %v890_v1  ;;  %v923_v1 = vld [vmem:[%s8167_s23 + $0x1018] sm:$0xff] }
 0x1ec   : > { %6165 = vmatprep.subr.msk.bf16.mxu0 %vm9644_vm0, %v6163_v40  ;;  %6933 = vmatprep.subr.msk.bf16.mxu1 %vm9644_vm0, %v6931_v41  ;;  %v885_v40 = vld [vmem:[%s8167_s23 + $0xee8] sm:$0xff]  ;;  %v883_v41 = vld [vmem:[%s8167_s23 + $0xed8] sm:$0xff] }
 0x1ed   : > { %v1902_v2 = vadd.s32 %v1646_v31, %v8192_v5  ;;  %v1907_v31 = vadd.s32 %v1651_v9, %v8192_v5  ;;  %v1908_v37 = vadd.s32 %v1652_v20, %v8192_v5  ;;  %v927_v12 = vld [vmem:[%s8167_s23 + $0x1038] sm:$0xff] }
 0x1ef   : > { %6168 = vmatpush1.bf16.msk.msra.mxu0 %vm9644_vm0, %v6166_v52  ;;  %6936 = vmatpush1.bf16.msk.msra.mxu1 %vm9644_vm0, %v6934_v53  ;;  %v6187_v52 = vpack.c.bf16 %v885_v40, %v881_v38  ;;  %v6955_v53 = vpack.c.bf16 %v887_v43, %v883_v41  ;;  %vm2158_vm15 = vcmp.lt.s32.totalorder %v1902_v2, 2176  ;;  %vm2159_vm0 = vcmp.lt.s32.totalorder %v1903_v57, 2176  ;;  %v904_v41 = vld [vmem:[%s8167_s23 + $0xf80] sm:$0xff]  ;;  %v913_v2 = vld [vmem:[%s8167_s23 + $0xfc8] sm:$0xff] }
 0x1f0   : > { %6171 = vmatprep.subr.msk.bf16.mxu0 %vm9669_vm3, %v6169_v58  ;;  %6939 = vmatprep.subr.msk.bf16.mxu1 %vm9669_vm3, %v6937_v59  ;;  %v1649_v58 = vadd.s32 1000, %v8196_v7  ;;  %v893_v59 = vld [vmem:[%s8167_s23 + $0xf28] sm:$0xff]  ;;  %vm9797_vm1 = vmpackc.low %vm2159_vm0, %vm2158_vm15  ;;  %v6202_v38 = vpack.c.bf16 %v900_v25, %v896_v24  ;;  %v908_v43 = vld [vmem:[%s8167_s23 + $0xfa0] sm:$0xff]  ;;  %vm2163_vm6 = vcmp.lt.s32.totalorder %v1907_v31, 2176  ;;  %vm2164_vm7 = vcmp.lt.s32.totalorder %v1908_v37, 2176 }
 0x1f1   : > { %v1656_v57 = vadd.s32 1056, %v8196_v7  ;;  %vm9847_vm8 = vmpackc.low %vm2163_vm6, %vm2162_vm4  ;;  %v6985_v25 = vpack.c.bf16 %v927_v12, %v923_v1  ;;  %v935_v31 = vld [vmem:[%s8167_s23 + $0x1078] sm:$0xff]  ;;  %v928_v40 = vld [vmem:[%s8167_s23 + $0x1040] sm:$0xff]  ;;  %v1664_v12 = vadd.s32 1120, %v8196_v7 }
 0x1f2   : > { %v1905_v15 = vadd.s32 %v1649_v58, %v8192_v5  ;;  %v6208_v58 = vpack.c.bf16 %v908_v43, %v904_v41  ;;  %v932_v41 = vld [vmem:[%s8167_s23 + $0x1060] sm:$0xff]  ;;  %v1915_v43 = vadd.s32 %v1659_v23, %v8192_v5  ;;  %v950_v23 = vld [vmem:[%s8167_s23 + $0x10f0] sm:$0xff] }
 0x1f3   : > { %6174 = vmatpush1.bf16.msk.msra.mxu0 %vm9669_vm3, %v6172_v10  ;;  %6942 = vmatpush1.bf16.msk.msra.mxu1 %vm9669_vm3, %v6940_v11  ;;  %v6193_v10 = vpack.c.bf16 %v893_v59, %v889_v56  ;;  %v6961_v11 = vpack.c.bf16 %v895_v61, %v891_v60  ;;  %v1439_v56 = vadd.s32 768, %v8412_v45  ;;  %v6976_v59 = vpack.c.bf16 %v910_v51, %v906_v50  ;;  %v912_v61 = vld [vmem:[%s8167_s23 + $0xfc0] sm:$0xff]  ;;  %v934_v50 = vld [vmem:[%s8167_s23 + $0x1070] sm:$0xff]  ;;  %v937_v51 = vld [vmem:[%s8167_s23 + $0x1088] sm:$0xff] }
 0x1f4   : > { %6177 = vmatprep.subr.msk.bf16.mxu0 %vm9696_vm5, %v6175_v16  ;;  %6945 = vmatprep.subr.msk.bf16.mxu1 %vm9696_vm5, %v6943_v17  ;;  %v901_v16 = vld [vmem:[%s8167_s23 + $0xf68] sm:$0xff]  ;;  %v899_v17 = vld [vmem:[%s8167_s23 + $0xf58] sm:$0xff]  ;;  %vm2161_vm3 = vcmp.lt.s32.totalorder %v1905_v15, 2176  ;;  %v1912_v15 = vadd.s32 %v1656_v57, %v8192_v5  ;;  %v6226_v57 = vpack.c.bf16 %v932_v41, %v928_v40  ;;  %v940_v60 = vld [vmem:[%s8167_s23 + $0x10a0] sm:$0xff]  ;;  %vm2171_vm4 = vcmp.lt.s32.totalorder %v1915_v43, 2176 }
 0x1f5   : > { %v6967_v35 = vpack.c.bf16 %v903_v18, %v899_v17  ;;  %v1442_v17 = vadd.s32 1152, %v8412_v45  ;;  %v6214_v18 = vpack.c.bf16 %v916_v62, %v912_v61  ;;  %v954_v41 = vld [vmem:[%s8167_s23 + $0x1110] sm:$0xff] }
 0x1f6   : > { %v958_v43 = vld [vmem:[%s8167_s23 + $0x1130] sm:$0xff] }
 0x1f7   : > { %6180 = vmatpush1.bf16.msk.msra.mxu0 %vm9696_vm5, %v6178_v26  ;;  %6948 = vmatpush1.bf16.msk.msra.mxu1 %vm9696_vm5, %v6946_v27  ;;  %v1653_v26 = vadd.s32 1032, %v8196_v7  ;;  %v6199_v27 = vpack.c.bf16 %v901_v16, %v897_v14  ;;  %vm9821_vm5 = vmpackc.low %vm2161_vm3, %vm2160_vm2  ;;  %v1457_v14 = vadd.s32 %v8192_v5, %v1439_v56  ;;  %v1658_v16 = vadd.s32 1072, %v8196_v7 }
 0x1f8   : > { %6183 = vmatprep.subr.msk.bf16.mxu0 %vm9720_vm9, %v6181_v32  ;;  %6951 = vmatprep.subr.msk.bf16.mxu1 %vm9720_vm9, %v6949_v34  ;;  %v909_v32 = vld [vmem:[%s8167_s23 + $0xfa8] sm:$0xff]  ;;  %v907_v34 = vld [vmem:[%s8167_s23 + $0xf98] sm:$0xff]  ;;  %v1662_v56 = vadd.s32 1104, %v8196_v7 }
 0x1f9   : > { %v1909_v44 = vadd.s32 %v1653_v26, %v8192_v5  ;;  %v6973_v49 = vpack.c.bf16 %v911_v36, %v907_v34  ;;  %v922_v26 = vld [vmem:[%s8167_s23 + $0x1010] sm:$0xff]  ;;  %vm1473_vm13 = vcmp.lt.s32.totalorder %v1457_v14, 2176  ;;  %v9896_v34 = vld [vmem:[%s8159_s21 + $0x20] sm:$0xff]  ;;  %v1460_v36 = vadd.s32 %v8192_v5, %v1442_v17 }
 0x1fa   : > { %v1918_v1 = vadd.s32 %v1662_v56, %v8192_v5  ;;  %v944_v17 = vld [vmem:[%s8167_s23 + $0x10c0] sm:$0xff] }
 0x1fb   : > { %6186 = vmatpush1.bf16.msk.msra.mxu0 %vm9720_vm9, %v6184_v47  ;;  %6954 = vmatpush1.bf16.msk.msra.mxu1 %vm9720_vm9, %v6952_v48  ;;  %v1654_v47 = vadd.s32 1040, %v8196_v7  ;;  %v6205_v48 = vpack.c.bf16 %v909_v32, %v905_v30  ;;  %vm2165_vm9 = vcmp.lt.s32.totalorder %v1909_v44, 2176  ;;  %v931_v30 = vld [vmem:[%s8167_s23 + $0x1058] sm:$0xff]  ;;  %v1914_v32 = vadd.s32 %v1658_v16, %v8192_v5  ;;  %v974_v16 = vld [vmem:[%s8167_s23 + $0x11b0] sm:$0xff] }
 0x1fc   : > { %6189 = vmatprep.subr.msk.bf16.mxu0 %vm9745_vm12, %v6187_v52  ;;  %6957 = vmatprep.subr.msk.bf16.mxu1 %vm9745_vm12, %v6955_v53  ;;  %v1655_v52 = vadd.s32 1048, %v8196_v7  ;;  %v917_v53 = vld [vmem:[%s8167_s23 + $0xfe8] sm:$0xff]  ;;  %vm9876_vm10 = vmpackc.low %vm2165_vm9, %vm2164_vm7  ;;  %v1660_v44 = vadd.s32 1088, %v8196_v7  ;;  %vm1476_vm2 = vcmp.lt.s32.totalorder %v1460_v36, 2176  ;;  %v952_v36 = vld [vmem:[%s8167_s23 + $0x1100] sm:$0xff]  ;;  %vm2174_vm9 = vcmp.lt.s32.totalorder %v1918_v1, 2176 }
 0x1fd   : > { %v1910_v63 = vadd.s32 %v1654_v47, %v8192_v5 }
 0x1fe   : > { %v1911_v9 = vadd.s32 %v1655_v52, %v8192_v5  ;;  %v941_v52 = vld [vmem:[%s8167_s23 + $0x10a8] sm:$0xff]  ;;  %v1916_v61 = vadd.s32 %v1660_v44, %v8192_v5 }
 0x1ff   : > { %6192 = vmatpush1.bf16.msk.msra.mxu0 %vm9745_vm12, %v6190_v0  ;;  %6960 = vmatpush1.bf16.msk.msra.mxu1 %vm9745_vm12, %v6958_v4  ;;  %v6211_v0 = vpack.c.bf16 %v917_v53, %v913_v2  ;;  %v6979_v4 = vpack.c.bf16 %v919_v55, %v915_v54  ;;  %vm2166_vm11 = vcmp.lt.s32.totalorder %v1910_v63, 2176  ;;  %v1661_v2 = vadd.s32 1096, %v8196_v7  ;;  %v939_v53 = vld [vmem:[%s8167_s23 + $0x1098] sm:$0xff]  ;;  %v961_v44 = vld [vmem:[%s8167_s23 + $0x1148] sm:$0xff] }
 0x200   : > { %6195 = vmatprep.subr.msk.bf16.mxu0 %vm9772_vm14, %v6193_v10  ;;  %6963 = vmatprep.subr.msk.bf16.mxu1 %vm9772_vm14, %v6961_v11  ;;  %v1657_v10 = vadd.s32 1064, %v8196_v7  ;;  %v925_v11 = vld [vmem:[%s8167_s23 + $0x1028] sm:$0xff]  ;;  %vm2167_vm12 = vcmp.lt.s32.totalorder %v1911_v9, 2176  ;;  %v943_v54 = vld [vmem:[%s8167_s23 + $0x10b8] sm:$0xff]  ;;  %v1495_v55 = vcombine.high %v9896_v34, %v9896_v34  ;;  %v6229_v62 = vpack.c.bf16 %v941_v52, %v937_v51 }
 0x201   : > { %v6217_v24 = vpack.c.bf16 %v925_v11, %v921_v8  ;;  %vm9904_vm15 = vmpackc.low %vm2167_vm12, %vm2166_vm11  ;;  %v6997_v63 = vpack.c.bf16 %v943_v54, %v939_v53  ;;  %v1917_v42 = vadd.s32 %v1661_v2, %v8192_v5  ;;  %v1663_v8 = vadd.s32 1112, %v8196_v7  ;;  %v949_v9 = vld [vmem:[%s8167_s23 + $0x10e8] sm:$0xff]  ;;  %v951_v11 = vld [vmem:[%s8167_s23 + $0x10f8] sm:$0xff] }
 0x202   : > { %v1913_v28 = vadd.s32 %v1657_v10, %v8192_v5  ;;  %v947_v10 = vld [vmem:[%s8167_s23 + $0x10d8] sm:$0xff]  ;;  %vm2172_vm6 = vcmp.lt.s32.totalorder %v1916_v61, 2176  ;;  %v6235_v20 = vpack.c.bf16 %v949_v9, %v945_v6  ;;  %v7012_v52 = vpack.c.bf16 %v958_v43, %v954_v41  ;;  %v960_v54 = vld [vmem:[%s8167_s23 + $0x1140] sm:$0xff]  ;;  %v969_v61 = vld [vmem:[%s8167_s23 + $0x1188] sm:$0xff] }
 0x203   : > { %6198 = vmatpush1.bf16.msk.msra.mxu0 %vm9772_vm14, %v6196_v21  ;;  %6966 = vmatpush1.bf16.msk.msra.mxu1 %vm9772_vm14, %v6964_v22  ;;  %v920_v21 = vld [vmem:[%s8167_s23 + $0x1000] sm:$0xff]  ;;  %vm2168_vm14 = vcmp.lt.s32.totalorder %v1912_v15, 2176  ;;  %vm2173_vm7 = vcmp.lt.s32.totalorder %v1917_v42, 2176  ;;  %v1670_v6 = vadd.s32 1168, %v8196_v7  ;;  %v991_v41 = vld [vmem:[%s8167_s23 + $0x1238] sm:$0xff]  ;;  %v1674_v43 = vadd.s32 1200, %v8196_v7 }
 0x204   : > { %6201 = vmatprep.subr.msk.bf16.mxu0 %vm9797_vm1, %v6199_v27  ;;  %6969 = vmatprep.subr.msk.bf16.mxu1 %vm9797_vm1, %v6967_v35  ;;  %v924_v22 = vld [vmem:[%s8167_s23 + $0x1020] sm:$0xff]  ;;  %v926_v27 = vld [vmem:[%s8167_s23 + $0x1030] sm:$0xff]  ;;  %v929_v35 = vld [vmem:[%s8167_s23 + $0x1048] sm:$0xff]  ;;  %vm2169_vm0 = vcmp.lt.s32.totalorder %v1913_v28, 2176  ;;  %v1920_v28 = vadd.s32 %v1664_v12, %v8192_v5 }
 0x205   : > { %v6220_v37 = vpack.c.bf16 %v924_v22, %v920_v21  ;;  %v6223_v47 = vpack.c.bf16 %v933_v29, %v929_v35  ;;  %vm9936_vm3 = vmpackc.low %vm2169_vm0, %vm2168_vm14  ;;  %v7003_v21 = vpack.c.bf16 %v951_v11, %v947_v10  ;;  %v946_v22 = vld [vmem:[%s8167_s23 + $0x10d0] sm:$0xff]  ;;  %v959_v35 = vld [vmem:[%s8167_s23 + $0x1138] sm:$0xff]  ;;  %v1666_v29 = vadd.s32 1136, %v8196_v7 }
 0x206   : > { %vm2176_vm11 = vcmp.lt.s32.totalorder %v1920_v28, 2176  ;;  %v968_v10 = vld [vmem:[%s8167_s23 + $0x1180] sm:$0xff] }
 0x207   : > { %6204 = vmatpush1.bf16.msk.msra.mxu0 %vm9797_vm1, %v6202_v38  ;;  %6972 = vmatpush1.bf16.msk.msra.mxu1 %vm9797_vm1, %v6970_v39  ;;  %v6988_v38 = vpack.c.bf16 %v926_v27, %v922_v26  ;;  %vm2170_vm1 = vcmp.lt.s32.totalorder %v1914_v32, 2176  ;;  %v957_v26 = vld [vmem:[%s8167_s23 + $0x1128] sm:$0xff]  ;;  %v955_v27 = vld [vmem:[%s8167_s23 + $0x1118] sm:$0xff]  ;;  %v1922_v51 = vadd.s32 %v1666_v29, %v8192_v5  ;;  %v972_v11 = vld [vmem:[%s8167_s23 + $0x11a0] sm:$0xff]  ;;  %v1673_v29 = vadd.s32 1192, %v8196_v7 }
 0x208   : > { %6207 = vmatprep.subr.msk.bf16.mxu0 %vm9821_vm5, %v6205_v48  ;;  %6975 = vmatprep.subr.msk.bf16.mxu1 %vm9821_vm5, %v6973_v49  ;;  %v6991_v48 = vpack.c.bf16 %v935_v31, %v931_v30  ;;  %v930_v49 = vld [vmem:[%s8167_s23 + $0x1050] sm:$0xff]  ;;  %v7006_v31 = vpack.c.bf16 %v950_v23, %v946_v22  ;;  %v7009_v40 = vpack.c.bf16 %v959_v35, %v955_v27  ;;  %v983_v22 = vld [vmem:[%s8167_s23 + $0x11f8] sm:$0xff]  ;;  %v976_v35 = vld [vmem:[%s8167_s23 + $0x11c0] sm:$0xff] }
 0x209   : > { %vm2178_vm14 = vcmp.lt.s32.totalorder %v1922_v51, 2176  ;;  %v1926_v23 = vadd.s32 %v1670_v6, %v8192_v5  ;;  %v980_v28 = vld [vmem:[%s8167_s23 + $0x11e0] sm:$0xff]  ;;  %v978_v32 = vld [vmem:[%s8167_s23 + $0x11d0] sm:$0xff] }
 0x20a   : > { %v988_v51 = vld [vmem:[%s8167_s23 + $0x1220] sm:$0xff]  ;;  %v1006_v27 = vld [vmem:[%s8167_s23 + $0x12b0] sm:$0xff] }
 0x20b   : > { %6210 = vmatpush1.bf16.msk.msra.mxu0 %vm9821_vm5, %v6208_v58  ;;  %6978 = vmatpush1.bf16.msk.msra.mxu1 %vm9821_vm5, %v6976_v59  ;;  %v6994_v58 = vpack.c.bf16 %v934_v50, %v930_v49  ;;  %v936_v59 = vld [vmem:[%s8167_s23 + $0x1080] sm:$0xff]  ;;  %vm9965_vm5 = vmpackc.low %vm2171_vm4, %vm2170_vm1  ;;  %v963_v49 = vld [vmem:[%s8167_s23 + $0x1158] sm:$0xff] }
 0x20c   : > { %6213 = vmatprep.subr.msk.bf16.mxu0 %vm9847_vm8, %v6211_v0  ;;  %6981 = vmatprep.subr.msk.bf16.mxu1 %vm9847_vm8, %v6979_v4  ;;  %v938_v0 = vld [vmem:[%s8167_s23 + $0x1090] sm:$0xff]  ;;  %v6232_v14 = vpack.c.bf16 %v940_v60, %v936_v59  ;;  %v967_v50 = vld [vmem:[%s8167_s23 + $0x1178] sm:$0xff]  ;;  %v996_v6 = vld [vmem:[%s8167_s23 + $0x1260] sm:$0xff] }
 0x20d   : > { %v942_v4 = vld [vmem:[%s8167_s23 + $0x10b0] sm:$0xff] }
 0x20e   : > { %v7000_v15 = vpack.c.bf16 %v942_v4, %v938_v0  ;;  %v962_v59 = vld [vmem:[%s8167_s23 + $0x1150] sm:$0xff]  ;;  %v971_v0 = vld [vmem:[%s8167_s23 + $0x1198] sm:$0xff] }
 0x20f   : > { %6216 = vmatpush1.bf16.msk.msra.mxu0 %vm9847_vm8, %v6214_v18  ;;  %6984 = vmatpush1.bf16.msk.msra.mxu1 %vm9847_vm8, %v6982_v19  ;;  %v948_v18 = vld [vmem:[%s8167_s23 + $0x10e0] sm:$0xff]  ;;  %v1665_v19 = vadd.s32 1128, %v8196_v7  ;;  %vm9990_vm8 = vmpackc.low %vm2173_vm7, %vm2172_vm6  ;;  %v966_v60 = vld [vmem:[%s8167_s23 + $0x1170] sm:$0xff] }
 0x210   : > { %6219 = vmatprep.subr.msk.bf16.mxu0 %vm9876_vm10, %v6217_v24  ;;  %6987 = vmatprep.subr.msk.bf16.mxu1 %vm9876_vm10, %v6985_v25  ;;  %v953_v24 = vld [vmem:[%s8167_s23 + $0x1108] sm:$0xff]  ;;  %v1919_v25 = vadd.s32 %v1663_v8, %v8192_v5  ;;  %v6238_v30 = vpack.c.bf16 %v948_v18, %v944_v17  ;;  %v975_v4 = vld [vmem:[%s8167_s23 + $0x11b8] sm:$0xff]  ;;  %v7018_v8 = vpack.c.bf16 %v966_v60, %v962_v59 }
 0x211   : > { %v6241_v39 = vpack.c.bf16 %v957_v26, %v953_v24  ;;  %v977_v17 = vld [vmem:[%s8167_s23 + $0x11c8] sm:$0xff]  ;;  %v1672_v24 = vadd.s32 1184, %v8196_v7  ;;  %v999_v59 = vld [vmem:[%s8167_s23 + $0x1278] sm:$0xff]  ;;  %v1930_v60 = vadd.s32 %v1674_v43, %v8192_v5  ;;  %v1012_v43 = vld [vmem:[%s8167_s23 + $0x12e0] sm:$0xff] }
 0x212   : > { %5031 = vmatmul.mubr.msk.f32.vlgmr.msra.gmra.mrb[0].mxu0 %vm1473_vm13, %v9476_v46  ;;  %5559 = vmatmul.mubr.msk.f32.vlgmr.msra.gmra.mrb[0].mxu1 %vm1473_vm13, %v9476_v46  ;;  %v7015_v46 = vpack.c.bf16 %v967_v50, %v963_v49  ;;  %v984_v50 = vld [vmem:[%s8167_s23 + $0x1200] sm:$0xff]  ;;  %v1010_v49 = vld [vmem:[%s8167_s23 + $0x12d0] sm:$0xff] }
 0x213   : > { %6222 = vmatpush1.bf16.msk.msra.mxu0 %vm9876_vm10, %v6220_v37  ;;  %6990 = vmatpush1.bf16.msk.msra.mxu1 %vm9876_vm10, %v6988_v38  ;;  %v956_v37 = vld [vmem:[%s8167_s23 + $0x1120] sm:$0xff]  ;;  %v1667_v38 = vadd.s32 1144, %v8196_v7  ;;  %vm2175_vm10 = vcmp.lt.s32.totalorder %v1919_v25, 2176  ;;  %v6256_v25 = vpack.c.bf16 %v972_v11, %v968_v10  ;;  %v994_v10 = vld [vmem:[%s8167_s23 + $0x1250] sm:$0xff] }
 0x214   : > { %6225 = vmatprep.subr.msk.bf16.mxu0 %vm9904_vm15, %v6223_v47  ;;  %6993 = vmatprep.subr.msk.bf16.mxu1 %vm9904_vm15, %v6991_v48  ;;  %v1921_v47 = vadd.s32 %v1665_v19, %v8192_v5  ;;  %v965_v48 = vld [vmem:[%s8167_s23 + $0x1168] sm:$0xff]  ;;  %v6244_v2 = vpack.c.bf16 %v956_v37, %v952_v36  ;;  %vm10014_vm12 = vmpackc.low %vm2175_vm10, %vm2174_vm9  ;;  %v1671_v19 = vadd.s32 1176, %v8196_v7  ;;  %v982_v36 = vld [vmem:[%s8167_s23 + $0x11f0] sm:$0xff]  ;;  %vm2186_vm10 = vcmp.lt.s32.totalorder %v1930_v60, 2176 }
 0x215   : > { %5096 = vmatprep.mubr.msk.f32.mxu0 %vm1476_vm2, %v1495_v55  ;;  %5624 = vmatprep.mubr.msk.f32.mxu1 %vm1476_vm2, %v1495_v55  ;;  %v964_v55 = vld [vmem:[%s8167_s23 + $0x1160] sm:$0xff]  ;;  %v1923_v56 = vadd.s32 %v1667_v38, %v8192_v5  ;;  %v985_v37 = vld [vmem:[%s8167_s23 + $0x1208] sm:$0xff]  ;;  %v998_v11 = vld [vmem:[%s8167_s23 + $0x1270] sm:$0xff] }
 0x216   : > { %vm2177_vm13 = vcmp.lt.s32.totalorder %v1921_v47, 2176  ;;  %v6250_v42 = vpack.c.bf16 %v964_v55, %v960_v54  ;;  %v1927_v38 = vadd.s32 %v1671_v19, %v8192_v5  ;;  %v6262_v47 = vpack.c.bf16 %v980_v28, %v976_v35  ;;  %v986_v54 = vld [vmem:[%s8167_s23 + $0x1210] sm:$0xff]  ;;  %v1009_v35 = vld [vmem:[%s8167_s23 + $0x12c8] sm:$0xff]  ;;  %v1020_v60 = vld [vmem:[%s8167_s23 + $0x1320] sm:$0xff] }
 0x217   : > { %6228 = vmatpush1.bf16.msk.msra.mxu0 %vm9904_vm15, %v6226_v57  ;;  %6996 = vmatpush1.bf16.msk.msra.mxu1 %vm9904_vm15, %v6994_v58  ;;  %v1668_v57 = vadd.s32 1152, %v8196_v7  ;;  %v6247_v58 = vpack.c.bf16 %v965_v48, %v961_v44  ;;  %vm10039_vm15 = vmpackc.low %vm2177_vm13, %vm2176_vm11  ;;  %vm2179_vm0 = vcmp.lt.s32.totalorder %v1923_v56, 2176  ;;  %v1675_v44 = vadd.s32 1208, %v8196_v7  ;;  %v990_v55 = vld [vmem:[%s8167_s23 + $0x1230] sm:$0xff]  ;;  %v993_v56 = vld [vmem:[%s8167_s23 + $0x1248] sm:$0xff] }
 0x218   : > { %6231 = vmatprep.subr.msk.bf16.mxu0 %vm9936_vm3, %v6229_v62  ;;  %6999 = vmatprep.subr.msk.bf16.mxu1 %vm9936_vm3, %v6997_v63  ;;  %v1669_v62 = vadd.s32 1160, %v8196_v7  ;;  %v973_v63 = vld [vmem:[%s8167_s23 + $0x11a8] sm:$0xff]  ;;  %vm10066_vm1 = vmpackc.low %vm2179_vm0, %vm2178_vm14  ;;  %v7030_v48 = vpack.c.bf16 %v982_v36, %v978_v32  ;;  %vm2183_vm6 = vcmp.lt.s32.totalorder %v1927_v38, 2176  ;;  %v1015_v32 = vld [vmem:[%s8167_s23 + $0x12f8] sm:$0xff]  ;;  %v1680_v36 = vadd.s32 1248, %v8196_v7 }
 0x219   : > { %v1924_v1 = vadd.s32 %v1668_v57, %v8192_v5  ;;  %v6253_v12 = vpack.c.bf16 %v973_v63, %v969_v61  ;;  %v1929_v57 = vadd.s32 %v1673_v29, %v8192_v5  ;;  %v1931_v61 = vadd.s32 %v1675_v44, %v8192_v5 }
 0x21a   : > { %v1925_v18 = vadd.s32 %v1669_v62, %v8192_v5  ;;  %v6268_v62 = vpack.c.bf16 %v988_v51, %v984_v50  ;;  %v7036_v63 = vpack.c.bf16 %v990_v55, %v986_v54  ;;  %v1679_v29 = vadd.s32 1240, %v8196_v7  ;;  %v1014_v50 = vld [vmem:[%s8167_s23 + $0x12f0] sm:$0xff]  ;;  %v1017_v51 = vld [vmem:[%s8167_s23 + $0x1308] sm:$0xff]  ;;  %v1023_v54 = vld [vmem:[%s8167_s23 + $0x1338] sm:$0xff] }
 0x21b   : > { %6234 = vmatpush1.bf16.msk.msra.mxu0 %vm9936_vm3, %v6232_v14  ;;  %7002 = vmatpush1.bf16.msk.msra.mxu1 %vm9936_vm3, %v7000_v15  ;;  %v7021_v14 = vpack.c.bf16 %v975_v4, %v971_v0  ;;  %v970_v15 = vld [vmem:[%s8167_s23 + $0x1190] sm:$0xff]  ;;  %vm2180_vm2 = vcmp.lt.s32.totalorder %v1924_v1, 2176  ;;  %v992_v4 = vld [vmem:[%s8167_s23 + $0x1240] sm:$0xff]  ;;  %v1001_v1 = vld [vmem:[%s8167_s23 + $0x1288] sm:$0xff]  ;;  %vm2185_vm9 = vcmp.lt.s32.totalorder %v1929_v57, 2176  ;;  %vm2187_vm11 = vcmp.lt.s32.totalorder %v1931_v61, 2176 }
 0x21c   : > { %6237 = vmatprep.subr.msk.bf16.mxu0 %vm9965_vm5, %v6235_v20  ;;  %7005 = vmatprep.subr.msk.bf16.mxu1 %vm9965_vm5, %v7003_v21  ;;  %v981_v20 = vld [vmem:[%s8167_s23 + $0x11e8] sm:$0xff]  ;;  %v979_v21 = vld [vmem:[%s8167_s23 + $0x11d8] sm:$0xff]  ;;  %v7024_v26 = vpack.c.bf16 %v974_v16, %v970_v15  ;;  %vm2181_vm3 = vcmp.lt.s32.totalorder %v1925_v18, 2176  ;;  %v7042_v18 = vpack.c.bf16 %v998_v11, %v994_v10  ;;  %vm10167_vm13 = vmpackc.low %vm2187_vm11, %vm2186_vm10  ;;  %v1936_v55 = vadd.s32 %v1680_v36, %v8192_v5 }
 0x21d   : > { %vm10091_vm4 = vmpackc.low %vm2181_vm3, %vm2180_vm2  ;;  %v1003_v15 = vld [vmem:[%s8167_s23 + $0x1298] sm:$0xff]  ;;  %v1682_v61 = vadd.s32 1264, %v8196_v7  ;;  %v1018_v0 = vld [vmem:[%s8167_s23 + $0x1310] sm:$0xff] }
 0x21e   : > { %v1007_v16 = vld [vmem:[%s8167_s23 + $0x12b8] sm:$0xff]  ;;  %vm2192_vm3 = vcmp.lt.s32.totalorder %v1936_v55, 2176  ;;  %v1036_v36 = vld [vmem:[%s8167_s23 + $0x13a0] sm:$0xff] }
 0x21f   : > { %6240 = vmatpush1.bf16.msk.msra.mxu0 %vm9965_vm5, %v6238_v30  ;;  %7008 = vmatpush1.bf16.msk.msra.mxu1 %vm9965_vm5, %v7006_v31  ;;  %v6259_v30 = vpack.c.bf16 %v981_v20, %v977_v17  ;;  %v7027_v31 = vpack.c.bf16 %v983_v22, %v979_v21  ;;  %vm2182_vm5 = vcmp.lt.s32.totalorder %v1926_v23, 2176  ;;  %v6274_v17 = vpack.c.bf16 %v996_v6, %v992_v4  ;;  %v1000_v20 = vld [vmem:[%s8167_s23 + $0x1280] sm:$0xff]  ;;  %v1022_v4 = vld [vmem:[%s8167_s23 + $0x1330] sm:$0xff]  ;;  %v1025_v6 = vld [vmem:[%s8167_s23 + $0x1348] sm:$0xff] }
 0x220   : > { %6243 = vmatprep.subr.msk.bf16.mxu0 %vm9990_vm8, %v6241_v39  ;;  %7011 = vmatprep.subr.msk.bf16.mxu1 %vm9990_vm8, %v7009_v40  ;;  %v989_v39 = vld [vmem:[%s8167_s23 + $0x1228] sm:$0xff]  ;;  %v987_v40 = vld [vmem:[%s8167_s23 + $0x1218] sm:$0xff]  ;;  %vm10116_vm7 = vmpackc.low %vm2183_vm6, %vm2182_vm5  ;;  %v1678_v23 = vadd.s32 1232, %v8196_v7 }
 0x221   : > { %v7033_v53 = vpack.c.bf16 %v991_v41, %v987_v40  ;;  %v1004_v21 = vld [vmem:[%s8167_s23 + $0x12a0] sm:$0xff]  ;;  %v1031_v10 = vld [vmem:[%s8167_s23 + $0x1378] sm:$0xff]  ;;  %v1034_v40 = vld [vmem:[%s8167_s23 + $0x1390] sm:$0xff] }
 0x222   : > { %v6280_v38 = vpack.c.bf16 %v1004_v21, %v1000_v20  ;;  %v1008_v41 = vld [vmem:[%s8167_s23 + $0x12c0] sm:$0xff]  ;;  %v1934_v44 = vadd.s32 %v1678_v23, %v8192_v5  ;;  %v1026_v20 = vld [vmem:[%s8167_s23 + $0x1350] sm:$0xff] }
 0x223   : > { %6246 = vmatpush1.bf16.msk.msra.mxu0 %vm9990_vm8, %v6244_v2  ;;  %7014 = vmatpush1.bf16.msk.msra.mxu1 %vm9990_vm8, %v7012_v52  ;;  %v1928_v2 = vadd.s32 %v1672_v24, %v8192_v5  ;;  %v6265_v52 = vpack.c.bf16 %v989_v39, %v985_v37  ;;  %v1681_v37 = vadd.s32 1256, %v8196_v7  ;;  %v6286_v57 = vpack.c.bf16 %v1012_v43, %v1008_v41  ;;  %v1030_v21 = vld [vmem:[%s8167_s23 + $0x1370] sm:$0xff]  ;;  %v1041_v43 = vld [vmem:[%s8167_s23 + $0x13c8] sm:$0xff]  ;;  %v1040_v55 = vld [vmem:[%s8167_s23 + $0x13c0] sm:$0xff] }
 0x224   : > { %6249 = vmatprep.subr.msk.bf16.mxu0 %vm10014_vm12, %v6247_v58  ;;  %7017 = vmatprep.subr.msk.bf16.mxu1 %vm10014_vm12, %v7015_v46  ;;  %v997_v58 = vld [vmem:[%s8167_s23 + $0x1268] sm:$0xff]  ;;  %v995_v46 = vld [vmem:[%s8167_s23 + $0x1258] sm:$0xff]  ;;  %v1038_v41 = vld [vmem:[%s8167_s23 + $0x13b0] sm:$0xff] }
 0x225   : > { %vm2184_vm8 = vcmp.lt.s32.totalorder %v1928_v2, 2176  ;;  %v7039_v9 = vpack.c.bf16 %v999_v59, %v995_v46  ;;  %v1935_v2 = vadd.s32 %v1679_v29, %v8192_v5  ;;  %v1016_v59 = vld [vmem:[%s8167_s23 + $0x1300] sm:$0xff] }
 0x226   : > { %v6292_v11 = vpack.c.bf16 %v1020_v60, %v1016_v59  ;;  %v1042_v59 = vld [vmem:[%s8167_s23 + $0x13d0] sm:$0xff] }
 0x227   : > { %6252 = vmatpush1.bf16.msk.msra.mxu0 %vm10014_vm12, %v6250_v42  ;;  %7020 = vmatpush1.bf16.msk.msra.mxu1 %vm10014_vm12, %v7018_v8  ;;  %v1676_v42 = vadd.s32 1216, %v8196_v7  ;;  %v6271_v8 = vpack.c.bf16 %v997_v58, %v993_v56  ;;  %vm10139_vm12 = vmpackc.low %vm2185_vm9, %vm2184_vm8  ;;  %v1937_v56 = vadd.s32 %v1681_v37, %v8192_v5  ;;  %v7054_v58 = vpack.c.bf16 %v1014_v50, %v1010_v49  ;;  %v1047_v49 = vld [vmem:[%s8167_s23 + $0x13f8] sm:$0xff]  ;;  %v1046_v60 = vld [vmem:[%s8167_s23 + $0x13f0] sm:$0xff] }
 0x228   : > { %6255 = vmatprep.subr.msk.bf16.mxu0 %vm10039_vm15, %v6253_v12  ;;  %7023 = vmatprep.subr.msk.bf16.mxu1 %vm10039_vm15, %v7021_v14  ;;  %v1677_v12 = vadd.s32 1224, %v8196_v7  ;;  %v1005_v14 = vld [vmem:[%s8167_s23 + $0x12a8] sm:$0xff]  ;;  %vm2191_vm2 = vcmp.lt.s32.totalorder %v1935_v2, 2176  ;;  %v1441_v50 = vadd.s32 1024, %v8412_v45 }
 0x229   : > { %v1932_v22 = vadd.s32 %v1676_v42, %v8192_v5  ;;  %v6277_v24 = vpack.c.bf16 %v1005_v14, %v1001_v1  ;;  %v1683_v42 = vadd.s32 1272, %v8196_v7  ;;  %v7060_v1 = vpack.c.bf16 %v1022_v4, %v1018_v0  ;;  %v1024_v14 = vld [vmem:[%s8167_s23 + $0x1340] sm:$0xff]  ;;  %v1051_v0 = vld [vmem:[%s8167_s23 + $0x1418] sm:$0xff] }
 0x22a   : > { %v1933_v28 = vadd.s32 %v1677_v12, %v8192_v5  ;;  %v1055_v4 = vld [vmem:[%s8167_s23 + $0x1438] sm:$0xff] }
 0x22b   : > { %6258 = vmatpush1.bf16.msk.msra.mxu0 %vm10039_vm15, %v6256_v25  ;;  %7026 = vmatpush1.bf16.msk.msra.mxu1 %vm10039_vm15, %v7024_v26  ;;  %v7045_v25 = vpack.c.bf16 %v1007_v16, %v1003_v15  ;;  %v1002_v26 = vld [vmem:[%s8167_s23 + $0x1290] sm:$0xff]  ;;  %vm2188_vm14 = vcmp.lt.s32.totalorder %v1932_v22, 2176  ;;  %v1028_v15 = vld [vmem:[%s8167_s23 + $0x1360] sm:$0xff]  ;;  %v1938_v16 = vadd.s32 %v1682_v61, %v8192_v5  ;;  %v1033_v22 = vld [vmem:[%s8167_s23 + $0x1388] sm:$0xff]  ;;  %v1939_v23 = vadd.s32 %v1683_v42, %v8192_v5 }
 0x22c   : > { %6261 = vmatprep.subr.msk.bf16.mxu0 %vm10066_vm1, %v6259_v30  ;;  %7029 = vmatprep.subr.msk.bf16.mxu1 %vm10066_vm1, %v7027_v31  ;;  %v1013_v30 = vld [vmem:[%s8167_s23 + $0x12e8] sm:$0xff]  ;;  %v1011_v31 = vld [vmem:[%s8167_s23 + $0x12d8] sm:$0xff]  ;;  %v7048_v39 = vpack.c.bf16 %v1006_v27, %v1002_v26  ;;  %vm2189_vm15 = vcmp.lt.s32.totalorder %v1933_v28, 2176  ;;  %v1687_v28 = vadd.s32 1304, %v8196_v7  ;;  %v6298_v29 = vpack.c.bf16 %v1028_v15, %v1024_v14 }
 0x22d   : > { %vm10192_vm0 = vmpackc.low %vm2189_vm15, %vm2188_vm14  ;;  %v1035_v26 = vld [vmem:[%s8167_s23 + $0x1398] sm:$0xff]  ;;  %vm2195_vm8 = vcmp.lt.s32.totalorder %v1939_v23, 2176  ;;  %v1049_v61 = vld [vmem:[%s8167_s23 + $0x1408] sm:$0xff]  ;;  %v1444_v42 = vadd.s32 1408, %v8412_v45  ;;  %v1690_v14 = vadd.s32 1328, %v8196_v7 }
 0x22e   : > { %v1039_v27 = vld [vmem:[%s8167_s23 + $0x13b8] sm:$0xff]  ;;  %v1943_v2 = vadd.s32 %v1687_v28, %v8192_v5 }
 0x22f   : > { %6264 = vmatpush1.bf16.msk.msra.mxu0 %vm10066_vm1, %v6262_v47  ;;  %7032 = vmatpush1.bf16.msk.msra.mxu1 %vm10066_vm1, %v7030_v48  ;;  %v6283_v47 = vpack.c.bf16 %v1013_v30, %v1009_v35  ;;  %v7051_v48 = vpack.c.bf16 %v1015_v32, %v1011_v31  ;;  %vm2190_vm1 = vcmp.lt.s32.totalorder %v1934_v44, 2176  ;;  %v1686_v35 = vadd.s32 1296, %v8196_v7  ;;  %v1032_v32 = vld [vmem:[%s8167_s23 + $0x1380] sm:$0xff]  ;;  %v1059_v23 = vld [vmem:[%s8167_s23 + $0x1458] sm:$0xff] }
 0x230   : > { %6267 = vmatprep.subr.msk.bf16.mxu0 %vm10091_vm4, %v6265_v52  ;;  %7035 = vmatprep.subr.msk.bf16.mxu1 %vm10091_vm4, %v7033_v53  ;;  %v1021_v52 = vld [vmem:[%s8167_s23 + $0x1328] sm:$0xff]  ;;  %v1019_v53 = vld [vmem:[%s8167_s23 + $0x1318] sm:$0xff]  ;;  %vm10215_vm5 = vmpackc.low %vm2191_vm2, %vm2190_vm1  ;;  %v7066_v30 = vpack.c.bf16 %v1030_v21, %v1026_v20  ;;  %v1691_v21 = vadd.s32 1336, %v8196_v7 }
 0x231   : > { %v1056_v31 = vld [vmem:[%s8167_s23 + $0x1440] sm:$0xff] }
 0x233   : > { %6270 = vmatpush1.bf16.msk.msra.mxu0 %vm10091_vm4, %v6268_v62  ;;  %7038 = vmatpush1.bf16.msk.msra.mxu1 %vm10091_vm4, %v7036_v63  ;;  %v6289_v62 = vpack.c.bf16 %v1021_v52, %v1017_v51  ;;  %v7057_v63 = vpack.c.bf16 %v1023_v54, %v1019_v53  ;;  %vm2193_vm4 = vcmp.lt.s32.totalorder %v1937_v56, 2176  ;;  %v1942_v51 = vadd.s32 %v1686_v35, %v8192_v5  ;;  %v1044_v56 = vld [vmem:[%s8167_s23 + $0x13e0] sm:$0xff] }
 0x234   : > { %6273 = vmatprep.subr.msk.bf16.mxu0 %vm10116_vm7, %v6271_v8  ;;  %7041 = vmatprep.subr.msk.bf16.mxu1 %vm10116_vm7, %v7039_v9  ;;  %v1029_v8 = vld [vmem:[%s8167_s23 + $0x1368] sm:$0xff]  ;;  %v1027_v9 = vld [vmem:[%s8167_s23 + $0x1358] sm:$0xff]  ;;  %vm10243_vm6 = vmpackc.low %vm2193_vm4, %vm2192_vm3  ;;  %v6304_v52 = vpack.c.bf16 %v1036_v36, %v1032_v32  ;;  %v7072_v53 = vpack.c.bf16 %v1038_v41, %v1034_v40  ;;  %v1462_v35 = vadd.s32 %v8192_v5, %v1444_v42 }
 0x235   : > { %v7063_v19 = vpack.c.bf16 %v1031_v10, %v1027_v9  ;;  %v7078_v9 = vpack.c.bf16 %v1046_v60, %v1042_v59  ;;  %v1060_v32 = vld [vmem:[%s8167_s23 + $0x1460] sm:$0xff]  ;;  %v1946_v36 = vadd.s32 %v1690_v14, %v8192_v5  ;;  %v1062_v40 = vld [vmem:[%s8167_s23 + $0x1470] sm:$0xff]  ;;  %v1065_v41 = vld [vmem:[%s8167_s23 + $0x1488] sm:$0xff]  ;;  %v1695_v60 = vadd.s32 1368, %v8196_v7 }
 0x236   : > { %vm1478_vm3 = vcmp.lt.s32.totalorder %v1462_v35, 2176  ;;  %v1068_v54 = vld [vmem:[%s8167_s23 + $0x14a0] sm:$0xff]  ;;  %v1073_v59 = vld [vmem:[%s8167_s23 + $0x14c8] sm:$0xff]  ;;  %v1696_v10 = vadd.s32 1376, %v8196_v7  ;;  %v1078_v14 = vld [vmem:[%s8167_s23 + $0x14f0] sm:$0xff] }
 0x237   : > { %6276 = vmatpush1.bf16.msk.msra.mxu0 %vm10116_vm7, %v6274_v17  ;;  %7044 = vmatpush1.bf16.msk.msra.mxu1 %vm10116_vm7, %v7042_v18  ;;  %v1684_v17 = vadd.s32 1280, %v8196_v7  ;;  %v6295_v18 = vpack.c.bf16 %v1029_v8, %v1025_v6  ;;  %vm2194_vm7 = vcmp.lt.s32.totalorder %v1938_v16, 2176  ;;  %v1459_v6 = vadd.s32 %v8192_v5, %v1441_v50  ;;  %v1072_v42 = vld [vmem:[%s8167_s23 + $0x14c0] sm:$0xff] }
 0x238   : > { %6279 = vmatprep.subr.msk.bf16.mxu0 %vm10139_vm12, %v6277_v24  ;;  %7047 = vmatprep.subr.msk.bf16.mxu1 %vm10139_vm12, %v7045_v25  ;;  %v1685_v24 = vadd.s32 1288, %v8196_v7  ;;  %v1037_v25 = vld [vmem:[%s8167_s23 + $0x13a8] sm:$0xff]  ;;  %vm10269_vm9 = vmpackc.low %vm2195_vm8, %vm2194_vm7  ;;  %v6310_v8 = vpack.c.bf16 %v1044_v56, %v1040_v55  ;;  %v7081_v16 = vpack.c.bf16 %v1055_v4, %v1051_v0  ;;  %v1694_v55 = vadd.s32 1360, %v8196_v7  ;;  %v1084_v35 = vld [vmem:[%s8167_s23 + $0x1520] sm:$0xff] }
 0x239   : > { %v1940_v37 = vadd.s32 %v1684_v17, %v8192_v5  ;;  %v1050_v17 = vld [vmem:[%s8167_s23 + $0x1410] sm:$0xff]  ;;  %vm1475_vm15 = vcmp.lt.s32.totalorder %v1459_v6, 2176 }
 0x23a   : > { %v1941_v44 = vadd.s32 %v1685_v24, %v8192_v5  ;;  %v1063_v24 = vld [vmem:[%s8167_s23 + $0x1478] sm:$0xff] }
 0x23b   : > { %6282 = vmatpush1.bf16.msk.msra.mxu0 %vm10139_vm12, %v6280_v38  ;;  %7050 = vmatpush1.bf16.msk.msra.mxu1 %vm10139_vm12, %v7048_v39  ;;  %v6301_v38 = vpack.c.bf16 %v1037_v25, %v1033_v22  ;;  %v7069_v39 = vpack.c.bf16 %v1039_v27, %v1035_v26  ;;  %vm2196_vm10 = vcmp.lt.s32.totalorder %v1940_v37, 2176  ;;  %vm2198_vm12 = vcmp.lt.s32.totalorder %v1942_v51, 2176  ;;  %v1061_v22 = vld [vmem:[%s8167_s23 + $0x1468] sm:$0xff] }
 0x23c   : > { %6285 = vmatprep.subr.msk.bf16.mxu0 %vm10167_vm13, %v6283_v47  ;;  %7053 = vmatprep.subr.msk.bf16.mxu1 %vm10167_vm13, %v7051_v48  ;;  %v1045_v47 = vld [vmem:[%s8167_s23 + $0x13e8] sm:$0xff]  ;;  %v1043_v48 = vld [vmem:[%s8167_s23 + $0x13d8] sm:$0xff]  ;;  %vm2197_vm11 = vcmp.lt.s32.totalorder %v1941_v44, 2176  ;;  %v1692_v25 = vadd.s32 1344, %v8196_v7  ;;  %v1693_v26 = vadd.s32 1352, %v8196_v7 }
 0x23d   : > { %v7075_v46 = vpack.c.bf16 %v1047_v49, %v1043_v48  ;;  %vm10294_vm14 = vmpackc.low %vm2197_vm11, %vm2196_vm10  ;;  %v10317_v27 = vld [vmem:[%s8159_s21 + $0x28] sm:$0xff]  ;;  %v1071_v48 = vld [vmem:[%s8167_s23 + $0x14b8] sm:$0xff] }
 0x23e   : > { %v1069_v44 = vld [vmem:[%s8167_s23 + $0x14a8] sm:$0xff]  ;;  %v1496_v49 = vcombine.high %v10317_v27, %v10317_v27  ;;  %v1948_v50 = vadd.s32 %v1692_v25, %v8192_v5  ;;  %v1949_v51 = vadd.s32 %v1693_v26, %v8192_v5  ;;  %v1080_v26 = vld [vmem:[%s8167_s23 + $0x1500] sm:$0xff]  ;;  %v1106_v25 = vld [vmem:[%s8167_s23 + $0x15d0] sm:$0xff] }
 0x23f   : > { %6288 = vmatpush1.bf16.msk.msra.mxu0 %vm10167_vm13, %v6286_v57  ;;  %7056 = vmatpush1.bf16.msk.msra.mxu1 %vm10167_vm13, %v7054_v58  ;;  %v1688_v57 = vadd.s32 1312, %v8196_v7  ;;  %v6307_v58 = vpack.c.bf16 %v1045_v47, %v1041_v43  ;;  %vm2199_vm13 = vcmp.lt.s32.totalorder %v1943_v2, 2176  ;;  %v1947_v43 = vadd.s32 %v1691_v21, %v8192_v5  ;;  %v1067_v47 = vld [vmem:[%s8167_s23 + $0x1498] sm:$0xff] }
 0x240   : > { %6291 = vmatprep.subr.msk.bf16.mxu0 %vm10192_vm0, %v6289_v62  ;;  %7059 = vmatprep.subr.msk.bf16.mxu1 %vm10192_vm0, %v7057_v63  ;;  %v1689_v62 = vadd.s32 1320, %v8196_v7  ;;  %v1053_v63 = vld [vmem:[%s8167_s23 + $0x1428] sm:$0xff]  ;;  %v6322_v2 = vpack.c.bf16 %v1060_v32, %v1056_v31  ;;  %v6325_v56 = vpack.c.bf16 %v1069_v44, %v1065_v41  ;;  %vm2204_vm7 = vcmp.lt.s32.totalorder %v1948_v50, 2176  ;;  %v1082_v31 = vld [vmem:[%s8167_s23 + $0x1510] sm:$0xff]  ;;  %v1092_v50 = vld [vmem:[%s8167_s23 + $0x1560] sm:$0xff] }
 0x241   : > { %v1944_v12 = vadd.s32 %v1688_v57, %v8192_v5  ;;  %v6313_v15 = vpack.c.bf16 %v1053_v63, %v1049_v61  ;;  %v7093_v57 = vpack.c.bf16 %v1071_v48, %v1067_v47  ;;  %v1077_v61 = vld [vmem:[%s8167_s23 + $0x14e8] sm:$0xff]  ;;  %v1079_v63 = vld [vmem:[%s8167_s23 + $0x14f8] sm:$0xff]  ;;  %vm2205_vm8 = vcmp.lt.s32.totalorder %v1949_v51, 2176  ;;  %v1086_v32 = vld [vmem:[%s8167_s23 + $0x1530] sm:$0xff] }
 0x242   : > { %v1945_v20 = vadd.s32 %v1689_v62, %v8192_v5  ;;  %v1075_v62 = vld [vmem:[%s8167_s23 + $0x14d8] sm:$0xff]  ;;  %v1698_v21 = vadd.s32 1392, %v8196_v7  ;;  %vm10411_vm10 = vmpackc.low %vm2205_vm8, %vm2204_vm7  ;;  %v6340_v44 = vpack.c.bf16 %v1084_v35, %v1080_v26  ;;  %v7108_v47 = vpack.c.bf16 %v1086_v32, %v1082_v31  ;;  %v1110_v26 = vld [vmem:[%s8167_s23 + $0x15f0] sm:$0xff] }
 0x243   : > { %6294 = vmatpush1.bf16.msk.msra.mxu0 %vm10192_vm0, %v6292_v11  ;;  %7062 = vmatpush1.bf16.msk.msra.mxu1 %vm10192_vm0, %v7060_v1  ;;  %v1048_v11 = vld [vmem:[%s8167_s23 + $0x1400] sm:$0xff]  ;;  %vm10326_vm0 = vmpackc.low %vm2199_vm13, %vm2198_vm12  ;;  %vm2200_vm1 = vcmp.lt.s32.totalorder %v1944_v12, 2176  ;;  %v1074_v12 = vld [vmem:[%s8167_s23 + $0x14d0] sm:$0xff]  ;;  %v1700_v51 = vadd.s32 1408, %v8196_v7 }
 0x244   : > { %6297 = vmatprep.subr.msk.bf16.mxu0 %vm10215_vm5, %v6295_v18  ;;  %7065 = vmatprep.subr.msk.bf16.mxu1 %vm10215_vm5, %v7063_v19  ;;  %v1052_v1 = vld [vmem:[%s8167_s23 + $0x1420] sm:$0xff]  ;;  %v1054_v18 = vld [vmem:[%s8167_s23 + $0x1430] sm:$0xff]  ;;  %v1057_v19 = vld [vmem:[%s8167_s23 + $0x1448] sm:$0xff]  ;;  %vm2201_vm2 = vcmp.lt.s32.totalorder %v1945_v20, 2176  ;;  %v1954_v41 = vadd.s32 %v1698_v21, %v8192_v5 }
 0x245   : > { %v6316_v28 = vpack.c.bf16 %v1052_v1, %v1048_v11  ;;  %v6319_v37 = vpack.c.bf16 %v1061_v22, %v1057_v19  ;;  %vm10358_vm4 = vmpackc.low %vm2201_vm2, %vm2200_vm1  ;;  %v6331_v11 = vpack.c.bf16 %v1077_v61, %v1073_v59  ;;  %v7099_v1 = vpack.c.bf16 %v1079_v63, %v1075_v62  ;;  %v1083_v19 = vld [vmem:[%s8167_s23 + $0x1518] sm:$0xff]  ;;  %v1096_v61 = vld [vmem:[%s8167_s23 + $0x1580] sm:$0xff] }
 0x246   : > { %v1087_v20 = vld [vmem:[%s8167_s23 + $0x1538] sm:$0xff]  ;;  %v1699_v22 = vadd.s32 1400, %v8196_v7  ;;  %v1100_v62 = vld [vmem:[%s8167_s23 + $0x15a0] sm:$0xff]  ;;  %v1956_v63 = vadd.s32 %v1700_v51, %v8192_v5  ;;  %v1113_v35 = vld [vmem:[%s8167_s23 + $0x1608] sm:$0xff]  ;;  %v1707_v51 = vadd.s32 1464, %v8196_v7 }
 0x247   : > { %6300 = vmatpush1.bf16.msk.msra.mxu0 %vm10215_vm5, %v6298_v29  ;;  %7068 = vmatpush1.bf16.msk.msra.mxu1 %vm10215_vm5, %v7066_v30  ;;  %v7084_v29 = vpack.c.bf16 %v1054_v18, %v1050_v17  ;;  %vm2202_vm5 = vcmp.lt.s32.totalorder %v1946_v36, 2176  ;;  %v1697_v17 = vadd.s32 1384, %v8196_v7  ;;  %v1085_v18 = vld [vmem:[%s8167_s23 + $0x1528] sm:$0xff]  ;;  %v7105_v30 = vpack.c.bf16 %v1087_v20, %v1083_v19  ;;  %v1104_v20 = vld [vmem:[%s8167_s23 + $0x15c0] sm:$0xff]  ;;  %v1119_v31 = vld [vmem:[%s8167_s23 + $0x1638] sm:$0xff] }
 0x248   : > { %6303 = vmatprep.subr.msk.bf16.mxu0 %vm10243_vm6, %v6301_v38  ;;  %7071 = vmatprep.subr.msk.bf16.mxu1 %vm10243_vm6, %v7069_v39  ;;  %v7087_v38 = vpack.c.bf16 %v1063_v24, %v1059_v23  ;;  %v1058_v39 = vld [vmem:[%s8167_s23 + $0x1450] sm:$0xff]  ;;  %v7102_v24 = vpack.c.bf16 %v1078_v14, %v1074_v12  ;;  %v1089_v36 = vld [vmem:[%s8167_s23 + $0x1548] sm:$0xff]  ;;  %v1107_v12 = vld [vmem:[%s8167_s23 + $0x15d8] sm:$0xff] }
 0x249   : > { %v1111_v14 = vld [vmem:[%s8167_s23 + $0x15f8] sm:$0xff]  ;;  %v1108_v21 = vld [vmem:[%s8167_s23 + $0x15e0] sm:$0xff]  ;;  %v1114_v48 = vld [vmem:[%s8167_s23 + $0x1610] sm:$0xff] }
 0x24a   : > { %v1130_v19 = vld [vmem:[%s8167_s23 + $0x1690] sm:$0xff] }
 0x24b   : > { %6306 = vmatpush1.bf16.msk.msra.mxu0 %vm10243_vm6, %v6304_v52  ;;  %7074 = vmatpush1.bf16.msk.msra.mxu1 %vm10243_vm6, %v7072_v53  ;;  %v7090_v52 = vpack.c.bf16 %v1062_v40, %v1058_v39  ;;  %v1064_v53 = vld [vmem:[%s8167_s23 + $0x1480] sm:$0xff]  ;;  %vm2203_vm6 = vcmp.lt.s32.totalorder %v1947_v43, 2176  ;;  %v1091_v39 = vld [vmem:[%s8167_s23 + $0x1558] sm:$0xff]  ;;  %v1955_v43 = vadd.s32 %v1699_v22, %v8192_v5 }
 0x24c   : > { %6309 = vmatprep.subr.msk.bf16.mxu0 %vm10269_vm9, %v6307_v58  ;;  %7077 = vmatprep.subr.msk.bf16.mxu1 %vm10269_vm9, %v7075_v46  ;;  %v1066_v58 = vld [vmem:[%s8167_s23 + $0x1490] sm:$0xff]  ;;  %v6328_v0 = vpack.c.bf16 %v1068_v54, %v1064_v53  ;;  %v1095_v40 = vld [vmem:[%s8167_s23 + $0x1578] sm:$0xff]  ;;  %v1097_v54 = vld [vmem:[%s8167_s23 + $0x1588] sm:$0xff] }
 0x24d   : > { %v1070_v46 = vld [vmem:[%s8167_s23 + $0x14b0] sm:$0xff]  ;;  %vm2211_vm1 = vcmp.lt.s32.totalorder %v1955_v43, 2176  ;;  %v1706_v43 = vadd.s32 1456, %v8196_v7 }
 0x24e   : > { %v7096_v4 = vpack.c.bf16 %v1070_v46, %v1066_v58  ;;  %v1094_v53 = vld [vmem:[%s8167_s23 + $0x1570] sm:$0xff]  ;;  %v1103_v58 = vld [vmem:[%s8167_s23 + $0x15b8] sm:$0xff] }
 0x24f   : > { %6312 = vmatpush1.bf16.msk.msra.mxu0 %vm10269_vm9, %v6310_v8  ;;  %7080 = vmatpush1.bf16.msk.msra.mxu1 %vm10269_vm9, %v7078_v9  ;;  %vm10383_vm9 = vmpackc.low %vm2203_vm6, %vm2202_vm5  ;;  %v1076_v8 = vld [vmem:[%s8167_s23 + $0x14e0] sm:$0xff]  ;;  %v1950_v9 = vadd.s32 %v1694_v55, %v8192_v5  ;;  %v1701_v55 = vadd.s32 1416, %v8196_v7 }
 0x250   : > { %6315 = vmatprep.subr.msk.bf16.mxu0 %vm10294_vm14, %v6313_v15  ;;  %7083 = vmatprep.subr.msk.bf16.mxu1 %vm10294_vm14, %v7081_v16  ;;  %v1081_v15 = vld [vmem:[%s8167_s23 + $0x1508] sm:$0xff]  ;;  %v1951_v16 = vadd.s32 %v1695_v60, %v8192_v5  ;;  %v6334_v23 = vpack.c.bf16 %v1076_v8, %v1072_v42  ;;  %v1098_v42 = vld [vmem:[%s8167_s23 + $0x1590] sm:$0xff] }
 0x251   : > { %vm2206_vm11 = vcmp.lt.s32.totalorder %v1950_v9, 2176  ;;  %v1102_v8 = vld [vmem:[%s8167_s23 + $0x15b0] sm:$0xff]  ;;  %v1105_v9 = vld [vmem:[%s8167_s23 + $0x15c8] sm:$0xff] }
 0x252   : > { %5097 = vmatmul.mubr.msk.f32.vlgmr.msra.gmra.mrb[0].mxu0 %vm1475_vm15, %v9896_v34  ;;  %5625 = vmatmul.mubr.msk.f32.vlgmr.msra.gmra.mrb[0].mxu1 %vm1475_vm15, %v9896_v34  ;;  %vm2207_vm12 = vcmp.lt.s32.totalorder %v1951_v16, 2176  ;;  %v1090_v34 = vld [vmem:[%s8167_s23 + $0x1550] sm:$0xff]  ;;  %v1705_v16 = vadd.s32 1448, %v8196_v7 }
 0x253   : > { %6318 = vmatpush1.bf16.msk.msra.mxu0 %vm10294_vm14, %v6316_v28  ;;  %7086 = vmatpush1.bf16.msk.msra.mxu1 %vm10294_vm14, %v7084_v29  ;;  %v1952_v28 = vadd.s32 %v1696_v10, %v8192_v5  ;;  %v6337_v29 = vpack.c.bf16 %v1085_v18, %v1081_v15  ;;  %vm10436_vm13 = vmpackc.low %vm2207_vm12, %vm2206_vm11  ;;  %v7114_v59 = vpack.c.bf16 %v1094_v53, %v1090_v34  ;;  %v1704_v15 = vadd.s32 1440, %v8196_v7  ;;  %v1127_v34 = vld [vmem:[%s8167_s23 + $0x1678] sm:$0xff] }
 0x254   : > { %6321 = vmatprep.subr.msk.bf16.mxu0 %vm10326_vm0, %v6319_v37  ;;  %7089 = vmatprep.subr.msk.bf16.mxu1 %vm10326_vm0, %v7087_v38  ;;  %v1953_v37 = vadd.s32 %v1697_v17, %v8192_v5  ;;  %v1093_v38 = vld [vmem:[%s8167_s23 + $0x1568] sm:$0xff]  ;;  %v1957_v10 = vadd.s32 %v1701_v55, %v8192_v5  ;;  %v6352_v17 = vpack.c.bf16 %v1100_v62, %v1096_v61  ;;  %v1122_v61 = vld [vmem:[%s8167_s23 + $0x1650] sm:$0xff] }
 0x255   : > { %5162 = vmatprep.mubr.msk.f32.mxu0 %vm1478_vm3, %v1496_v49  ;;  %5690 = vmatprep.mubr.msk.f32.mxu1 %vm1478_vm3, %v1496_v49  ;;  %v1088_v49 = vld [vmem:[%s8167_s23 + $0x1540] sm:$0xff]  ;;  %vm2208_vm14 = vcmp.lt.s32.totalorder %v1952_v28, 2176  ;;  %v7120_v18 = vpack.c.bf16 %v1102_v8, %v1098_v42  ;;  %v1960_v32 = vadd.s32 %v1704_v15, %v8192_v5  ;;  %v1126_v62 = vld [vmem:[%s8167_s23 + $0x1670] sm:$0xff]  ;;  %v1131_v42 = vld [vmem:[%s8167_s23 + $0x1698] sm:$0xff] }
 0x256   : > { %vm2209_vm15 = vcmp.lt.s32.totalorder %v1953_v37, 2176  ;;  %v6346_v46 = vpack.c.bf16 %v1092_v50, %v1088_v49  ;;  %vm2213_vm5 = vcmp.lt.s32.totalorder %v1957_v10, 2176  ;;  %v6358_v37 = vpack.c.bf16 %v1108_v21, %v1104_v20  ;;  %v1118_v49 = vld [vmem:[%s8167_s23 + $0x1630] sm:$0xff]  ;;  %v1121_v50 = vld [vmem:[%s8167_s23 + $0x1648] sm:$0xff]  ;;  %v1135_v8 = vld [vmem:[%s8167_s23 + $0x16b8] sm:$0xff] }
 0x257   : > { %6324 = vmatpush1.bf16.msk.msra.mxu0 %vm10326_vm0, %v6322_v2  ;;  %7092 = vmatpush1.bf16.msk.msra.mxu1 %vm10326_vm0, %v7090_v52  ;;  %v6343_v2 = vpack.c.bf16 %v1093_v38, %v1089_v36  ;;  %v7111_v52 = vpack.c.bf16 %v1095_v40, %v1091_v39  ;;  %vm2210_vm0 = vcmp.lt.s32.totalorder %v1954_v41, 2176  ;;  %vm10459_vm2 = vmpackc.low %vm2209_vm15, %vm2208_vm14  ;;  %v1961_v36 = vadd.s32 %v1705_v16, %v8192_v5  ;;  %v1112_v40 = vld [vmem:[%s8167_s23 + $0x1600] sm:$0xff]  ;;  %v1134_v20 = vld [vmem:[%s8167_s23 + $0x16b0] sm:$0xff] }
 0x258   : > { %6327 = vmatprep.subr.msk.bf16.mxu0 %vm10358_vm4, %v6325_v56  ;;  %7095 = vmatprep.subr.msk.bf16.mxu1 %vm10358_vm4, %v7093_v57  ;;  %v1101_v56 = vld [vmem:[%s8167_s23 + $0x15a8] sm:$0xff]  ;;  %v1099_v57 = vld [vmem:[%s8167_s23 + $0x1598] sm:$0xff]  ;;  %vm10487_vm3 = vmpackc.low %vm2211_vm1, %vm2210_vm0  ;;  %v7126_v38 = vpack.c.bf16 %v1110_v26, %v1106_v25  ;;  %v1711_v10 = vadd.s32 1496, %v8196_v7 }
 0x259   : > { %v7117_v6 = vpack.c.bf16 %v1103_v58, %v1099_v57  ;;  %v1116_v41 = vld [vmem:[%s8167_s23 + $0x1620] sm:$0xff]  ;;  %v1962_v58 = vadd.s32 %v1706_v43, %v8192_v5  ;;  %v1137_v21 = vld [vmem:[%s8167_s23 + $0x16c8] sm:$0xff]  ;;  %v1143_v25 = vld [vmem:[%s8167_s23 + $0x16f8] sm:$0xff]  ;;  %v1713_v43 = vadd.s32 1512, %v8196_v7 }
 0x25a   : > { %v6364_v53 = vpack.c.bf16 %v1116_v41, %v1112_v40  ;;  %v1124_v57 = vld [vmem:[%s8167_s23 + $0x1660] sm:$0xff]  ;;  %v1138_v39 = vld [vmem:[%s8167_s23 + $0x16d0] sm:$0xff]  ;;  %v1145_v41 = vld [vmem:[%s8167_s23 + $0x1708] sm:$0xff] }
 0x25b   : > { %6330 = vmatpush1.bf16.msk.msra.mxu0 %vm10358_vm4, %v6328_v0  ;;  %7098 = vmatpush1.bf16.msk.msra.mxu1 %vm10358_vm4, %v7096_v4  ;;  %v1702_v0 = vadd.s32 1424, %v8196_v7  ;;  %v6349_v4 = vpack.c.bf16 %v1101_v56, %v1097_v54  ;;  %vm2212_vm4 = vcmp.lt.s32.totalorder %v1956_v63, 2176  ;;  %v7132_v54 = vpack.c.bf16 %v1118_v49, %v1114_v48  ;;  %v1120_v56 = vld [vmem:[%s8167_s23 + $0x1640] sm:$0xff]  ;;  %v1129_v63 = vld [vmem:[%s8167_s23 + $0x1688] sm:$0xff]  ;;  %v1142_v40 = vld [vmem:[%s8167_s23 + $0x16f0] sm:$0xff] }
 0x25c   : > { %6333 = vmatprep.subr.msk.bf16.mxu0 %vm10383_vm9, %v6331_v11  ;;  %7101 = vmatprep.subr.msk.bf16.mxu1 %vm10383_vm9, %v7099_v1  ;;  %v1703_v11 = vadd.s32 1432, %v8196_v7  ;;  %v1109_v1 = vld [vmem:[%s8167_s23 + $0x15e8] sm:$0xff]  ;;  %vm10512_vm6 = vmpackc.low %vm2213_vm5, %vm2212_vm4  ;;  %v1132_v15 = vld [vmem:[%s8167_s23 + $0x16a0] sm:$0xff] }
 0x25d   : > { %v1958_v22 = vadd.s32 %v1702_v0, %v8192_v5  ;;  %v1963_v0 = vadd.s32 %v1707_v51, %v8192_v5  ;;  %v1151_v48 = vld [vmem:[%s8167_s23 + $0x1738] sm:$0xff] }
 0x25e   : > { %v1959_v28 = vadd.s32 %v1703_v11, %v8192_v5  ;;  %v6370_v11 = vpack.c.bf16 %v1124_v57, %v1120_v56  ;;  %v1146_v56 = vld [vmem:[%s8167_s23 + $0x1710] sm:$0xff] }
 0x25f   : > { %6336 = vmatpush1.bf16.msk.msra.mxu0 %vm10383_vm9, %v6334_v23  ;;  %7104 = vmatpush1.bf16.msk.msra.mxu1 %vm10383_vm9, %v7102_v24  ;;  %v6355_v23 = vpack.c.bf16 %v1109_v1, %v1105_v9  ;;  %v7123_v24 = vpack.c.bf16 %v1111_v14, %v1107_v12  ;;  %vm2214_vm7 = vcmp.lt.s32.totalorder %v1958_v22, 2176  ;;  %vm2216_vm9 = vcmp.lt.s32.totalorder %v1960_v32, 2176  ;;  %v1128_v14 = vld [vmem:[%s8167_s23 + $0x1680] sm:$0xff]  ;;  %v1150_v57 = vld [vmem:[%s8167_s23 + $0x1730] sm:$0xff] }
 0x260   : > { %6339 = vmatprep.subr.msk.bf16.mxu0 %vm10411_vm10, %v6337_v29  ;;  %7107 = vmatprep.subr.msk.bf16.mxu1 %vm10411_vm10, %v7105_v30  ;;  %v1117_v29 = vld [vmem:[%s8167_s23 + $0x1628] sm:$0xff]  ;;  %v1115_v30 = vld [vmem:[%s8167_s23 + $0x1618] sm:$0xff]  ;;  %vm2215_vm8 = vcmp.lt.s32.totalorder %v1959_v28, 2176  ;;  %v1710_v9 = vadd.s32 1488, %v8196_v7  ;;  %v7138_v1 = vpack.c.bf16 %v1126_v62, %v1122_v61  ;;  %vm2219_vm14 = vcmp.lt.s32.totalorder %v1963_v0, 2176  ;;  %v1140_v32 = vld [vmem:[%s8167_s23 + $0x16e0] sm:$0xff] }
 0x261   : > { %vm10535_vm11 = vmpackc.low %vm2215_vm8, %vm2214_vm7  ;;  %v6376_v28 = vpack.c.bf16 %v1132_v15, %v1128_v14  ;;  %v1155_v61 = vld [vmem:[%s8167_s23 + $0x1758] sm:$0xff]  ;;  %v1717_v0 = vadd.s32 1544, %v8196_v7  ;;  %v1154_v12 = vld [vmem:[%s8167_s23 + $0x1750] sm:$0xff] }
 0x262   : > { %v1966_v26 = vadd.s32 %v1710_v9, %v8192_v5  ;;  %v1159_v62 = vld [vmem:[%s8167_s23 + $0x1778] sm:$0xff]  ;;  %v1156_v9 = vld [vmem:[%s8167_s23 + $0x1760] sm:$0xff]  ;;  %v1158_v14 = vld [vmem:[%s8167_s23 + $0x1770] sm:$0xff] }
 0x263   : > { %6342 = vmatpush1.bf16.msk.msra.mxu0 %vm10411_vm10, %v6340_v44  ;;  %7110 = vmatpush1.bf16.msk.msra.mxu1 %vm10411_vm10, %v7108_v47  ;;  %v6361_v44 = vpack.c.bf16 %v1117_v29, %v1113_v35  ;;  %v7129_v47 = vpack.c.bf16 %v1119_v31, %v1115_v30  ;;  %vm2217_vm10 = vcmp.lt.s32.totalorder %v1961_v36, 2176  ;;  %v1967_v35 = vadd.s32 %v1711_v10, %v8192_v5  ;;  %v1136_v31 = vld [vmem:[%s8167_s23 + $0x16c0] sm:$0xff]  ;;  %v1161_v15 = vld [vmem:[%s8167_s23 + $0x1788] sm:$0xff]  ;;  %v1162_v30 = vld [vmem:[%s8167_s23 + $0x1790] sm:$0xff] }
 0x264   : > { %6345 = vmatprep.subr.msk.bf16.mxu0 %vm10436_vm13, %v6343_v2  ;;  %7113 = vmatprep.subr.msk.bf16.mxu1 %vm10436_vm13, %v7111_v52  ;;  %v1125_v2 = vld [vmem:[%s8167_s23 + $0x1668] sm:$0xff]  ;;  %v1123_v52 = vld [vmem:[%s8167_s23 + $0x1658] sm:$0xff]  ;;  %vm10563_vm12 = vmpackc.low %vm2217_vm10, %vm2216_vm9  ;;  %v7144_v29 = vpack.c.bf16 %v1134_v20, %v1130_v19  ;;  %v1712_v36 = vadd.s32 1504, %v8196_v7  ;;  %v6382_v49 = vpack.c.bf16 %v1140_v32, %v1136_v31 }
 0x265   : > { %v7135_v60 = vpack.c.bf16 %v1127_v34, %v1123_v52  ;;  %v1148_v52 = vld [vmem:[%s8167_s23 + $0x1720] sm:$0xff]  ;;  %v1167_v19 = vld [vmem:[%s8167_s23 + $0x17b8] sm:$0xff]  ;;  %v1166_v31 = vld [vmem:[%s8167_s23 + $0x17b0] sm:$0xff] }
 0x266   : > { %v1968_v34 = vadd.s32 %v1712_v36, %v8192_v5  ;;  %v1169_v32 = vld [vmem:[%s8167_s23 + $0x17c8] sm:$0xff]  ;;  %v1719_v36 = vadd.s32 1560, %v8196_v7 }
 0x267   : > { %6348 = vmatpush1.bf16.msk.msra.mxu0 %vm10436_vm13, %v6346_v46  ;;  %7116 = vmatpush1.bf16.msk.msra.mxu1 %vm10436_vm13, %v7114_v59  ;;  %v1708_v46 = vadd.s32 1472, %v8196_v7  ;;  %v6367_v59 = vpack.c.bf16 %v1125_v2, %v1121_v50  ;;  %vm2218_vm13 = vcmp.lt.s32.totalorder %v1962_v58, 2176  ;;  %v7150_v50 = vpack.c.bf16 %v1142_v40, %v1138_v39  ;;  %v1144_v2 = vld [vmem:[%s8167_s23 + $0x1700] sm:$0xff]  ;;  %v1153_v58 = vld [vmem:[%s8167_s23 + $0x1748] sm:$0xff]  ;;  %v1175_v39 = vld [vmem:[%s8167_s23 + $0x17f8] sm:$0xff] }
 0x268   : > { %6351 = vmatprep.subr.msk.bf16.mxu0 %vm10459_vm2, %v6349_v4  ;;  %7119 = vmatprep.subr.msk.bf16.mxu1 %vm10459_vm2, %v7117_v6  ;;  %v1709_v4 = vadd.s32 1480, %v8196_v7  ;;  %v1133_v6 = vld [vmem:[%s8167_s23 + $0x16a8] sm:$0xff]  ;;  %vm10588_vm15 = vmpackc.low %vm2219_vm14, %vm2218_vm13  ;;  %v1443_v40 = vadd.s32 1280, %v8412_v45 }
 0x269   : > { %v1964_v16 = vadd.s32 %v1708_v46, %v8192_v5  ;;  %v1969_v46 = vadd.s32 %v1713_v43, %v8192_v5  ;;  %v7168_v43 = vpack.c.bf16 %v1166_v31, %v1162_v30  ;;  %v1190_v30 = vld [vmem:[%s8167_s23 + $0x1870] sm:$0xff]  ;;  %v1193_v31 = vld [vmem:[%s8167_s23 + $0x1888] sm:$0xff] }
 0x26a   : > { %v1965_v22 = vadd.s32 %v1709_v4, %v8192_v5  ;;  %v6388_v4 = vpack.c.bf16 %v1148_v52, %v1144_v2  ;;  %v1170_v52 = vld [vmem:[%s8167_s23 + $0x17d0] sm:$0xff] }
 0x26b   : > { %6354 = vmatpush1.bf16.msk.msra.mxu0 %vm10459_vm2, %v6352_v17  ;;  %7122 = vmatpush1.bf16.msk.msra.mxu1 %vm10459_vm2, %v7120_v18  ;;  %v6373_v17 = vpack.c.bf16 %v1133_v6, %v1129_v63  ;;  %v7141_v18 = vpack.c.bf16 %v1135_v8, %v1131_v42  ;;  %vm2220_vm0 = vcmp.lt.s32.totalorder %v1964_v16, 2176  ;;  %vm2222_vm2 = vcmp.lt.s32.totalorder %v1966_v26, 2176  ;;  %v1152_v8 = vld [vmem:[%s8167_s23 + $0x1740] sm:$0xff] }
 0x26c   : > { %6357 = vmatprep.subr.msk.bf16.mxu0 %vm10487_vm3, %v6355_v23  ;;  %7125 = vmatprep.subr.msk.bf16.mxu1 %vm10487_vm3, %v7123_v24  ;;  %v1141_v23 = vld [vmem:[%s8167_s23 + $0x16e8] sm:$0xff]  ;;  %v1139_v24 = vld [vmem:[%s8167_s23 + $0x16d8] sm:$0xff]  ;;  %vm2221_vm1 = vcmp.lt.s32.totalorder %v1965_v22, 2176  ;;  %v1716_v63 = vadd.s32 1536, %v8196_v7  ;;  %v7156_v6 = vpack.c.bf16 %v1150_v57, %v1146_v56  ;;  %vm2225_vm7 = vcmp.lt.s32.totalorder %v1969_v46, 2176  ;;  %v1164_v26 = vld [vmem:[%s8167_s23 + $0x17a0] sm:$0xff] }
 0x26d   : > { %vm10611_vm4 = vmpackc.low %vm2221_vm1, %vm2220_vm0  ;;  %v6394_v22 = vpack.c.bf16 %v1156_v9, %v1152_v8  ;;  %v1181_v56 = vld [vmem:[%s8167_s23 + $0x1828] sm:$0xff]  ;;  %v1179_v57 = vld [vmem:[%s8167_s23 + $0x1818] sm:$0xff]  ;;  %v1461_v46 = vadd.s32 %v8192_v5, %v1443_v40 }
 0x26e   : > { %v1972_v20 = vadd.s32 %v1716_v63, %v8192_v5 }
 0x26f   : > { %6360 = vmatpush1.bf16.msk.msra.mxu0 %vm10487_vm3, %v6358_v37  ;;  %7128 = vmatpush1.bf16.msk.msra.mxu1 %vm10487_vm3, %v7126_v38  ;;  %v6379_v37 = vpack.c.bf16 %v1141_v23, %v1137_v21  ;;  %v7147_v38 = vpack.c.bf16 %v1143_v25, %v1139_v24  ;;  %vm2223_vm3 = vcmp.lt.s32.totalorder %v1967_v35, 2176  ;;  %v1973_v21 = vadd.s32 %v1717_v0, %v8192_v5  ;;  %v1160_v25 = vld [vmem:[%s8167_s23 + $0x1780] sm:$0xff] }
 0x270   : > { %6363 = vmatprep.subr.msk.bf16.mxu0 %vm10512_vm6, %v6361_v44  ;;  %7131 = vmatprep.subr.msk.bf16.mxu1 %vm10512_vm6, %v7129_v47  ;;  %v1149_v44 = vld [vmem:[%s8167_s23 + $0x1728] sm:$0xff]  ;;  %v1147_v47 = vld [vmem:[%s8167_s23 + $0x1718] sm:$0xff]  ;;  %vm10639_vm5 = vmpackc.low %vm2223_vm3, %vm2222_vm2  ;;  %v7162_v23 = vpack.c.bf16 %v1158_v14, %v1154_v12  ;;  %v1718_v35 = vadd.s32 1552, %v8196_v7  ;;  %vm1477_vm1 = vcmp.lt.s32.totalorder %v1461_v46, 2176 }
 0x271   : > { %v7153_v55 = vpack.c.bf16 %v1151_v48, %v1147_v47  ;;  %v1168_v47 = vld [vmem:[%s8167_s23 + $0x17c0] sm:$0xff]  ;;  %v1189_v14 = vld [vmem:[%s8167_s23 + $0x1868] sm:$0xff] }
 0x272   : > { %v1172_v48 = vld [vmem:[%s8167_s23 + $0x17e0] sm:$0xff] }
 0x273   : > { %6366 = vmatpush1.bf16.msk.msra.mxu0 %vm10512_vm6, %v6364_v53  ;;  %7134 = vmatpush1.bf16.msk.msra.mxu1 %vm10512_vm6, %v7132_v54  ;;  %v1714_v53 = vadd.s32 1520, %v8196_v7  ;;  %v6385_v54 = vpack.c.bf16 %v1149_v44, %v1145_v41  ;;  %vm2224_vm6 = vcmp.lt.s32.totalorder %v1968_v34, 2176  ;;  %v6400_v41 = vpack.c.bf16 %v1164_v26, %v1160_v25  ;;  %v1174_v34 = vld [vmem:[%s8167_s23 + $0x17f0] sm:$0xff]  ;;  %v1184_v24 = vld [vmem:[%s8167_s23 + $0x1840] sm:$0xff] }
 0x274   : > { %6369 = vmatprep.subr.msk.bf16.mxu0 %vm10535_vm11, %v6367_v59  ;;  %7137 = vmatprep.subr.msk.bf16.mxu1 %vm10535_vm11, %v7135_v60  ;;  %v1715_v59 = vadd.s32 1528, %v8196_v7  ;;  %v1157_v60 = vld [vmem:[%s8167_s23 + $0x1768] sm:$0xff]  ;;  %vm10664_vm8 = vmpackc.low %vm2225_vm7, %vm2224_vm6  ;;  %v7174_v63 = vpack.c.bf16 %v1174_v34, %v1170_v52  ;;  %v1188_v25 = vld [vmem:[%s8167_s23 + $0x1860] sm:$0xff]  ;;  %v1724_v26 = vadd.s32 1600, %v8196_v7 }
 0x275   : > { %v1970_v10 = vadd.s32 %v1714_v53, %v8192_v5  ;;  %v1177_v53 = vld [vmem:[%s8167_s23 + $0x1808] sm:$0xff]  ;;  %v6418_v40 = vpack.c.bf16 %v1188_v25, %v1184_v24  ;;  %v1196_v44 = vld [vmem:[%s8167_s23 + $0x18a0] sm:$0xff]  ;;  %v1210_v24 = vld [vmem:[%s8167_s23 + $0x1910] sm:$0xff] }
 0x276   : > { %v1971_v16 = vadd.s32 %v1715_v59, %v8192_v5  ;;  %v1722_v59 = vadd.s32 1584, %v8196_v7  ;;  %v6409_v8 = vpack.c.bf16 %v1181_v56, %v1177_v53  ;;  %v1201_v52 = vld [vmem:[%s8167_s23 + $0x18c8] sm:$0xff]  ;;  %v1727_v53 = vadd.s32 1624, %v8196_v7  ;;  %v1207_v56 = vld [vmem:[%s8167_s23 + $0x18f8] sm:$0xff]  ;;  %v1214_v25 = vld [vmem:[%s8167_s23 + $0x1930] sm:$0xff] }
 0x277   : > { %6372 = vmatpush1.bf16.msk.msra.mxu0 %vm10535_vm11, %v6370_v11  ;;  %7140 = vmatpush1.bf16.msk.msra.mxu1 %vm10535_vm11, %v7138_v1  ;;  %v6391_v11 = vpack.c.bf16 %v1157_v60, %v1153_v58  ;;  %v7159_v1 = vpack.c.bf16 %v1159_v62, %v1155_v61  ;;  %vm2226_vm9 = vcmp.lt.s32.totalorder %v1970_v10, 2176  ;;  %vm2228_vm11 = vcmp.lt.s32.totalorder %v1972_v20, 2176  ;;  %v1183_v58 = vld [vmem:[%s8167_s23 + $0x1838] sm:$0xff]  ;;  %v1178_v10 = vld [vmem:[%s8167_s23 + $0x1810] sm:$0xff] }
 0x278   : > { %6375 = vmatprep.subr.msk.bf16.mxu0 %vm10563_vm12, %v6373_v17  ;;  %7143 = vmatprep.subr.msk.bf16.mxu1 %vm10563_vm12, %v7141_v18  ;;  %v1165_v17 = vld [vmem:[%s8167_s23 + $0x17a8] sm:$0xff]  ;;  %v1163_v18 = vld [vmem:[%s8167_s23 + $0x1798] sm:$0xff]  ;;  %vm2227_vm10 = vcmp.lt.s32.totalorder %v1971_v16, 2176  ;;  %v1723_v60 = vadd.s32 1592, %v8196_v7  ;;  %v1446_v61 = vadd.s32 1664, %v8412_v45  ;;  %v6406_v62 = vpack.c.bf16 %v1172_v48, %v1168_v47 }
 0x279   : > { %vm10688_vm13 = vmpackc.low %vm2227_vm10, %vm2226_vm9  ;;  %v7177_v9 = vpack.c.bf16 %v1183_v58, %v1179_v57  ;;  %v1191_v16 = vld [vmem:[%s8167_s23 + $0x1878] sm:$0xff]  ;;  %v1980_v47 = vadd.s32 %v1724_v26, %v8192_v5  ;;  %v1726_v48 = vadd.s32 1616, %v8196_v7  ;;  %v1728_v57 = vadd.s32 1632, %v8196_v7  ;;  %v1217_v26 = vld [vmem:[%s8167_s23 + $0x1948] sm:$0xff] }
 0x27a   : > { %v1464_v20 = vadd.s32 %v8192_v5, %v1446_v61  ;;  %v1729_v58 = vadd.s32 1640, %v8196_v7  ;;  %v1200_v61 = vld [vmem:[%s8167_s23 + $0x18c0] sm:$0xff] }
 0x27b   : > { %6378 = vmatpush1.bf16.msk.msra.mxu0 %vm10563_vm12, %v6376_v28  ;;  %7146 = vmatpush1.bf16.msk.msra.mxu1 %vm10563_vm12, %v7144_v29  ;;  %v6397_v28 = vpack.c.bf16 %v1165_v17, %v1161_v15  ;;  %v7165_v29 = vpack.c.bf16 %v1167_v19, %v1163_v18  ;;  %vm2229_vm12 = vcmp.lt.s32.totalorder %v1973_v21, 2176  ;;  %v1187_v15 = vld [vmem:[%s8167_s23 + $0x1858] sm:$0xff]  ;;  %v1978_v17 = vadd.s32 %v1722_v59, %v8192_v5  ;;  %v10739_v19 = vld [vmem:[%s8159_s21 + $0x30] sm:$0xff] }
 0x27c   : > { %6381 = vmatprep.subr.msk.bf16.mxu0 %vm10588_vm15, %v6379_v37  ;;  %7149 = vmatprep.subr.msk.bf16.mxu1 %vm10588_vm15, %v7147_v38  ;;  %v1173_v37 = vld [vmem:[%s8167_s23 + $0x17e8] sm:$0xff]  ;;  %v1171_v38 = vld [vmem:[%s8167_s23 + $0x17d8] sm:$0xff]  ;;  %vm10718_vm14 = vmpackc.low %vm2229_vm12, %vm2228_vm11  ;;  %v1979_v18 = vadd.s32 %v1723_v60, %v8192_v5  ;;  %vm1480_vm7 = vcmp.lt.s32.totalorder %v1464_v20, 2176  ;;  %vm2236_vm10 = vcmp.lt.s32.totalorder %v1980_v47, 2176 }
 0x27d   : > { %v6403_v51 = vpack.c.bf16 %v1173_v37, %v1169_v32  ;;  %v7171_v2 = vpack.c.bf16 %v1175_v39, %v1171_v38  ;;  %v1725_v32 = vadd.s32 1608, %v8196_v7  ;;  %v1195_v37 = vld [vmem:[%s8167_s23 + $0x1898] sm:$0xff]  ;;  %v1497_v39 = vcombine.high %v10739_v19, %v10739_v19  ;;  %v1212_v20 = vld [vmem:[%s8167_s23 + $0x1920] sm:$0xff]  ;;  %v1225_v47 = vld [vmem:[%s8167_s23 + $0x1988] sm:$0xff] }
 0x27e   : > { %v1199_v38 = vld [vmem:[%s8167_s23 + $0x18b8] sm:$0xff]  ;;  %vm2235_vm6 = vcmp.lt.s32.totalorder %v1979_v18, 2176  ;;  %v1208_v18 = vld [vmem:[%s8167_s23 + $0x1900] sm:$0xff]  ;;  %v1226_v60 = vld [vmem:[%s8167_s23 + $0x1990] sm:$0xff] }
 0x27f   : > { %6384 = vmatpush1.bf16.msk.msra.mxu0 %vm10588_vm15, %v6382_v49  ;;  %7152 = vmatpush1.bf16.msk.msra.mxu1 %vm10588_vm15, %v7150_v50  ;;  %v1974_v49 = vadd.s32 %v1718_v35, %v8192_v5  ;;  %v1720_v50 = vadd.s32 1568, %v8196_v7  ;;  %v1981_v34 = vadd.s32 %v1725_v32, %v8192_v5  ;;  %v7204_v32 = vpack.c.bf16 %v1214_v25, %v1210_v24  ;;  %v1247_v24 = vld [vmem:[%s8167_s23 + $0x1a38] sm:$0xff] }
 0x280   : > { %6387 = vmatprep.subr.msk.bf16.mxu0 %vm10611_vm4, %v6385_v54  ;;  %7155 = vmatprep.subr.msk.bf16.mxu1 %vm10611_vm4, %v7153_v55  ;;  %v1975_v54 = vadd.s32 %v1719_v36, %v8192_v5  ;;  %v1721_v55 = vadd.s32 1576, %v8196_v7  ;;  %v1197_v36 = vld [vmem:[%s8167_s23 + $0x18a8] sm:$0xff] }
 0x281   : > { %vm2230_vm15 = vcmp.lt.s32.totalorder %v1974_v49, 2176  ;;  %v1976_v42 = vadd.s32 %v1720_v50, %v8192_v5  ;;  %v6421_v49 = vpack.c.bf16 %v1197_v36, %v1193_v31  ;;  %v7189_v50 = vpack.c.bf16 %v1199_v38, %v1195_v37  ;;  %v1216_v37 = vld [vmem:[%s8167_s23 + $0x1940] sm:$0xff] }
 0x282   : > { %vm2231_vm0 = vcmp.lt.s32.totalorder %v1975_v54, 2176  ;;  %v1977_v12 = vadd.s32 %v1721_v55, %v8192_v5  ;;  %v1205_v54 = vld [vmem:[%s8167_s23 + $0x18e8] sm:$0xff]  ;;  %v1203_v55 = vld [vmem:[%s8167_s23 + $0x18d8] sm:$0xff]  ;;  %vm2237_vm11 = vcmp.lt.s32.totalorder %v1981_v34, 2176  ;;  %v6436_v31 = vpack.c.bf16 %v1212_v20, %v1208_v18  ;;  %v1220_v38 = vld [vmem:[%s8167_s23 + $0x1960] sm:$0xff] }
 0x283   : > { %6390 = vmatpush1.bf16.msk.msra.mxu0 %vm10611_vm4, %v6388_v4  ;;  %7158 = vmatpush1.bf16.msk.msra.mxu1 %vm10611_vm4, %v7156_v6  ;;  %v1176_v4 = vld [vmem:[%s8167_s23 + $0x1800] sm:$0xff]  ;;  %vm10747_vm2 = vmpackc.low %vm2231_vm0, %vm2230_vm15  ;;  %vm2232_vm3 = vcmp.lt.s32.totalorder %v1976_v42, 2176  ;;  %v6427_v0 = vpack.c.bf16 %v1205_v54, %v1201_v52  ;;  %v1206_v42 = vld [vmem:[%s8167_s23 + $0x18f0] sm:$0xff]  ;;  %v1734_v52 = vadd.s32 1680, %v8196_v7  ;;  %v1735_v34 = vadd.s32 1688, %v8196_v7 }
 0x284   : > { %6393 = vmatprep.subr.msk.bf16.mxu0 %vm10639_vm5, %v6391_v11  ;;  %7161 = vmatprep.subr.msk.bf16.mxu1 %vm10639_vm5, %v7159_v1  ;;  %v1180_v6 = vld [vmem:[%s8167_s23 + $0x1820] sm:$0xff]  ;;  %v1182_v11 = vld [vmem:[%s8167_s23 + $0x1830] sm:$0xff]  ;;  %v1185_v1 = vld [vmem:[%s8167_s23 + $0x1848] sm:$0xff]  ;;  %vm2233_vm4 = vcmp.lt.s32.totalorder %v1977_v12, 2176  ;;  %v1984_v12 = vadd.s32 %v1728_v57, %v8192_v5 }
 0x285   : > { %v6412_v21 = vpack.c.bf16 %v1180_v6, %v1176_v4  ;;  %v6415_v35 = vpack.c.bf16 %v1189_v14, %v1185_v1  ;;  %v7195_v4 = vpack.c.bf16 %v1207_v56, %v1203_v55  ;;  %v1202_v6 = vld [vmem:[%s8167_s23 + $0x18d0] sm:$0xff]  ;;  %v1215_v1 = vld [vmem:[%s8167_s23 + $0x1938] sm:$0xff]  ;;  %v1985_v14 = vadd.s32 %v1729_v58, %v8192_v5  ;;  %vm10832_vm12 = vmpackc.low %vm2237_vm11, %vm2236_vm10 }
 0x286   : > { %vm2240_vm15 = vcmp.lt.s32.totalorder %v1984_v12, 2176  ;;  %v1224_v56 = vld [vmem:[%s8167_s23 + $0x1980] sm:$0xff]  ;;  %v1238_v18 = vld [vmem:[%s8167_s23 + $0x19f0] sm:$0xff]  ;;  %v1241_v20 = vld [vmem:[%s8167_s23 + $0x1a08] sm:$0xff] }
 0x287   : > { %6396 = vmatpush1.bf16.msk.msra.mxu0 %vm10639_vm5, %v6394_v22  ;;  %7164 = vmatpush1.bf16.msk.msra.mxu1 %vm10639_vm5, %v7162_v23  ;;  %v7180_v22 = vpack.c.bf16 %v1182_v11, %v1178_v10  ;;  %vm2234_vm5 = vcmp.lt.s32.totalorder %v1978_v17, 2176  ;;  %v1213_v10 = vld [vmem:[%s8167_s23 + $0x1928] sm:$0xff]  ;;  %v1211_v11 = vld [vmem:[%s8167_s23 + $0x1918] sm:$0xff]  ;;  %vm2241_vm0 = vcmp.lt.s32.totalorder %v1985_v14, 2176  ;;  %v1228_v57 = vld [vmem:[%s8167_s23 + $0x19a0] sm:$0xff]  ;;  %v1736_v14 = vadd.s32 1696, %v8196_v7 }
 0x288   : > { %6399 = vmatprep.subr.msk.bf16.mxu0 %vm10664_vm8, %v6397_v28  ;;  %7167 = vmatprep.subr.msk.bf16.mxu1 %vm10664_vm8, %v7165_v29  ;;  %v7183_v28 = vpack.c.bf16 %v1191_v16, %v1187_v15  ;;  %v1186_v29 = vld [vmem:[%s8167_s23 + $0x1850] sm:$0xff]  ;;  %vm10807_vm9 = vmpackc.low %vm2235_vm6, %vm2234_vm5  ;;  %v7198_v16 = vpack.c.bf16 %v1206_v42, %v1202_v6  ;;  %v7201_v23 = vpack.c.bf16 %v1215_v1, %v1211_v11  ;;  %v1239_v6 = vld [vmem:[%s8167_s23 + $0x19f8] sm:$0xff] }
 0x289   : > { %v1990_v42 = vadd.s32 %v1734_v52, %v8192_v5  ;;  %v1232_v1 = vld [vmem:[%s8167_s23 + $0x19c0] sm:$0xff]  ;;  %v1234_v17 = vld [vmem:[%s8167_s23 + $0x19d0] sm:$0xff] }
 0x28a   : > { %v1236_v12 = vld [vmem:[%s8167_s23 + $0x19e0] sm:$0xff]  ;;  %v1250_v55 = vld [vmem:[%s8167_s23 + $0x1a50] sm:$0xff] }
 0x28b   : > { %6402 = vmatpush1.bf16.msk.msra.mxu0 %vm10664_vm8, %v6400_v41  ;;  %7170 = vmatpush1.bf16.msk.msra.mxu1 %vm10664_vm8, %v7168_v43  ;;  %v7186_v41 = vpack.c.bf16 %v1190_v30, %v1186_v29  ;;  %vm10777_vm8 = vmpackc.low %vm2233_vm4, %vm2232_vm3  ;;  %v1192_v43 = vld [vmem:[%s8167_s23 + $0x1880] sm:$0xff]  ;;  %v1219_v29 = vld [vmem:[%s8167_s23 + $0x1958] sm:$0xff]  ;;  %v6454_v25 = vpack.c.bf16 %v1236_v12, %v1232_v1 }
 0x28c   : > { %6405 = vmatprep.subr.msk.bf16.mxu0 %vm10688_vm13, %v6403_v51  ;;  %7173 = vmatprep.subr.msk.bf16.mxu1 %vm10688_vm13, %v7171_v2  ;;  %v1194_v51 = vld [vmem:[%s8167_s23 + $0x1890] sm:$0xff]  ;;  %v6424_v46 = vpack.c.bf16 %v1196_v44, %v1192_v43  ;;  %v1223_v30 = vld [vmem:[%s8167_s23 + $0x1978] sm:$0xff]  ;;  %v1252_v52 = vld [vmem:[%s8167_s23 + $0x1a60] sm:$0xff] }
 0x28d   : > { %v1198_v2 = vld [vmem:[%s8167_s23 + $0x18b0] sm:$0xff]  ;;  %v1265_v12 = vld [vmem:[%s8167_s23 + $0x1ac8] sm:$0xff] }
 0x28e   : > { %v7192_v59 = vpack.c.bf16 %v1198_v2, %v1194_v51  ;;  %v1218_v43 = vld [vmem:[%s8167_s23 + $0x1950] sm:$0xff]  ;;  %v1227_v51 = vld [vmem:[%s8167_s23 + $0x1998] sm:$0xff] }
 0x28f   : > { %6408 = vmatpush1.bf16.msk.msra.mxu0 %vm10688_vm13, %v6406_v62  ;;  %7176 = vmatpush1.bf16.msk.msra.mxu1 %vm10688_vm13, %v7174_v63  ;;  %v1204_v62 = vld [vmem:[%s8167_s23 + $0x18e0] sm:$0xff]  ;;  %v1982_v63 = vadd.s32 %v1726_v48, %v8192_v5  ;;  %v1222_v44 = vld [vmem:[%s8167_s23 + $0x1970] sm:$0xff]  ;;  %v1231_v2 = vld [vmem:[%s8167_s23 + $0x19b8] sm:$0xff] }
 0x290   : > { %6411 = vmatprep.subr.msk.bf16.mxu0 %vm10718_vm14, %v6409_v8  ;;  %7179 = vmatprep.subr.msk.bf16.mxu1 %vm10718_vm14, %v7177_v9  ;;  %v1209_v8 = vld [vmem:[%s8167_s23 + $0x1908] sm:$0xff]  ;;  %v1983_v9 = vadd.s32 %v1727_v53, %v8192_v5  ;;  %v6430_v15 = vpack.c.bf16 %v1204_v62, %v1200_v61  ;;  %v6442_v53 = vpack.c.bf16 %v1220_v38, %v1216_v37  ;;  %v1230_v61 = vld [vmem:[%s8167_s23 + $0x19b0] sm:$0xff] }
 0x291   : > { %vm2238_vm13 = vcmp.lt.s32.totalorder %v1982_v63, 2176  ;;  %v7210_v54 = vpack.c.bf16 %v1222_v44, %v1218_v43  ;;  %v1233_v62 = vld [vmem:[%s8167_s23 + $0x19c8] sm:$0xff]  ;;  %v1242_v37 = vld [vmem:[%s8167_s23 + $0x1a10] sm:$0xff]  ;;  %v1251_v43 = vld [vmem:[%s8167_s23 + $0x1a58] sm:$0xff] }
 0x292   : > { %5163 = vmatmul.mubr.msk.f32.vlgmr.msra.gmra.mrb[0].mxu0 %vm1477_vm1, %v10317_v27  ;;  %5691 = vmatmul.mubr.msk.f32.vlgmr.msra.gmra.mrb[0].mxu1 %vm1477_vm1, %v10317_v27  ;;  %v7207_v27 = vpack.c.bf16 %v1223_v30, %v1219_v29  ;;  %v1244_v29 = vld [vmem:[%s8167_s23 + $0x1a20] sm:$0xff]  ;;  %v1992_v30 = vadd.s32 %v1736_v14, %v8192_v5  ;;  %v1246_v38 = vld [vmem:[%s8167_s23 + $0x1a30] sm:$0xff]  ;;  %v1255_v44 = vld [vmem:[%s8167_s23 + $0x1a78] sm:$0xff]  ;;  %v1743_v14 = vadd.s32 1752, %v8196_v7 }
 0x293   : > { %6414 = vmatpush1.bf16.msk.msra.mxu0 %vm10718_vm14, %v6412_v21  ;;  %7182 = vmatpush1.bf16.msk.msra.mxu1 %vm10718_vm14, %v7180_v22  ;;  %v1730_v21 = vadd.s32 1648, %v8196_v7  ;;  %v6433_v22 = vpack.c.bf16 %v1213_v10, %v1209_v8  ;;  %vm2239_vm14 = vcmp.lt.s32.totalorder %v1983_v9, 2176  ;;  %v1991_v8 = vadd.s32 %v1735_v34, %v8192_v5  ;;  %v1258_v11 = vld [vmem:[%s8167_s23 + $0x1a90] sm:$0xff] }
 0x294   : > { %6417 = vmatprep.subr.msk.bf16.mxu0 %vm10747_vm2, %v6415_v35  ;;  %7185 = vmatprep.subr.msk.bf16.mxu1 %vm10747_vm2, %v7183_v28  ;;  %v1731_v35 = vadd.s32 1656, %v8196_v7  ;;  %v1221_v28 = vld [vmem:[%s8167_s23 + $0x1968] sm:$0xff]  ;;  %vm10855_vm1 = vmpackc.low %vm2239_vm14, %vm2238_vm13  ;;  %v6448_v9 = vpack.c.bf16 %v1228_v57, %v1224_v56  ;;  %v7216_v10 = vpack.c.bf16 %v1230_v61, %v1226_v60  ;;  %v1254_v56 = vld [vmem:[%s8167_s23 + $0x1a70] sm:$0xff] }
 0x295   : > { %5228 = vmatprep.mubr.msk.f32.mxu0 %vm1480_vm7, %v1497_v39  ;;  %5756 = vmatprep.mubr.msk.f32.mxu1 %vm1480_vm7, %v1497_v39  ;;  %v1986_v39 = vadd.s32 %v1730_v21, %v8192_v5  ;;  %v1737_v21 = vadd.s32 1704, %v8196_v7  ;;  %v1257_v57 = vld [vmem:[%s8167_s23 + $0x1a88] sm:$0xff]  ;;  %v1263_v60 = vld [vmem:[%s8167_s23 + $0x1ab8] sm:$0xff]  ;;  %v1262_v1 = vld [vmem:[%s8167_s23 + $0x1ab0] sm:$0xff] }
 0x296   : > { %v1987_v48 = vadd.s32 %v1731_v35, %v8192_v5 }
 0x297   : > { %6420 = vmatpush1.bf16.msk.msra.mxu0 %vm10747_vm2, %v6418_v40  ;;  %7188 = vmatpush1.bf16.msk.msra.mxu1 %vm10747_vm2, %v7186_v41  ;;  %v1732_v40 = vadd.s32 1664, %v8196_v7  ;;  %v6439_v41 = vpack.c.bf16 %v1221_v28, %v1217_v26  ;;  %vm10883_vm2 = vmpackc.low %vm2241_vm0, %vm2240_vm15  ;;  %vm2242_vm3 = vcmp.lt.s32.totalorder %v1986_v39, 2176  ;;  %v7222_v26 = vpack.c.bf16 %v1238_v18, %v1234_v17  ;;  %v1240_v28 = vld [vmem:[%s8167_s23 + $0x1a00] sm:$0xff]  ;;  %v1249_v39 = vld [vmem:[%s8167_s23 + $0x1a48] sm:$0xff] }
 0x298   : > { %6423 = vmatprep.subr.msk.bf16.mxu0 %vm10777_vm8, %v6421_v49  ;;  %7191 = vmatprep.subr.msk.bf16.mxu1 %vm10777_vm8, %v7189_v50  ;;  %v1733_v49 = vadd.s32 1672, %v8196_v7  ;;  %v1229_v50 = vld [vmem:[%s8167_s23 + $0x19a8] sm:$0xff]  ;;  %vm2243_vm4 = vcmp.lt.s32.totalorder %v1987_v48, 2176  ;;  %v1741_v48 = vadd.s32 1736, %v8196_v7  ;;  %v1271_v17 = vld [vmem:[%s8167_s23 + $0x1af8] sm:$0xff] }
 0x299   : > { %v1988_v58 = vadd.s32 %v1732_v40, %v8192_v5  ;;  %vm10908_vm5 = vmpackc.low %vm2243_vm4, %vm2242_vm3  ;;  %v1993_v40 = vadd.s32 %v1737_v21, %v8192_v5 }
 0x29a   : > { %v1989_v63 = vadd.s32 %v1733_v49, %v8192_v5  ;;  %v6460_v49 = vpack.c.bf16 %v1244_v29, %v1240_v28  ;;  %v1266_v28 = vld [vmem:[%s8167_s23 + $0x1ad0] sm:$0xff] }
 0x29b   : > { %6426 = vmatpush1.bf16.msk.msra.mxu0 %vm10777_vm8, %v6424_v46  ;;  %7194 = vmatpush1.bf16.msk.msra.mxu1 %vm10777_vm8, %v7192_v59  ;;  %v6445_v46 = vpack.c.bf16 %v1229_v50, %v1225_v47  ;;  %v7213_v59 = vpack.c.bf16 %v1231_v2, %v1227_v51  ;;  %vm2244_vm6 = vcmp.lt.s32.totalorder %v1988_v58, 2176  ;;  %vm2246_vm8 = vcmp.lt.s32.totalorder %v1990_v42, 2176  ;;  %v1248_v2 = vld [vmem:[%s8167_s23 + $0x1a40] sm:$0xff]  ;;  %v1270_v29 = vld [vmem:[%s8167_s23 + $0x1af0] sm:$0xff] }
 0x29c   : > { %6429 = vmatprep.subr.msk.bf16.mxu0 %vm10807_vm9, %v6427_v0  ;;  %7197 = vmatprep.subr.msk.bf16.mxu1 %vm10807_vm9, %v7195_v4  ;;  %v1237_v0 = vld [vmem:[%s8167_s23 + $0x19e8] sm:$0xff]  ;;  %v1235_v4 = vld [vmem:[%s8167_s23 + $0x19d8] sm:$0xff]  ;;  %vm2245_vm7 = vcmp.lt.s32.totalorder %v1989_v63, 2176  ;;  %v1740_v47 = vadd.s32 1728, %v8196_v7  ;;  %v7228_v50 = vpack.c.bf16 %v1246_v38, %v1242_v37  ;;  %vm2249_vm13 = vcmp.lt.s32.totalorder %v1993_v40, 2176  ;;  %v1260_v42 = vld [vmem:[%s8167_s23 + $0x1aa0] sm:$0xff] }
 0x29d   : > { %vm10931_vm10 = vmpackc.low %vm2245_vm7, %vm2244_vm6  ;;  %v6466_v63 = vpack.c.bf16 %v1252_v52, %v1248_v2  ;;  %v1275_v37 = vld [vmem:[%s8167_s23 + $0x1b18] sm:$0xff]  ;;  %v1747_v40 = vadd.s32 1784, %v8196_v7  ;;  %v1274_v51 = vld [vmem:[%s8167_s23 + $0x1b10] sm:$0xff] }
 0x29e   : > { %v1996_v61 = vadd.s32 %v1740_v47, %v8192_v5  ;;  %v1279_v38 = vld [vmem:[%s8167_s23 + $0x1b38] sm:$0xff]  ;;  %v1276_v47 = vld [vmem:[%s8167_s23 + $0x1b20] sm:$0xff]  ;;  %v1278_v2 = vld [vmem:[%s8167_s23 + $0x1b30] sm:$0xff] }
 0x29f   : > { %6432 = vmatpush1.bf16.msk.msra.mxu0 %vm10807_vm9, %v6430_v15  ;;  %7200 = vmatpush1.bf16.msk.msra.mxu1 %vm10807_vm9, %v7198_v16  ;;  %v6451_v15 = vpack.c.bf16 %v1237_v0, %v1233_v62  ;;  %v7219_v16 = vpack.c.bf16 %v1239_v6, %v1235_v4  ;;  %vm2247_vm9 = vcmp.lt.s32.totalorder %v1991_v8, 2176  ;;  %v1997_v62 = vadd.s32 %v1741_v48, %v8192_v5  ;;  %v1256_v6 = vld [vmem:[%s8167_s23 + $0x1a80] sm:$0xff]  ;;  %v1281_v52 = vld [vmem:[%s8167_s23 + $0x1b48] sm:$0xff]  ;;  %v1282_v4 = vld [vmem:[%s8167_s23 + $0x1b50] sm:$0xff] }
 0x2a0   : > { %6435 = vmatprep.subr.msk.bf16.mxu0 %vm10832_vm12, %v6433_v22  ;;  %7203 = vmatprep.subr.msk.bf16.mxu1 %vm10832_vm12, %v7201_v23  ;;  %v1245_v22 = vld [vmem:[%s8167_s23 + $0x1a28] sm:$0xff]  ;;  %v1243_v23 = vld [vmem:[%s8167_s23 + $0x1a18] sm:$0xff]  ;;  %vm10959_vm11 = vmpackc.low %vm2247_vm9, %vm2246_vm8  ;;  %v7234_v0 = vpack.c.bf16 %v1254_v56, %v1250_v55  ;;  %v1742_v8 = vadd.s32 1744, %v8196_v7  ;;  %v6472_v18 = vpack.c.bf16 %v1260_v42, %v1256_v6 }
 0x2a1   : > { %v7225_v36 = vpack.c.bf16 %v1247_v24, %v1243_v23  ;;  %v1268_v23 = vld [vmem:[%s8167_s23 + $0x1ae0] sm:$0xff]  ;;  %v1287_v55 = vld [vmem:[%s8167_s23 + $0x1b78] sm:$0xff]  ;;  %v1286_v6 = vld [vmem:[%s8167_s23 + $0x1b70] sm:$0xff] }
 0x2a2   : > { %v1998_v24 = vadd.s32 %v1742_v8, %v8192_v5  ;;  %v1289_v42 = vld [vmem:[%s8167_s23 + $0x1b88] sm:$0xff]  ;;  %v1749_v8 = vadd.s32 1800, %v8196_v7 }
 0x2a3   : > { %6438 = vmatpush1.bf16.msk.msra.mxu0 %vm10832_vm12, %v6436_v31  ;;  %7206 = vmatpush1.bf16.msk.msra.mxu1 %vm10832_vm12, %v7204_v32  ;;  %v1738_v31 = vadd.s32 1712, %v8196_v7  ;;  %v6457_v32 = vpack.c.bf16 %v1245_v22, %v1241_v20  ;;  %vm2248_vm12 = vcmp.lt.s32.totalorder %v1992_v30, 2176  ;;  %v7240_v20 = vpack.c.bf16 %v1262_v1, %v1258_v11  ;;  %v1264_v22 = vld [vmem:[%s8167_s23 + $0x1ac0] sm:$0xff]  ;;  %v1273_v30 = vld [vmem:[%s8167_s23 + $0x1b08] sm:$0xff]  ;;  %v1295_v11 = vld [vmem:[%s8167_s23 + $0x1bb8] sm:$0xff] }
 0x2a4   : > { %6441 = vmatprep.subr.msk.bf16.mxu0 %vm10855_vm1, %v6439_v41  ;;  %7209 = vmatprep.subr.msk.bf16.mxu1 %vm10855_vm1, %v7207_v27  ;;  %v1739_v41 = vadd.s32 1720, %v8196_v7  ;;  %v1253_v27 = vld [vmem:[%s8167_s23 + $0x1a68] sm:$0xff]  ;;  %vm10984_vm14 = vmpackc.low %vm2249_vm13, %vm2248_vm12 }
 0x2a5   : > { %v1994_v34 = vadd.s32 %v1738_v31, %v8192_v5  ;;  %v1999_v31 = vadd.s32 %v1743_v14, %v8192_v5  ;;  %v1312_v14 = vld [vmem:[%s8167_s23 + $0x1c40] sm:$0xff] }
 0x2a6   : > { %v1995_v58 = vadd.s32 %v1739_v41, %v8192_v5  ;;  %v6478_v41 = vpack.c.bf16 %v1268_v23, %v1264_v22  ;;  %v1290_v22 = vld [vmem:[%s8167_s23 + $0x1b90] sm:$0xff] }
 0x2a7   : > { %6444 = vmatpush1.bf16.msk.msra.mxu0 %vm10855_vm1, %v6442_v53  ;;  %7212 = vmatpush1.bf16.msk.msra.mxu1 %vm10855_vm1, %v7210_v54  ;;  %v6463_v53 = vpack.c.bf16 %v1253_v27, %v1249_v39  ;;  %v7231_v54 = vpack.c.bf16 %v1255_v44, %v1251_v43  ;;  %vm2250_vm15 = vcmp.lt.s32.totalorder %v1994_v34, 2176  ;;  %vm2252_vm1 = vcmp.lt.s32.totalorder %v1996_v61, 2176  ;;  %v1272_v44 = vld [vmem:[%s8167_s23 + $0x1b00] sm:$0xff]  ;;  %v1294_v23 = vld [vmem:[%s8167_s23 + $0x1bb0] sm:$0xff] }
 0x2a8   : > { %6447 = vmatprep.subr.msk.bf16.mxu0 %vm10883_vm2, %v6445_v46  ;;  %7215 = vmatprep.subr.msk.bf16.mxu1 %vm10883_vm2, %v7213_v59  ;;  %v1261_v46 = vld [vmem:[%s8167_s23 + $0x1aa8] sm:$0xff]  ;;  %v1259_v59 = vld [vmem:[%s8167_s23 + $0x1a98] sm:$0xff]  ;;  %vm2251_vm0 = vcmp.lt.s32.totalorder %v1995_v58, 2176  ;;  %v1746_v39 = vadd.s32 1776, %v8196_v7  ;;  %v7246_v27 = vpack.c.bf16 %v1270_v29, %v1266_v28  ;;  %vm2255_vm6 = vcmp.lt.s32.totalorder %v1999_v31, 2176  ;;  %v1284_v61 = vld [vmem:[%s8167_s23 + $0x1b60] sm:$0xff] }
 0x2a9   : > { %vm11007_vm3 = vmpackc.low %vm2251_vm0, %vm2250_vm15  ;;  %v6484_v58 = vpack.c.bf16 %v1276_v47, %v1272_v44  ;;  %v1299_v28 = vld [vmem:[%s8167_s23 + $0x1bd8] sm:$0xff]  ;;  %v1752_v31 = vadd.s32 1824, %v8196_v7  ;;  %v1298_v44 = vld [vmem:[%s8167_s23 + $0x1bd0] sm:$0xff] }
 0x2aa   : > { %v2002_v56 = vadd.s32 %v1746_v39, %v8192_v5  ;;  %v1303_v29 = vld [vmem:[%s8167_s23 + $0x1bf8] sm:$0xff]  ;;  %v1296_v39 = vld [vmem:[%s8167_s23 + $0x1bc0] sm:$0xff]  ;;  %v1302_v47 = vld [vmem:[%s8167_s23 + $0x1bf0] sm:$0xff] }
 0x2ab   : > { %6450 = vmatpush1.bf16.msk.msra.mxu0 %vm10883_vm2, %v6448_v9  ;;  %7218 = vmatpush1.bf16.msk.msra.mxu1 %vm10883_vm2, %v7216_v10  ;;  %v6469_v9 = vpack.c.bf16 %v1261_v46, %v1257_v57  ;;  %v7237_v10 = vpack.c.bf16 %v1263_v60, %v1259_v59  ;;  %vm2253_vm2 = vcmp.lt.s32.totalorder %v1997_v62, 2176  ;;  %v2003_v57 = vadd.s32 %v1747_v40, %v8192_v5  ;;  %v1280_v60 = vld [vmem:[%s8167_s23 + $0x1b40] sm:$0xff] }
 0x2ac   : > { %6453 = vmatprep.subr.msk.bf16.mxu0 %vm10908_vm5, %v6451_v15  ;;  %7221 = vmatprep.subr.msk.bf16.mxu1 %vm10908_vm5, %v7219_v16  ;;  %v1269_v15 = vld [vmem:[%s8167_s23 + $0x1ae8] sm:$0xff]  ;;  %v1267_v16 = vld [vmem:[%s8167_s23 + $0x1ad8] sm:$0xff]  ;;  %vm11035_vm4 = vmpackc.low %vm2253_vm2, %vm2252_vm1  ;;  %v7252_v46 = vpack.c.bf16 %v1278_v2, %v1274_v51  ;;  %v1748_v62 = vadd.s32 1792, %v8196_v7  ;;  %v6490_v1 = vpack.c.bf16 %v1284_v61, %v1280_v60  ;;  %v7267_v43 = vpack.c.bf16 %v1303_v29, %v1299_v28 }
 0x2ad   : > { %v7243_v35 = vpack.c.bf16 %v1271_v17, %v1267_v16  ;;  %v1292_v16 = vld [vmem:[%s8167_s23 + $0x1ba0] sm:$0xff]  ;;  %v1307_v51 = vld [vmem:[%s8167_s23 + $0x1c18] sm:$0xff]  ;;  %v1754_v59 = vadd.s32 1840, %v8196_v7 }
 0x2ae   : > { %v2004_v17 = vadd.s32 %v1748_v62, %v8192_v5  ;;  %v1300_v40 = vld [vmem:[%s8167_s23 + $0x1be0] sm:$0xff]  ;;  %v1311_v2 = vld [vmem:[%s8167_s23 + $0x1c38] sm:$0xff]  ;;  %v1306_v62 = vld [vmem:[%s8167_s23 + $0x1c10] sm:$0xff] }
 0x2af   : > { %6456 = vmatpush1.bf16.msk.msra.mxu0 %vm10908_vm5, %v6454_v25  ;;  %7224 = vmatpush1.bf16.msk.msra.mxu1 %vm10908_vm5, %v7222_v26  ;;  %v1744_v25 = vadd.s32 1760, %v8196_v7  ;;  %v6475_v26 = vpack.c.bf16 %v1269_v15, %v1265_v12  ;;  %vm2254_vm5 = vcmp.lt.s32.totalorder %v1998_v24, 2176  ;;  %v7258_v12 = vpack.c.bf16 %v1286_v6, %v1282_v4  ;;  %v1288_v15 = vld [vmem:[%s8167_s23 + $0x1b80] sm:$0xff]  ;;  %v1297_v24 = vld [vmem:[%s8167_s23 + $0x1bc8] sm:$0xff]  ;;  %v1327_v28 = vld [vmem:[%s8167_s23 + $0x1cb8] sm:$0xff] }
 0x2b0   : > { %6459 = vmatprep.subr.msk.bf16.mxu0 %vm10931_vm10, %v6457_v32  ;;  %7227 = vmatprep.subr.msk.bf16.mxu1 %vm10931_vm10, %v7225_v36  ;;  %v1745_v32 = vadd.s32 1768, %v8196_v7  ;;  %v1277_v36 = vld [vmem:[%s8167_s23 + $0x1b28] sm:$0xff]  ;;  %vm11060_vm7 = vmpackc.low %vm2255_vm6, %vm2254_vm5  ;;  %v7273_v61 = vpack.c.bf16 %v1311_v2, %v1307_v51  ;;  %v1755_v4 = vadd.s32 1848, %v8196_v7 }
 0x2b1   : > { %v2000_v48 = vadd.s32 %v1744_v25, %v8192_v5  ;;  %v2005_v25 = vadd.s32 %v1749_v8, %v8192_v5  ;;  %v1317_v6 = vld [vmem:[%s8167_s23 + $0x1c68] sm:$0xff]  ;;  %v1319_v8 = vld [vmem:[%s8167_s23 + $0x1c78] sm:$0xff] }
 0x2b2   : > { %v2001_v34 = vadd.s32 %v1745_v32, %v8192_v5  ;;  %v1753_v32 = vadd.s32 1832, %v8196_v7 }
 0x2b3   : > { %6462 = vmatpush1.bf16.msk.msra.mxu0 %vm10931_vm10, %v6460_v49  ;;  %7230 = vmatpush1.bf16.msk.msra.mxu1 %vm10931_vm10, %v7228_v50  ;;  %v6481_v49 = vpack.c.bf16 %v1277_v36, %v1273_v30  ;;  %v7249_v50 = vpack.c.bf16 %v1279_v38, %v1275_v37  ;;  %vm2256_vm8 = vcmp.lt.s32.totalorder %v2000_v48, 2176  ;;  %vm2258_vm10 = vcmp.lt.s32.totalorder %v2002_v56, 2176  ;;  %v1305_v48 = vld [vmem:[%s8167_s23 + $0x1c08] sm:$0xff] }
 0x2b4   : > { %6465 = vmatprep.subr.msk.bf16.mxu0 %vm10959_vm11, %v6463_v53  ;;  %7233 = vmatprep.subr.msk.bf16.mxu1 %vm10959_vm11, %v7231_v54  ;;  %v1285_v53 = vld [vmem:[%s8167_s23 + $0x1b68] sm:$0xff]  ;;  %v1283_v54 = vld [vmem:[%s8167_s23 + $0x1b58] sm:$0xff]  ;;  %vm2257_vm9 = vcmp.lt.s32.totalorder %v2001_v34, 2176  ;;  %v1445_v30 = vadd.s32 1536, %v8412_v45  ;;  %v6496_v36 = vpack.c.bf16 %v1292_v16, %v1288_v15  ;;  %v7264_v37 = vpack.c.bf16 %v1294_v23, %v1290_v22  ;;  %v1316_v15 = vld [vmem:[%s8167_s23 + $0x1c60] sm:$0xff] }
 0x2b5   : > { %vm11083_vm12 = vmpackc.low %vm2257_vm9, %vm2256_vm8  ;;  %vm2261_vm15 = vcmp.lt.s32.totalorder %v2005_v25, 2176  ;;  %v2008_v34 = vadd.s32 %v1752_v31, %v8192_v5  ;;  %v7270_v56 = vpack.c.bf16 %v1302_v47, %v1298_v44  ;;  %v2010_v16 = vadd.s32 %v1754_v59, %v8192_v5  ;;  %v1318_v22 = vld [vmem:[%s8167_s23 + $0x1c70] sm:$0xff]  ;;  %v1321_v23 = vld [vmem:[%s8167_s23 + $0x1c88] sm:$0xff] }
 0x2b6   : > { %v1757_v25 = vadd.s32 1864, %v8196_v7  ;;  %v1333_v44 = vld [vmem:[%s8167_s23 + $0x1ce8] sm:$0xff]  ;;  %v1331_v47 = vld [vmem:[%s8167_s23 + $0x1cd8] sm:$0xff] }
 0x2b7   : > { %6468 = vmatpush1.bf16.msk.msra.mxu0 %vm10959_vm11, %v6466_v63  ;;  %7236 = vmatpush1.bf16.msk.msra.mxu1 %vm10959_vm11, %v7234_v0  ;;  %v6487_v63 = vpack.c.bf16 %v1285_v53, %v1281_v52  ;;  %v7255_v0 = vpack.c.bf16 %v1287_v55, %v1283_v54  ;;  %vm2259_vm11 = vcmp.lt.s32.totalorder %v2003_v57, 2176  ;;  %v1463_v52 = vadd.s32 %v8192_v5, %v1445_v30  ;;  %v1334_v57 = vld [vmem:[%s8167_s23 + $0x1cf0] sm:$0xff]  ;;  %v1339_v59 = vld [vmem:[%s8167_s23 + $0x1d18] sm:$0xff] }
 0x2b8   : > { %6471 = vmatprep.subr.msk.bf16.mxu0 %vm10984_vm14, %v6469_v9  ;;  %7239 = vmatprep.subr.msk.bf16.mxu1 %vm10984_vm14, %v7237_v10  ;;  %v1293_v9 = vld [vmem:[%s8167_s23 + $0x1ba8] sm:$0xff]  ;;  %v1291_v10 = vld [vmem:[%s8167_s23 + $0x1b98] sm:$0xff]  ;;  %vm11112_vm13 = vmpackc.low %vm2259_vm11, %vm2258_vm10  ;;  %v2009_v53 = vadd.s32 %v1753_v32, %v8192_v5  ;;  %v1448_v54 = vadd.s32 1920, %v8412_v45  ;;  %v6502_v55 = vpack.c.bf16 %v1300_v40, %v1296_v39  ;;  %v6514_v30 = vpack.c.bf16 %v1316_v15, %v1312_v14 }
 0x2b9   : > { %v7261_v21 = vpack.c.bf16 %v1295_v11, %v1291_v10  ;;  %vm2266_vm9 = vcmp.lt.s32.totalorder %v2010_v16, 2176  ;;  %v1322_v40 = vld [vmem:[%s8167_s23 + $0x1c90] sm:$0xff] }
 0x2ba   : > { %vm2265_vm5 = vcmp.lt.s32.totalorder %v2009_v53, 2176  ;;  %v1466_v10 = vadd.s32 %v8192_v5, %v1448_v54  ;;  %v1332_v53 = vld [vmem:[%s8167_s23 + $0x1ce0] sm:$0xff]  ;;  %v1338_v15 = vld [vmem:[%s8167_s23 + $0x1d10] sm:$0xff] }
 0x2bb   : > { %6474 = vmatpush1.bf16.msk.msra.mxu0 %vm10984_vm14, %v6472_v18  ;;  %7242 = vmatpush1.bf16.msk.msra.mxu1 %vm10984_vm14, %v7240_v20  ;;  %v1750_v18 = vadd.s32 1808, %v8196_v7  ;;  %v6493_v20 = vpack.c.bf16 %v1293_v9, %v1289_v42  ;;  %vm2260_vm14 = vcmp.lt.s32.totalorder %v2004_v17, 2176  ;;  %v1315_v42 = vld [vmem:[%s8167_s23 + $0x1c58] sm:$0xff]  ;;  %v1756_v17 = vadd.s32 1856, %v8196_v7  ;;  %v1342_v16 = vld [vmem:[%s8167_s23 + $0x1d30] sm:$0xff] }
 0x2bc   : > { %6477 = vmatprep.subr.msk.bf16.mxu0 %vm11007_vm3, %v6475_v26  ;;  %7245 = vmatprep.subr.msk.bf16.mxu1 %vm11007_vm3, %v7243_v35  ;;  %v1751_v26 = vadd.s32 1816, %v8196_v7  ;;  %v1301_v35 = vld [vmem:[%s8167_s23 + $0x1be8] sm:$0xff]  ;;  %vm11139_vm0 = vmpackc.low %vm2261_vm15, %vm2260_vm14  ;;  %v11158_v9 = vld [vmem:[%s8159_s21 + $0x38] sm:$0xff] }
 0x2bd   : > { %v1498_v29 = vcombine.high %v11158_v9, %v11158_v9 }
 0x2bf   : > { %6480 = vmatpush1.bf16.msk.msra.mxu0 %vm11007_vm3, %v6478_v41  ;;  %7248 = vmatpush1.bf16.msk.msra.mxu1 %vm11007_vm3, %v7246_v27  ;;  %v2006_v41 = vadd.s32 %v1750_v18, %v8192_v5  ;;  %v6499_v27 = vpack.c.bf16 %v1301_v35, %v1297_v24  ;;  %vm1479_vm3 = vcmp.lt.s32.totalorder %v1463_v52, 2176  ;;  %v2011_v24 = vadd.s32 %v1755_v4, %v8192_v5  ;;  %v1323_v35 = vld [vmem:[%s8167_s23 + $0x1c98] sm:$0xff]  ;;  %v1358_v52 = vld [vmem:[%s8167_s23 + $0x1db0] sm:$0xff] }
 0x2c0   : > { %6483 = vmatprep.subr.msk.bf16.mxu0 %vm11035_vm4, %v6481_v49  ;;  %7251 = vmatprep.subr.msk.bf16.mxu1 %vm11035_vm4, %v7249_v50  ;;  %v2007_v49 = vadd.s32 %v1751_v26, %v8192_v5  ;;  %v1309_v50 = vld [vmem:[%s8167_s23 + $0x1c28] sm:$0xff]  ;;  %v7285_v39 = vpack.c.bf16 %v1327_v28, %v1323_v35  ;;  %v1762_v4 = vadd.s32 1904, %v8196_v7  ;;  %v1344_v35 = vld [vmem:[%s8167_s23 + $0x1d40] sm:$0xff] }
 0x2c1   : > { %vm2262_vm1 = vcmp.lt.s32.totalorder %v2006_v41, 2176  ;;  %v6505_v60 = vpack.c.bf16 %v1309_v50, %v1305_v48  ;;  %v1325_v26 = vld [vmem:[%s8167_s23 + $0x1ca8] sm:$0xff]  ;;  %v1326_v41 = vld [vmem:[%s8167_s23 + $0x1cb0] sm:$0xff]  ;;  %vm2267_vm10 = vcmp.lt.s32.totalorder %v2011_v24, 2176  ;;  %v1335_v48 = vld [vmem:[%s8167_s23 + $0x1cf8] sm:$0xff]  ;;  %v1759_v50 = vadd.s32 1880, %v8196_v7 }
 0x2c2   : > { %vm2263_vm2 = vcmp.lt.s32.totalorder %v2007_v49, 2176  ;;  %v6517_v38 = vpack.c.bf16 %v1325_v26, %v1321_v23  ;;  %v1758_v49 = vadd.s32 1872, %v8196_v7  ;;  %v7288_v2 = vpack.c.bf16 %v1326_v41, %v1322_v40  ;;  %vm11225_vm11 = vmpackc.low %vm2267_vm10, %vm2266_vm9  ;;  %v1348_v28 = vld [vmem:[%s8167_s23 + $0x1d60] sm:$0xff]  ;;  %v1355_v41 = vld [vmem:[%s8167_s23 + $0x1d98] sm:$0xff] }
 0x2c3   : > { %6486 = vmatpush1.bf16.msk.msra.mxu0 %vm11035_vm4, %v6484_v58  ;;  %7254 = vmatpush1.bf16.msk.msra.mxu1 %vm11035_vm4, %v7252_v46  ;;  %v1304_v58 = vld [vmem:[%s8167_s23 + $0x1c00] sm:$0xff]  ;;  %vm2264_vm4 = vcmp.lt.s32.totalorder %v2008_v34, 2176  ;;  %vm11166_vm6 = vmpackc.low %vm2263_vm2, %vm2262_vm1  ;;  %v2018_v24 = vadd.s32 %v1762_v4, %v8192_v5  ;;  %v7300_v26 = vpack.c.bf16 %v1342_v16, %v1338_v15  ;;  %v1768_v15 = vadd.s32 1952, %v8196_v7 }
 0x2c4   : > { %6489 = vmatprep.subr.msk.bf16.mxu0 %vm11060_vm7, %v6487_v63  ;;  %7257 = vmatprep.subr.msk.bf16.mxu1 %vm11060_vm7, %v7255_v0  ;;  %v1308_v46 = vld [vmem:[%s8167_s23 + $0x1c20] sm:$0xff]  ;;  %v1310_v63 = vld [vmem:[%s8167_s23 + $0x1c30] sm:$0xff]  ;;  %v1313_v0 = vld [vmem:[%s8167_s23 + $0x1c48] sm:$0xff]  ;;  %v1769_v16 = vadd.s32 1960, %v8196_v7 }
 0x2c5   : > { %v6508_v11 = vpack.c.bf16 %v1308_v46, %v1304_v58  ;;  %v6511_v18 = vpack.c.bf16 %v1317_v6, %v1313_v0  ;;  %vm11198_vm8 = vmpackc.low %vm2265_vm5, %vm2264_vm4  ;;  %v1328_v34 = vld [vmem:[%s8167_s23 + $0x1cc0] sm:$0xff]  ;;  %v1337_v58 = vld [vmem:[%s8167_s23 + $0x1d08] sm:$0xff]  ;;  %v1761_v0 = vadd.s32 1896, %v8196_v7  ;;  %vm2274_vm4 = vcmp.lt.s32.totalorder %v2018_v24, 2176 }
 0x2c6   : > { %v1341_v46 = vld [vmem:[%s8167_s23 + $0x1d28] sm:$0xff]  ;;  %v6526_v6 = vpack.c.bf16 %v1332_v53, %v1328_v34  ;;  %v1376_v40 = vld [vmem:[%s8167_s23 + $0x1e40] sm:$0xff] }
 0x2c7   : > { %6492 = vmatpush1.bf16.msk.msra.mxu0 %vm11060_vm7, %v6490_v1  ;;  %7260 = vmatpush1.bf16.msk.msra.mxu1 %vm11060_vm7, %v7258_v12  ;;  %v7276_v1 = vpack.c.bf16 %v1310_v63, %v1306_v62  ;;  %vm1482_vm7 = vcmp.lt.s32.totalorder %v1466_v10, 2176  ;;  %v2015_v62 = vadd.s32 %v1759_v50, %v8192_v5  ;;  %v1760_v63 = vadd.s32 1888, %v8196_v7  ;;  %v1336_v10 = vld [vmem:[%s8167_s23 + $0x1d00] sm:$0xff]  ;;  %v1354_v50 = vld [vmem:[%s8167_s23 + $0x1d90] sm:$0xff]  ;;  %v1361_v34 = vld [vmem:[%s8167_s23 + $0x1dc8] sm:$0xff] }
 0x2c8   : > { %6495 = vmatprep.subr.msk.bf16.mxu0 %vm11083_vm12, %v6493_v20  ;;  %7263 = vmatprep.subr.msk.bf16.mxu1 %vm11083_vm12, %v7261_v21  ;;  %v7279_v20 = vpack.c.bf16 %v1319_v8, %v1315_v42  ;;  %v1314_v21 = vld [vmem:[%s8167_s23 + $0x1c50] sm:$0xff]  ;;  %v6529_v12 = vpack.c.bf16 %v1341_v46, %v1337_v58  ;;  %v2017_v23 = vadd.s32 %v1761_v0, %v8192_v5  ;;  %v1365_v53 = vld [vmem:[%s8167_s23 + $0x1de8] sm:$0xff]  ;;  %v1363_v58 = vld [vmem:[%s8167_s23 + $0x1dd8] sm:$0xff] }
 0x2c9   : > { %v7282_v31 = vpack.c.bf16 %v1318_v22, %v1314_v21  ;;  %v1351_v21 = vld [vmem:[%s8167_s23 + $0x1d78] sm:$0xff]  ;;  %v2016_v22 = vadd.s32 %v1760_v63, %v8192_v5  ;;  %v1360_v63 = vld [vmem:[%s8167_s23 + $0x1dc0] sm:$0xff]  ;;  %v1369_v8 = vld [vmem:[%s8167_s23 + $0x1e08] sm:$0xff] }
 0x2ca   : > { %v1367_v46 = vld [vmem:[%s8167_s23 + $0x1df8] sm:$0xff]  ;;  %v1364_v0 = vld [vmem:[%s8167_s23 + $0x1de0] sm:$0xff] }
 0x2cb   : > { %6498 = vmatpush1.bf16.msk.msra.mxu0 %vm11083_vm12, %v6496_v36  ;;  %7266 = vmatpush1.bf16.msk.msra.mxu1 %vm11083_vm12, %v7264_v37  ;;  %v1324_v36 = vld [vmem:[%s8167_s23 + $0x1ca0] sm:$0xff]  ;;  %v2012_v37 = vadd.s32 %v1756_v17, %v8192_v5  ;;  %v1345_v17 = vld [vmem:[%s8167_s23 + $0x1d48] sm:$0xff]  ;;  %vm2272_vm2 = vcmp.lt.s32.totalorder %v2016_v22, 2176  ;;  %v7315_v4 = vpack.c.bf16 %v1367_v46, %v1363_v58  ;;  %v1386_v58 = vld [vmem:[%s8167_s23 + $0x1e90] sm:$0xff] }
 0x2cc   : > { %6501 = vmatprep.subr.msk.bf16.mxu0 %vm11112_vm13, %v6499_v27  ;;  %7269 = vmatprep.subr.msk.bf16.mxu1 %vm11112_vm13, %v7267_v43  ;;  %v1329_v27 = vld [vmem:[%s8167_s23 + $0x1cc8] sm:$0xff]  ;;  %v2013_v43 = vadd.s32 %v1757_v25, %v8192_v5  ;;  %v1372_v22 = vld [vmem:[%s8167_s23 + $0x1e20] sm:$0xff] }
 0x2cd   : > { %v6523_v54 = vpack.c.bf16 %v1333_v44, %v1329_v27  ;;  %vm2268_vm12 = vcmp.lt.s32.totalorder %v2012_v37, 2176  ;;  %v1353_v37 = vld [vmem:[%s8167_s23 + $0x1d88] sm:$0xff]  ;;  %v1359_v27 = vld [vmem:[%s8167_s23 + $0x1db8] sm:$0xff] }
 0x2cf   : > { %6504 = vmatpush1.bf16.msk.msra.mxu0 %vm11112_vm13, %v6502_v55  ;;  %7272 = vmatpush1.bf16.msk.msra.mxu1 %vm11112_vm13, %v7270_v56  ;;  %v7291_v55 = vpack.c.bf16 %v1335_v48, %v1331_v47  ;;  %v1330_v56 = vld [vmem:[%s8167_s23 + $0x1cd0] sm:$0xff]  ;;  %vm2269_vm13 = vcmp.lt.s32.totalorder %v2013_v43, 2176  ;;  %v6538_v43 = vpack.c.bf16 %v1348_v28, %v1344_v35  ;;  %v1352_v48 = vld [vmem:[%s8167_s23 + $0x1d80] sm:$0xff]  ;;  %v1377_v35 = vld [vmem:[%s8167_s23 + $0x1e48] sm:$0xff] }
 0x2d0   : > { %6507 = vmatprep.subr.msk.bf16.mxu0 %vm11139_vm0, %v6505_v60  ;;  %7275 = vmatprep.subr.msk.bf16.mxu1 %vm11139_vm0, %v7273_v61  ;;  %v1343_v60 = vld [vmem:[%s8167_s23 + $0x1d38] sm:$0xff]  ;;  %v2014_v61 = vadd.s32 %v1758_v49, %v8192_v5  ;;  %v7294_v42 = vpack.c.bf16 %v1334_v57, %v1330_v56  ;;  %vm11250_vm14 = vmpackc.low %vm2269_vm13, %vm2268_vm12  ;;  %v1356_v49 = vld [vmem:[%s8167_s23 + $0x1da0] sm:$0xff]  ;;  %v1767_v56 = vadd.s32 1944, %v8196_v7 }
 0x2d1   : > { %v7297_v14 = vpack.c.bf16 %v1343_v60, %v1339_v59  ;;  %v6544_v59 = vpack.c.bf16 %v1356_v49, %v1352_v48  ;;  %v7312_v60 = vpack.c.bf16 %v1358_v52, %v1354_v50  ;;  %v1381_v28 = vld [vmem:[%s8167_s23 + $0x1e68] sm:$0xff]  ;;  %v1387_v50 = vld [vmem:[%s8167_s23 + $0x1e98] sm:$0xff]  ;;  %v1773_v52 = vadd.s32 1992, %v8196_v7  ;;  %v1388_v57 = vld [vmem:[%s8167_s23 + $0x1ea0] sm:$0xff] }
 0x2d2   : > { %5229 = vmatmul.mubr.msk.f32.vlgmr.msra.gmra.mrb[0].mxu0 %vm1479_vm3, %v10739_v19  ;;  %5757 = vmatmul.mubr.msk.f32.vlgmr.msra.gmra.mrb[0].mxu1 %vm1479_vm3, %v10739_v19  ;;  %v1320_v19 = vld [vmem:[%s8167_s23 + $0x1c80] sm:$0xff]  ;;  %vm2270_vm15 = vcmp.lt.s32.totalorder %v2014_v61, 2176  ;;  %vm2273_vm3 = vcmp.lt.s32.totalorder %v2017_v23, 2176  ;;  %v6547_v61 = vpack.c.bf16 %v1365_v53, %v1361_v34  ;;  %v1385_v48 = vld [vmem:[%s8167_s23 + $0x1e88] sm:$0xff] }
 0x2d3   : > { %6510 = vmatpush1.bf16.msk.msra.mxu0 %vm11139_vm0, %v6508_v11  ;;  %7278 = vmatpush1.bf16.msk.msra.mxu1 %vm11139_vm0, %v7276_v1  ;;  %v6520_v51 = vpack.c.bf16 %v1324_v36, %v1320_v19  ;;  %v1340_v11 = vld [vmem:[%s8167_s23 + $0x1d20] sm:$0xff]  ;;  %v1763_v1 = vadd.s32 1912, %v8196_v7  ;;  %vm2271_vm0 = vcmp.lt.s32.totalorder %v2015_v62, 2176  ;;  %v1350_v36 = vld [vmem:[%s8167_s23 + $0x1d70] sm:$0xff]  ;;  %v1389_v49 = vld [vmem:[%s8167_s23 + $0x1ea8] sm:$0xff] }
 0x2d4   : > { %6513 = vmatprep.subr.msk.bf16.mxu0 %vm11166_vm6, %v6511_v18  ;;  %7281 = vmatprep.subr.msk.bf16.mxu1 %vm11166_vm6, %v7279_v20  ;;  %v1349_v18 = vld [vmem:[%s8167_s23 + $0x1d68] sm:$0xff]  ;;  %v1347_v20 = vld [vmem:[%s8167_s23 + $0x1d58] sm:$0xff]  ;;  %v6532_v25 = vpack.c.bf16 %v1340_v11, %v1336_v10  ;;  %vm11289_vm1 = vmpackc.low %vm2271_vm0, %vm2270_vm15  ;;  %v2023_v11 = vadd.s32 %v1767_v56, %v8192_v5  ;;  %v6565_v46 = vpack.c.bf16 %v1389_v49, %v1385_v48  ;;  %v1778_v48 = vadd.s32 2032, %v8196_v7 }
 0x2d5   : > { %5294 = vmatprep.mubr.msk.f32.mxu0 %vm1482_vm7, %v1498_v29  ;;  %5822 = vmatprep.mubr.msk.f32.mxu1 %vm1482_vm7, %v1498_v29  ;;  %v1346_v29 = vld [vmem:[%s8167_s23 + $0x1d50] sm:$0xff]  ;;  %v6535_v32 = vpack.c.bf16 %v1349_v18, %v1345_v17  ;;  %v7303_v19 = vpack.c.bf16 %v1351_v21, %v1347_v20  ;;  %v6550_v17 = vpack.c.bf16 %v1364_v0, %v1360_v63  ;;  %v1368_v21 = vld [vmem:[%s8167_s23 + $0x1e00] sm:$0xff]  ;;  %v1397_v62 = vld [vmem:[%s8167_s23 + $0x1ee8] sm:$0xff]  ;;  %v1774_v63 = vadd.s32 2000, %v8196_v7 }
 0x2d6   : > { %v7306_v44 = vpack.c.bf16 %v1350_v36, %v1346_v29  ;;  %vm2279_vm12 = vcmp.lt.s32.totalorder %v2023_v11, 2176  ;;  %v1379_v29 = vld [vmem:[%s8167_s23 + $0x1e58] sm:$0xff]  ;;  %v1771_v36 = vadd.s32 1976, %v8196_v7  ;;  %v1384_v56 = vld [vmem:[%s8167_s23 + $0x1e80] sm:$0xff]  ;;  %v1775_v0 = vadd.s32 2008, %v8196_v7  ;;  %v1401_v20 = vld [vmem:[%s8167_s23 + $0x1f08] sm:$0xff] }
 0x2d7   : > { %6516 = vmatpush1.bf16.msk.msra.mxu0 %vm11166_vm6, %v6514_v30  ;;  %7284 = vmatpush1.bf16.msk.msra.mxu1 %vm11166_vm6, %v7282_v31  ;;  %v2019_v30 = vadd.s32 %v1763_v1, %v8192_v5  ;;  %v1764_v31 = vadd.s32 1920, %v8196_v7  ;;  %vm11315_vm6 = vmpackc.low %vm2273_vm3, %vm2272_vm2  ;;  %v1373_v1 = vld [vmem:[%s8167_s23 + $0x1e28] sm:$0xff]  ;;  %v6568_v11 = vpack.c.bf16 %v1388_v57, %v1384_v56  ;;  %v1779_v49 = vadd.s32 2040, %v8196_v7  ;;  %v1414_v56 = vld [vmem:[%s8167_s23 + $0x1f70] sm:$0xff] }
 0x2d8   : > { %6519 = vmatprep.subr.msk.bf16.mxu0 %vm11198_vm8, %v6517_v38  ;;  %7287 = vmatprep.subr.msk.bf16.mxu1 %vm11198_vm8, %v7285_v39  ;;  %v1357_v38 = vld [vmem:[%s8167_s23 + $0x1da8] sm:$0xff]  ;;  %v1765_v39 = vadd.s32 1928, %v8196_v7  ;;  %v6553_v23 = vpack.c.bf16 %v1373_v1, %v1369_v8  ;;  %v2027_v53 = vadd.s32 %v1771_v36, %v8192_v5 }
 0x2d9   : > { %v6541_v47 = vpack.c.bf16 %v1357_v38, %v1353_v37  ;;  %vm2275_vm5 = vcmp.lt.s32.totalorder %v2019_v30, 2176  ;;  %v1383_v30 = vld [vmem:[%s8167_s23 + $0x1e78] sm:$0xff]  ;;  %v6556_v37 = vpack.c.bf16 %v1372_v22, %v1368_v21  ;;  %v1405_v21 = vld [vmem:[%s8167_s23 + $0x1f28] sm:$0xff]  ;;  %v2030_v22 = vadd.s32 %v1774_v63, %v8192_v5 }
 0x2da   : > { %vm11327_vm7 = vmpackc.low %vm2275_vm5, %vm2274_vm4  ;;  %vm2283_vm2 = vcmp.lt.s32.totalorder %v2027_v53, 2176  ;;  %v6577_v36 = vpack.c.bf16 %v1405_v21, %v1401_v20  ;;  %v1417_v57 = vld [vmem:[%s8167_s23 + $0x1f88] sm:$0xff]  ;;  %v1447_v20 = vadd.s32 1792, %v8412_v45 }
 0x2db   : > { %6522 = vmatpush1.bf16.msk.msra.mxu0 %vm11198_vm8, %v6520_v51  ;;  %7290 = vmatpush1.bf16.msk.msra.mxu1 %vm11198_vm8, %v7288_v2  ;;  %v2020_v51 = vadd.s32 %v1764_v31, %v8192_v5  ;;  %v7309_v2 = vpack.c.bf16 %v1359_v27, %v1355_v41  ;;  %v2024_v31 = vadd.s32 %v1768_v15, %v8192_v5  ;;  %v1380_v41 = vld [vmem:[%s8167_s23 + $0x1e60] sm:$0xff] }
 0x2dc   : > { %6525 = vmatprep.subr.msk.bf16.mxu0 %vm11225_vm11, %v6523_v54  ;;  %7293 = vmatprep.subr.msk.bf16.mxu1 %vm11225_vm11, %v7291_v55  ;;  %v2021_v54 = vadd.s32 %v1765_v39, %v8192_v5  ;;  %v1766_v55 = vadd.s32 1936, %v8196_v7  ;;  %v6559_v27 = vpack.c.bf16 %v1381_v28, %v1377_v35  ;;  %v1396_v15 = vld [vmem:[%s8167_s23 + $0x1ee0] sm:$0xff]  ;;  %v1776_v35 = vadd.s32 2016, %v8196_v7  ;;  %v1406_v39 = vld [vmem:[%s8167_s23 + $0x1f30] sm:$0xff] }
 0x2dd   : > { %vm2276_vm8 = vcmp.lt.s32.totalorder %v2020_v51, 2176  ;;  %v1391_v51 = vld [vmem:[%s8167_s23 + $0x1eb8] sm:$0xff]  ;;  %v1777_v28 = vadd.s32 2024, %v8196_v7 }
 0x2de   : > { %vm2277_vm9 = vcmp.lt.s32.totalorder %v2021_v54, 2176  ;;  %v2022_v10 = vadd.s32 %v1766_v55, %v8192_v5  ;;  %v6562_v54 = vpack.c.bf16 %v1380_v41, %v1376_v40  ;;  %v1409_v40 = vld [vmem:[%s8167_s23 + $0x1f48] sm:$0xff] }
 0x2df   : > { %6528 = vmatpush1.bf16.msk.msra.mxu0 %vm11225_vm11, %v6526_v6  ;;  %7296 = vmatpush1.bf16.msk.msra.mxu1 %vm11225_vm11, %v7294_v42  ;;  %v1362_v6 = vld [vmem:[%s8167_s23 + $0x1dd0] sm:$0xff]  ;;  %vm11352_vm10 = vmpackc.low %vm2277_vm9, %vm2276_vm8  ;;  %v1413_v41 = vld [vmem:[%s8167_s23 + $0x1f68] sm:$0xff] }
 0x2e0   : > { %6531 = vmatprep.subr.msk.bf16.mxu0 %vm11250_vm14, %v6529_v12  ;;  %7299 = vmatprep.subr.msk.bf16.mxu1 %vm11250_vm14, %v7297_v14  ;;  %v1366_v42 = vld [vmem:[%s8167_s23 + $0x1df0] sm:$0xff]  ;;  %v1371_v12 = vld [vmem:[%s8167_s23 + $0x1e18] sm:$0xff]  ;;  %vm2278_vm11 = vcmp.lt.s32.totalorder %v2022_v10, 2176  ;;  %v2029_v10 = vadd.s32 %v1773_v52, %v8192_v5  ;;  %v1408_v52 = vld [vmem:[%s8167_s23 + $0x1f40] sm:$0xff]  ;;  %v6583_v53 = vpack.c.bf16 %v1413_v41, %v1409_v40  ;;  %v4476_v40 = vsub.s32 (!%p5824_p6), 0, %v8196_v7 }
 0x2e1   : > { %v1375_v14 = vld [vmem:[%s8167_s23 + $0x1e38] sm:$0xff]  ;;  %v7318_v18 = vpack.c.bf16 %v1366_v42, %v1362_v6  ;;  %vm11376_vm13 = vmpackc.low %vm2279_vm12, %vm2278_vm11  ;;  %v4480_v41 = vsub.s32 (!%p5824_p6), 1, %v8196_v7 }
 0x2e2   : > { %v7321_v24 = vpack.c.bf16 %v1375_v14, %v1371_v12  ;;  %v1395_v6 = vld [vmem:[%s8167_s23 + $0x1ed8] sm:$0xff]  ;;  %v1392_v14 = vld [vmem:[%s8167_s23 + $0x1ec0] sm:$0xff]  ;;  %vm2285_vm5 = vcmp.lt.s32.totalorder %v2029_v10, 2176 }
 0x2e3   : > { %6534 = vmatpush1.bf16.msk.msra.mxu0 %vm11250_vm14, %v6532_v25  ;;  %7302 = vmatpush1.bf16.msk.msra.mxu1 %vm11250_vm14, %v7300_v26  ;;  %v1370_v25 = vld [vmem:[%s8167_s23 + $0x1e10] sm:$0xff]  ;;  %vm2280_vm14 = vcmp.lt.s32.totalorder %v2024_v31, 2176  ;;  %v1399_v42 = vld [vmem:[%s8167_s23 + $0x1ef8] sm:$0xff]  ;;  %v1400_v31 = vld [vmem:[%s8167_s23 + $0x1f00] sm:$0xff] }
 0x2e4   : > { %6537 = vmatprep.subr.msk.bf16.mxu0 %vm11289_vm1, %v6535_v32  ;;  %7305 = vmatprep.subr.msk.bf16.mxu1 %vm11289_vm1, %v7303_v19  ;;  %v1374_v26 = vld [vmem:[%s8167_s23 + $0x1e30] sm:$0xff]  ;;  %v2025_v32 = vadd.s32 %v1769_v16, %v8192_v5  ;;  %v1770_v19 = vadd.s32 1968, %v8196_v7 }
 0x2e5   : > { %v7324_v38 = vpack.c.bf16 %v1374_v26, %v1370_v25  ;;  %v1394_v16 = vld [vmem:[%s8167_s23 + $0x1ed0] sm:$0xff]  ;;  %v1403_v25 = vld [vmem:[%s8167_s23 + $0x1f18] sm:$0xff] }
 0x2e6   : > { %vm2281_vm15 = vcmp.lt.s32.totalorder %v2025_v32, 2176  ;;  %v2026_v34 = vadd.s32 %v1770_v19, %v8192_v5  ;;  %v1407_v26 = vld [vmem:[%s8167_s23 + $0x1f38] sm:$0xff]  ;;  %v1404_v32 = vld [vmem:[%s8167_s23 + $0x1f20] sm:$0xff]  ;;  %v1402_v19 = vld [vmem:[%s8167_s23 + $0x1f10] sm:$0xff] }
 0x2e7   : > { %6540 = vmatpush1.bf16.msk.msra.mxu0 %vm11289_vm1, %v6538_v43  ;;  %7308 = vmatpush1.bf16.msk.msra.mxu1 %vm11289_vm1, %v7306_v44  ;;  %v7327_v43 = vpack.c.bf16 %v1383_v30, %v1379_v29  ;;  %v1378_v44 = vld [vmem:[%s8167_s23 + $0x1e50] sm:$0xff]  ;;  %vm11414_vm0 = vmpackc.low %vm2281_vm15, %vm2280_vm14  ;;  %v6574_v29 = vpack.c.bf16 %v1396_v15, %v1392_v14  ;;  %v1427_v14 = vld [vmem:[%s8167_s23 + $0x1fd8] sm:$0xff] }
 0x2e8   : > { %6543 = vmatprep.subr.msk.bf16.mxu0 %vm11315_vm6, %v6541_v47  ;;  %7311 = vmatprep.subr.msk.bf16.mxu1 %vm11315_vm6, %v7309_v2  ;;  %v1382_v47 = vld [vmem:[%s8167_s23 + $0x1e70] sm:$0xff]  ;;  %v1772_v2 = vadd.s32 1984, %v8196_v7  ;;  %vm2282_vm1 = vcmp.lt.s32.totalorder %v2026_v34, 2176  ;;  %v1412_v34 = vld [vmem:[%s8167_s23 + $0x1f60] sm:$0xff]  ;;  %v1431_v15 = vld [vmem:[%s8167_s23 + $0x1ff8] sm:$0xff] }
 0x2e9   : > { %v7330_v55 = vpack.c.bf16 %v1382_v47, %v1378_v44  ;;  %vm11440_vm3 = vmpackc.low %vm2283_vm2, %vm2282_vm1  ;;  %v2032_v44 = vadd.s32 %v1776_v35, %v8192_v5  ;;  %v2033_v47 = vadd.s32 %v1777_v28, %v8192_v5  ;;  %v1465_v28 = vadd.s32 %v8192_v5, %v1447_v20 }
 0x2ea   : > { %v2028_v8 = vadd.s32 %v1772_v2, %v8192_v5 }
 0x2eb   : > { %6546 = vmatpush1.bf16.msk.msra.mxu0 %vm11315_vm6, %v6544_v59  ;;  %7314 = vmatpush1.bf16.msk.msra.mxu1 %vm11315_vm6, %v7312_v60  ;;  %v7333_v59 = vpack.c.bf16 %v1391_v51, %v1387_v50  ;;  %v1390_v60 = vld [vmem:[%s8167_s23 + $0x1eb0] sm:$0xff]  ;;  %v6580_v50 = vpack.c.bf16 %v1404_v32, %v1400_v31  ;;  %v7348_v51 = vpack.c.bf16 %v1406_v39, %v1402_v19  ;;  %vm2289_vm11 = vcmp.lt.s32.totalorder %v2033_v47, 2176  ;;  %v3316_v31 = vld [vmem:[#allocation2] sm:$0xff] }
 0x2ec   : > { %6549 = vmatprep.subr.msk.bf16.mxu0 %vm11327_vm7, %v6547_v61  ;;  %7317 = vmatprep.subr.msk.bf16.mxu1 %vm11327_vm7, %v7315_v4  ;;  %v1393_v61 = vld [vmem:[%s8167_s23 + $0x1ec8] sm:$0xff]  ;;  %v7336_v1 = vpack.c.bf16 %v1390_v60, %v1386_v58  ;;  %vm2284_vm4 = vcmp.lt.s32.totalorder %v2028_v8, 2176  ;;  %v2034_v60 = vadd.s32 %v1778_v48, %v8192_v5  ;;  %v1420_v4 = vld [vmem:[%s8167_s23 + $0x1fa0] sm:$0xff] }
 0x2ed   : > { %v6571_v12 = vpack.c.bf16 %v1397_v62, %v1393_v61  ;;  %vm11461_vm6 = vmpackc.low %vm2285_vm5, %vm2284_vm4  ;;  %v1421_v58 = vld [vmem:[%s8167_s23 + $0x1fa8] sm:$0xff]  ;;  %v2035_v61 = vadd.s32 %v1779_v49, %v8192_v5  ;;  %v6586_v62 = vpack.c.bf16 %v1412_v34, %v1408_v52  ;;  %v4497_v47 = vld [vmem:[%s8180_s8 + $0x8] sm:$0xff] (!%p5824_p6) }
 0x2ee   : > { %v3317_v19 = vld [vmem:[#allocation2 + $0x8] sm:$0xff] }
 0x2ef   : > { %6552 = vmatpush1.bf16.msk.msra.mxu0 %vm11327_vm7, %v6550_v17  ;;  %7320 = vmatpush1.bf16.msk.msra.mxu1 %vm11327_vm7, %v7318_v18  ;;  %v7339_v17 = vpack.c.bf16 %v1399_v42, %v1395_v6  ;;  %v1398_v18 = vld [vmem:[%s8167_s23 + $0x1ef0] sm:$0xff]  ;;  %vm2286_vm7 = vcmp.lt.s32.totalorder %v2030_v22, 2176  ;;  %v6589_v42 = vpack.c.bf16 %v1421_v58, %v1417_v57  ;;  %vm2291_vm14 = vcmp.lt.s32.totalorder %v2035_v61, 2176 }
 0x2f0   : > { %6555 = vmatprep.subr.msk.bf16.mxu0 %vm11352_vm10, %v6553_v23  ;;  %7323 = vmatprep.subr.msk.bf16.mxu1 %vm11352_vm10, %v7321_v24  ;;  %v2031_v23 = vadd.s32 %v1775_v0, %v8192_v5  ;;  %v7342_v30 = vpack.c.bf16 %v1398_v18, %v1394_v16  ;;  %v1416_v0 = vld [vmem:[%s8167_s23 + $0x1f80] sm:$0xff]  ;;  %v1418_v6 = vld [vmem:[%s8167_s23 + $0x1f90] sm:$0xff]  ;;  %v7363_v22 = vpack.c.bf16 %v1431_v15, %v1427_v14 }
 0x2f1   : > { %v6592_v16 = vpack.c.bf16 %v1420_v4, %v1416_v0  ;;  %v1424_v18 = vld [vmem:[%s8167_s23 + $0x1fc0] sm:$0xff]  ;;  %v1426_v24 = vld [vmem:[%s8167_s23 + $0x1fd0] sm:$0xff]  ;;  %v4521_v58 = vcombine.high (!%p5824_p6), %v4497_v47, %v4497_v47 }
 0x2f2   : > { %vm2287_vm8 = vcmp.lt.s32.totalorder %v2031_v23, 2176  ;;  %v1428_v23 = vld [vmem:[%s8167_s23 + $0x1fe0] sm:$0xff] }
 0x2f3   : > { %6558 = vmatpush1.bf16.msk.msra.mxu0 %vm11352_vm10, %v6556_v37  ;;  %7326 = vmatpush1.bf16.msk.msra.mxu1 %vm11352_vm10, %v7324_v38  ;;  %v7345_v38 = vpack.c.bf16 %v1407_v26, %v1403_v25  ;;  %vm11478_vm9 = vmpackc.low %vm2287_vm8, %vm2286_vm7  ;;  %vm2288_vm10 = vcmp.lt.s32.totalorder %v2032_v44, 2176  ;;  %v1430_v25 = vld [vmem:[%s8167_s23 + $0x1ff0] sm:$0xff]  ;;  %v6598_v26 = vpack.c.bf16 %v1428_v23, %v1424_v18  ;;  %v4496_v44 = vld [vmem:[%s8180_s8] sm:$0xff] (!%p5824_p6) }
 0x2f4   : > { %6561 = vmatprep.subr.msk.bf16.mxu0 %vm11376_vm13, %v6559_v27  ;;  %7329 = vmatprep.subr.msk.bf16.mxu1 %vm11376_vm13, %v7327_v43  ;;  %v1411_v27 = vld [vmem:[%s8167_s23 + $0x1f58] sm:$0xff]  ;;  %vm11509_vm12 = vmpackc.low %vm2289_vm11, %vm2288_vm10  ;;  %v7366_v35 = vpack.c.bf16 %v1430_v25, %v1426_v24 }
 0x2f5   : > { %v1415_v43 = vld [vmem:[%s8167_s23 + $0x1f78] sm:$0xff] }
 0x2f7   : > { %6564 = vmatpush1.bf16.msk.msra.mxu0 %vm11376_vm13, %v6562_v54  ;;  %7332 = vmatpush1.bf16.msk.msra.mxu1 %vm11376_vm13, %v7330_v55  ;;  %v7351_v54 = vpack.c.bf16 %v1415_v43, %v1411_v27  ;;  %v1410_v55 = vld [vmem:[%s8167_s23 + $0x1f50] sm:$0xff]  ;;  %vm2290_vm13 = vcmp.lt.s32.totalorder %v2034_v60, 2176  ;;  %v4484_v27 = vsub.s32 (!%p5824_p6), 2, %v8196_v7  ;;  %v4488_v43 = vsub.s32 (!%p5824_p6), 3, %v8196_v7 }
 0x2f8   : > { %6567 = vmatprep.subr.msk.bf16.mxu0 %vm11414_vm0, %v6565_v46  ;;  %7335 = vmatprep.subr.msk.bf16.mxu1 %vm11414_vm0, %v7333_v59  ;;  %v1419_v46 = vld [vmem:[%s8167_s23 + $0x1f98] sm:$0xff]  ;;  %v7354_v63 = vpack.c.bf16 %v1414_v56, %v1410_v55  ;;  %vm6596_vm15 = vmpackc.low %vm2291_vm14, %vm2290_vm13 }
 0x2f9   : > { %v1423_v59 = vld [vmem:[%s8167_s23 + $0x1fb8] sm:$0xff] }
 0x2fa   : > { %v7357_v10 = vpack.c.bf16 %v1423_v59, %v1419_v46 }
 0x2fb   : > { %6570 = vmatpush1.bf16.msk.msra.mxu0 %vm11414_vm0, %v6568_v11  ;;  %7338 = vmatpush1.bf16.msk.msra.mxu1 %vm11414_vm0, %v7336_v1  ;;  %v1422_v11 = vld [vmem:[%s8167_s23 + $0x1fb0] sm:$0xff]  ;;  %v1425_v1 = vld [vmem:[%s8167_s23 + $0x1fc8] sm:$0xff]  ;;  %vm1481_vm0 = vcmp.lt.s32.totalorder %v1465_v28, 2176 }
 0x2fc   : > { %6573 = vmatprep.subr.msk.bf16.mxu0 %vm11440_vm3, %v6571_v12  ;;  %7341 = vmatprep.subr.msk.bf16.mxu1 %vm11440_vm3, %v7339_v17  ;;  %v1429_v12 = vld [vmem:[%s8167_s23 + $0x1fe8] sm:$0xff]  ;;  %v7360_v17 = vpack.c.bf16 %v1422_v11, %v1418_v6 }
 0x2fd   : > { %v6595_v21 = vpack.c.bf16 %v1429_v12, %v1425_v1 }
 0x2ff   : > { %6576 = vmatpush1.bf16.msk.msra.mxu0 %vm11440_vm3, %v6574_v29  ;;  %7344 = vmatpush1.bf16.msk.msra.mxu1 %vm11440_vm3, %v7342_v30  ;;  %vm4533_vm3 = vcmask (!%p5824_p6), 1043456  }
 0x300   : > { %6579 = vmatprep.subr.msk.bf16.mxu0 %vm11461_vm6, %v6577_v36  ;;  %7347 = vmatprep.subr.msk.bf16.mxu1 %vm11461_vm6, %v7345_v38 }
 0x303   : > { %6582 = vmatpush1.bf16.msk.msra.mxu0 %vm11461_vm6, %v6580_v50  ;;  %7350 = vmatpush1.bf16.msk.msra.mxu1 %vm11461_vm6, %v7348_v51  ;;  %v4499_v50 = vstv (!%p5824_p6), %s5825_s4  ;;  %v4520_v51 = vcombine.high (!%p5824_p6), %v4496_v44, %v4496_v44  ;;  %vm4544_vm6 = vcmask (!%p5824_p6), 3072  }
 0x304   : > { %6585 = vmatprep.subr.msk.bf16.mxu0 %vm11478_vm9, %v6583_v53  ;;  %7353 = vmatprep.subr.msk.bf16.mxu1 %vm11478_vm9, %v7351_v54  ;;  %v4500_v53 = vadd.s32 (!%p5824_p6), %v4499_v50, %v8412_v45  ;;  %v4501_v54 = vadd.s32 (!%p5824_p6), %v4499_v50, %v8443_v3  ;;  %v4502_v57 = vadd.s32 (!%p5824_p6), %v4499_v50, %v9000_v13 }
 0x305   : > { %v4503_v7 = vadd.s32 (!%p5824_p6), %v4499_v50, %v8764_v33  ;;  %v4546_v50 = vld [vmem:[#allocation4] sm:$0xf] (!%p5824_p6) }
 0x306   : > { %vm4504_vm1 = vcmp.lt.s32.totalorder (!%p5824_p6), %v4500_v53, 640  ;;  %vm4505_vm2 = vcmp.lt.s32.totalorder (!%p5824_p6), %v4501_v54, 640  ;;  %vm4506_vm4 = vcmp.lt.s32.totalorder (!%p5824_p6), %v4502_v57, 640 }
 0x307   : > { %6588 = vmatpush1.bf16.msk.msra.mxu0 %vm11478_vm9, %v6586_v62  ;;  %7356 = vmatpush1.bf16.msk.msra.mxu1 %vm11478_vm9, %v7354_v63  ;;  %vm4507_vm5 = vcmp.lt.s32.totalorder (!%p5824_p6), %v4503_v7, 640  ;;  %v4524_v60 = vsel (!%p5824_p6), %vm4504_vm1, %v4496_v44, 0.0  ;;  %v4525_v45 = vsel (!%p5824_p6), %vm4505_vm2, %v4520_v51, 0.0  ;;  %v4526_v62 = vsel (!%p5824_p6), %vm4506_vm4, %v4497_v47, 0.0 }
 0x308   : > { %6591 = vmatprep.subr.msk.bf16.mxu0 %vm11509_vm12, %v6589_v42  ;;  %7359 = vmatprep.subr.msk.bf16.mxu1 %vm11509_vm12, %v7357_v10  ;;  %v4527_v3 = vsel (!%p5824_p6), %vm4507_vm5, %v4521_v58, 0.0  ;;  %v4563_v13 = vmul.f32 (!%p5824_p6), %v4524_v60, %v4524_v60  ;;  %v4564_v4 = vmul.f32 (!%p5824_p6), %v4525_v45, %v4525_v45  ;;  %v4565_v8 = vmul.f32 (!%p5824_p6), %v4526_v62, %v4526_v62 }
 0x309   : > { %v4566_v1 = vmul.f32 (!%p5824_p6), %v4527_v3, %v4527_v3 }
 0x30a   : > { %v4567_v12 = vsel (!%p5824_p6), %vm4533_vm3, %v4563_v13, 0.0 }
 0x30b   : > { %6594 = vmatpush1.bf16.msk.msra.mxu0 %vm11509_vm12, %v6592_v16  ;;  %7362 = vmatpush1.bf16.msk.msra.mxu1 %vm11509_vm12, %v7360_v17  ;;  %v4568_v17 = vsel (!%p5824_p6), %vm4533_vm3, %v4564_v4, 0.0  ;;  %v4572_v24 = vsel (!%p5824_p6), %vm4533_vm3, %v4566_v1, 0.0 }
 0x30c   : > { %6597 = vmatprep.subr.msk.bf16.mxu0 %vm6596_vm15, %v6595_v21  ;;  %7365 = vmatprep.subr.msk.bf16.mxu1 %vm6596_vm15, %v7363_v22  ;;  %v4569_v21 = vadd.f32 (!%p5824_p6), %v4568_v17, %v4567_v12  ;;  %v4570_v22 = vsel (!%p5824_p6), %vm4533_vm3, %v4565_v8, 0.0 }
 0x30e   : > { %v4571_v28 = vadd.f32 (!%p5824_p6), %v4570_v22, %v4569_v21 }
 0x30f   : > { %6600 = vmatpush1.bf16.msk.msra.mxu0 %vm6596_vm15, %v6598_v26  ;;  %7368 = vmatpush1.bf16.msk.msra.mxu1 %vm6596_vm15, %v7366_v35 }
 0x312   : > { %5295 = vmatmul.mubr.msk.f32.vlgmr.msra.gmra.mrb[0].mxu0 %vm1481_vm0, %v11158_v9  ;;  %5823 = vmatmul.mubr.msk.f32.vlgmr.msra.gmra.mrb[0].mxu1 %vm1481_vm0, %v11158_v9  ;;  %v4472_v9 = vld [vmem:[%s8174_s13] sm:$0xf] (!%p5824_p6) }
 0x313   : > { %v4477_v48 = vrot.slane (!%p5824_p6), %v4472_v9, %v4476_v40  ;;  %v4481_v49 = vrot.slane (!%p5824_p6), %v4472_v9, %v4480_v41  ;;  %v4485_v52 = vrot.slane (!%p5824_p6), %v4472_v9, %v4484_v27  ;;  %v4489_v34 = vrot.slane (!%p5824_p6), %v4472_v9, %v4488_v43  ;;  %v4562_v27 = vld [vmem:[#allocation5] sm:$0xf] (!%p5824_p6)  ;;  %v4528_v43 = vld [vmem:[#allocation3] sm:$0xf] (!%p5824_p6) }
 0x315   : > { %v4490_v56 = vcombine.low (!%p5824_p6), %v4477_v48, %v4481_v49  ;;  %v4491_v46 = vcombine.low (!%p5824_p6), %v4485_v52, %v4489_v34 }
 0x3e5   : > { %v3881_v29 = vpop.f32.mrb[0].mxu0  ;;  %v4449_v30 = vpop.f32.mrb[0].mxu1  ;;  %4469 = sbr.rel (%p5824_p6) target bundleno = 1174 (0x496), region = 64 }
 0x3e6   : > { %v3883_v32 = vpop.f32.mrb[1].mxu0  ;;  %v4451_v36 = vpop.f32.mrb[1].mxu1 }
 0x3e7   : > { %v4458_v37 = vcombine.low %v3881_v29, %v3883_v32  ;;  %v4459_v38 = vcombine.low %v4449_v30, %v4451_v36 }
 0x3e9   : > { %v4462_v39 = vadd.f32 %v4458_v37, %v3316_v31  ;;  %v4463_v5 = vadd.f32 %v4459_v38, %v3317_v19  ;;  %v4573_v37 = vadd.f32 (!%p5824_p6), %v4572_v24, %v4571_v28 }
 0x3eb   : > { %4464 = vst [vmem:[#allocation2] sm:$0xff] %v4462_v39  ;;  %4465 = vst [vmem:[#allocation2 + $0x8] sm:$0xff] %v4463_v5  ;;  %4574 = vadd.xlane.f32.xlu1 (!%p5824_p6), %v4573_v37 }
 0x3f2   : > { %v4470_v2 = vld [vmem:[#allocation2] sm:$0xff]  ;;  %v4471_v55 = vld [vmem:[#allocation2 + $0x8] sm:$0xff] }
 0x3f3   : > { %v4494_v59 = vadd.f32 %v4490_v56, %v4470_v2  ;;  %v4495_v61 = vadd.f32 %v4491_v46, %v4471_v55 }
 0x3f5   : > { %v4510_v63 = vcombine.high %v4494_v59, %v4494_v59  ;;  %v4514_v0 = vsel %vm4504_vm1, %v4494_v59, 0.0  ;;  %v4511_v33 = vcombine.high %v4495_v61, %v4495_v61  ;;  %v4516_v6 = vsel %vm4506_vm4, %v4495_v61, 0.0 }
 0x3f6   : > { %v4529_v42 = vmul.f32 %v4524_v60, %v4514_v0  ;;  %v4531_v11 = vmul.f32 %v4526_v62, %v4516_v6  ;;  %v4547_v25 = vmul.f32 %v4514_v0, %v4514_v0  ;;  %v4549_v29 = vmul.f32 %v4516_v6, %v4516_v6 }
 0x3f7   : > { %v4515_v10 = vsel %vm4505_vm2, %v4510_v63, 0.0  ;;  %v4517_v14 = vsel %vm4507_vm5, %v4511_v33, 0.0 }
 0x3f8   : > { %v4530_v15 = vmul.f32 %v4525_v45, %v4515_v10  ;;  %v4534_v16 = vsel %vm4533_vm3, %v4529_v42, 0.0  ;;  %v4532_v18 = vmul.f32 %v4527_v3, %v4517_v14  ;;  %v4537_v20 = vsel %vm4533_vm3, %v4531_v11, 0.0 }
 0x3f9   : > { %v4548_v26 = vmul.f32 %v4515_v10, %v4515_v10  ;;  %v4550_v31 = vmul.f32 %v4517_v14, %v4517_v14  ;;  %v4551_v32 = vsel %vm4533_vm3, %v4547_v25, 0.0  ;;  %v4554_v39 = vsel %vm4533_vm3, %v4549_v29, 0.0 }
 0x3fa   : > { %v4535_v23 = vsel %vm4533_vm3, %v4530_v15, 0.0  ;;  %v4539_v30 = vsel %vm4533_vm3, %v4532_v18, 0.0 }
 0x3fb   : > { %v4536_v35 = vadd.f32 %v4535_v23, %v4534_v16  ;;  %v4552_v19 = vsel %vm4533_vm3, %v4548_v26, 0.0  ;;  %v4556_v5 = vsel %vm4533_vm3, %v4550_v31, 0.0 }
 0x3fc   : > { %v4553_v38 = vadd.f32 %v4552_v19, %v4551_v32 }
 0x3fd   : > { %v4538_v36 = vadd.f32 %v4537_v20, %v4536_v35 }
 0x3fe   : > { %v4555_v40 = vadd.f32 %v4554_v39, %v4553_v38 }
 0x3ff   : > { %v4540_v9 = vadd.f32 %v4539_v30, %v4538_v36 }
 0x400   : > { %v4557_v41 = vadd.f32 %v4556_v5, %v4555_v40 }
 0x401   : > { %4541 = vadd.xlane.f32.xlu0 %v4540_v9 }
 0x405   : > { %4558 = vadd.xlane.f32.xlu0 %v4557_v41 }
 0x478   : > { %v4575_v44 = vpop.xlane.xlu1 %4574 }
 0x479   : > { %v4576_v47 = vadd.f32 %v4575_v44, %v4562_v27 }
 0x47b   : > { %4577 = vst.msk [vmem:[#allocation5] sm:$0xf] %vm4544_vm6, %v4576_v47 }
 0x48e   : > { %v4542_v48 = vpop.xlane.xlu0 %4541 }
 0x48f   : > { %v4543_v49 = vadd.f32 %v4542_v48, %v4528_v43 }
 0x491   : > { %4545 = vst.msk [vmem:[#allocation3] sm:$0xf] %vm4544_vm6, %v4543_v49 }
 0x492   : > { %v4559_v51 = vpop.xlane.xlu0 %4558 }
 0x493   : > { %v4560_v2 = vadd.f32 %v4559_v51, %v4546_v50 }
 0x495   : > { %4561 = vst.msk [vmem:[#allocation4] sm:$0xf] %vm4544_vm6, %v4560_v2 }
 0x496 PF: > { %s11942_s21 = sld [smem:[#allocation22_spill]] }
 0x49c   : > { %p4578_p8 = scmp.eq.s32.totalorder %s11942_s21, 1 }
 0x49e   : > { %p4579_p4 = pnand %p4578_p8, %p4466_p10 }
 0x49f   : > { %v4584_v52 = vld [vmem:[#allocation4] sm:$0xf] (!%p4579_p4)  ;;  %v4585_v34 = vld [vmem:[#allocation5] sm:$0xf] (!%p4579_p4)  ;;  %v4583_v56 = vld [vmem:[#allocation3] sm:$0xf] (!%p4579_p4) }
 0x4a0   : > { %4582 = sbr.rel (%p4579_p4) target bundleno = 1202 (0x4b2), region = 68  ;;  %v4586_v53 = vmax.f32 (!%p4579_p4), %v4584_v52, 1e-16  ;;  %v4587_v54 = vmax.f32 (!%p4579_p4), %v4585_v34, 1e-16  ;;  %vm4591_vm7 = vcmask (!%p4579_p4), 3072  }
 0x4a2   : > { %v4588_v55 = vmul.f32 (!%p4579_p4), %v4587_v54, %v4586_v53 }
 0x4a4   : > { %7535 = vrsqrt.f32 (!%p4579_p4), %v4588_v55 }
 0x4ae   : > { %v7536_v57 = vpop.eup %7535 }
 0x4af   : > { %v4590_v7 = vmul.f32 %v7536_v57, %v4583_v56 }
 0x4b1   : > { %4592 = vst.msk [vmem:[#allocation14] sm:$0xf] %vm4591_vm7, %v4590_v7 }
 0x4b2 PF: > { %p7406_p12 = scmp.eq.s32.totalorder %s7910_s29, 3  ;;  %s7815_s12 = smov [#allocation14]  }
 0x4b3   : > { %s4600_s30 = sshll.u32 %s7815_s12, 4  ;;  %s4601_s30 = int_to_ptr.vmem [resolvable:$true] %s4600_s30 }
 0x4b4   : > { %s7649_s15 = scalar_lea.vmem %s4601_s30, 64  ;;  %p7656_p13 = scmp.lt.s32.totalorder %s4601_s30, %s4601_s30 }
 0x4b5   : > { %p7650_p5 = scmp.ne.s32.totalorder %s4601_s30, %s7649_s15  ;;  %p7657_p3 = scmp.lt.s32.totalorder %s7649_s15, %s7649_s15 }
 0x4b7   : > { %p7651_p1 = pnand %p7650_p5, %p7406_p12  ;;  %p7658_p9 = por %p7657_p3, %p7656_p13 }
 0x4b9   : > { %p7652_p11 = pneg %p7651_p1 }
 0x4bb   : > { %p7659_p2 = pnand %p7658_p9, %p7652_p11 }
 0x4bd   : > { %7662 = shalt.err (!%p7659_p2)
}
 0x4be   : > { %s11944_s25 = sld [smem:[#allocation31_spill]] }
 0x4c4   : > { %s11945_s14 = smov %s11944_s25  ;;  %s7663_s13 = scalar_lea.hbm %s11944_s25, 64 }
 0x4c5   : > { %p7664_p0 = scmp.ne.s32.totalorder %s11945_s14, %s7663_s13  ;;  %p7669_p6 = scmp.lt.u32.totalorder %s7663_s13, %s11945_s14 }
 0x4c7   : > { %p7665_p7 = pnand %p7664_p0, %p7406_p12 }
 0x4c9   : > { %p7666_p10 = pneg %p7665_p7 }
 0x4cb   : > { %p7671_p8 = pnand %p7669_p6, %p7666_p10 }
 0x4cd   : > { %7674 = shalt.err (!%p7671_p8)
}
 0x4ce   : > { %7403 = dma.vmem_to_hbm [thread:$0]  (%p7406_p12), %s4601_s30, 64, %s11945_s14, [#allocation8]  }
 0x4cf   : > { %7748 = dma.done.wait (%p7406_p12), [#allocation8], 64  }
 0x4d0   : > { %7750 = vsyncadd (%p7406_p12), [#allocation8], 4294967232 }
 0x4d1 PF: > { %s24_s28 = sadd.s32 1, %s7805_s28   ;;  %s11947_s7 = sld [smem:[#allocation28_spill]] }
 0x4d2   : > { %p11596_p4 = scmp.ge.s32.totalorder %s24_s28, 6   ;;  %s11948_s4 = sld [smem:[#allocation27_spill]] }
 0x4d3   : > { %s11949_s26 = sld [smem:[#allocation20_spill]]  ;;  %s11950_s23 = sld [smem:[#allocation26_spill]] }
 0x4d4   : > { %s11951_s24 = sld [smem:[#allocation23_spill]]  ;;  %s11952_s29 = sld [smem:[#allocation24_spill]] }
 0x4d5   : > { %s11953_s12 = sld [smem:[#allocation25_spill]]  ;;  %s11954_s15 = smov %s7757_s16 }
 0x4d6   : > { %s11955_s16 = smov %s7761_s17  ;;  %s11957_s18 = smov %s7769_s19 }
 0x4d7   : > { %s11956_s17 = smov %s11947_s7  ;;  %s11958_s19 = smov %s7773_s20 }
 0x4d8   : > { %s11959_s20 = smov %s11948_s4  ;;  %s11960_s21 = smov %s7781_s22 }
 0x4d9   : > { %s11961_s22 = smov %s11949_s26  ;;  %s11962_s25 = smov %s7801_s27 }
 0x4da   : > { %s11963_s26 = smov %s11952_s29  ;;  %23 = sbr.rel (!%p11596_p4) target bundleno = 16 (0x10), region = 126 }
 0x4db   : > { %s11964_s27 = smov %s11953_s12 }
 0x4e1   :  { %4613 = vsyncpa [#allocation7], 1 }
 0x4e2   :  { %4615 = vsyncpa [#allocation7 + $0x1], 1 }
 0x4e3   :  { %4616 = vsyncpa [#allocation10], 1 }
 0x4e4   :  { %4618 = vsyncpa [#allocation10 + $0x1], 1 }
 0x4e5   :  { %4619 = vsyncpa [#allocation13], 1 }
 0x4e6   :  { %4621 = vsyncpa [#allocation13 + $0x1], 1 }
 0x4e7   :  { %4622 = vsyncpa [#allocation8], 1 }
 0x4e8   :  { %4624 = vsyncpa [#allocation8 + $0x1], 1 }

</bundles_post_ra>
